<compile_context>
chip_gen: v7x
topology: tpu7x:2x2x1
jax: 0.10.0
libtpu: 0.0.40
codegen_flags: <defaults>
</compile_context>

<pallas_src>
import functools

import numpy as np
import jax
import jax.numpy as jnp
from jax import lax
from jax.experimental import pallas as pl
from jax.experimental.pallas import tpu as pltpu

_EPS = 1e-5


# ----------------------------------------------------------------------------
# the fused Pallas kernel (one grid step == one batch block of bb images)
# ----------------------------------------------------------------------------
def _kw_block_kernel(xph_ref,
                     w1_ref, w2sc_ref, w3_ref, w4_ref,
                     s1sh1_ref, sh234_ref,
                     tapmask_ref, e_h_ref, e_w_ref,
                     wc1_ref, bc1_ref, wc2_ref, bc2_ref,
                     wtt_ref, bt_ref,
                     wf1t_ref, bf1_ref, wf2t_ref, bf2_ref,
                     abg_ref,
                     out_ref, *, h_out, w_out, bb):
    f32 = jnp.float32
    bf16 = jnp.bfloat16
    hw = h_out * w_out
    m = bb * hw

    tapmask = tapmask_ref[...]                       # (m, 9) grid-invariant const

    def tap(act, sy, sx):
        # `act` spatially shifted by (sy, sx) on the (h_out, w_out) grid with
        # zero fill: a sublane roll (XLU) + precomputed (m, 1) edge mask.
        # Cross-batch / wrap-around rows are always invalid, so the mask also
        # guards the batch-stacked layout.
        s = sy * w_out + sx
        t = act if s == 0 else pltpu.roll(act, shift=(-s) % m, axis=0)
        if (sy, sx) == (0, 0):
            return t
        k = (sy + 1) * 3 + (sx + 1)
        return t * tapmask[:, k:k + 1]

    def conv3x3(act, w_ref, extra=None):
        # One im2col-in-VMEM dot: 9 rolled+masked taps concatenated along the
        # lane axis -> single (m, 9*C [+Cx]) @ (9*C [+Cx], Cout) bf16 MXU dot.
        taps = [tap(act, dy - 1, dx - 1) for dy in range(3) for dx in range(3)]
        if extra is not None:
            taps.append(extra)
        cat = jnp.concatenate(taps, axis=-1).astype(bf16)
        return jnp.dot(cat, w_ref[...], preferred_element_type=f32)

    # ---------------- bn1 on the four stride-2 phases of the input ----------
    s1 = s1sh1_ref[0:1, :]
    sh1 = s1sh1_ref[1:2, :]
    xph = xph_ref[...]                               # (bb, 4, hw, cin)
    cin = xph.shape[-1]
    bn1 = [xph[:, k].reshape(m, cin) * s1 + sh1 for k in range(4)]
    rl1 = [jnp.maximum(v, 0.0) for v in bn1]

    # ---------------- conv1 (3x3, stride 2, same pad) -> bn2 -> relu --------
    # stride-2 conv on the phase-split input == stride-1 taps on the phases
    taps1 = []
    for dy in range(3):
        phy, qy = (1, -1) if dy == 0 else ((0, 0) if dy == 1 else (1, 0))
        for dx in range(3):
            phx, qx = (1, -1) if dx == 0 else ((0, 0) if dx == 1 else (1, 0))
            taps1.append(tap(rl1[phy * 2 + phx], qy, qx))
    cat1 = jnp.concatenate(taps1, axis=-1).astype(bf16)
    r1 = jnp.maximum(
        jnp.dot(cat1, w1_ref[...], preferred_element_type=f32) + sh234_ref[0:1, :],
        0.0)                                         # (m, planes)

    # ---------------- skip: 2x2 maxpool(bn1) == max of the four phases ------
    mp = jnp.maximum(jnp.maximum(bn1[0], bn1[1]), jnp.maximum(bn1[2], bn1[3]))

    # ---------------- conv2 + 1x1 skip conv fused into ONE dot -> bn3 -------
    skip2 = conv3x3(r1, w2sc_ref, extra=mp) + sh234_ref[1:2, :]

    # ---------------- relu -> conv3 -> bn4 -> relu -> conv4 -----------------
    r3 = jnp.maximum(conv3x3(jnp.maximum(skip2, 0.0), w3_ref) + sh234_ref[2:3, :],
                     0.0)
    c4 = conv3x3(r3, w4_ref)                         # (m, planes) f32
    planes = c4.shape[-1]

    # ---------------- MDAM attention + residual add (per batch element) -----
    c4_3 = c4.reshape(bb, hw, planes)
    sk_3 = skip2.reshape(bb, hw, planes)

    def elu(z):
        return jnp.where(z > 0, z, jnp.exp(z) - 1.0)

    def sig(z):
        return 1.0 / (1.0 + jnp.exp(-z))

    def small_fc(v, w):                              # (bb, K) x (K, N) -> (bb, N)
        # tiny FC layers stay on the VPU (broadcast-multiply + sublane reduce)
        return jnp.sum(v[:, :, None] * w[None, :, :], axis=1)

    # channel attention: global max over (H, W)
    cg = jnp.max(c4_3, axis=1)                                            # (bb, C)
    catt = sig(small_fc(elu(small_fc(cg, wc1_ref[...]) + bc1_ref[...]),
                        wc2_ref[...]) + bc2_ref[...])                     # (bb, C)

    e_h = e_h_ref[...]                                                    # (hw, H)
    e_w = e_w_ref[...]                                                    # (hw, W)

    # temporal attention: mean over (W, C) per output row
    rowsum = jnp.sum(c4_3, axis=2, keepdims=True)                         # (bb, hw, 1)
    tg = jnp.sum(rowsum * e_h[None], axis=1) * (1.0 / (w_out * planes))   # (bb, H)
    tatt = sig(small_fc(tg, wtt_ref[...]) + bt_ref[...])                  # (bb, H)
    texp = jnp.sum(e_h[None] * tatt[:, None, :], axis=2, keepdims=True)   # (bb, hw, 1)

    # frequency attention: max over (H, C) per output column
    rowmax = jnp.max(c4_3, axis=2, keepdims=True)                         # (bb, hw, 1)
    fg = jnp.max(jnp.where(e_w[None] > 0.5, rowmax, -1e30), axis=1)       # (bb, W)
    fatt = sig(small_fc(elu(small_fc(fg, wf1t_ref[...]) + bf1_ref[...]),
                        wf2t_ref[...]) + bf2_ref[...])                    # (bb, W)
    fexp = jnp.sum(e_w[None] * fatt[:, None, :], axis=2, keepdims=True)   # (bb, hw, 1)

    alpha = abg_ref[0]
    beta = abg_ref[1]
    gamma = abg_ref[2]
    mult = alpha * catt[:, None, :] + beta * texp + gamma * fexp          # (bb, hw, C)
    out_ref[...] = c4_3 * mult + sk_3


# ----------------------------------------------------------------------------
# forward-pass wrapper (plain-JAX glue: transpose, BN fold, phase split)
# ----------------------------------------------------------------------------
def kw_upper_block_forward(x_nchw, p):
    x = jnp.transpose(x_nchw, (0, 2, 3, 1)).astype(jnp.float32)   # NCHW -> NHWC
    b, h, w, cin = x.shape
    assert h % 2 == 0 and w % 2 == 0, "phase decomposition assumes even H, W"
    ho, wo = h // 2, w // 2
    hw = ho * wo
    planes = p['w1'].shape[-1]

    def bn_fold(name):
        scale = p['g' + name] / jnp.sqrt(p['v' + name] + _EPS)
        return scale, p['b' + name] - p['m' + name] * scale

    s1, sh1 = bn_fold('1')
    s2, sh2 = bn_fold('2')
    s3, sh3 = bn_fold('3')
    s4, sh4 = bn_fold('4')

    bf16 = jnp.bfloat16
    # Fold BN scales into conv weights wherever no ReLU intervenes; reshape to
    # im2col layout (9*Cin, Cout) and pre-cast to bf16 (MXU-native operands).
    w1c = (p['w1'] * s2[None, None, None, :]).reshape(9 * cin, planes).astype(bf16)
    w2f = (p['w2'] * s3[None, None, None, :]).reshape(9 * planes, planes)
    wscf = (p['wsc'] * s3[None, None, None, :]).reshape(cin, planes)
    w2sc = jnp.concatenate([w2f, wscf], axis=0).astype(bf16)  # conv2 + fused skip
    w3c = (p['w3'] * s4[None, None, None, :]).reshape(9 * planes, planes).astype(bf16)
    w4c = p['w4'].reshape(9 * planes, planes).astype(bf16)

    s1sh1 = jnp.stack([s1, sh1], axis=0)                       # (2, cin)
    sh234 = jnp.stack([sh2, sh3, sh4], axis=0)                 # (3, planes)

    # Batch-block size: stack batches along the MXU M/sublane dim (hw rows per
    # image) to fill ~128 rows per dot and amortize per-grid-step overhead.
    # (With larger B this still leaves multiple "parallel" grid steps for v7x.)
    bb = max(1, min(b, 128 // hw))
    while b % bb:
        bb -= 1
    nsteps = b // bb

    # Phase-split the input over the stride-2 lattice (byte-neutral re-layout):
    # stride-2 conv1 becomes stride-1 in-kernel; 2x2 maxpool becomes an
    # elementwise max of the four phases.
    phases = jnp.stack(
        [x[:, py::2, px::2, :].reshape(b, hw, cin)
         for py in (0, 1) for px in (0, 1)], axis=1)           # (B, 4, hw, cin)

    # Grid-invariant index masks, built once on the host and DMA'd once.
    pid = np.arange(hw)
    py_i, px_i = pid // wo, pid % wo
    cols = []
    for dy in range(3):
        for dx in range(3):
            sy, sx = dy - 1, dx - 1
            ok = ((py_i + sy >= 0) & (py_i + sy < ho)
                  & (px_i + sx >= 0) & (px_i + sx < wo))
            cols.append(ok.astype(np.float32))
    tapmask = jnp.asarray(np.tile(np.stack(cols, axis=1), (bb, 1)))   # (bb*hw, 9)
    e_h = jnp.asarray((py_i[:, None] == np.arange(ho)[None, :]).astype(np.float32))
    e_w = jnp.asarray((px_i[:, None] == np.arange(wo)[None, :]).astype(np.float32))

    rc = p['wc1'].shape[1]
    rf = p['wf1'].shape[0]
    norm = p['alpha'] + p['beta'] + p['gamma']
    abg = (jnp.stack([p['alpha'], p['beta'], p['gamma']]) / norm).astype(jnp.float32)

    consts = [
        w1c, w2sc, w3c, w4c, s1sh1, sh234, tapmask, e_h, e_w,
        p['wc1'], p['bc1'].reshape(1, rc), p['wc2'], p['bc2'].reshape(1, planes),
        p['wt'].T, p['bt'].reshape(1, ho),
        p['wf1'].T, p['bf1'].reshape(1, rf), p['wf2'].T, p['bf2'].reshape(1, wo),
    ]

    def _const_spec(a):
        nd = a.ndim
        return pl.BlockSpec(a.shape, lambda i, _nd=nd: (0,) * _nd)

    kern = functools.partial(_kw_block_kernel, h_out=ho, w_out=wo, bb=bb)
    out = pl.pallas_call(
        kern,
        out_shape=jax.ShapeDtypeStruct((b, hw, planes), jnp.float32),
        grid=(nsteps,),
        in_specs=[pl.BlockSpec((bb, 4, hw, cin), lambda i: (i, 0, 0, 0))]
                + [_const_spec(a) for a in consts]
                + [pl.BlockSpec(memory_space=pltpu.MemorySpace.SMEM)],
        out_specs=pl.BlockSpec((bb, hw, planes), lambda i: (i, 0, 0)),
        compiler_params=pltpu.CompilerParams(
            dimension_semantics=("parallel",)),
    )(phases, *consts, abg)

    out = out.reshape(b, ho, wo, planes)
    return jnp.transpose(out, (0, 3, 1, 2))                       # back to NCHW


# ----------------------------------------------------------------------------
# pure-JAX reference (mirrors the PyTorch forward, eval-mode BN, f32-accurate)
# ----------------------------------------------------------------------------
def reference_forward(x_nchw, p):
    prec = lax.Precision.HIGHEST
    dot = functools.partial(jnp.dot, precision=prec)
    x = jnp.transpose(x_nchw, (0, 2, 3, 1)).astype(jnp.float32)

    def bn(t, n):
        return (t - p['m' + n]) / jnp.sqrt(p['v' + n] + _EPS) * p['g' + n] + p['b' + n]

    def conv(t, w, stride, pad):
        return lax.conv_general_dilated(t, w, (stride, stride), pad,
                                        dimension_numbers=('NHWC', 'HWIO', 'NHWC'),
                                        precision=prec)

    x1 = bn(x, '1')
    identity = x1
    out = jnp.maximum(x1, 0.0)
    out = conv(out, p['w1'], 2, ((1, 1), (1, 1)))
    out = jnp.maximum(bn(out, '2'), 0.0)
    out = conv(out, p['w2'], 1, ((1, 1), (1, 1)))

    idp = jnp.pad(identity, ((0, 0), (0, 1), (0, 1), (0, 0)))
    skip = lax.reduce_window(idp, -jnp.inf, lax.max, (1, 2, 2, 1), (1, 2, 2, 1), 'VALID')
    skip = conv(skip, p['wsc'], 1, 'VALID')

    out = bn(out + skip, '3')
    skip2 = out
    o = jnp.maximum(out, 0.0)
    o = conv(o, p['w3'], 1, ((1, 1), (1, 1)))
    o = jnp.maximum(bn(o, '4'), 0.0)
    o = conv(o, p['w4'], 1, ((1, 1), (1, 1)))

    a, bb, g = p['alpha'], p['beta'], p['gamma']
    s = a + bb + g
    aa, bbn, gg = a / s, bb / s, g / s
    sig = lambda z: 1.0 / (1.0 + jnp.exp(-z))
    elu = lambda z: jnp.where(z > 0, z, jnp.exp(z) - 1.0)

    cg = jnp.max(o, axis=(1, 2))                                             # (B, C)
    catt = sig(dot(elu(dot(cg, p['wc1']) + p['bc1']), p['wc2']) + p['bc2'])  # (B, C)
    tg = jnp.mean(o, axis=(2, 3))                                            # (B, H)
    tatt = sig(dot(tg, p['wt'].T) + p['bt'].reshape(1, -1))                  # (B, H)
    fg = jnp.max(o, axis=(1, 3))                                             # (B, W)
    fatt = sig(dot(elu(dot(fg, p['wf1'].T) + p['bf1'].reshape(1, -1)),
                   p['wf2'].T) + p['bf2'].reshape(1, -1))                    # (B, W)

    md = (aa * o * catt[:, None, None, :]
          + bbn * o * tatt[:, :, None, None]
          + gg * o * fatt[:, None, :, None])
    out_final = md + skip2
    return jnp.transpose(out_final, (0, 3, 1, 2))


# ----------------------------------------------------------------------------
# deterministic parameter init (synthetic; shapes from the module __init__)
# ----------------------------------------------------------------------------
def init_params(key, cin, planes, h_out, w_out):
    keys = iter(jax.random.split(key, 40))
    nk = lambda: next(keys)
    f32 = jnp.float32
    nrm = lambda k, shape, scale: float(scale) * jax.random.normal(k, shape, dtype=f32)
    p = {}
    for name, c in (('1', cin), ('2', planes), ('3', planes), ('4', planes)):
        p['g' + name] = 1.0 + 0.1 * jax.random.normal(nk(), (c,), dtype=f32)
        p['b' + name] = 0.1 * jax.random.normal(nk(), (c,), dtype=f32)
        p['m' + name] = 0.1 * jax.random.normal(nk(), (c,), dtype=f32)
        p['v' + name] = jax.random.uniform(nk(), (c,), dtype=f32, minval=0.5, maxval=1.5)
    p['w1'] = nrm(nk(), (3, 3, cin, planes), 1.0 / np.sqrt(9 * cin))        # HWIO
    p['w2'] = nrm(nk(), (3, 3, planes, planes), 1.0 / np.sqrt(9 * planes))
    p['w3'] = nrm(nk(), (3, 3, planes, planes), 1.0 / np.sqrt(9 * planes))
    p['w4'] = nrm(nk(), (3, 3, planes, planes), 1.0 / np.sqrt(9 * planes))
    p['wsc'] = nrm(nk(), (1, 1, cin, planes), 1.0 / np.sqrt(cin))
    rc = max(planes // 6, 1)
    rf = max(w_out // 6, 1)
    p['wc1'] = nrm(nk(), (planes, rc), 0.3); p['bc1'] = nrm(nk(), (1, rc), 0.1)
    p['wc2'] = nrm(nk(), (rc, planes), 0.3); p['bc2'] = nrm(nk(), (1, planes), 0.1)
    # TemporalAttention conv1d(k=3, padding='same') on a length-1 sequence:
    # only the centre tap + bias contribute; materialize exactly that.
    p['wt'] = nrm(nk(), (h_out, h_out), 0.3); p['bt'] = nrm(nk(), (h_out, 1), 0.1)
    p['wf1'] = nrm(nk(), (rf, w_out), 0.3); p['bf1'] = nrm(nk(), (rf, 1), 0.1)
    p['wf2'] = nrm(nk(), (w_out, rf), 0.3); p['bf2'] = nrm(nk(), (w_out, 1), 0.1)
    # MDAM mixing parameters as runtime scalars (no retrace when they change).
    p['alpha'] = jnp.float32(1.0)
    p['beta'] = jnp.float32(0.75)
    p['gamma'] = jnp.float32(0.75)
    return p


# ----------------------------------------------------------------------------
if __name__ == "__main__":
    key = jax.random.PRNGKey(0)
    k_x, k_p = jax.random.split(key)

    # shapes consistent with the module: inplanes=8, planes=16,
    # spatial 16x16 -> 8x8 after the stride-2 conv (so APlanes == [16, 8, 8]).
    B, CIN, H, W, PLANES = 2, 8, 16, 16, 16
    x = jax.random.normal(k_x, (B, CIN, H, W), dtype=jnp.float32)   # NCHW like PyTorch
    params = init_params(k_p, CIN, PLANES, H // 2, W // 2)

    fwd = jax.jit(functools.partial(kw_upper_block_forward, p=params))
    out = jax.block_until_ready(fwd(x))

    ref = jax.block_until_ready(
        jax.jit(functools.partial(reference_forward, p=params))(x))

    # Kernel MXU operands are bf16 (f32 accumulation); the reference runs at
    # HIGHEST precision, hence the wider tolerance.  Structural bugs would
    # produce O(1) errors and still be caught.
    np.testing.assert_allclose(np.asarray(out), np.asarray(ref), rtol=5e-2, atol=5e-2)
    assert out.shape == (B, PLANES, H // 2, W // 2)
    print("KERNEL_OK")
</pallas_src>

<mosaic_0001>
module attributes {stable_mosaic.version = 11 : i64} {
  func.func @_kw_block_kernel(%arg0: i32, %arg1: memref<2x4x64x8xf32, #tpu.memory_space<vmem>>, %arg2: memref<72x16xbf16, #tpu.memory_space<vmem>>, %arg3: memref<152x16xbf16, #tpu.memory_space<vmem>>, %arg4: memref<144x16xbf16, #tpu.memory_space<vmem>>, %arg5: memref<144x16xbf16, #tpu.memory_space<vmem>>, %arg6: memref<2x8xf32, #tpu.memory_space<vmem>>, %arg7: memref<3x16xf32, #tpu.memory_space<vmem>>, %arg8: memref<128x9xf32, #tpu.memory_space<vmem>>, %arg9: memref<64x8xf32, #tpu.memory_space<vmem>>, %arg10: memref<64x8xf32, #tpu.memory_space<vmem>>, %arg11: memref<16x2xf32, #tpu.memory_space<vmem>>, %arg12: memref<1x2xf32, #tpu.memory_space<vmem>>, %arg13: memref<2x16xf32, #tpu.memory_space<vmem>>, %arg14: memref<1x16xf32, #tpu.memory_space<vmem>>, %arg15: memref<8x8xf32, #tpu.memory_space<vmem>>, %arg16: memref<1x8xf32, #tpu.memory_space<vmem>>, %arg17: memref<8x1xf32, #tpu.memory_space<vmem>>, %arg18: memref<1x1xf32, #tpu.memory_space<vmem>>, %arg19: memref<1x8xf32, #tpu.memory_space<vmem>>, %arg20: memref<1x8xf32, #tpu.memory_space<vmem>>, %arg21: memref<3xf32, #tpu.memory_space<smem>>, %arg22: memref<2x64x16xf32, #tpu.memory_space<vmem>>) attributes {dimension_semantics = [#tpu.dimension_semantics<parallel>], iteration_bounds = array<i64: 1>, scalar_prefetch = 0 : i64, scratch_operands = 0 : i64, tpu.core_type = #tpu.core_type<tc>, window_params = [{transform_indices = @transform_0, window_bounds = array<i64: 2, 4, 64, 8>}, {pipeline_mode = #tpu.pipeline_mode<synchronous>, transform_indices = @transform_1, window_bounds = array<i64: 72, 16>}, {pipeline_mode = #tpu.pipeline_mode<synchronous>, transform_indices = @transform_2, window_bounds = array<i64: 152, 16>}, {pipeline_mode = #tpu.pipeline_mode<synchronous>, transform_indices = @transform_3, window_bounds = array<i64: 144, 16>}, {pipeline_mode = #tpu.pipeline_mode<synchronous>, transform_indices = @transform_4, window_bounds = array<i64: 144, 16>}, {pipeline_mode = #tpu.pipeline_mode<synchronous>, transform_indices = @transform_5, window_bounds = array<i64: 2, 8>}, {pipeline_mode = #tpu.pipeline_mode<synchronous>, transform_indices = @transform_6, window_bounds = array<i64: 3, 16>}, {pipeline_mode = #tpu.pipeline_mode<synchronous>, transform_indices = @transform_7, window_bounds = array<i64: 128, 9>}, {pipeline_mode = #tpu.pipeline_mode<synchronous>, transform_indices = @transform_8, window_bounds = array<i64: 64, 8>}, {pipeline_mode = #tpu.pipeline_mode<synchronous>, transform_indices = @transform_9, window_bounds = array<i64: 64, 8>}, {pipeline_mode = #tpu.pipeline_mode<synchronous>, transform_indices = @transform_10, window_bounds = array<i64: 16, 2>}, {pipeline_mode = #tpu.pipeline_mode<synchronous>, transform_indices = @transform_11, window_bounds = array<i64: 1, 2>}, {pipeline_mode = #tpu.pipeline_mode<synchronous>, transform_indices = @transform_12, window_bounds = array<i64: 2, 16>}, {pipeline_mode = #tpu.pipeline_mode<synchronous>, transform_indices = @transform_13, window_bounds = array<i64: 1, 16>}, {pipeline_mode = #tpu.pipeline_mode<synchronous>, transform_indices = @transform_14, window_bounds = array<i64: 8, 8>}, {pipeline_mode = #tpu.pipeline_mode<synchronous>, transform_indices = @transform_15, window_bounds = array<i64: 1, 8>}, {pipeline_mode = #tpu.pipeline_mode<synchronous>, transform_indices = @transform_16, window_bounds = array<i64: 8, 1>}, {pipeline_mode = #tpu.pipeline_mode<synchronous>, transform_indices = @transform_17, window_bounds = array<i64: 1, 1>}, {pipeline_mode = #tpu.pipeline_mode<synchronous>, transform_indices = @transform_18, window_bounds = array<i64: 1, 8>}, {pipeline_mode = #tpu.pipeline_mode<synchronous>, transform_indices = @transform_19, window_bounds = array<i64: 1, 8>}, {transform_indices = @transform_20, window_bounds = array<i64: 3>}, {transform_indices = @transform_21, window_bounds = array<i64: 2, 64, 16>}]} {
    %c0 = arith.constant 0 : index
    %c0_0 = arith.constant 0 : index
    %0 = vector.load %arg8[%c0, %c0_0] : memref<128x9xf32, #tpu.memory_space<vmem>>, vector<128x9xf32>
    %c0_1 = arith.constant 0 : index
    %c0_2 = arith.constant 0 : index
    %1 = vector.load %arg6[%c0_1, %c0_2] : memref<2x8xf32, #tpu.memory_space<vmem>>, vector<1x8xf32>
    %c1 = arith.constant 1 : index
    %c0_3 = arith.constant 0 : index
    %2 = vector.load %arg6[%c1, %c0_3] : memref<2x8xf32, #tpu.memory_space<vmem>>, vector<1x8xf32>
    %c0_4 = arith.constant 0 : index
    %c0_5 = arith.constant 0 : index
    %c0_6 = arith.constant 0 : index
    %c0_7 = arith.constant 0 : index
    %3 = vector.load %arg1[%c0_4, %c0_5, %c0_6, %c0_7] : memref<2x4x64x8xf32, #tpu.memory_space<vmem>>, vector<2x4x64x8xf32>
    %4 = vector.extract_strided_slice %3 {offsets = [0, 0, 0, 0], sizes = [2, 1, 64, 8], strides = [1, 1, 1, 1]} : vector<2x4x64x8xf32> to vector<2x1x64x8xf32>
    %5 = vector.shape_cast %4 : vector<2x1x64x8xf32> to vector<2x64x8xf32>
    %6 = vector.shape_cast %5 : vector<2x64x8xf32> to vector<128x8xf32>
    %7 = vector.broadcast %1 : vector<1x8xf32> to vector<128x8xf32>
    %8 = arith.mulf %6, %7 : vector<128x8xf32>
    %9 = vector.broadcast %2 : vector<1x8xf32> to vector<128x8xf32>
    %10 = arith.addf %8, %9 : vector<128x8xf32>
    %11 = vector.extract_strided_slice %3 {offsets = [0, 1, 0, 0], sizes = [2, 1, 64, 8], strides = [1, 1, 1, 1]} : vector<2x4x64x8xf32> to vector<2x1x64x8xf32>
    %12 = vector.shape_cast %11 : vector<2x1x64x8xf32> to vector<2x64x8xf32>
    %13 = vector.shape_cast %12 : vector<2x64x8xf32> to vector<128x8xf32>
    %14 = vector.broadcast %1 : vector<1x8xf32> to vector<128x8xf32>
    %15 = arith.mulf %13, %14 : vector<128x8xf32>
    %16 = vector.broadcast %2 : vector<1x8xf32> to vector<128x8xf32>
    %17 = arith.addf %15, %16 : vector<128x8xf32>
    %18 = vector.extract_strided_slice %3 {offsets = [0, 2, 0, 0], sizes = [2, 1, 64, 8], strides = [1, 1, 1, 1]} : vector<2x4x64x8xf32> to vector<2x1x64x8xf32>
    %19 = vector.shape_cast %18 : vector<2x1x64x8xf32> to vector<2x64x8xf32>
    %20 = vector.shape_cast %19 : vector<2x64x8xf32> to vector<128x8xf32>
    %21 = vector.broadcast %1 : vector<1x8xf32> to vector<128x8xf32>
    %22 = arith.mulf %20, %21 : vector<128x8xf32>
    %23 = vector.broadcast %2 : vector<1x8xf32> to vector<128x8xf32>
    %24 = arith.addf %22, %23 : vector<128x8xf32>
    %25 = vector.extract_strided_slice %3 {offsets = [0, 3, 0, 0], sizes = [2, 1, 64, 8], strides = [1, 1, 1, 1]} : vector<2x4x64x8xf32> to vector<2x1x64x8xf32>
    %26 = vector.shape_cast %25 : vector<2x1x64x8xf32> to vector<2x64x8xf32>
    %27 = vector.shape_cast %26 : vector<2x64x8xf32> to vector<128x8xf32>
    %28 = vector.broadcast %1 : vector<1x8xf32> to vector<128x8xf32>
    %29 = arith.mulf %27, %28 : vector<128x8xf32>
    %30 = vector.broadcast %2 : vector<1x8xf32> to vector<128x8xf32>
    %31 = arith.addf %29, %30 : vector<128x8xf32>
    %cst = arith.constant 0.000000e+00 : f32
    %32 = vector.broadcast %cst : f32 to vector<128x8xf32>
    %33 = arith.maximumf %10, %32 : vector<128x8xf32>
    %cst_8 = arith.constant 0.000000e+00 : f32
    %34 = vector.broadcast %cst_8 : f32 to vector<128x8xf32>
    %35 = arith.maximumf %17, %34 : vector<128x8xf32>
    %cst_9 = arith.constant 0.000000e+00 : f32
    %36 = vector.broadcast %cst_9 : f32 to vector<128x8xf32>
    %37 = arith.maximumf %24, %36 : vector<128x8xf32>
    %cst_10 = arith.constant 0.000000e+00 : f32
    %38 = vector.broadcast %cst_10 : f32 to vector<128x8xf32>
    %39 = arith.maximumf %31, %38 : vector<128x8xf32>
    %c9_i32 = arith.constant 9 : i32
    %40 = tpu.dynamic_rotate %39 by %c9_i32 dim 0 : vector<128x8xf32>, i32 -> vector<128x8xf32>
    %41 = vector.extract_strided_slice %0 {offsets = [0, 0], sizes = [128, 1], strides = [1, 1]} : vector<128x9xf32> to vector<128x1xf32>
    %42 = vector.broadcast %41 : vector<128x1xf32> to vector<128x8xf32>
    %43 = arith.mulf %40, %42 : vector<128x8xf32>
    %c8_i32 = arith.constant 8 : i32
    %44 = tpu.dynamic_rotate %37 by %c8_i32 dim 0 : vector<128x8xf32>, i32 -> vector<128x8xf32>
    %45 = vector.extract_strided_slice %0 {offsets = [0, 1], sizes = [128, 1], strides = [1, 1]} : vector<128x9xf32> to vector<128x1xf32>
    %46 = vector.broadcast %45 : vector<128x1xf32> to vector<128x8xf32>
    %47 = arith.mulf %44, %46 : vector<128x8xf32>
    %c8_i32_11 = arith.constant 8 : i32
    %48 = tpu.dynamic_rotate %39 by %c8_i32_11 dim 0 : vector<128x8xf32>, i32 -> vector<128x8xf32>
    %49 = vector.extract_strided_slice %0 {offsets = [0, 1], sizes = [128, 1], strides = [1, 1]} : vector<128x9xf32> to vector<128x1xf32>
    %50 = vector.broadcast %49 : vector<128x1xf32> to vector<128x8xf32>
    %51 = arith.mulf %48, %50 : vector<128x8xf32>
    %c1_i32 = arith.constant 1 : i32
    %52 = tpu.dynamic_rotate %35 by %c1_i32 dim 0 : vector<128x8xf32>, i32 -> vector<128x8xf32>
    %53 = vector.extract_strided_slice %0 {offsets = [0, 3], sizes = [128, 1], strides = [1, 1]} : vector<128x9xf32> to vector<128x1xf32>
    %54 = vector.broadcast %53 : vector<128x1xf32> to vector<128x8xf32>
    %55 = arith.mulf %52, %54 : vector<128x8xf32>
    %c1_i32_12 = arith.constant 1 : i32
    %56 = tpu.dynamic_rotate %39 by %c1_i32_12 dim 0 : vector<128x8xf32>, i32 -> vector<128x8xf32>
    %57 = vector.extract_strided_slice %0 {offsets = [0, 3], sizes = [128, 1], strides = [1, 1]} : vector<128x9xf32> to vector<128x1xf32>
    %58 = vector.broadcast %57 : vector<128x1xf32> to vector<128x8xf32>
    %59 = arith.mulf %56, %58 : vector<128x8xf32>
    %60 = tpu.concatenate %43, %47, %51, %55, %33, %35, %59, %37, %39 in 1 : vector<128x8xf32>, vector<128x8xf32>, vector<128x8xf32>, vector<128x8xf32>, vector<128x8xf32>, vector<128x8xf32>, vector<128x8xf32>, vector<128x8xf32>, vector<128x8xf32> -> vector<128x72xf32>
    %61 = arith.truncf %60 : vector<128x72xf32> to vector<128x72xbf16>
    %c0_13 = arith.constant 0 : index
    %c0_14 = arith.constant 0 : index
    %62 = vector.load %arg2[%c0_13, %c0_14] : memref<72x16xbf16, #tpu.memory_space<vmem>>, vector<72x16xbf16>
    %cst_15 = arith.constant dense<0.000000e+00> : vector<128x16xf32>
    %63 = tpu.matmul %61, %62, %cst_15 {dimension_numbers = #tpu.dot_dimension_numbers<[1], [0], [0], [1], [0, 0, 1, 1], [], []>} : vector<128x72xbf16>, vector<72x16xbf16>, vector<128x16xf32> -> vector<128x16xf32>
    %c0_16 = arith.constant 0 : index
    %c0_17 = arith.constant 0 : index
    %64 = vector.load %arg7[%c0_16, %c0_17] : memref<3x16xf32, #tpu.memory_space<vmem>>, vector<1x16xf32>
    %65 = vector.broadcast %64 : vector<1x16xf32> to vector<128x16xf32>
    %66 = arith.addf %63, %65 : vector<128x16xf32>
    %cst_18 = arith.constant 0.000000e+00 : f32
    %67 = vector.broadcast %cst_18 : f32 to vector<128x16xf32>
    %68 = arith.maximumf %66, %67 : vector<128x16xf32>
    %69 = arith.maximumf %10, %17 : vector<128x8xf32>
    %70 = arith.maximumf %24, %31 : vector<128x8xf32>
    %71 = arith.maximumf %69, %70 : vector<128x8xf32>
    %c9_i32_19 = arith.constant 9 : i32
    %72 = tpu.dynamic_rotate %68 by %c9_i32_19 dim 0 : vector<128x16xf32>, i32 -> vector<128x16xf32>
    %73 = vector.extract_strided_slice %0 {offsets = [0, 0], sizes = [128, 1], strides = [1, 1]} : vector<128x9xf32> to vector<128x1xf32>
    %74 = vector.broadcast %73 : vector<128x1xf32> to vector<128x16xf32>
    %75 = arith.mulf %72, %74 : vector<128x16xf32>
    %c8_i32_20 = arith.constant 8 : i32
    %76 = tpu.dynamic_rotate %68 by %c8_i32_20 dim 0 : vector<128x16xf32>, i32 -> vector<128x16xf32>
    %77 = vector.extract_strided_slice %0 {offsets = [0, 1], sizes = [128, 1], strides = [1, 1]} : vector<128x9xf32> to vector<128x1xf32>
    %78 = vector.broadcast %77 : vector<128x1xf32> to vector<128x16xf32>
    %79 = arith.mulf %76, %78 : vector<128x16xf32>
    %c7_i32 = arith.constant 7 : i32
    %80 = tpu.dynamic_rotate %68 by %c7_i32 dim 0 : vector<128x16xf32>, i32 -> vector<128x16xf32>
    %81 = vector.extract_strided_slice %0 {offsets = [0, 2], sizes = [128, 1], strides = [1, 1]} : vector<128x9xf32> to vector<128x1xf32>
    %82 = vector.broadcast %81 : vector<128x1xf32> to vector<128x16xf32>
    %83 = arith.mulf %80, %82 : vector<128x16xf32>
    %c1_i32_21 = arith.constant 1 : i32
    %84 = tpu.dynamic_rotate %68 by %c1_i32_21 dim 0 : vector<128x16xf32>, i32 -> vector<128x16xf32>
    %85 = vector.extract_strided_slice %0 {offsets = [0, 3], sizes = [128, 1], strides = [1, 1]} : vector<128x9xf32> to vector<128x1xf32>
    %86 = vector.broadcast %85 : vector<128x1xf32> to vector<128x16xf32>
    %87 = arith.mulf %84, %86 : vector<128x16xf32>
    %c127_i32 = arith.constant 127 : i32
    %88 = tpu.dynamic_rotate %68 by %c127_i32 dim 0 : vector<128x16xf32>, i32 -> vector<128x16xf32>
    %89 = vector.extract_strided_slice %0 {offsets = [0, 5], sizes = [128, 1], strides = [1, 1]} : vector<128x9xf32> to vector<128x1xf32>
    %90 = vector.broadcast %89 : vector<128x1xf32> to vector<128x16xf32>
    %91 = arith.mulf %88, %90 : vector<128x16xf32>
    %c121_i32 = arith.constant 121 : i32
    %92 = tpu.dynamic_rotate %68 by %c121_i32 dim 0 : vector<128x16xf32>, i32 -> vector<128x16xf32>
    %93 = vector.extract_strided_slice %0 {offsets = [0, 6], sizes = [128, 1], strides = [1, 1]} : vector<128x9xf32> to vector<128x1xf32>
    %94 = vector.broadcast %93 : vector<128x1xf32> to vector<128x16xf32>
    %95 = arith.mulf %92, %94 : vector<128x16xf32>
    %c120_i32 = arith.constant 120 : i32
    %96 = tpu.dynamic_rotate %68 by %c120_i32 dim 0 : vector<128x16xf32>, i32 -> vector<128x16xf32>
    %97 = vector.extract_strided_slice %0 {offsets = [0, 7], sizes = [128, 1], strides = [1, 1]} : vector<128x9xf32> to vector<128x1xf32>
    %98 = vector.broadcast %97 : vector<128x1xf32> to vector<128x16xf32>
    %99 = arith.mulf %96, %98 : vector<128x16xf32>
    %c119_i32 = arith.constant 119 : i32
    %100 = tpu.dynamic_rotate %68 by %c119_i32 dim 0 : vector<128x16xf32>, i32 -> vector<128x16xf32>
    %101 = vector.extract_strided_slice %0 {offsets = [0, 8], sizes = [128, 1], strides = [1, 1]} : vector<128x9xf32> to vector<128x1xf32>
    %102 = vector.broadcast %101 : vector<128x1xf32> to vector<128x16xf32>
    %103 = arith.mulf %100, %102 : vector<128x16xf32>
    %104 = tpu.concatenate %75, %79, %83, %87, %68, %91, %95, %99, %103, %71 in 1 : vector<128x16xf32>, vector<128x16xf32>, vector<128x16xf32>, vector<128x16xf32>, vector<128x16xf32>, vector<128x16xf32>, vector<128x16xf32>, vector<128x16xf32>, vector<128x16xf32>, vector<128x8xf32> -> vector<128x152xf32>
    %105 = arith.truncf %104 : vector<128x152xf32> to vector<128x152xbf16>
    %c0_22 = arith.constant 0 : index
    %c0_23 = arith.constant 0 : index
    %106 = vector.load %arg3[%c0_22, %c0_23] : memref<152x16xbf16, #tpu.memory_space<vmem>>, vector<152x16xbf16>
    %cst_24 = arith.constant dense<0.000000e+00> : vector<128x16xf32>
    %107 = tpu.matmul %105, %106, %cst_24 {dimension_numbers = #tpu.dot_dimension_numbers<[1], [0], [0], [1], [0, 0, 1, 1], [], []>} : vector<128x152xbf16>, vector<152x16xbf16>, vector<128x16xf32> -> vector<128x16xf32>
    %c1_25 = arith.constant 1 : index
    %c0_26 = arith.constant 0 : index
    %108 = vector.load %arg7[%c1_25, %c0_26] : memref<3x16xf32, #tpu.memory_space<vmem>>, vector<1x16xf32>
    %109 = vector.broadcast %108 : vector<1x16xf32> to vector<128x16xf32>
    %110 = arith.addf %107, %109 : vector<128x16xf32>
    %cst_27 = arith.constant 0.000000e+00 : f32
    %111 = vector.broadcast %cst_27 : f32 to vector<128x16xf32>
    %112 = arith.maximumf %110, %111 : vector<128x16xf32>
    %c9_i32_28 = arith.constant 9 : i32
    %113 = tpu.dynamic_rotate %112 by %c9_i32_28 dim 0 : vector<128x16xf32>, i32 -> vector<128x16xf32>
    %114 = vector.extract_strided_slice %0 {offsets = [0, 0], sizes = [128, 1], strides = [1, 1]} : vector<128x9xf32> to vector<128x1xf32>
    %115 = vector.broadcast %114 : vector<128x1xf32> to vector<128x16xf32>
    %116 = arith.mulf %113, %115 : vector<128x16xf32>
    %c8_i32_29 = arith.constant 8 : i32
    %117 = tpu.dynamic_rotate %112 by %c8_i32_29 dim 0 : vector<128x16xf32>, i32 -> vector<128x16xf32>
    %118 = vector.extract_strided_slice %0 {offsets = [0, 1], sizes = [128, 1], strides = [1, 1]} : vector<128x9xf32> to vector<128x1xf32>
    %119 = vector.broadcast %118 : vector<128x1xf32> to vector<128x16xf32>
    %120 = arith.mulf %117, %119 : vector<128x16xf32>
    %c7_i32_30 = arith.constant 7 : i32
    %121 = tpu.dynamic_rotate %112 by %c7_i32_30 dim 0 : vector<128x16xf32>, i32 -> vector<128x16xf32>
    %122 = vector.extract_strided_slice %0 {offsets = [0, 2], sizes = [128, 1], strides = [1, 1]} : vector<128x9xf32> to vector<128x1xf32>
    %123 = vector.broadcast %122 : vector<128x1xf32> to vector<128x16xf32>
    %124 = arith.mulf %121, %123 : vector<128x16xf32>
    %c1_i32_31 = arith.constant 1 : i32
    %125 = tpu.dynamic_rotate %112 by %c1_i32_31 dim 0 : vector<128x16xf32>, i32 -> vector<128x16xf32>
    %126 = vector.extract_strided_slice %0 {offsets = [0, 3], sizes = [128, 1], strides = [1, 1]} : vector<128x9xf32> to vector<128x1xf32>
    %127 = vector.broadcast %126 : vector<128x1xf32> to vector<128x16xf32>
    %128 = arith.mulf %125, %127 : vector<128x16xf32>
    %c127_i32_32 = arith.constant 127 : i32
    %129 = tpu.dynamic_rotate %112 by %c127_i32_32 dim 0 : vector<128x16xf32>, i32 -> vector<128x16xf32>
    %130 = vector.extract_strided_slice %0 {offsets = [0, 5], sizes = [128, 1], strides = [1, 1]} : vector<128x9xf32> to vector<128x1xf32>
    %131 = vector.broadcast %130 : vector<128x1xf32> to vector<128x16xf32>
    %132 = arith.mulf %129, %131 : vector<128x16xf32>
    %c121_i32_33 = arith.constant 121 : i32
    %133 = tpu.dynamic_rotate %112 by %c121_i32_33 dim 0 : vector<128x16xf32>, i32 -> vector<128x16xf32>
    %134 = vector.extract_strided_slice %0 {offsets = [0, 6], sizes = [128, 1], strides = [1, 1]} : vector<128x9xf32> to vector<128x1xf32>
    %135 = vector.broadcast %134 : vector<128x1xf32> to vector<128x16xf32>
    %136 = arith.mulf %133, %135 : vector<128x16xf32>
    %c120_i32_34 = arith.constant 120 : i32
    %137 = tpu.dynamic_rotate %112 by %c120_i32_34 dim 0 : vector<128x16xf32>, i32 -> vector<128x16xf32>
    %138 = vector.extract_strided_slice %0 {offsets = [0, 7], sizes = [128, 1], strides = [1, 1]} : vector<128x9xf32> to vector<128x1xf32>
    %139 = vector.broadcast %138 : vector<128x1xf32> to vector<128x16xf32>
    %140 = arith.mulf %137, %139 : vector<128x16xf32>
    %c119_i32_35 = arith.constant 119 : i32
    %141 = tpu.dynamic_rotate %112 by %c119_i32_35 dim 0 : vector<128x16xf32>, i32 -> vector<128x16xf32>
    %142 = vector.extract_strided_slice %0 {offsets = [0, 8], sizes = [128, 1], strides = [1, 1]} : vector<128x9xf32> to vector<128x1xf32>
    %143 = vector.broadcast %142 : vector<128x1xf32> to vector<128x16xf32>
    %144 = arith.mulf %141, %143 : vector<128x16xf32>
    %145 = tpu.concatenate %116, %120, %124, %128, %112, %132, %136, %140, %144 in 1 : vector<128x16xf32>, vector<128x16xf32>, vector<128x16xf32>, vector<128x16xf32>, vector<128x16xf32>, vector<128x16xf32>, vector<128x16xf32>, vector<128x16xf32>, vector<128x16xf32> -> vector<128x144xf32>
    %146 = arith.truncf %145 : vector<128x144xf32> to vector<128x144xbf16>
    %c0_36 = arith.constant 0 : index
    %c0_37 = arith.constant 0 : index
    %147 = vector.load %arg4[%c0_36, %c0_37] : memref<144x16xbf16, #tpu.memory_space<vmem>>, vector<144x16xbf16>
    %cst_38 = arith.constant dense<0.000000e+00> : vector<128x16xf32>
    %148 = tpu.matmul %146, %147, %cst_38 {dimension_numbers = #tpu.dot_dimension_numbers<[1], [0], [0], [1], [0, 0, 1, 1], [], []>} : vector<128x144xbf16>, vector<144x16xbf16>, vector<128x16xf32> -> vector<128x16xf32>
    %c2 = arith.constant 2 : index
    %c0_39 = arith.constant 0 : index
    %149 = vector.load %arg7[%c2, %c0_39] : memref<3x16xf32, #tpu.memory_space<vmem>>, vector<1x16xf32>
    %150 = vector.broadcast %149 : vector<1x16xf32> to vector<128x16xf32>
    %151 = arith.addf %148, %150 : vector<128x16xf32>
    %cst_40 = arith.constant 0.000000e+00 : f32
    %152 = vector.broadcast %cst_40 : f32 to vector<128x16xf32>
    %153 = arith.maximumf %151, %152 : vector<128x16xf32>
    %c9_i32_41 = arith.constant 9 : i32
    %154 = tpu.dynamic_rotate %153 by %c9_i32_41 dim 0 : vector<128x16xf32>, i32 -> vector<128x16xf32>
    %155 = vector.extract_strided_slice %0 {offsets = [0, 0], sizes = [128, 1], strides = [1, 1]} : vector<128x9xf32> to vector<128x1xf32>
    %156 = vector.broadcast %155 : vector<128x1xf32> to vector<128x16xf32>
    %157 = arith.mulf %154, %156 : vector<128x16xf32>
    %c8_i32_42 = arith.constant 8 : i32
    %158 = tpu.dynamic_rotate %153 by %c8_i32_42 dim 0 : vector<128x16xf32>, i32 -> vector<128x16xf32>
    %159 = vector.extract_strided_slice %0 {offsets = [0, 1], sizes = [128, 1], strides = [1, 1]} : vector<128x9xf32> to vector<128x1xf32>
    %160 = vector.broadcast %159 : vector<128x1xf32> to vector<128x16xf32>
    %161 = arith.mulf %158, %160 : vector<128x16xf32>
    %c7_i32_43 = arith.constant 7 : i32
    %162 = tpu.dynamic_rotate %153 by %c7_i32_43 dim 0 : vector<128x16xf32>, i32 -> vector<128x16xf32>
    %163 = vector.extract_strided_slice %0 {offsets = [0, 2], sizes = [128, 1], strides = [1, 1]} : vector<128x9xf32> to vector<128x1xf32>
    %164 = vector.broadcast %163 : vector<128x1xf32> to vector<128x16xf32>
    %165 = arith.mulf %162, %164 : vector<128x16xf32>
    %c1_i32_44 = arith.constant 1 : i32
    %166 = tpu.dynamic_rotate %153 by %c1_i32_44 dim 0 : vector<128x16xf32>, i32 -> vector<128x16xf32>
    %167 = vector.extract_strided_slice %0 {offsets = [0, 3], sizes = [128, 1], strides = [1, 1]} : vector<128x9xf32> to vector<128x1xf32>
    %168 = vector.broadcast %167 : vector<128x1xf32> to vector<128x16xf32>
    %169 = arith.mulf %166, %168 : vector<128x16xf32>
    %c127_i32_45 = arith.constant 127 : i32
    %170 = tpu.dynamic_rotate %153 by %c127_i32_45 dim 0 : vector<128x16xf32>, i32 -> vector<128x16xf32>
    %171 = vector.extract_strided_slice %0 {offsets = [0, 5], sizes = [128, 1], strides = [1, 1]} : vector<128x9xf32> to vector<128x1xf32>
    %172 = vector.broadcast %171 : vector<128x1xf32> to vector<128x16xf32>
    %173 = arith.mulf %170, %172 : vector<128x16xf32>
    %c121_i32_46 = arith.constant 121 : i32
    %174 = tpu.dynamic_rotate %153 by %c121_i32_46 dim 0 : vector<128x16xf32>, i32 -> vector<128x16xf32>
    %175 = vector.extract_strided_slice %0 {offsets = [0, 6], sizes = [128, 1], strides = [1, 1]} : vector<128x9xf32> to vector<128x1xf32>
    %176 = vector.broadcast %175 : vector<128x1xf32> to vector<128x16xf32>
    %177 = arith.mulf %174, %176 : vector<128x16xf32>
    %c120_i32_47 = arith.constant 120 : i32
    %178 = tpu.dynamic_rotate %153 by %c120_i32_47 dim 0 : vector<128x16xf32>, i32 -> vector<128x16xf32>
    %179 = vector.extract_strided_slice %0 {offsets = [0, 7], sizes = [128, 1], strides = [1, 1]} : vector<128x9xf32> to vector<128x1xf32>
    %180 = vector.broadcast %179 : vector<128x1xf32> to vector<128x16xf32>
    %181 = arith.mulf %178, %180 : vector<128x16xf32>
    %c119_i32_48 = arith.constant 119 : i32
    %182 = tpu.dynamic_rotate %153 by %c119_i32_48 dim 0 : vector<128x16xf32>, i32 -> vector<128x16xf32>
    %183 = vector.extract_strided_slice %0 {offsets = [0, 8], sizes = [128, 1], strides = [1, 1]} : vector<128x9xf32> to vector<128x1xf32>
    %184 = vector.broadcast %183 : vector<128x1xf32> to vector<128x16xf32>
    %185 = arith.mulf %182, %184 : vector<128x16xf32>
    %186 = tpu.concatenate %157, %161, %165, %169, %153, %173, %177, %181, %185 in 1 : vector<128x16xf32>, vector<128x16xf32>, vector<128x16xf32>, vector<128x16xf32>, vector<128x16xf32>, vector<128x16xf32>, vector<128x16xf32>, vector<128x16xf32>, vector<128x16xf32> -> vector<128x144xf32>
    %187 = arith.truncf %186 : vector<128x144xf32> to vector<128x144xbf16>
    %c0_49 = arith.constant 0 : index
    %c0_50 = arith.constant 0 : index
    %188 = vector.load %arg5[%c0_49, %c0_50] : memref<144x16xbf16, #tpu.memory_space<vmem>>, vector<144x16xbf16>
    %cst_51 = arith.constant dense<0.000000e+00> : vector<128x16xf32>
    %189 = tpu.matmul %187, %188, %cst_51 {dimension_numbers = #tpu.dot_dimension_numbers<[1], [0], [0], [1], [0, 0, 1, 1], [], []>} : vector<128x144xbf16>, vector<144x16xbf16>, vector<128x16xf32> -> vector<128x16xf32>
    %190 = vector.shape_cast %189 : vector<128x16xf32> to vector<2x64x16xf32>
    %191 = vector.shape_cast %110 : vector<128x16xf32> to vector<2x64x16xf32>
    %cst_52 = arith.constant dense<0xFF800000> : vector<2x16xf32>
    %192 = vector.multi_reduction <maximumf>, %190, %cst_52 [1] : vector<2x64x16xf32> to vector<2x16xf32>
    %c0_53 = arith.constant 0 : index
    %c0_54 = arith.constant 0 : index
    %193 = vector.load %arg11[%c0_53, %c0_54] : memref<16x2xf32, #tpu.memory_space<vmem>>, vector<16x2xf32>
    %194 = vector.shape_cast %192 : vector<2x16xf32> to vector<2x16x1xf32>
    %195 = vector.shape_cast %193 : vector<16x2xf32> to vector<1x16x2xf32>
    %196 = vector.broadcast %194 : vector<2x16x1xf32> to vector<2x16x2xf32>
    %197 = vector.broadcast %195 : vector<1x16x2xf32> to vector<2x16x2xf32>
    %198 = arith.mulf %196, %197 : vector<2x16x2xf32>
    %cst_55 = arith.constant dense<0.000000e+00> : vector<2x2xf32>
    %199 = vector.multi_reduction <add>, %198, %cst_55 [1] : vector<2x16x2xf32> to vector<2x2xf32>
    %c0_56 = arith.constant 0 : index
    %c0_57 = arith.constant 0 : index
    %200 = vector.load %arg12[%c0_56, %c0_57] : memref<1x2xf32, #tpu.memory_space<vmem>>, vector<1x2xf32>
    %201 = vector.broadcast %200 : vector<1x2xf32> to vector<2x2xf32>
    %202 = arith.addf %199, %201 : vector<2x2xf32>
    %cst_58 = arith.constant 0.000000e+00 : f32
    %203 = vector.broadcast %cst_58 : f32 to vector<2x2xf32>
    %204 = arith.cmpf ogt, %202, %203 : vector<2x2xf32>
    %205 = math.exp %202 : vector<2x2xf32>
    %cst_59 = arith.constant 1.000000e+00 : f32
    %206 = vector.broadcast %cst_59 : f32 to vector<2x2xf32>
    %207 = arith.subf %205, %206 : vector<2x2xf32>
    %208 = arith.select %204, %202, %207 : vector<2x2xi1>, vector<2x2xf32>
    %c0_60 = arith.constant 0 : index
    %c0_61 = arith.constant 0 : index
    %209 = vector.load %arg13[%c0_60, %c0_61] : memref<2x16xf32, #tpu.memory_space<vmem>>, vector<2x16xf32>
    %210 = vector.shape_cast %208 : vector<2x2xf32> to vector<2x2x1xf32>
    %211 = vector.shape_cast %209 : vector<2x16xf32> to vector<1x2x16xf32>
    %212 = vector.broadcast %210 : vector<2x2x1xf32> to vector<2x2x16xf32>
    %213 = vector.broadcast %211 : vector<1x2x16xf32> to vector<2x2x16xf32>
    %214 = arith.mulf %212, %213 : vector<2x2x16xf32>
    %cst_62 = arith.constant dense<0.000000e+00> : vector<2x16xf32>
    %215 = vector.multi_reduction <add>, %214, %cst_62 [1] : vector<2x2x16xf32> to vector<2x16xf32>
    %c0_63 = arith.constant 0 : index
    %c0_64 = arith.constant 0 : index
    %216 = vector.load %arg14[%c0_63, %c0_64] : memref<1x16xf32, #tpu.memory_space<vmem>>, vector<1x16xf32>
    %217 = vector.broadcast %216 : vector<1x16xf32> to vector<2x16xf32>
    %218 = arith.addf %215, %217 : vector<2x16xf32>
    %cst_65 = arith.constant 0.000000e+00 : f32
    %219 = vector.broadcast %cst_65 : f32 to vector<2x16xf32>
    %220 = arith.subf %219, %218 : vector<2x16xf32>
    %221 = math.exp %220 : vector<2x16xf32>
    %cst_66 = arith.constant 1.000000e+00 : f32
    %222 = vector.broadcast %cst_66 : f32 to vector<2x16xf32>
    %223 = arith.addf %222, %221 : vector<2x16xf32>
    %cst_67 = arith.constant 1.000000e+00 : f32
    %224 = vector.broadcast %cst_67 : f32 to vector<2x16xf32>
    %225 = arith.divf %224, %223 : vector<2x16xf32>
    %c0_68 = arith.constant 0 : index
    %c0_69 = arith.constant 0 : index
    %226 = vector.load %arg9[%c0_68, %c0_69] : memref<64x8xf32, #tpu.memory_space<vmem>>, vector<64x8xf32>
    %c0_70 = arith.constant 0 : index
    %c0_71 = arith.constant 0 : index
    %227 = vector.load %arg10[%c0_70, %c0_71] : memref<64x8xf32, #tpu.memory_space<vmem>>, vector<64x8xf32>
    %cst_72 = arith.constant dense<0.000000e+00> : vector<2x64xf32>
    %228 = vector.multi_reduction <add>, %190, %cst_72 [2] : vector<2x64x16xf32> to vector<2x64xf32>
    %229 = vector.shape_cast %228 : vector<2x64xf32> to vector<2x64x1xf32>
    %230 = vector.shape_cast %226 : vector<64x8xf32> to vector<1x64x8xf32>
    %231 = vector.broadcast %229 : vector<2x64x1xf32> to vector<2x64x8xf32>
    %232 = vector.broadcast %230 : vector<1x64x8xf32> to vector<2x64x8xf32>
    %233 = arith.mulf %231, %232 : vector<2x64x8xf32>
    %cst_73 = arith.constant dense<0.000000e+00> : vector<2x8xf32>
    %234 = vector.multi_reduction <add>, %233, %cst_73 [1] : vector<2x64x8xf32> to vector<2x8xf32>
    %cst_74 = arith.constant 7.812500e-03 : f32
    %235 = vector.broadcast %cst_74 : f32 to vector<2x8xf32>
    %236 = arith.mulf %234, %235 : vector<2x8xf32>
    %c0_75 = arith.constant 0 : index
    %c0_76 = arith.constant 0 : index
    %237 = vector.load %arg15[%c0_75, %c0_76] : memref<8x8xf32, #tpu.memory_space<vmem>>, vector<8x8xf32>
    %238 = vector.shape_cast %236 : vector<2x8xf32> to vector<2x8x1xf32>
    %239 = vector.shape_cast %237 : vector<8x8xf32> to vector<1x8x8xf32>
    %240 = vector.broadcast %238 : vector<2x8x1xf32> to vector<2x8x8xf32>
    %241 = vector.broadcast %239 : vector<1x8x8xf32> to vector<2x8x8xf32>
    %242 = arith.mulf %240, %241 : vector<2x8x8xf32>
    %cst_77 = arith.constant dense<0.000000e+00> : vector<2x8xf32>
    %243 = vector.multi_reduction <add>, %242, %cst_77 [1] : vector<2x8x8xf32> to vector<2x8xf32>
    %c0_78 = arith.constant 0 : index
    %c0_79 = arith.constant 0 : index
    %244 = vector.load %arg16[%c0_78, %c0_79] : memref<1x8xf32, #tpu.memory_space<vmem>>, vector<1x8xf32>
    %245 = vector.broadcast %244 : vector<1x8xf32> to vector<2x8xf32>
    %246 = arith.addf %243, %245 : vector<2x8xf32>
    %cst_80 = arith.constant 0.000000e+00 : f32
    %247 = vector.broadcast %cst_80 : f32 to vector<2x8xf32>
    %248 = arith.subf %247, %246 : vector<2x8xf32>
    %249 = math.exp %248 : vector<2x8xf32>
    %cst_81 = arith.constant 1.000000e+00 : f32
    %250 = vector.broadcast %cst_81 : f32 to vector<2x8xf32>
    %251 = arith.addf %250, %249 : vector<2x8xf32>
    %cst_82 = arith.constant 1.000000e+00 : f32
    %252 = vector.broadcast %cst_82 : f32 to vector<2x8xf32>
    %253 = arith.divf %252, %251 : vector<2x8xf32>
    %254 = vector.shape_cast %226 : vector<64x8xf32> to vector<1x64x8xf32>
    %255 = vector.shape_cast %253 : vector<2x8xf32> to vector<2x1x8xf32>
    %256 = vector.broadcast %254 : vector<1x64x8xf32> to vector<2x64x8xf32>
    %257 = vector.broadcast %255 : vector<2x1x8xf32> to vector<2x64x8xf32>
    %258 = arith.mulf %256, %257 : vector<2x64x8xf32>
    %cst_83 = arith.constant dense<0.000000e+00> : vector<2x64xf32>
    %259 = vector.multi_reduction <add>, %258, %cst_83 [2] : vector<2x64x8xf32> to vector<2x64xf32>
    %260 = vector.shape_cast %259 : vector<2x64xf32> to vector<2x64x1xf32>
    %cst_84 = arith.constant dense<0xFF800000> : vector<2x64xf32>
    %261 = vector.multi_reduction <maximumf>, %190, %cst_84 [2] : vector<2x64x16xf32> to vector<2x64xf32>
    %262 = vector.shape_cast %261 : vector<2x64xf32> to vector<2x64x1xf32>
    %263 = vector.shape_cast %227 : vector<64x8xf32> to vector<1x64x8xf32>
    %cst_85 = arith.constant 5.000000e-01 : f32
    %264 = vector.broadcast %cst_85 : f32 to vector<1x64x8xf32>
    %265 = arith.cmpf ogt, %263, %264 : vector<1x64x8xf32>
    %cst_86 = arith.constant -1.000000e+30 : f32
    %266 = vector.shape_cast %265 : vector<1x64x8xi1> to vector<1x64x8xi1>
    %267 = vector.broadcast %266 : vector<1x64x8xi1> to vector<2x64x8xi1>
    %268 = vector.shape_cast %262 : vector<2x64x1xf32> to vector<2x64x1xf32>
    %269 = vector.broadcast %268 : vector<2x64x1xf32> to vector<2x64x8xf32>
    %270 = vector.broadcast %cst_86 : f32 to vector<2x64x8xf32>
    %271 = arith.select %267, %269, %270 : vector<2x64x8xi1>, vector<2x64x8xf32>
    %cst_87 = arith.constant dense<0xFF800000> : vector<2x8xf32>
    %272 = vector.multi_reduction <maximumf>, %271, %cst_87 [1] : vector<2x64x8xf32> to vector<2x8xf32>
    %c0_88 = arith.constant 0 : index
    %c0_89 = arith.constant 0 : index
    %273 = vector.load %arg17[%c0_88, %c0_89] : memref<8x1xf32, #tpu.memory_space<vmem>>, vector<8x1xf32>
    %274 = vector.shape_cast %272 : vector<2x8xf32> to vector<2x8x1xf32>
    %275 = vector.shape_cast %273 : vector<8x1xf32> to vector<1x8x1xf32>
    %276 = vector.broadcast %275 : vector<1x8x1xf32> to vector<2x8x1xf32>
    %277 = arith.mulf %274, %276 : vector<2x8x1xf32>
    %cst_90 = arith.constant dense<0.000000e+00> : vector<2x1xf32>
    %278 = vector.multi_reduction <add>, %277, %cst_90 [1] : vector<2x8x1xf32> to vector<2x1xf32>
    %c0_91 = arith.constant 0 : index
    %c0_92 = arith.constant 0 : index
    %279 = vector.load %arg18[%c0_91, %c0_92] : memref<1x1xf32, #tpu.memory_space<vmem>>, vector<1x1xf32>
    %280 = vector.broadcast %279 : vector<1x1xf32> to vector<2x1xf32>
    %281 = arith.addf %278, %280 : vector<2x1xf32>
    %cst_93 = arith.constant 0.000000e+00 : f32
    %282 = vector.broadcast %cst_93 : f32 to vector<2x1xf32>
    %283 = arith.cmpf ogt, %281, %282 : vector<2x1xf32>
    %284 = math.exp %281 : vector<2x1xf32>
    %cst_94 = arith.constant 1.000000e+00 : f32
    %285 = vector.broadcast %cst_94 : f32 to vector<2x1xf32>
    %286 = arith.subf %284, %285 : vector<2x1xf32>
    %287 = arith.select %283, %281, %286 : vector<2x1xi1>, vector<2x1xf32>
    %c0_95 = arith.constant 0 : index
    %c0_96 = arith.constant 0 : index
    %288 = vector.load %arg19[%c0_95, %c0_96] : memref<1x8xf32, #tpu.memory_space<vmem>>, vector<1x8xf32>
    %289 = vector.shape_cast %287 : vector<2x1xf32> to vector<2x1x1xf32>
    %290 = vector.shape_cast %288 : vector<1x8xf32> to vector<1x1x8xf32>
    %291 = vector.broadcast %289 : vector<2x1x1xf32> to vector<2x1x8xf32>
    %292 = vector.broadcast %290 : vector<1x1x8xf32> to vector<2x1x8xf32>
    %293 = arith.mulf %291, %292 : vector<2x1x8xf32>
    %cst_97 = arith.constant dense<0.000000e+00> : vector<2x8xf32>
    %294 = vector.multi_reduction <add>, %293, %cst_97 [1] : vector<2x1x8xf32> to vector<2x8xf32>
    %c0_98 = arith.constant 0 : index
    %c0_99 = arith.constant 0 : index
    %295 = vector.load %arg20[%c0_98, %c0_99] : memref<1x8xf32, #tpu.memory_space<vmem>>, vector<1x8xf32>
    %296 = vector.broadcast %295 : vector<1x8xf32> to vector<2x8xf32>
    %297 = arith.addf %294, %296 : vector<2x8xf32>
    %cst_100 = arith.constant 0.000000e+00 : f32
    %298 = vector.broadcast %cst_100 : f32 to vector<2x8xf32>
    %299 = arith.subf %298, %297 : vector<2x8xf32>
    %300 = math.exp %299 : vector<2x8xf32>
    %cst_101 = arith.constant 1.000000e+00 : f32
    %301 = vector.broadcast %cst_101 : f32 to vector<2x8xf32>
    %302 = arith.addf %301, %300 : vector<2x8xf32>
    %cst_102 = arith.constant 1.000000e+00 : f32
    %303 = vector.broadcast %cst_102 : f32 to vector<2x8xf32>
    %304 = arith.divf %303, %302 : vector<2x8xf32>
    %305 = vector.shape_cast %227 : vector<64x8xf32> to vector<1x64x8xf32>
    %306 = vector.shape_cast %304 : vector<2x8xf32> to vector<2x1x8xf32>
    %307 = vector.broadcast %305 : vector<1x64x8xf32> to vector<2x64x8xf32>
    %308 = vector.broadcast %306 : vector<2x1x8xf32> to vector<2x64x8xf32>
    %309 = arith.mulf %307, %308 : vector<2x64x8xf32>
    %cst_103 = arith.constant dense<0.000000e+00> : vector<2x64xf32>
    %310 = vector.multi_reduction <add>, %309, %cst_103 [2] : vector<2x64x8xf32> to vector<2x64xf32>
    %311 = vector.shape_cast %310 : vector<2x64xf32> to vector<2x64x1xf32>
    %c0_104 = arith.constant 0 : index
    %312 = memref.load %arg21[%c0_104] : memref<3xf32, #tpu.memory_space<smem>>
    %c1_105 = arith.constant 1 : index
    %313 = memref.load %arg21[%c1_105] : memref<3xf32, #tpu.memory_space<smem>>
    %c2_106 = arith.constant 2 : index
    %314 = memref.load %arg21[%c2_106] : memref<3xf32, #tpu.memory_space<smem>>
    %315 = vector.shape_cast %225 : vector<2x16xf32> to vector<2x1x16xf32>
    %316 = vector.broadcast %312 : f32 to vector<2x1x16xf32>
    %317 = arith.mulf %316, %315 : vector<2x1x16xf32>
    %318 = vector.broadcast %313 : f32 to vector<2x64x1xf32>
    %319 = arith.mulf %318, %260 : vector<2x64x1xf32>
    %320 = vector.broadcast %317 : vector<2x1x16xf32> to vector<2x64x16xf32>
    %321 = vector.broadcast %319 : vector<2x64x1xf32> to vector<2x64x16xf32>
    %322 = arith.addf %320, %321 : vector<2x64x16xf32>
    %323 = vector.broadcast %314 : f32 to vector<2x64x1xf32>
    %324 = arith.mulf %323, %311 : vector<2x64x1xf32>
    %325 = vector.broadcast %324 : vector<2x64x1xf32> to vector<2x64x16xf32>
    %326 = arith.addf %322, %325 : vector<2x64x16xf32>
    %327 = arith.mulf %190, %326 : vector<2x64x16xf32>
    %328 = arith.addf %327, %191 : vector<2x64x16xf32>
    %c0_107 = arith.constant 0 : index
    %c0_108 = arith.constant 0 : index
    %c0_109 = arith.constant 0 : index
    %329 = vector.load %arg22[%c0_107, %c0_108, %c0_109] : memref<2x64x16xf32, #tpu.memory_space<vmem>>, vector<2x64x16xf32>
    tpu.vector_store %arg22[%c0_107, %c0_108, %c0_109], %328 {strides = array<i32>} : memref<2x64x16xf32, #tpu.memory_space<vmem>>, vector<2x64x16xf32>,
    return
  }
  func.func @transform_0(%arg0: i32) -> (i32, i32, i32, i32) {
    %c0_i32 = arith.constant 0 : i32
    %c0_i32_0 = arith.constant 0 : i32
    %c0_i32_1 = arith.constant 0 : i32
    %c0_i32_2 = arith.constant 0 : i32
    return %arg0, %c0_i32, %c0_i32_0, %c0_i32_1 : i32, i32, i32, i32
  }
  func.func @transform_1(%arg0: i32) -> (i32, i32) {
    %c0_i32 = arith.constant 0 : i32
    %c0_i32_0 = arith.constant 0 : i32
    %c0_i32_1 = arith.constant 0 : i32
    return %c0_i32, %c0_i32_0 : i32, i32
  }
  func.func @transform_2(%arg0: i32) -> (i32, i32) {
    %c0_i32 = arith.constant 0 : i32
    %c0_i32_0 = arith.constant 0 : i32
    %c0_i32_1 = arith.constant 0 : i32
    return %c0_i32, %c0_i32_0 : i32, i32
  }
  func.func @transform_3(%arg0: i32) -> (i32, i32) {
    %c0_i32 = arith.constant 0 : i32
    %c0_i32_0 = arith.constant 0 : i32
    %c0_i32_1 = arith.constant 0 : i32
    return %c0_i32, %c0_i32_0 : i32, i32
  }
  func.func @transform_4(%arg0: i32) -> (i32, i32) {
    %c0_i32 = arith.constant 0 : i32
    %c0_i32_0 = arith.constant 0 : i32
    %c0_i32_1 = arith.constant 0 : i32
    return %c0_i32, %c0_i32_0 : i32, i32
  }
  func.func @transform_5(%arg0: i32) -> (i32, i32) {
    %c0_i32 = arith.constant 0 : i32
    %c0_i32_0 = arith.constant 0 : i32
    %c0_i32_1 = arith.constant 0 : i32
    return %c0_i32, %c0_i32_0 : i32, i32
  }
  func.func @transform_6(%arg0: i32) -> (i32, i32) {
    %c0_i32 = arith.constant 0 : i32
    %c0_i32_0 = arith.constant 0 : i32
    %c0_i32_1 = arith.constant 0 : i32
    return %c0_i32, %c0_i32_0 : i32, i32
  }
  func.func @transform_7(%arg0: i32) -> (i32, i32) {
    %c0_i32 = arith.constant 0 : i32
    %c0_i32_0 = arith.constant 0 : i32
    %c0_i32_1 = arith.constant 0 : i32
    return %c0_i32, %c0_i32_0 : i32, i32
  }
  func.func @transform_8(%arg0: i32) -> (i32, i32) {
    %c0_i32 = arith.constant 0 : i32
    %c0_i32_0 = arith.constant 0 : i32
    %c0_i32_1 = arith.constant 0 : i32
    return %c0_i32, %c0_i32_0 : i32, i32
  }
  func.func @transform_9(%arg0: i32) -> (i32, i32) {
    %c0_i32 = arith.constant 0 : i32
    %c0_i32_0 = arith.constant 0 : i32
    %c0_i32_1 = arith.constant 0 : i32
    return %c0_i32, %c0_i32_0 : i32, i32
  }
  func.func @transform_10(%arg0: i32) -> (i32, i32) {
    %c0_i32 = arith.constant 0 : i32
    %c0_i32_0 = arith.constant 0 : i32
    %c0_i32_1 = arith.constant 0 : i32
    return %c0_i32, %c0_i32_0 : i32, i32
  }
  func.func @transform_11(%arg0: i32) -> (i32, i32) {
    %c0_i32 = arith.constant 0 : i32
    %c0_i32_0 = arith.constant 0 : i32
    %c0_i32_1 = arith.constant 0 : i32
    return %c0_i32, %c0_i32_0 : i32, i32
  }
  func.func @transform_12(%arg0: i32) -> (i32, i32) {
    %c0_i32 = arith.constant 0 : i32
    %c0_i32_0 = arith.constant 0 : i32
    %c0_i32_1 = arith.constant 0 : i32
    return %c0_i32, %c0_i32_0 : i32, i32
  }
  func.func @transform_13(%arg0: i32) -> (i32, i32) {
    %c0_i32 = arith.constant 0 : i32
    %c0_i32_0 = arith.constant 0 : i32
    %c0_i32_1 = arith.constant 0 : i32
    return %c0_i32, %c0_i32_0 : i32, i32
  }
  func.func @transform_14(%arg0: i32) -> (i32, i32) {
    %c0_i32 = arith.constant 0 : i32
    %c0_i32_0 = arith.constant 0 : i32
    %c0_i32_1 = arith.constant 0 : i32
    return %c0_i32, %c0_i32_0 : i32, i32
  }
  func.func @transform_15(%arg0: i32) -> (i32, i32) {
    %c0_i32 = arith.constant 0 : i32
    %c0_i32_0 = arith.constant 0 : i32
    %c0_i32_1 = arith.constant 0 : i32
    return %c0_i32, %c0_i32_0 : i32, i32
  }
  func.func @transform_16(%arg0: i32) -> (i32, i32) {
    %c0_i32 = arith.constant 0 : i32
    %c0_i32_0 = arith.constant 0 : i32
    %c0_i32_1 = arith.constant 0 : i32
    return %c0_i32, %c0_i32_0 : i32, i32
  }
  func.func @transform_17(%arg0: i32) -> (i32, i32) {
    %c0_i32 = arith.constant 0 : i32
    %c0_i32_0 = arith.constant 0 : i32
    %c0_i32_1 = arith.constant 0 : i32
    return %c0_i32, %c0_i32_0 : i32, i32
  }
  func.func @transform_18(%arg0: i32) -> (i32, i32) {
    %c0_i32 = arith.constant 0 : i32
    %c0_i32_0 = arith.constant 0 : i32
    %c0_i32_1 = arith.constant 0 : i32
    return %c0_i32, %c0_i32_0 : i32, i32
  }
  func.func @transform_19(%arg0: i32) -> (i32, i32) {
    %c0_i32 = arith.constant 0 : i32
    %c0_i32_0 = arith.constant 0 : i32
    %c0_i32_1 = arith.constant 0 : i32
    return %c0_i32, %c0_i32_0 : i32, i32
  }
  func.func @transform_20(%arg0: i32) -> i32 {
    %c0_i32 = arith.constant 0 : i32
    %c0_i32_0 = arith.constant 0 : i32
    return %c0_i32 : i32
  }
  func.func @transform_21(%arg0: i32) -> (i32, i32, i32) {
    %c0_i32 = arith.constant 0 : i32
    %c0_i32_0 = arith.constant 0 : i32
    %c0_i32_1 = arith.constant 0 : i32
    return %arg0, %c0_i32, %c0_i32_0 : i32, i32, i32
  }
}

</mosaic_0001>

<bundles_post_ra>
// kernel: kw_upper_block_forward.1
= control target key start
LH: loop header
LB: loop body
LE: loop exit
PB: predicated region body
PF: predicated region fallthrough
CT: control target
= control target key end

     0   :  { %s13015_s0 = inlined_call_operand.vmem [shape: f32[2,4,64,8], index: 0, kind: input, shape index: {}]   ;;  %s13016_s1 = inlined_call_operand.vmem [shape: bf16[72,16], index: 1, kind: input, shape index: {}]   ;;  %s13017_s2 = inlined_call_operand.vmem [shape: bf16[152,16], index: 2, kind: input, shape index: {}]   ;;  %s13018_s3 = inlined_call_operand.vmem [shape: bf16[144,16], index: 3, kind: input, shape index: {}]   ;;  %s13019_s4 = inlined_call_operand.vmem [shape: bf16[144,16], index: 4, kind: input, shape index: {}]   ;;  %s13020_s5 = inlined_call_operand.vmem [shape: f32[2,8], index: 5, kind: input, shape index: {}]   ;;  %s13021_s6 = inlined_call_operand.vmem [shape: f32[3,16], index: 6, kind: input, shape index: {}]   ;;  %s13022_s7 = inlined_call_operand.vmem [shape: f32[128,9], index: 7, kind: input, shape index: {}]   ;;  %s13023_s8 = inlined_call_operand.vmem [shape: f32[64,8], index: 8, kind: input, shape index: {}]   ;;  %s13024_s9 = inlined_call_operand.vmem [shape: f32[64,8], index: 9, kind: input, shape index: {}]   ;;  %s13025_s10 = inlined_call_operand.vmem [shape: f32[16,2], index: 10, kind: input, shape index: {}]   ;;  %s13026_s11 = inlined_call_operand.vmem [shape: f32[1,2], index: 11, kind: input, shape index: {}]   ;;  %s13027_s12 = inlined_call_operand.vmem [shape: f32[2,16], index: 12, kind: input, shape index: {}]   ;;  %s13028_s13 = inlined_call_operand.vmem [shape: f32[1,16], index: 13, kind: input, shape index: {}]   ;;  %s13029_s14 = inlined_call_operand.vmem [shape: f32[8,8], index: 14, kind: input, shape index: {}]   ;;  %s13030_s15 = inlined_call_operand.vmem [shape: f32[1,8], index: 15, kind: input, shape index: {}]   ;;  %s13031_s16 = inlined_call_operand.vmem [shape: f32[8,1], index: 16, kind: input, shape index: {}]   ;;  %s13032_s17 = inlined_call_operand.<no memory space> [shape: f32[1,1], index: 17, kind: input, shape index: {}]   ;;  %s13033_s18 = inlined_call_operand.vmem [shape: f32[1,8], index: 18, kind: input, shape index: {}]   ;;  %s13034_s19 = inlined_call_operand.vmem [shape: f32[1,8], index: 19, kind: input, shape index: {}]   ;;  %s13035_s20 = inlined_call_operand.vmem [shape: f32[3], index: 20, kind: input, shape index: {}]   ;;  %s13036_s21 = inlined_call_operand.hbm [shape: f32[2,64,16], index: 21, kind: output, shape index: {}]  }
   0x1   :  { %13474 = sst [smem:[#allocation162_spill]] %s13015_s0  ;;  %v26_v0 = vstv %s13032_s17 }
   0x2   :  { %13475 = sst [smem:[#allocation163_spill]] %s13016_s1  ;;  %27 = vst [vmem:[#allocation2] sm:$0x1] %v26_v0 }
   0x3   :  { %13476 = sst [smem:[#allocation164_spill]] %s13017_s2 }
   0x4   :  { %13477 = sst [smem:[#allocation165_spill]] %s13018_s3 }
   0x5   :  { %13478 = sst [smem:[#allocation166_spill]] %s13019_s4 }
   0x6   :  { %13479 = sst [smem:[#allocation167_spill]] %s13020_s5 }
   0x7   :  { %28 = vsyncpa [#allocation5], 0 }
   0x8   :  { %29 = vsyncpa [#allocation4], 0  ;;  %s76_s3 = sshll.u32 %s13035_s20, 4  ;;  %s77_s3 = int_to_ptr.vmem [resolvable:$true] %s76_s3 }
   0x9   :  { %s7250_s28 = scalar_lea.vmem %s77_s3, 16  ;;  %p7255_p1 = scmp.lt.s32.totalorder %s77_s3, %s77_s3 }
   0xa   :  { %p7251_p0 = scmp.ne.s32.totalorder %s77_s3, %s7250_s28  ;;  %p7256_p2 = scmp.lt.s32.totalorder %s7250_s28, %s7250_s28 }
   0xc   :  { %p7257_p3 = por %p7256_p2, %p7255_p1 }
   0xe   :  { %p7258_p4 = pnand %p7257_p3, %p7251_p0 }
  0x10   :  { %7261 = shalt.err (!%p7258_p4)
}
  0x11   :  { %s7288_s29 = smov [#allocation3]  }
  0x12   :  { %79 = dma.vmem_to_smem %s77_s3, 16, %s7288_s29, [#allocation5]  }
  0x13   :  { %7284 = dma.done.wait [#allocation5], 16  }
  0x14   :  { %7285 = vsyncadd [#allocation5], 4294967280 }
  0x15   :  { %83 = sfence }
  0x16   :  { %v7429_v1 = vld [vmem:[%s13022_s7 + $0x10] sm:$0xff]  ;;  %v7434_v2 = vld [vmem:[%s13022_s7] sm:$0xff]  ;;  %v7289_v3 = vmov 1   ;;  %v7443_v4 = vld [vmem:[%s13022_s7 + $0x18] sm:$0xff]  ;;  %v13043_v6 = vmov 0   ;;  %s13480_s2 = sld [smem:[#allocation167_spill]] }
  0x17   :  { %5910 = vset.pattern.permute.xlu1 %v7289_v3  ;;  %5909 = vset.pattern.permute.xlu0 %v7289_v3  ;;  %v7448_v5 = vld [vmem:[%s13022_s7 + $0x8] sm:$0xff]  ;;  %s13481_s28 = sld [smem:[#allocation162_spill]]  ;;  %v7291_v22 = vmov 3   ;;  %v7571_v50 = vld [vmem:[%s13022_s7 + $0x20] sm:$0xff]  ;;  %v7605_v63 = vld [vmem:[%s13022_s7 + $0x30] sm:$0xff]  ;;  %s7292_s3 = smov 32  }
  0x18   :  { %507 = vperm.xlu1 %5910, %v7429_v1   ;;  %499 = vperm.xlu0 %5909, %v7434_v2   ;;  %v7475_v12 = vld [vmem:[%s13022_s7 + $0x28] sm:$0xff]  ;;  %s13107_s29 = smov 40   ;;  %s7294_s17 = smov 56   ;;  %vm1444_vm1 = vcmask 1043456   ;;  %vm1234_vm2 = vcmask 64512   ;;  %vm1251_vm3 = vcmask 130048  }
  0x19   :  { %2889 = vmatprep.subr.bf16.mxu1 %v13043_v6  ;;  %v7511_v26 = vld [vmem:[%s13022_s7 + $0x48] sm:$0xff]  ;;  %s7295_s24 = smov 64   ;;  %s13527_s27 = sld [smem:[#allocation163_spill]]  ;;  %vm1268_vm4 = vcmask 195584   ;;  %vm1285_vm5 = vcmask 261120   ;;  %vm1302_vm6 = vcmask 326656  }
  0x1a   :  { %v7534_v35 = vld [vmem:[%s13022_s7 + $0x68] sm:$0xff]  ;;  %s7296_s0 = smov 8   ;;  %s7297_s30 = smov 16   ;;  %vm1319_vm7 = vcmask 392192   ;;  %vm1336_vm8 = vcmask 457728   ;;  %vm1353_vm9 = vcmask 523264  }
  0x1b   :  { %s7299_s23 = smov 48   ;;  %s13600_s26 = smov 40   ;;  %vm1419_vm10 = vcmask 588800   ;;  %vm2698_vm12 = vcmask 654336   ;;  %vm2715_vm13 = vcmask 785408   ;;  %vm2732_vm14 = vcmask 916480  }
  0x1c   :  { %v7454_v7 = vld [vmem:[%s13480_s2] ss:$0 sm:$0xff]  ;;  %v7459_v8 = vld [vmem:[%s13480_s2 + $0x1] ss:$0 sm:$0xff]  ;;  %511 = vperm.xlu1 %5910, %v7443_v4   ;;  %503 = vperm.xlu0 %5909, %v7448_v5   ;;  %s7306_s4 = smov 96   ;;  %s14183_s20 = sld [smem:[#allocation166_spill]] }
  0x1d   :  { %v103_v9 = vld [vmem:[%s13481_s28] sm:$0xff]  ;;  %v104_v10 = vld [vmem:[%s13481_s28 + $0x8] sm:$0xff]  ;;  %v105_v18 = vld [vmem:[%s13481_s28 + $0x10] sm:$0xff] }
  0x1e   :  { %v111_v11 = vld [vmem:[%s13481_s28 + $0x40] sm:$0xff]  ;;  %v171_v13 = vmul.f32 %v7454_v7, %v103_v9  ;;  %v172_v14 = vmul.f32 %v7454_v7, %v104_v10  ;;  %v112_v15 = vld [vmem:[%s13481_s28 + $0x48] sm:$0xff]  ;;  %v106_v28 = vld [vmem:[%s13481_s28 + $0x18] sm:$0xff]  ;;  %v173_v29 = vmul.f32 %v7454_v7, %v105_v18 }
  0x1f   :  { %v207_v16 = vmul.f32 %v7454_v7, %v111_v11  ;;  %v208_v17 = vmul.f32 %v7454_v7, %v112_v15  ;;  %v119_v21 = vld [vmem:[%s13481_s28 + $0x80] sm:$0xff]  ;;  %v120_v25 = vld [vmem:[%s13481_s28 + $0x88] sm:$0xff]  ;;  %v113_v34 = vld [vmem:[%s13481_s28 + $0x50] sm:$0xff]  ;;  %v174_v39 = vmul.f32 %v7454_v7, %v106_v28 }
  0x20   :  { %v7488_v19 = vadd.f32 %v7459_v8, %v171_v13  ;;  %5911 = vset.pattern.permute.xlu1 %v7291_v22  ;;  %519 = vperm.xlu0 %5909, %v7475_v12   ;;  %v7499_v23 = vadd.f32 %v7459_v8, %v172_v14  ;;  %v127_v30 = vld [vmem:[%s13481_s28 + $0xc0] sm:$0xff]  ;;  %v128_v32 = vld [vmem:[%s13481_s28 + $0xc8] sm:$0xff]  ;;  %v239_v33 = vmul.f32 %v7454_v7, %v119_v21  ;;  %v114_v37 = vld [vmem:[%s13481_s28 + $0x58] sm:$0xff] }
  0x21   :  { %v7491_v20 = vadd.f32 %v7459_v8, %v207_v16  ;;  %v7502_v24 = vadd.f32 %v7459_v8, %v208_v17  ;;  %631 = vperm.xlu1 %5911, %v7448_v5   ;;  %v240_v36 = vmul.f32 %v7454_v7, %v120_v25  ;;  %v121_v38 = vld [vmem:[%s13481_s28 + $0x90] sm:$0xff]  ;;  %v271_v40 = vmul.f32 %v7454_v7, %v127_v30  ;;  %v122_v45 = vld [vmem:[%s13481_s28 + $0x98] sm:$0xff] }
  0x22   :  { %13482 = vst [vmem:[#allocation9_spill] sm:$0xff] %v7488_v19  ;;  %13484 = vst [vmem:[#allocation11_spill] sm:$0xff] %v7499_v23  ;;  %v129_v41 = vld [vmem:[%s13481_s28 + $0xd0] sm:$0xff]  ;;  %v7551_v42 = vadd.f32 %v7459_v8, %v173_v29  ;;  %v272_v43 = vmul.f32 %v7454_v7, %v128_v32  ;;  %v209_v44 = vmul.f32 %v7454_v7, %v113_v34  ;;  %v130_v58 = vld [vmem:[%s13481_s28 + $0xd8] sm:$0xff]  ;;  %v383_v17 = vlaneseq }
  0x23   :  { %13483 = vst [vmem:[#allocation10_spill] sm:$0xff] %v7491_v20  ;;  %13485 = vst [vmem:[#allocation12_spill] sm:$0xff] %v7502_v24  ;;  %v7559_v46 = vadd.f32 %v7459_v8, %v239_v33  ;;  %v7562_v47 = vadd.f32 %v7459_v8, %v240_v36  ;;  %v7565_v48 = vadd.f32 %v7459_v8, %v271_v40  ;;  %v319_v11 = vmax.f32 %v7491_v20, 0.0  ;;  %v7630_v18 = vld [vmem:[%s13022_s7 + $0x38] sm:$0xff]  ;;  %v7660_v32 = vld [vmem:[%s13022_s7 + $0x40] sm:$0xff] }
  0x24   :  { %535 = vperm.xlu0 %5909, %v7511_v26   ;;  %13486 = vst [vmem:[#allocation13_spill] sm:$0xff] %v7551_v42  ;;  %v210_v49 = vmul.f32 %v7454_v7, %v114_v37  ;;  %v7574_v51 = vadd.f32 %v7459_v8, %v272_v43  ;;  %v7577_v52 = vadd.f32 %v7459_v8, %v209_v44  ;;  %v320_v13 = vmax.f32 %v7502_v24, 0.0  ;;  %v115_v33 = vld [vmem:[%s13481_s28 + $0x60] sm:$0xff]  ;;  %v116_v34 = vld [vmem:[%s13481_s28 + $0x68] sm:$0xff]  ;;  %v7690_v44 = vld [vmem:[%s13022_s7 + $0x50] sm:$0xff] }
  0x25   :  { %635 = vperm.xlu1 %5911, %v7429_v1   ;;  %13487 = vst [vmem:[#allocation14_spill] sm:$0xff] %v7559_v46  ;;  %13488 = vst [vmem:[#allocation15_spill] sm:$0xff] %v7562_v47  ;;  %v241_v53 = vmul.f32 %v7454_v7, %v121_v38  ;;  %v273_v54 = vmul.f32 %v7454_v7, %v129_v41  ;;  %v7583_v55 = vadd.f32 %v7459_v8, %v174_v39  ;;  %v107_v36 = vld [vmem:[%s13481_s28 + $0x20] sm:$0xff]  ;;  %v108_v37 = vld [vmem:[%s13481_s28 + $0x28] sm:$0xff] }
  0x26   :  { %13489 = vst [vmem:[#allocation16_spill] sm:$0xff] %v7565_v48  ;;  %13490 = vst [vmem:[#allocation17_spill] sm:$0xff] %v7574_v51  ;;  %v7588_v57 = vadd.f32 %v7459_v8, %v210_v49  ;;  %v242_v61 = vmul.f32 %v7454_v7, %v122_v45  ;;  %v274_v9 = vmul.f32 %v7454_v7, %v130_v58  ;;  %v7634_v21 = vrot.slane %v320_v13, 7  ;;  %v7679_v38 = vld [vmem:[%s13022_s7 + $0x58] sm:$0xff]  ;;  %v7696_v45 = vld [vmem:[%s13022_s7 + $0x60] sm:$0xff] }
  0x27   :  { %13491 = vst [vmem:[#allocation18_spill] sm:$0xff] %v7577_v52  ;;  %13492 = vst [vmem:[#allocation19_spill] sm:$0xff] %v7583_v55  ;;  %v7608_v0 = vadd.f32 %v7459_v8, %v241_v53  ;;  %v7612_v10 = vadd.f32 %v7459_v8, %v273_v54  ;;  %v7638_v25 = vrot.slane %v319_v11, 7  ;;  %v7642_v29 = vshrl.u32 %v383_v17, 7  ;;  %v117_v49 = vld [vmem:[%s13481_s28 + $0x70] sm:$0xff]  ;;  %v7161_v24 = vld [vmem:[%s13527_s27] sm:$0xff]  }
  0x28   :  { %551 = vperm.xlu0 %5909, %v7534_v35   ;;  %13493 = vst [vmem:[#allocation20_spill] sm:$0xff] %v7588_v57  ;;  %v7619_v14 = vadd.f32 %v7459_v8, %v242_v61  ;;  %v7622_v15 = vadd.f32 %v7459_v8, %v274_v9  ;;  %v211_v39 = vmul.f32 %v7454_v7, %v115_v33  ;;  %v118_v9 = vld [vmem:[%s13481_s28 + $0x78] sm:$0xff]  ;;  %v109_v17 = vld [vmem:[%s13481_s28 + $0x30] sm:$0xff] }
  0x29   :  { %5912 = vset.pattern.permute.xlu1 %v7289_v3  ;;  %13494 = vst [vmem:[#allocation21_spill] sm:$0xff] %v7608_v0  ;;  %13495 = vst [vmem:[#allocation22_spill] sm:$0xff] %v7612_v10  ;;  %vm385_vm0 = vcmp.lt.s32.totalorder %v7642_v29, 1  ;;  %v212_v40 = vmul.f32 %v7454_v7, %v116_v34  ;;  %v175_v41 = vmul.f32 %v7454_v7, %v107_v36  ;;  %v110_v33 = vld [vmem:[%s13481_s28 + $0x38] sm:$0xff]  ;;  %5842 = vmatprep.subr.bf16.mxu0 %v7161_v24 }
  0x2a   :  { %515 = vperm.xlu1 %5912, %v7571_v50   ;;  %13496 = vst [vmem:[#allocation23_spill] sm:$0xff] %v7622_v15  ;;  %v7651_v30 = vsel %vm385_vm0, %v7638_v25, %v7634_v21  ;;  %v176_v43 = vmul.f32 %v7454_v7, %v108_v37  ;;  %v7702_v53 = vadd.f32 %v7459_v8, %v211_v39  ;;  %v7731_v37 = vld [vmem:[%s13022_s7 + $0x78] sm:$0xff]  ;;  %vm1689_vm11 = vcmp.lt.s32.totalorder %v7642_v29, 7 }
  0x2b   :  { %v7705_v54 = vadd.f32 %v7459_v8, %v212_v40  ;;  %v7708_v58 = vadd.f32 %v7459_v8, %v175_v41  ;;  %v213_v39 = vmul.f32 %v7454_v7, %v117_v49  ;;  %v214_v40 = vmul.f32 %v7454_v7, %v118_v9  ;;  %5843 = vmatpush3.bf16.msra.mxu0 %v7161_v24  ;;  %v7163_v24 = vld [vmem:[%s13527_s27 + $0x10] sm:$0xff]  }
  0x2c   :  { %5917 = vset.pattern.permute.xlu0 %v7291_v22  ;;  %13497 = vst [vmem:[#allocation24_spill] sm:$0xff] %v7702_v53  ;;  %v7711_v61 = vadd.f32 %v7459_v8, %v176_v43  ;;  %v177_v41 = vmul.f32 %v7454_v7, %v109_v17  ;;  %v178_v43 = vmul.f32 %v7454_v7, %v110_v33  ;;  %v303_v33 = vmax.f32 %v7488_v19, 0.0 }
  0x2d   :  { %627 = vperm.xlu0 %5917, %v7434_v2   ;;  %13498 = vst [vmem:[#allocation25_spill] sm:$0xff] %v7705_v54  ;;  %13499 = vst [vmem:[#allocation26_spill] sm:$0xff] %v7708_v58  ;;  %v7740_v34 = vadd.f32 %v7459_v8, %v213_v39  ;;  %v7743_v36 = vadd.f32 %v7459_v8, %v214_v40  ;;  %v304_v39 = vmax.f32 %v7499_v23, 0.0  ;;  %v134_v40 = vld [vmem:[%s13481_s28 + $0xf8] sm:$0xff] }
  0x2e   :  { %523 = vperm.xlu1 %5912, %v7605_v63   ;;  %13500 = vst [vmem:[#allocation27_spill] sm:$0xff] %v7711_v61  ;;  %v7746_v62 = vadd.f32 %v7459_v8, %v177_v41  ;;  %v7749_v49 = vadd.f32 %v7459_v8, %v178_v43  ;;  %v126_v41 = vld [vmem:[%s13481_s28 + $0xb8] sm:$0xff]  ;;  %v278_v43 = vmul.f32 %v7454_v7, %v134_v40 }
  0x2f   :  { %13501 = vst [vmem:[#allocation28_spill] sm:$0xff] %v7740_v34  ;;  %13502 = vst [vmem:[#allocation29_spill] sm:$0xff] %v7743_v36  ;;  %v246_v17 = vmul.f32 %v7454_v7, %v126_v41 }
  0x30   :  { %13503 = vst [vmem:[#allocation30_spill] sm:$0xff] %v7746_v62  ;;  %13504 = vst [vmem:[#allocation31_spill] sm:$0xff] %v7749_v49 }
  0x31   :  { %639 = vperm.xlu0 %5917, %v7443_v4   ;;  %v7791_v40 = vadd.f32 %v7459_v8, %v246_v17  ;;  %v7807_v17 = vmax.f32 %v7574_v51, 0.0 }
  0x32   :  { %527 = vperm.xlu1 %5912, %v7630_v18  }
  0x33   :  { %13506 = vst [vmem:[#allocation33_spill] sm:$0xff] %v7791_v40 }
  0x35   :  { %643 = vperm.xlu0 %5917, %v7571_v50  }
  0x36   :  { %5913 = vset.pattern.permute.xlu1 %v7291_v22 }
  0x37   :  { %647 = vperm.xlu1 %5913, %v7475_v12  }
  0x39   :  { %655 = vperm.xlu0 %5917, %v7630_v18  }
  0x3b   :  { %651 = vperm.xlu1 %5913, %v7605_v63  }
  0x3d   :  { %659 = vperm.xlu0 %5917, %v7660_v32  }
  0x3f   :  { %5914 = vset.pattern.permute.xlu1 %v7289_v3 }
  0x40   :  { %531 = vperm.xlu1 %5914, %v7660_v32  }
  0x41   :  { %671 = vperm.xlu0 %5917, %v7679_v38  }
  0x44   :  { %539 = vperm.xlu1 %5914, %v7690_v44  }
  0x45   :  { %675 = vperm.xlu0 %5917, %v7696_v45  }
  0x48   :  { %543 = vperm.xlu1 %5914, %v7679_v38  }
  0x49   :  { %687 = vperm.xlu0 %5917, %v7731_v37  }
  0x4c   :  { %5915 = vset.pattern.permute.xlu1 %v7291_v22 }
  0x4d   :  { %663 = vperm.xlu1 %5915, %v7511_v26   ;;  %5920 = vset.pattern.permute.xlu0 %v13043_v6 }
  0x4e   :  { %409 = vperm.xlu0 %5920, %v7448_v5   ;;  %v5921_v5 = vpack.i.bf16 %v304_v39, %v303_v33  ;;  %v336_v33 = vmax.f32 %v7562_v47, 0.0  ;;  %v7788_v39 = vadd.f32 %v7459_v8, %v278_v43  ;;  %v144_v43 = vld [vmem:[%s13481_s28 + $0x148] sm:$0xff] }
  0x4f   :  { %v216_v9 = vmul.f32 %v7454_v7, %v144_v43  ;;  %v145_v43 = vld [vmem:[%s13481_s28 + $0x150] sm:$0xff] }
  0x50   :  { %13505 = vst [vmem:[#allocation32_spill] sm:$0xff] %v7788_v39 }
  0x51   :  { %667 = vperm.xlu1 %5915, %v7690_v44   ;;  %v7836_v16 = vadd.f32 %v7459_v8, %v216_v9 }
  0x52   :  { %424 = vperm.xlu0 %5920, %v7571_v50   ;;  %v7775_v50 = vld [vmem:[%s13022_s7 + $0x70] sm:$0xff] }
  0x53   :  { %13508 = vst [vmem:[#allocation35_spill] sm:$0xff] %v7836_v16 }
  0x55   :  { %5916 = vset.pattern.permute.xlu1 %v7289_v3  ;;  %v5931_v3 = vpack.i.bf16 %v320_v13, %v319_v11  ;;  %v7804_v13 = vmax.f32 %v7565_v48, 0.0 }
  0x56   :  { %547 = vperm.xlu1 %5916, %v7696_v45   ;;  %434 = vperm.xlu0 %5920, %v7605_v63   ;;  %v13048_v63 = vmax.f32 %v7559_v46, 0.0 }
  0x58   :  { %v5941_v11 = vpack.i.bf16 %v336_v33, %v13048_v63 }
  0x5a   :  { %555 = vperm.xlu1 %5916, %v7775_v50   ;;  %5922 = vrot.lane.b32.xlu0 %v5921_v5, %s7292_s3  ;;  %v143_v5 = vld [vmem:[%s13481_s28 + $0x140] sm:$0xff] }
  0x5b   :  { %v215_v41 = vmul.f32 %v7454_v7, %v143_v5 }
  0x5e   :  { %559 = vperm.xlu1 %5916, %v7731_v37   ;;  %5932 = vrot.lane.b32.xlu0 %v5931_v3, %s13107_s29  ;;  %v136_v3 = vld [vmem:[%s13481_s28 + $0x108] sm:$0xff] }
  0x5f   :  { %v180_v60 = vmul.f32 %v7454_v7, %v136_v3 }
  0x61   :  { %v7842_v5 = vadd.f32 %v7459_v8, %v180_v60  ;;  %v137_v60 = vld [vmem:[%s13481_s28 + $0x110] sm:$0xff] }
  0x62   :  { %5918 = vset.pattern.permute.xlu1 %v7291_v22  ;;  %5942 = vrot.lane.b32.xlu0 %v5941_v11, %s7294_s17  ;;  %v135_v22 = vld [vmem:[%s13481_s28 + $0x100] sm:$0xff]  ;;  %v5951_v11 = vpack.i.bf16 %v7807_v17, %v7804_v13 }
  0x63   :  { %679 = vperm.xlu1 %5918, %v7534_v35   ;;  %v179_v28 = vmul.f32 %v7454_v7, %v135_v22  ;;  %13510 = vst [vmem:[#allocation37_spill] sm:$0xff] %v7842_v5  ;;  %v217_v22 = vmul.f32 %v7454_v7, %v145_v43 }
  0x65   :  { %v7839_v31 = vadd.f32 %v7459_v8, %v179_v28  ;;  %v7868_v28 = vadd.f32 %v7459_v8, %v217_v22  ;;  %v13046_v22 = vmax.f32 %v7588_v57, 0.0 }
  0x66   :  { %449 = vperm.xlu0 %5920, %v7511_v26   ;;  %v7833_v26 = vadd.f32 %v7459_v8, %v215_v41  ;;  %v146_v41 = vld [vmem:[%s13481_s28 + $0x158] sm:$0xff] }
  0x67   :  { %683 = vperm.xlu1 %5918, %v7775_v50   ;;  %13509 = vst [vmem:[#allocation36_spill] sm:$0xff] %v7839_v31  ;;  %v218_v3 = vmul.f32 %v7454_v7, %v146_v41  ;;  %13511 = vst [vmem:[#allocation38_spill] sm:$0xff] %v7868_v28  ;;  %v305_v41 = vmax.f32 %v7551_v42, 0.0  ;;  %v13526_v42 = vmax.f32 %v7559_v46, 0.0  ;;  %v133_v46 = vld [vmem:[%s13481_s28 + $0xf0] sm:$0xff] }
  0x68   :  { %13507 = vst [vmem:[#allocation34_spill] sm:$0xff] %v7833_v26 }
  0x69   :  { %v7871_v59 = vadd.f32 %v7459_v8, %v218_v3  ;;  %v13047_v3 = vmax.f32 %v7619_v14, 0.0 }
  0x6a   :  { %5952 = vrot.lane.b32.xlu0 %v5951_v11, %s7295_s24  ;;  %v181_v11 = vmul.f32 %v7454_v7, %v137_v60  ;;  %v306_v60 = vmax.f32 %v7583_v55, 0.0 }
  0x6b   :  { %5919 = vset.pattern.permute.xlu1 %v13043_v6  ;;  %13512 = vst [vmem:[#allocation39_spill] sm:$0xff] %v7871_v59 }
  0x6c   :  { %404 = vperm.xlu1 %5919, %v7434_v2   ;;  %v138_v2 = vld [vmem:[%s13481_s28 + $0x118] sm:$0xff]  ;;  %v7874_v27 = vadd.f32 %v7459_v8, %v181_v11  ;;  %v148_v11 = vld [vmem:[%s13481_s28 + $0x168] sm:$0xff] }
  0x6d   :  { %v182_v9 = vmul.f32 %v7454_v7, %v138_v2  ;;  %v5926_v2 = vpack.i.bf16 %v306_v60, %v305_v41  ;;  %v139_v41 = vld [vmem:[%s13481_s28 + $0x120] sm:$0xff]  ;;  %v140_v60 = vld [vmem:[%s13481_s28 + $0x128] sm:$0xff] }
  0x6e   :  { %459 = vperm.xlu0 %5920, %v7679_v38   ;;  %13513 = vst [vmem:[#allocation40_spill] sm:$0xff] %v7874_v27  ;;  %v184_v43 = vmul.f32 %v7454_v7, %v140_v60 }
  0x6f   :  { %v7877_v38 = vadd.f32 %v7459_v8, %v182_v9  ;;  %v13045_v9 = vmax.f32 %v7577_v52, 0.0 }
  0x70   :  { %414 = vperm.xlu1 %5919, %v7429_v1   ;;  %v183_v1 = vmul.f32 %v7454_v7, %v139_v41 }
  0x71   :  { %13514 = vst [vmem:[#allocation41_spill] sm:$0xff] %v7877_v38 }
  0x74   :  { %419 = vperm.xlu1 %5919, %v7443_v4   ;;  %v5936_v4 = vpack.i.bf16 %v13046_v22, %v13045_v9  ;;  %v7924_v22 = vadd.f32 %v7459_v8, %v183_v1 }
  0x76   :  { %13517 = vst [vmem:[#allocation44_spill] sm:$0xff] %v7924_v22 }
  0x78   :  { %429 = vperm.xlu1 %5919, %v7475_v12   ;;  %v337_v12 = vmax.f32 %v7608_v0, 0.0 }
  0x7a   :  { %v5946_v56 = vpack.i.bf16 %v13047_v3, %v337_v12 }
  0x7c   :  { %439 = vperm.xlu1 %5919, %v7630_v18   ;;  %v147_v18 = vld [vmem:[%s13481_s28 + $0x160] sm:$0xff] }
  0x80   :  { %5927 = vrot.lane.b32.xlu1 %v5926_v2, %s7292_s3  ;;  %v219_v2 = vmul.f32 %v7454_v7, %v147_v18  ;;  %v7927_v18 = vadd.f32 %v7459_v8, %v184_v43  ;;  %v166_v43 = vld [vmem:[%s13481_s28 + $0x1f8] sm:$0xff] }
  0x81   :  { %v286_v1 = vmul.f32 %v7454_v7, %v166_v43 }
  0x82   :  { %v7918_v6 = vadd.f32 %v7459_v8, %v219_v2  ;;  %13518 = vst [vmem:[#allocation45_spill] sm:$0xff] %v7927_v18  ;;  %v277_v18 = vmul.f32 %v7454_v7, %v133_v46 }
  0x83   :  { %v7952_v41 = vadd.f32 %v7459_v8, %v286_v1 }
  0x84   :  { %5937 = vrot.lane.b32.xlu1 %v5936_v4, %s13107_s29  ;;  %v220_v4 = vmul.f32 %v7454_v7, %v148_v11  ;;  %13515 = vst [vmem:[#allocation42_spill] sm:$0xff] %v7918_v6 }
  0x85   :  { %13522 = vst [vmem:[#allocation49_spill] sm:$0xff] %v7952_v41  ;;  %v7972_v55 = vmax.f32 %v7952_v41, 0.0 }
  0x86   :  { %v7921_v9 = vadd.f32 %v7459_v8, %v220_v4 }
  0x87   :  { %13525 = vst [vmem:[#allocation52_spill] sm:$0xff] %v7972_v55 }
  0x88   :  { %444 = vperm.xlu1 %5919, %v7660_v32   ;;  %13516 = vst [vmem:[#allocation43_spill] sm:$0xff] %v7921_v9  ;;  %v158_v32 = vld [vmem:[%s13481_s28 + $0x1b8] sm:$0xff] }
  0x89   :  { %v254_v60 = vmul.f32 %v7454_v7, %v158_v32  ;;  %v7958_v32 = vmax.f32 %v7612_v10, 0.0 }
  0x8c   :  { %5947 = vrot.lane.b32.xlu1 %v5946_v56, %s7294_s17  ;;  %v7943_v56 = vadd.f32 %v7459_v8, %v254_v60 }
  0x8e   :  { %13519 = vst [vmem:[#allocation46_spill] sm:$0xff] %v7943_v56  ;;  %v13054_v11 = vmax.f32 %v7943_v56, 0.0 }
  0x90   :  { %454 = vperm.xlu1 %5919, %v7690_v44   ;;  %v150_v44 = vld [vmem:[%s13481_s28 + $0x178] sm:$0xff] }
  0x91   :  { %v222_v43 = vmul.f32 %v7454_v7, %v150_v44 }
  0x93   :  { %v7988_v51 = vadd.f32 %v7459_v8, %v222_v43 }
  0x95   :  { %13528 = vst [vmem:[#allocation53_spill] sm:$0xff] %v7988_v51 }
  0x97   :  { %v7946_v2 = vpop.permute.xlu0 %499  ;;  %v7948_v4 = vpop.permute.xlu1 %507 }
  0x98   :  { %13520 = vst [vmem:[#allocation47_spill] sm:$0xff] %v7946_v2  ;;  %13521 = vst [vmem:[#allocation48_spill] sm:$0xff] %v7948_v4  ;;  %v564_v60 = vmul.f32 %v7948_v4, %v336_v33  ;;  %v562_v1 = vmul.f32 %v7946_v2, %v13054_v11  ;;  %v580_v33 = vmul.f32 %v7948_v4, %v7807_v17 }
  0x9b   :  { %v7964_v3 = vpop.permute.xlu0 %503  ;;  %v7966_v63 = vpop.permute.xlu1 %511 }
  0x9c   :  { %13523 = vst [vmem:[#allocation50_spill] sm:$0xff] %v7964_v3  ;;  %13524 = vst [vmem:[#allocation51_spill] sm:$0xff] %v7966_v63  ;;  %v563_v10 = vmul.f32 %v7964_v3, %v13526_v42  ;;  %v565_v0 = vmul.f32 %v7966_v63, %v337_v12  ;;  %v581_v44 = vmul.f32 %v7966_v63, %v7958_v32  ;;  %v13536_v63 = vmax.f32 %v7577_v52, 0.0 }
  0x9d   :  { %v579_v41 = vmul.f32 %v7964_v3, %v7804_v13 }
  0x9e   :  { %v5956_v11 = vpack.i.bf16 %v563_v10, %v562_v1  ;;  %v5961_v23 = vpack.i.bf16 %v565_v0, %v564_v60  ;;  %v578_v10 = vmul.f32 %v7946_v2, %v7972_v55  ;;  %v5971_v0 = vpack.i.bf16 %v581_v44, %v580_v33  ;;  %v7162_v60 = vld [vmem:[%s13527_s27 + $0x8] sm:$0xff]   ;;  %v131_v33 = vld [vmem:[%s13481_s28 + $0xe0] sm:$0xff] }
  0x9f   :  { %v7990_v42 = vpop.permute.xlu0 %519  ;;  %v13060_v1 = vmax.f32 %v7988_v51, 0.0  ;;  %5844 = vmatprep.subr.bf16.mxu0 %v7162_v60  ;;  %v123_v44 = vld [vmem:[%s13481_s28 + $0xa0] sm:$0xff]  ;;  %v596_v4 = vrot.slane %v13536_v63, 7  ;;  %v124_v63 = vld [vmem:[%s13481_s28 + $0xa8] sm:$0xff] }
  0xa0   :  { %13529 = vst [vmem:[#allocation54_spill] sm:$0xff] %v7990_v42  ;;  %5957 = vrot.lane.b32.xlu0 %v5956_v11, %s7296_s0  ;;  %v7993_v12 = vpop.permute.xlu1 %631  ;;  %5962 = vrot.lane.b32.xlu1 %v5961_v23, %s7296_s0  ;;  %v5966_v43 = vpack.i.bf16 %v579_v41, %v578_v10  ;;  %v367_v10 = vrot.slane %v7804_v13, 7 }
  0xa1   :  { %13530 = vst [vmem:[#allocation55_spill] sm:$0xff] %v7993_v12  ;;  %5845 = vmatpush3.bf16.msra.mxu0 %v7162_v60  ;;  %v8010_v23 = vrot.slane %v13060_v1, 7  ;;  %v13535_v1 = vmax.f32 %v7588_v57, 0.0  ;;  %v275_v60 = vmul.f32 %v7454_v7, %v131_v33  ;;  %v691_v19 = vmul.f32 %v7993_v12, %v7651_v30 }
  0xa2   :  { %5846 = vmatprep.subr.bf16.mxu0 %v7163_v24 }
  0xa3   :  { %v8002_v3 = vpop.permute.xlu0 %535  ;;  %13533 = vst [vmem:[#allocation58_spill] sm:$0xff] %v8010_v23  ;;  %v8031_v2 = vrot.slane %v13535_v1, 7  ;;  %v625_v13 = vsel %vm385_vm0, %v8010_v23, %v7638_v25  ;;  %v7164_v1 = vld [vmem:[%s13527_s27 + $0x18] sm:$0xff]   ;;  %v13539_v25 = vrot.slane %v7972_v55, 7  ;;  %v8090_v56 = vadd.f32 %v7459_v8, %v275_v60  ;;  %v7165_v55 = vld [vmem:[%s13527_s27 + $0x20] ss:$0 sps:$4 sm:$0xff]  }
  0xa4   :  { %13531 = vst [vmem:[#allocation56_spill] sm:$0xff] %v8002_v3  ;;  %5967 = vrot.lane.b32.xlu0 %v5966_v43, %s7297_s30  ;;  %v8005_v11 = vpop.permute.xlu1 %635  ;;  %5972 = vrot.lane.b32.xlu1 %v5971_v0, %s7297_s30  ;;  %v368_v0 = vrot.slane %v7807_v17, 7  ;;  %v8027_v43 = vmax.f32 %v7622_v15, 0.0  ;;  %v243_v15 = vmul.f32 %v7454_v7, %v123_v44  ;;  %v369_v44 = vrot.slane %v7958_v32, 7  ;;  %v125_v17 = vld [vmem:[%s13481_s28 + $0xb0] sm:$0xff]  ;;  %s7298_s27 = smov 24  }
  0xa5   :  { %13532 = vst [vmem:[#allocation57_spill] sm:$0xff] %v8005_v11  ;;  %5847 = vmatpush3.bf16.msra.mxu0 %v7163_v24  ;;  %v8060_v33 = vsel %vm385_vm0, %v13539_v25, %v367_v10  ;;  %v622_v48 = vsel %vm385_vm0, %v596_v4, %v8031_v2  ;;  %v132_v25 = vld [vmem:[%s13481_s28 + $0xe8] sm:$0xff]  ;;  %v245_v23 = vmul.f32 %v7454_v7, %v125_v17 }
  0xa6   :  { %v8054_v57 = vsel %vm385_vm0, %v367_v10, %v368_v0  ;;  %13540 = vst [vmem:[#allocation62_spill] sm:$0xff] %v8060_v33  ;;  %5848 = vmatprep.subr.bf16.mxu0 %v7164_v1  ;;  %v623_v10 = vsel %vm385_vm0, %v7634_v21, %v596_v4  ;;  %v8093_v21 = vadd.f32 %v7459_v8, %v243_v15 }
  0xa7   :  { %v8015_v41 = vpop.permute.xlu0 %551  ;;  %v244_v4 = vmul.f32 %v7454_v7, %v124_v63  ;;  %v276_v15 = vmul.f32 %v7454_v7, %v132_v25  ;;  %v1446_v63 = vsel %vm1444_vm1, %v7165_v55, 0  ;;  %v692_v17 = vmul.f32 %v8005_v11, %v623_v10 }
  0xa8   :  { %13534 = vst [vmem:[#allocation59_spill] sm:$0xff] %v8015_v41  ;;  %13543 = vst [vmem:[#allocation64_spill] sm:$0xff] %v8093_v21  ;;  %v8118_v46 = vsel %vm385_vm0, %v368_v0, %v369_v44  ;;  %v8128_v10 = vadd.f32 %v7459_v8, %v245_v23  ;;  %v8133_v0 = vmax.f32 %v8090_v56, 0.0 }
  0xa9   :  { %v8035_v47 = vpop.permute.xlu1 %515  ;;  %5849 = vmatpush3.bf16.msra.mxu0 %v7164_v1  ;;  %v8121_v25 = vadd.f32 %v7459_v8, %v244_v4 }
  0xaa   :  { %13537 = vst [vmem:[#allocation60_spill] sm:$0xff] %v8035_v47  ;;  %5886 = vmatprep.subr.msk.bf16.mxu0 %vm1444_vm1, %v7165_v55  ;;  %v13089_v55 = vmax.f32 %v7702_v53, 0.0  ;;  %13548 = vst [vmem:[#allocation68_spill] sm:$0xff] %v8128_v10 }
  0xab   :  { %13546 = vst [vmem:[#allocation67_spill] sm:$0xff] %v8121_v25 }
  0xac   :  { %v8050_v24 = vpop.permute.xlu0 %627 }
  0xad   :  { %13538 = vst [vmem:[#allocation61_spill] sm:$0xff] %v8050_v24  ;;  %v8066_v52 = vpop.permute.xlu1 %523  ;;  %v690_v20 = vmul.f32 %v8050_v24, %v625_v13  ;;  %v13542_v13 = vrot.slane %v8027_v43, 7  ;;  %v706_v1 = vmul.f32 %v8050_v24, %v8060_v33  ;;  %5851 = vmatpush3.bf16.msra.mxu0 %v1446_v63 }
  0xae   :  { %13541 = vst [vmem:[#allocation63_spill] sm:$0xff] %v8066_v52 }
  0xaf   :  { %v8087_v30 = vsel %vm385_vm0, %v369_v44, %v13542_v13  ;;  %v5976_v51 = vpack.i.bf16 %v691_v19, %v690_v20  ;;  %v707_v20 = vmul.f32 %v7993_v12, %v8054_v57  ;;  %v13549_v44 = vmax.f32 %v7705_v54, 0.0 }
  0xb0   :  { %v8102_v13 = vpop.permute.xlu0 %639 }
  0xb1   :  { %13544 = vst [vmem:[#allocation65_spill] sm:$0xff] %v8102_v13  ;;  %5977 = vrot.lane.b32.xlu0 %v5976_v51, %s7298_s27  ;;  %v8110_v19 = vpop.permute.xlu1 %527  ;;  %v693_v60 = vmul.f32 %v8102_v13, %v622_v48  ;;  %v13547_v51 = vmov 0   ;;  %v5986_v24 = vpack.i.bf16 %v707_v20, %v706_v1  ;;  %v709_v12 = vmul.f32 %v8102_v13, %v8087_v30 }
  0xb2   :  { %13545 = vst [vmem:[#allocation66_spill] sm:$0xff] %v8110_v19  ;;  %3871 = vmatprep.subr.bf16.mxu0 %v13547_v51  ;;  %v5991_v48 = vpack.i.bf16 %v8027_v43, %v7958_v32  ;;  %v599_v4 = vrot.slane %v13549_v44, 7  ;;  %v708_v1 = vmul.f32 %v8005_v11, %v8118_v46  ;;  %v8146_v32 = vadd.f32 %v7459_v8, %v277_v18 }
  0xb3   :  { %v5981_v33 = vpack.i.bf16 %v693_v60, %v692_v17  ;;  %v8143_v60 = vadd.f32 %v7459_v8, %v276_v15  ;;  %v582_v20 = vmul.f32 %v8035_v47, %v8027_v43  ;;  %v13553_v17 = vmax.f32 %v7619_v14, 0.0 }
  0xb4   :  { %13551 = vst [vmem:[#allocation70_spill] sm:$0xff] %v8146_v32  ;;  %v583_v8 = vmul.f32 %v7990_v42, %v8133_v0  ;;  %v8174_v15 = vpop.permute.xlu0 %643  ;;  %v13558_v11 = vmax.f32 %v8128_v10, 0.0 }
  0xb5   :  { %5987 = vrot.lane.b32.xlu0 %v5986_v24, %s7299_s23  ;;  %5982 = vrot.lane.b32.xlu1 %v5981_v33, %s7298_s27  ;;  %13550 = vst [vmem:[#allocation69_spill] sm:$0xff] %v8143_v60  ;;  %v598_v24 = vrot.slane %v13089_v55, 7  ;;  %v5996_v33 = vpack.i.bf16 %v709_v12, %v708_v1  ;;  %v566_v44 = vmul.f32 %v8035_v47, %v13553_v17  ;;  %v13554_v12 = vmax.f32 %v8093_v21, 0.0 }
  0xb6   :  { %v8148_v63 = vpop.permute.xlu1 %647  ;;  %v8169_v17 = vmax.f32 %v8143_v60, 0.0  ;;  %v8172_v55 = vmax.f32 %v8146_v32, 0.0  ;;  %13555 = vst [vmem:[#allocation72_spill] sm:$0xff] %v8174_v15  ;;  %v6011_v51 = vpack.i.bf16 %v583_v8, %v582_v20  ;;  %v326_v47 = vmax.f32 %v7743_v36, 0.0 }
  0xb7   :  { %13552 = vst [vmem:[#allocation71_spill] sm:$0xff] %v8148_v63  ;;  %v620_v18 = vsel %vm385_vm0, %v598_v24, %v599_v4  ;;  %v567_v1 = vmul.f32 %v7990_v42, %v13554_v12  ;;  %v13557_v42 = vmax.f32 %v8121_v25, 0.0  ;;  %v569_v32 = vmul.f32 %v8110_v19, %v13558_v11 }
  0xb8   :  { %v695_v60 = vmul.f32 %v8148_v63, %v620_v18  ;;  %v307_v20 = vmax.f32 %v7708_v58, 0.0  ;;  %v8195_v8 = vrot.slane %v326_v47, 7  ;;  %v584_v11 = vmul.f32 %v8066_v52, %v8169_v17 }
  0xb9   :  { %5992 = vrot.lane.b32.xlu0 %v5991_v48, %s7295_s24  ;;  %5997 = vrot.lane.b32.xlu1 %v5996_v33, %s7299_s23  ;;  %v621_v48 = vsel %vm385_vm0, %v8031_v2, %v598_v24  ;;  %v325_v33 = vmax.f32 %v7740_v34, 0.0  ;;  %v6001_v12 = vpack.i.bf16 %v567_v1, %v566_v44  ;;  %v568_v13 = vmul.f32 %v8066_v52, %v13557_v42  ;;  %v8208_v34 = vpop.permute.xlu0 %655 }
  0xba   :  { %v8176_v23 = vpop.permute.xlu1 %651  ;;  %v694_v2 = vmul.f32 %v8174_v15, %v621_v48  ;;  %v308_v24 = vmax.f32 %v7711_v61, 0.0  ;;  %v372_v48 = vrot.slane %v8169_v17, 7  ;;  %13560 = vst [vmem:[#allocation75_spill] sm:$0xff] %v8208_v34  ;;  %v13130_v61 = vmov 5  }
  0xbb   :  { %13556 = vst [vmem:[#allocation73_spill] sm:$0xff] %v8176_v23  ;;  %v600_v44 = vrot.slane %v325_v33, 7  ;;  %v6006_v1 = vpack.i.bf16 %v569_v32, %v568_v13 }
  0xbc   :  { %v6021_v36 = vpack.i.bf16 %v695_v60, %v694_v2  ;;  %v371_v60 = vrot.slane %v8133_v0, 7 }
  0xbd   :  { %6012 = vrot.lane.b32.xlu0 %v6011_v51, %s7297_s30  ;;  %6002 = vrot.lane.b32.xlu1 %v6001_v12, %s7296_s0  ;;  %v585_v51 = vmul.f32 %v8110_v19, %v8172_v55  ;;  %v619_v18 = vsel %vm385_vm0, %v599_v4, %v600_v44  ;;  %v6031_v12 = vpack.i.bf16 %v308_v24, %v307_v20  ;;  %v13563_v20 = vmax.f32 %v7705_v54, 0.0 }
  0xbe   :  { %v618_v13 = vsel %vm385_vm0, %v600_v44, %v8195_v8  ;;  %v696_v4 = vmul.f32 %v8176_v23, %v619_v18  ;;  %v8219_v52 = vsel %vm385_vm0, %v371_v60, %v372_v48 }
  0xbf   :  { %v8197_v42 = vpop.permute.xlu1 %531  ;;  %v6016_v2 = vpack.i.bf16 %v585_v51, %v584_v11  ;;  %v697_v44 = vmul.f32 %v8208_v34, %v618_v13  ;;  %v310_v11 = vmax.f32 %v7749_v49, 0.0  ;;  %v13564_v51 = vrot.slane %v8027_v43, 7 }
  0xc0   :  { %13559 = vst [vmem:[#allocation74_spill] sm:$0xff] %v8197_v42 }
  0xc1   :  { %6007 = vrot.lane.b32.xlu1 %v6006_v1, %s7296_s0  ;;  %6022 = vrot.lane.b32.xlu0 %v6021_v36, %s7298_s27  ;;  %v13562_v36 = vmax.f32 %v7702_v53, 0.0  ;;  %v309_v1 = vmax.f32 %v7746_v62, 0.0  ;;  %v8234_v18 = vsel %vm385_vm0, %v13564_v51, %v371_v60  ;;  %v6026_v19 = vpack.i.bf16 %v697_v44, %v696_v4 }
  0xc2   :  { %v710_v43 = vmul.f32 %v8174_v15, %v8234_v18  ;;  %v373_v60 = vrot.slane %v8172_v55, 7 }
  0xc3   :  { %v8214_v32 = vpop.permute.xlu1 %539  ;;  %v6041_v24 = vpack.i.bf16 %v13563_v20, %v13562_v36  ;;  %v711_v36 = vmul.f32 %v8148_v63, %v8219_v52  ;;  %v6036_v13 = vpack.i.bf16 %v310_v11, %v309_v1  ;;  %v6046_v1 = vpack.i.bf16 %v326_v47, %v325_v33  ;;  %v8261_v11 = vpop.permute.xlu0 %659  ;;  %v159_v33 = vld [vmem:[%s13481_s28 + $0x1c0] sm:$0xff] }
  0xc4   :  { %13561 = vst [vmem:[#allocation76_spill] sm:$0xff] %v8214_v32  ;;  %v8253_v4 = vsel %vm385_vm0, %v372_v48, %v373_v60  ;;  %13569 = vst [vmem:[#allocation79_spill] sm:$0xff] %v8261_v11 }
  0xc5   :  { %6017 = vrot.lane.b32.xlu1 %v6016_v2, %s7297_s30  ;;  %6032 = vrot.lane.b32.xlu0 %v6031_v12, %s7292_s3  ;;  %v8237_v2 = vmax.f32 %v7788_v39, 0.0  ;;  %v6051_v51 = vpack.i.bf16 %v711_v36, %v710_v43  ;;  %v712_v48 = vmul.f32 %v8176_v23, %v8253_v4 }
  0xc7   :  { %v8239_v12 = vpop.permute.xlu1 %543  ;;  %v13109_v20 = vrot.slane %v8237_v2, 7 }
  0xc8   :  { %13565 = vst [vmem:[#allocation77_spill] sm:$0xff] %v8239_v12 }
  0xc9   :  { %6042 = vrot.lane.b32.xlu0 %v6041_v24, %s13107_s29  ;;  %6027 = vrot.lane.b32.xlu1 %v6026_v19, %s7298_s27  ;;  %v13567_v19 = vmax.f32 %v8093_v21, 0.0  ;;  %v13568_v24 = vmax.f32 %v8121_v25, 0.0  ;;  %v8267_v36 = vsel %vm385_vm0, %v373_v60, %v13109_v20  ;;  %v8303_v20 = vld [vmem:[%s13480_s2] ss:$0 sm:$0xff] }
  0xca   :  { %v713_v47 = vmul.f32 %v8208_v34, %v8267_v36 }
  0xcb   :  { %v6061_v44 = vpack.i.bf16 %v13568_v24, %v13567_v19  ;;  %v279_v19 = vmul.f32 %v7454_v7, %v159_v33  ;;  %v152_v24 = vld [vmem:[%s13481_s28 + $0x188] sm:$0xff]  ;;  %v342_v33 = vmax.f32 %v7791_v40, 0.0  ;;  %v13581_v40 = vmax.f32 %v7833_v26, 0.0 }
  0xcc   :  { %v8249_v49 = vpop.permute.xlu1 %663  ;;  %v6056_v60 = vpack.i.bf16 %v713_v47, %v712_v48  ;;  %v6071_v48 = vpack.i.bf16 %v8169_v17, %v8133_v0  ;;  %v248_v34 = vmul.f32 %v8303_v20, %v152_v24 }
  0xcd   :  { %13566 = vst [vmem:[#allocation78_spill] sm:$0xff] %v8249_v49  ;;  %6052 = vrot.lane.b32.xlu0 %v6051_v51, %s7299_s23  ;;  %6037 = vrot.lane.b32.xlu1 %v6036_v13, %s7292_s3  ;;  %v151_v13 = vld [vmem:[%s13481_s28 + $0x180] sm:$0xff]  ;;  %v8283_v51 = vpop.permute.xlu0 %671 }
  0xce   :  { %13571 = vst [vmem:[#allocation81_spill] sm:$0xff] %v8283_v51  ;;  %v247_v47 = vmul.f32 %v7454_v7, %v151_v13  ;;  %v13122_v7 = vmax.f32 %v7836_v16, 0.0  ;;  %v13575_v13 = vmax.f32 %v8128_v10, 0.0 }
  0xd0   :  { %v8271_v43 = vpop.permute.xlu1 %667 }
  0xd1   :  { %13570 = vst [vmem:[#allocation80_spill] sm:$0xff] %v8271_v43  ;;  %6062 = vrot.lane.b32.xlu0 %v6061_v44, %s7294_s17  ;;  %6047 = vrot.lane.b32.xlu1 %v6046_v1, %s13107_s29  ;;  %v153_v44 = vld [vmem:[%s13481_s28 + $0x190] sm:$0xff]  ;;  %v8329_v63 = vpop.permute.xlu0 %675 }
  0xd2   :  { %v249_v23 = vmul.f32 %v8303_v20, %v153_v44  ;;  %13577 = vst [vmem:[#allocation86_spill] sm:$0xff] %v8329_v63  ;;  %v603_v44 = vrot.slane %v13122_v7, 7  ;;  %v586_v7 = vmul.f32 %v8197_v42, %v8237_v2 }
  0xd5   :  { %v8292_v1 = vpop.permute.xlu1 %547  ;;  %469 = vperm.xlu0 %5920, %v7534_v35   ;;  %6057 = vrot.lane.b32.xlu1 %v6056_v60, %s7299_s23  ;;  %v8310_v35 = vld [vmem:[%s13480_s2 + $0x1] ss:$0 sm:$0xff]  ;;  %v6066_v60 = vpack.i.bf16 %v342_v33, %v13575_v13  ;;  %v8361_v10 = vpop.permute.xlu0 %687  ;;  %s7305_s2 = smov 112  }
  0xd6   :  { %13572 = vst [vmem:[#allocation82_spill] sm:$0xff] %v8292_v1  ;;  %v8313_v0 = vadd.f32 %v8310_v35, %v279_v19  ;;  %v8323_v24 = vadd.f32 %v8310_v35, %v247_v47  ;;  %v160_v19 = vld [vmem:[%s13481_s28 + $0x1c8] sm:$0xff]  ;;  %v8338_v13 = vadd.f32 %v8310_v35, %v249_v23  ;;  %13582 = vst [vmem:[#allocation90_spill] sm:$0xff] %v8361_v10 }
  0xd7   :  { %v280_v15 = vmul.f32 %v8303_v20, %v160_v19  ;;  %v570_v19 = vmul.f32 %v8197_v42, %v342_v33 }
  0xd8   :  { %13573 = vst [vmem:[#allocation83_spill] sm:$0xff] %v8313_v0  ;;  %13576 = vst [vmem:[#allocation85_spill] sm:$0xff] %v8323_v24  ;;  %v8341_v47 = vmax.f32 %v8313_v0, 0.0  ;;  %v602_v0 = vrot.slane %v13581_v40, 7  ;;  %v13584_v33 = vmax.f32 %v8323_v24, 0.0 }
  0xd9   :  { %6072 = vrot.lane.b32.xlu0 %v6071_v48, %s7295_s24  ;;  %464 = vperm.xlu1 %5919, %v7696_v45   ;;  %v8318_v17 = vpop.permute.xlu1 %555  ;;  %v161_v45 = vld [vmem:[%s13481_s28 + $0x1d0] sm:$0xff]  ;;  %v8335_v48 = vadd.f32 %v8310_v35, %v248_v34  ;;  %13579 = vst [vmem:[#allocation88_spill] sm:$0xff] %v8338_v13  ;;  %v6081_v34 = vpack.i.bf16 %v8237_v2, %v8172_v55 }
  0xda   :  { %13574 = vst [vmem:[#allocation84_spill] sm:$0xff] %v8318_v17  ;;  %v281_v62 = vmul.f32 %v8303_v20, %v161_v45  ;;  %v587_v55 = vmul.f32 %v8002_v3, %v8341_v47  ;;  %v616_v23 = vsel %vm385_vm0, %v602_v0, %v603_v44  ;;  %v8368_v40 = vadd.f32 %v8310_v35, %v280_v15 }
  0xdb   :  { %13578 = vst [vmem:[#allocation87_spill] sm:$0xff] %v8335_v48  ;;  %v571_v45 = vmul.f32 %v8002_v3, %v13584_v33  ;;  %v13137_v15 = vmax.f32 %v7868_v28, 0.0  ;;  %v13587_v33 = vmax.f32 %v8335_v48, 0.0 }
  0xdc   :  { %13583 = vst [vmem:[#allocation91_spill] sm:$0xff] %v8368_v40  ;;  %v6091_v54 = vpack.i.bf16 %v587_v55, %v586_v7  ;;  %v162_v7 = vld [vmem:[%s13481_s28 + $0x1d8] sm:$0xff]  ;;  %v8396_v55 = vpop.permute.xlu0 %409 }
  0xdd   :  { %479 = vperm.xlu0 %5920, %v7731_v37   ;;  %6067 = vrot.lane.b32.xlu1 %v6066_v60, %s7294_s17  ;;  %v8348_v39 = vpop.permute.xlu1 %559  ;;  %v617_v60 = vsel %vm385_vm0, %v8195_v8, %v602_v0  ;;  %v8379_v37 = vadd.f32 %v8310_v35, %v281_v62  ;;  %v572_v3 = vmul.f32 %v8214_v32, %v13587_v33  ;;  %v13588_v8 = vmax.f32 %v8338_v13, 0.0 }
  0xde   :  { %13580 = vst [vmem:[#allocation89_spill] sm:$0xff] %v8348_v39  ;;  %v699_v0 = vmul.f32 %v8249_v49, %v616_v23  ;;  %13589 = vst [vmem:[#allocation94_spill] sm:$0xff] %v8396_v55  ;;  %v311_v23 = vmax.f32 %v7839_v31, 0.0  ;;  %v312_v33 = vmax.f32 %v7842_v5, 0.0 }
  0xdf   :  { %13585 = vst [vmem:[#allocation92_spill] sm:$0xff] %v8379_v37  ;;  %v573_v62 = vmul.f32 %v8239_v12, %v13588_v8 }
  0xe1   :  { %6082 = vrot.lane.b32.xlu0 %v6081_v34, %s7295_s24  ;;  %474 = vperm.xlu1 %5919, %v7775_v50   ;;  %v6076_v50 = vpack.i.bf16 %v571_v45, %v570_v19  ;;  %v8399_v34 = vmax.f32 %v8368_v40, 0.0  ;;  %v698_v19 = vmul.f32 %v8261_v11, %v617_v60  ;;  %v8405_v45 = vmax.f32 %v8379_v37, 0.0 }
  0xe2   :  { %v8381_v42 = vpop.permute.xlu1 %679  ;;  %6243 = vset.pattern.permute.xlu0 %v13130_v61  ;;  %v604_v61 = vrot.slane %v13137_v15, 7  ;;  %v13591_v40 = vmax.f32 %v7871_v59, 0.0  ;;  %v6086_v60 = vpack.i.bf16 %v573_v62, %v572_v3  ;;  %v375_v62 = vrot.slane %v8341_v47, 7 }
  0xe3   :  { %13586 = vst [vmem:[#allocation93_spill] sm:$0xff] %v8381_v42  ;;  %v6101_v37 = vpack.i.bf16 %v699_v0, %v698_v19  ;;  %v588_v31 = vmul.f32 %v8214_v32, %v8399_v34  ;;  %v589_v5 = vmul.f32 %v8239_v12, %v8405_v45  ;;  %v376_v58 = vrot.slane %v8399_v34, 7 }
  0xe4   :  { %v8415_v53 = vrot.slane %v13591_v40, 7  ;;  %v615_v15 = vsel %vm385_vm0, %v603_v44, %v604_v61  ;;  %v6111_v40 = vpack.i.bf16 %v312_v33, %v311_v23  ;;  %v13596_v23 = vmax.f32 %v7836_v16, 0.0 }
  0xe5   :  { %6092 = vrot.lane.b32.xlu0 %v6091_v54, %s7297_s30  ;;  %6077 = vrot.lane.b32.xlu1 %v6076_v50, %s7296_s0  ;;  %v282_v54 = vmul.f32 %v8303_v20, %v162_v7  ;;  %v13139_v50 = vmov 2   ;;  %v8428_v7 = vpop.permute.xlu0 %424  ;;  %v6096_v44 = vpack.i.bf16 %v589_v5, %v588_v31  ;;  %v314_v31 = vmax.f32 %v7877_v38, 0.0 }
  0xe6   :  { %v8409_v8 = vpop.permute.xlu1 %683  ;;  %6241 = vset.pattern.permute.xlu1 %v13139_v50  ;;  %13592 = vst [vmem:[#allocation96_spill] sm:$0xff] %v8428_v7  ;;  %v614_v3 = vsel %vm385_vm0, %v604_v61, %v8415_v53  ;;  %v700_v50 = vmul.f32 %v8271_v43, %v615_v15  ;;  %v13595_v61 = vmax.f32 %v7833_v26, 0.0  ;;  %v13597_v5 = vrot.slane %v8237_v2, 7 }
  0xe7   :  { %13590 = vst [vmem:[#allocation95_spill] sm:$0xff] %v8409_v8  ;;  %v8435_v0 = vadd.f32 %v8310_v35, %v282_v54  ;;  %v701_v54 = vmul.f32 %v8283_v51, %v614_v3 }
  0xe8   :  { %v6121_v33 = vpack.i.bf16 %v13596_v23, %v13595_v61  ;;  %v8457_v15 = vsel %vm385_vm0, %v13597_v5, %v375_v62  ;;  %v154_v23 = vld [vmem:[%s13481_s28 + $0x198] sm:$0xff]  ;;  %v157_v5 = vld [vmem:[%s13481_s28 + $0x1b0] sm:$0xff] }
  0xe9   :  { %6087 = vrot.lane.b32.xlu1 %v6086_v60, %s7296_s0  ;;  %6102 = vrot.lane.b32.xlu0 %v6101_v37, %s7298_s27  ;;  %13593 = vst [vmem:[#allocation97_spill] sm:$0xff] %v8435_v0  ;;  %v8442_v37 = vsel %vm385_vm0, %v375_v62, %v376_v58  ;;  %v313_v60 = vmax.f32 %v7874_v27, 0.0  ;;  %v6106_v32 = vpack.i.bf16 %v701_v54, %v700_v50  ;;  %v8466_v3 = vpop.permute.xlu0 %434  ;;  %v163_v50 = vld [vmem:[%s13481_s28 + $0x1e0] sm:$0xff]  ;;  %v377_v54 = vrot.slane %v8405_v45, 7 }
  0xea   :  { %v715_v61 = vmul.f32 %v8249_v49, %v8442_v37  ;;  %13599 = vst [vmem:[#allocation100_spill] sm:$0xff] %v8466_v3  ;;  %v714_v2 = vmul.f32 %v8261_v11, %v8457_v15  ;;  %v155_v49 = vld [vmem:[%s13481_s28 + $0x1a0] sm:$0xff]  ;;  %v156_v11 = vld [vmem:[%s13481_s28 + $0x1a8] sm:$0xff] }
  0xeb   :  { %v8437_v19 = vpop.permute.xlu1 %404  ;;  %v6116_v62 = vpack.i.bf16 %v314_v31, %v313_v60  ;;  %v8488_v60 = vsel %vm385_vm0, %v376_v58, %v377_v54  ;;  %v283_v31 = vmul.f32 %v8303_v20, %v163_v50  ;;  %v13605_v50 = vmax.f32 %v7871_v59, 0.0 }
  0xec   :  { %13594 = vst [vmem:[#allocation98_spill] sm:$0xff] %v8437_v19  ;;  %v251_v27 = vmul.f32 %v8303_v20, %v155_v49  ;;  %v253_v49 = vmul.f32 %v8303_v20, %v157_v5 }
  0xed   :  { %6097 = vrot.lane.b32.xlu1 %v6096_v44, %s7297_s30  ;;  %6112 = vrot.lane.b32.xlu0 %v6111_v40, %s7292_s3  ;;  %v8460_v44 = vmax.f32 %v8435_v0, 0.0  ;;  %v8508_v0 = vpop.permute.xlu0 %5922  ;;  %v8529_v59 = vadd.f32 %v8310_v35, %v283_v31  ;;  %v164_v31 = vld [vmem:[%s13481_s28 + $0x1e8] sm:$0xff] }
  0xef   :  { %v8462_v40 = vpop.permute.xlu1 %414  ;;  %v13606_v16 = vrot.slane %v8460_v44, 7  ;;  %13610 = vst [vmem:[#allocation105_spill] sm:$0xff] %v8529_v59  ;;  %v8562_v26 = vmax.f32 %v8529_v59, 0.0  ;;  %v590_v59 = vmul.f32 %v8292_v1, %v8460_v44 }
  0xf0   :  { %13598 = vst [vmem:[#allocation99_spill] sm:$0xff] %v8462_v40 }
  0xf1   :  { %6122 = vrot.lane.b32.xlu0 %v6121_v33, %s13600_s26  ;;  %6107 = vrot.lane.b32.xlu1 %v6106_v32, %s7298_s27  ;;  %v6131_v33 = vpack.i.bf16 %v715_v61, %v714_v2  ;;  %v250_v32 = vmul.f32 %v8303_v20, %v154_v23  ;;  %v13602_v61 = vmax.f32 %v8323_v24, 0.0  ;;  %v13603_v23 = vmax.f32 %v8335_v48, 0.0 }
  0xf2   :  { %v13604_v2 = vmax.f32 %v7868_v28, 0.0 }
  0xf3   :  { %v8483_v12 = vpop.permute.xlu1 %419  ;;  %v6141_v58 = vpack.i.bf16 %v13603_v23, %v13602_v61  ;;  %v716_v61 = vmul.f32 %v8271_v43, %v8488_v60  ;;  %v8521_v23 = vadd.f32 %v8310_v35, %v250_v32  ;;  %v8542_v32 = vadd.f32 %v8310_v35, %v251_v27 }
  0xf4   :  { %13601 = vst [vmem:[#allocation101_spill] sm:$0xff] %v8483_v12  ;;  %v6126_v38 = vpack.i.bf16 %v13605_v50, %v13604_v2  ;;  %v252_v2 = vmul.f32 %v8303_v20, %v156_v11  ;;  %v149_v50 = vld [vmem:[%s13481_s28 + $0x170] sm:$0xff]  ;;  %v6151_v11 = vpack.i.bf16 %v8399_v34, %v8341_v47  ;;  %v8556_v34 = vadd.f32 %v8310_v35, %v253_v49 }
  0xf5   :  { %6132 = vrot.lane.b32.xlu0 %v6131_v33, %s7299_s23  ;;  %6117 = vrot.lane.b32.xlu1 %v6116_v62, %s7292_s3  ;;  %v8514_v33 = vsel %vm385_vm0, %v377_v54, %v13606_v16  ;;  %13609 = vst [vmem:[#allocation104_spill] sm:$0xff] %v8521_v23  ;;  %v165_v54 = vld [vmem:[%s13481_s28 + $0x1f0] sm:$0xff]  ;;  %13611 = vst [vmem:[#allocation106_spill] sm:$0xff] %v8542_v32  ;;  %v221_v43 = vmul.f32 %v8303_v20, %v149_v50  ;;  %v346_v28 = vmax.f32 %v8521_v23, 0.0 }
  0xf6   :  { %13607 = vst [vmem:[#allocation102_spill] sm:$0xff] %v8514_v33  ;;  %v717_v5 = vmul.f32 %v8283_v51, %v8514_v33  ;;  %v8553_v47 = vadd.f32 %v8310_v35, %v252_v2  ;;  %13614 = vst [vmem:[#allocation109_spill] sm:$0xff] %v8556_v34  ;;  %v285_v27 = vmul.f32 %v8303_v20, %v165_v54  ;;  %v8559_v51 = vpop.permute.xlu0 %5932  ;;  %v13615_v50 = vmax.f32 %v7921_v9, 0.0 }
  0xf7   :  { %v8516_v62 = vpop.permute.xlu1 %429  ;;  %v6161_v2 = vpack.i.bf16 %v8460_v44, %v8405_v45  ;;  %v13616_v49 = vmax.f32 %v8338_v13, 0.0  ;;  %v13617_v23 = vmax.f32 %v7918_v6, 0.0  ;;  %v315_v33 = vmax.f32 %v7924_v22, 0.0 }
  0xf8   :  { %13608 = vst [vmem:[#allocation103_spill] sm:$0xff] %v8516_v62  ;;  %13613 = vst [vmem:[#allocation108_spill] sm:$0xff] %v8553_v47  ;;  %v607_v16 = vrot.slane %v13615_v50, 7 }
  0xf9   :  { %6142 = vrot.lane.b32.xlu0 %v6141_v58, %s7294_s17  ;;  %6127 = vrot.lane.b32.xlu1 %v6126_v38, %s13600_s26  ;;  %v6136_v38 = vpack.i.bf16 %v717_v5, %v716_v61  ;;  %v284_v61 = vmul.f32 %v8303_v20, %v164_v31  ;;  %v6146_v54 = vpack.i.bf16 %v346_v28, %v13616_v49  ;;  %v606_v50 = vrot.slane %v13617_v23, 7 }
  0xfa   :  { %v8579_v31 = vadd.f32 %v8310_v35, %v221_v43  ;;  %v8587_v49 = vadd.f32 %v8310_v35, %v285_v27  ;;  %v591_v5 = vmul.f32 %v8015_v41, %v8562_v26  ;;  %v8601_v45 = vpop.permute.xlu0 %5942 }
  0xfb   :  { %v8549_v58 = vpop.permute.xlu1 %439  ;;  %v612_v23 = vsel %vm385_vm0, %v606_v50, %v607_v16  ;;  %v8594_v43 = vadd.f32 %v8310_v35, %v284_v61  ;;  %v141_v61 = vld [vmem:[%s13481_s28 + $0x130] sm:$0xff] }
  0xfc   :  { %13612 = vst [vmem:[#allocation107_spill] sm:$0xff] %v8549_v58  ;;  %13618 = vst [vmem:[#allocation110_spill] sm:$0xff] %v8579_v31  ;;  %v6171_v27 = vpack.i.bf16 %v591_v5, %v590_v59  ;;  %v333_v48 = vmax.f32 %v8579_v31, 0.0  ;;  %v13623_v5 = vmax.f32 %v8556_v34, 0.0  ;;  %v8623_v31 = vmax.f32 %v8587_v49, 0.0 }
  0xfd   :  { %6152 = vrot.lane.b32.xlu0 %v6151_v11, %s7295_s24  ;;  %6137 = vrot.lane.b32.xlu1 %v6136_v38, %s7299_s23  ;;  %v574_v38 = vmul.f32 %v8292_v1, %v346_v28  ;;  %13619 = vst [vmem:[#allocation111_spill] sm:$0xff] %v8587_v49  ;;  %13620 = vst [vmem:[#allocation112_spill] sm:$0xff] %v8594_v43  ;;  %v13621_v28 = vmax.f32 %v8542_v32, 0.0  ;;  %v613_v1 = vsel %vm385_vm0, %v8415_v53, %v606_v50 }
  0xfe   :  { %v577_v53 = vmul.f32 %v8348_v39, %v13623_v5  ;;  %v703_v50 = vmul.f32 %v8381_v42, %v612_v23  ;;  %v8626_v24 = vmax.f32 %v8594_v43, 0.0  ;;  %v185_v5 = vmul.f32 %v8303_v20, %v141_v61 }
  0xff   :  { %v8581_v11 = vpop.permute.xlu1 %5927  ;;  %v575_v13 = vmul.f32 %v8015_v41, %v13621_v28  ;;  %v13622_v41 = vmax.f32 %v8553_v47, 0.0  ;;  %v608_v25 = vrot.slane %v333_v48, 7  ;;  %v593_v22 = vmul.f32 %v8348_v39, %v8623_v31 }
 0x100   :  { %v592_v43 = vmul.f32 %v8318_v17, %v8626_v24  ;;  %v380_v61 = vrot.slane %v8626_v24, 7 }
 0x101   :  { %6162 = vrot.lane.b32.xlu0 %v6161_v2, %s7295_s24  ;;  %6147 = vrot.lane.b32.xlu1 %v6146_v54, %s7294_s17  ;;  %v142_v2 = vld [vmem:[%s13481_s28 + $0x138] sm:$0xff]  ;;  %v6156_v28 = vpack.i.bf16 %v575_v13, %v574_v38  ;;  %v576_v59 = vmul.f32 %v8318_v17, %v13622_v41  ;;  %v702_v41 = vmul.f32 %v8329_v63, %v613_v1  ;;  %v13624_v13 = vld [vmem:[#allocation45_spill] sm:$0xff]  ;;  %s7307_s28 = smov 80  }
 0x102   :  { %v316_v38 = vmax.f32 %v13624_v13, 0.0  ;;  %v186_v23 = vmul.f32 %v8303_v20, %v142_v2  ;;  %v611_v1 = vsel %vm385_vm0, %v607_v16, %v608_v25  ;;  %v8649_v2 = vadd.f32 %v8310_v35, %v185_v5 }
 0x103   :  { %v8613_v54 = vpop.permute.xlu1 %5937  ;;  %v6166_v49 = vpack.i.bf16 %v577_v53, %v576_v59  ;;  %v6181_v21 = vpack.i.bf16 %v703_v50, %v702_v41  ;;  %v13629_v53 = vld [vmem:[#allocation58_spill] sm:$0xff]  ;;  %v379_v41 = vrot.slane %v8562_v26, 7  ;;  %v6176_v16 = vpack.i.bf16 %v593_v22, %v592_v43 }
 0x104   :  { %v6191_v20 = vpack.i.bf16 %v316_v38, %v315_v33  ;;  %13627 = vst [vmem:[#allocation115_spill] sm:$0xff] %v8649_v2  ;;  %v8652_v59 = vadd.f32 %v8310_v35, %v186_v23  ;;  %v610_v50 = vsel %vm385_vm0, %v608_v25, %v13629_v53  ;;  %v704_v39 = vmul.f32 %v8409_v8, %v611_v1 }
 0x105   :  { %6172 = vrot.lane.b32.xlu0 %v6171_v27, %s7297_s30  ;;  %6157 = vrot.lane.b32.xlu1 %v6156_v28, %s7296_s0  ;;  %v8639_v27 = vpop.permute.xlu0 %449  ;;  %v13631_v35 = vmax.f32 %v7921_v9, 0.0  ;;  %v705_v25 = vmul.f32 %v8361_v10, %v610_v50  ;;  %v317_v38 = vmax.f32 %v8649_v2, 0.0  ;;  %v13632_v23 = vrot.slane %v8460_v44, 7 }
 0x106   :  { %13625 = vst [vmem:[#allocation113_spill] sm:$0xff] %v8639_v27  ;;  %13628 = vst [vmem:[#allocation116_spill] sm:$0xff] %v8652_v59  ;;  %v318_v22 = vmax.f32 %v8652_v59, 0.0 }
 0x107   :  { %v8641_v28 = vpop.permute.xlu1 %444  ;;  %v8680_v1 = vsel %vm385_vm0, %v13632_v23, %v379_v41 }
 0x108   :  { %13626 = vst [vmem:[#allocation114_spill] sm:$0xff] %v8641_v28  ;;  %v718_v50 = vmul.f32 %v8329_v63, %v8680_v1 }
 0x109   :  { %6167 = vrot.lane.b32.xlu1 %v6166_v49, %s7296_s0  ;;  %6182 = vrot.lane.b32.xlu0 %v6181_v21, %s7298_s27  ;;  %v8661_v49 = vsel %vm385_vm0, %v379_v41, %v380_v61  ;;  %v13630_v21 = vmax.f32 %v7918_v6, 0.0  ;;  %v8672_v43 = vpop.permute.xlu0 %5952  ;;  %v13635_v41 = vld [vmem:[#allocation53_spill] sm:$0xff] }
 0x10a   :  { %v719_v53 = vmul.f32 %v8381_v42, %v8661_v49 }
 0x10b   :  { %v6201_v33 = vpack.i.bf16 %v13631_v35, %v13630_v21  ;;  %v8674_v5 = vpop.permute.xlu1 %5947  ;;  %v381_v21 = vrot.slane %v8623_v31, 7 }
 0x10c   :  { %v6211_v35 = vpack.i.bf16 %v719_v53, %v718_v50 }
 0x10d   :  { %6177 = vrot.lane.b32.xlu1 %v6176_v16, %s7297_s30  ;;  %6192 = vrot.lane.b32.xlu0 %v6191_v20, %s7292_s3  ;;  %v6186_v20 = vpack.i.bf16 %v705_v25, %v704_v39  ;;  %v6196_v16 = vpack.i.bf16 %v318_v22, %v317_v38  ;;  %v8689_v44 = vpop.permute.xlu0 %459  ;;  %v8695_v39 = vsel %vm385_vm0, %v380_v61, %v381_v21  ;;  %v13637_v38 = vmax.f32 %v8542_v32, 0.0 }
 0x10e   :  { %13633 = vst [vmem:[#allocation58_spill] sm:$0xff] %v8689_v44  ;;  %v13638_v22 = vmax.f32 %v8553_v47, 0.0  ;;  %v720_v61 = vmul.f32 %v8409_v8, %v8695_v39 }
 0x10f   :  { %v8691_v59 = vpop.permute.xlu1 %454 }
 0x110   :  { %13634 = vst [vmem:[#allocation117_spill] sm:$0xff] %v8691_v59  ;;  %v6221_v23 = vpack.i.bf16 %v13638_v22, %v13637_v38  ;;  %v13642_v38 = vld [vmem:[#allocation46_spill] sm:$0xff] }
 0x111   :  { %6202 = vrot.lane.b32.xlu0 %v6201_v33, %s13600_s26  ;;  %6187 = vrot.lane.b32.xlu1 %v6186_v20, %s7298_s27  ;;  %v13636_v33 = vmax.f32 %v13635_v41, 0.0  ;;  %v13639_v20 = vld [vmem:[#allocation52_spill] sm:$0xff]  ;;  %v13643_v22 = vmax.f32 %v13642_v38, 0.0 }
 0x112   :  { %v13640_v53 = vrot.slane %v13639_v20, 7  ;;  %v5958_v2 = vpop.permute.xlu0 %5957 }
 0x113   :  { %v6206_v25 = vpack.i.bf16 %v13636_v33, %v333_v48  ;;  %v6231_v48 = vpack.i.bf16 %v8626_v24, %v8562_v26  ;;  %v5925_v26 = vunpack.i.h.bf16 %v8508_v0  ;;  %v5959_v38 = vunpack.i.l.bf16 %v5958_v2 }
 0x114   :  { %v386_v50 = vsel %vm385_vm0, %v381_v21, %v13640_v53  ;;  %v13641_v21 = vmax.f32 %v8556_v34, 0.0 }
 0x115   :  { %6212 = vrot.lane.b32.xlu0 %v6211_v35, %s7299_s23  ;;  %6197 = vrot.lane.b32.xlu1 %v6196_v16, %s7292_s3  ;;  %v721_v16 = vmul.f32 %v8361_v10, %v386_v50  ;;  %v5963_v35 = vpop.permute.xlu1 %5962 }
 0x116   :  { %v6226_v53 = vpack.i.bf16 %v13643_v22, %v13641_v21  ;;  %v5968_v24 = vpop.permute.xlu0 %5967  ;;  %v5934_v21 = vunpack.i.l.bf16 %v8559_v51  ;;  %v5965_v22 = vunpack.i.h.bf16 %v5963_v35 }
 0x117   :  { %v6216_v33 = vpack.i.bf16 %v721_v16, %v720_v61  ;;  %v6236_v61 = vpack.i.bf16 %v13639_v20, %v8623_v31  ;;  %v5924_v16 = vunpack.i.l.bf16 %v8508_v0  ;;  %v482_v31 = vmul.f32 %v8437_v19, %v386_v50 }
 0x118   :  { %v5970_v0 = vunpack.i.h.bf16 %v5968_v24  ;;  %v5969_v41 = vunpack.i.l.bf16 %v5968_v24  ;;  %v5930_v50 = vunpack.i.h.bf16 %v8581_v11  ;;  %v5964_v20 = vunpack.i.l.bf16 %v5963_v35 }
 0x119   :  { %6207 = vrot.lane.b32.xlu1 %v6206_v25, %s13600_s26  ;;  %6222 = vrot.lane.b32.xlu0 %v6221_v23, %s7294_s17  ;;  %v13644_v25 = vld [vmem:[#allocation62_spill] sm:$0xff]  ;;  %v5973_v34 = vpop.permute.xlu1 %5972  ;;  %v5929_v24 = vunpack.i.l.bf16 %v8581_v11  ;;  %v1235_v8 = vsel %vm1234_vm2, %v482_v31, %v5959_v38  ;;  %v8758_v11 = vld [vmem:[%s13022_s7 + $0x20] sm:$0xff]  ;;  %s13827_s26 = sld [smem:[#allocation164_spill]] }
 0x11a   :  { %v483_v23 = vmul.f32 %v8396_v55, %v13644_v25  ;;  %v5960_v55 = vunpack.i.h.bf16 %v5958_v2  ;;  %v484_v2 = vmul.f32 %v8462_v40, %v8054_v57  ;;  %v485_v25 = vmul.f32 %v8483_v12, %v8118_v46 }
 0x11b   :  { %v5939_v40 = vunpack.i.l.bf16 %v8613_v54  ;;  %v1252_v46 = vsel %vm1251_vm3, %v1235_v8, %v5969_v41  ;;  %v5975_v42 = vunpack.i.h.bf16 %v5973_v34 }
 0x11c   :  { %v1236_v10 = vsel %vm1234_vm2, %v483_v23, %v5960_v55  ;;  %v5950_v55 = vunpack.i.h.bf16 %v8674_v5 }
 0x11d   :  { %6217 = vrot.lane.b32.xlu1 %v6216_v33, %s7299_s23  ;;  %6232 = vrot.lane.b32.xlu0 %v6231_v48, %s7295_s24  ;;  %v5935_v33 = vunpack.i.h.bf16 %v8559_v51  ;;  %v8739_v51 = vld [vmem:[%s13022_s7 + $0x8] sm:$0xff]  ;;  %v5974_v48 = vunpack.i.l.bf16 %v5973_v34  ;;  %v1253_v12 = vsel %vm1251_vm3, %v1236_v10, %v5970_v0  ;;  %v1238_v10 = vsel %vm1234_vm2, %v485_v25, %v5965_v22 }
 0x11e   :  { %v13645_v25 = vunpack.i.l.bf16 %v8601_v45 }
 0x121   :  { %6227 = vrot.lane.b32.xlu1 %v6226_v53, %s7294_s17  ;;  %1807 = vperm.xlu0 %6243, %v8739_v51   ;;  %v5940_v53 = vunpack.i.h.bf16 %v8613_v54  ;;  %s14027_s17 = sld [smem:[#allocation165_spill]] }
 0x123   :  { %v5978_v19 = vpop.permute.xlu0 %5977 }
 0x124   :  { %v5980_v17 = vunpack.i.h.bf16 %v5978_v19  ;;  %v5979_v57 = vunpack.i.l.bf16 %v5978_v19  ;;  %v1237_v19 = vsel %vm1234_vm2, %v484_v2, %v5964_v20  ;;  %v5949_v20 = vunpack.i.l.bf16 %v8674_v5 }
 0x125   :  { %6237 = vrot.lane.b32.xlu1 %v6236_v61, %s7295_s24  ;;  %1819 = vperm.xlu0 %6243, %v8758_v11   ;;  %v1254_v34 = vsel %vm1251_vm3, %v1237_v19, %v5974_v48  ;;  %v1255_v2 = vsel %vm1251_vm3, %v1238_v10, %v5975_v42 }
 0x126   :  { %v1269_v54 = vsel %vm1268_vm4, %v1252_v46, %v5979_v57  ;;  %v1270_v8 = vsel %vm1268_vm4, %v1253_v12, %v5980_v17  ;;  %v13646_v46 = vunpack.i.h.bf16 %v8601_v45 }
 0x127   :  { %v1286_v41 = vsel %vm1285_vm5, %v1269_v54, %v5924_v16  ;;  %v1287_v35 = vsel %vm1285_vm5, %v1270_v8, %v5925_v26  ;;  %v5983_v38 = vpop.permute.xlu1 %5982  ;;  %v5988_v23 = vpop.permute.xlu0 %5987  ;;  %v8777_v26 = vld [vmem:[%s13022_s7 + $0x38] sm:$0xff] }
 0x128   :  { %v5985_v61 = vunpack.i.h.bf16 %v5983_v38  ;;  %v5984_v31 = vunpack.i.l.bf16 %v5983_v38  ;;  %v5990_v0 = vunpack.i.h.bf16 %v5988_v23  ;;  %v5989_v63 = vunpack.i.l.bf16 %v5988_v23 }
 0x129   :  { %1711 = vperm.xlu1 %6241, %v8739_v51   ;;  %v1303_v12 = vsel %vm1302_vm6, %v1286_v41, %v5934_v21  ;;  %v1304_v17 = vsel %vm1302_vm6, %v1287_v35, %v5935_v33  ;;  %1831 = vperm.xlu0 %6243, %v8777_v26   ;;  %v13647_v35 = vmov 5   ;;  %v13649_v23 = vunpack.i.h.bf16 %v8672_v43 }
 0x12a   :  { %v1272_v16 = vsel %vm1268_vm4, %v1255_v2, %v5985_v61  ;;  %v1271_v22 = vsel %vm1268_vm4, %v1254_v34, %v5984_v31  ;;  %v1320_v5 = vsel %vm1319_vm7, %v1303_v12, %v5989_v63  ;;  %v1321_v42 = vsel %vm1319_vm7, %v1304_v17, %v5990_v0  ;;  %v8804_v61 = vld [vmem:[%s13022_s7 + $0x50] sm:$0xff]  ;;  %v8812_v31 = vld [vmem:[%s13022_s7] sm:$0xff] }
 0x12b   :  { %v1289_v48 = vsel %vm1285_vm5, %v1272_v16, %v5930_v50  ;;  %v1288_v21 = vsel %vm1285_vm5, %v1271_v22, %v5929_v24  ;;  %v5998_v33 = vpop.permute.xlu1 %5997  ;;  %v1337_v57 = vsel %vm1336_vm8, %v1320_v5, %v13645_v25  ;;  %v1338_v19 = vsel %vm1336_vm8, %v1321_v42, %v13646_v46  ;;  %v5993_v34 = vpop.permute.xlu0 %5992  ;;  %v8823_v5 = vld [vmem:[%s13022_s7 + $0x68] sm:$0xff] }
 0x12c   :  { %v6000_v54 = vunpack.i.h.bf16 %v5998_v33  ;;  %v5999_v8 = vunpack.i.l.bf16 %v5998_v33  ;;  %v1305_v10 = vsel %vm1302_vm6, %v1288_v21, %v5939_v40  ;;  %v1306_v63 = vsel %vm1302_vm6, %v1289_v48, %v5940_v53  ;;  %v8839_v33 = vld [vmem:[%s13022_s7 + $0x18] sm:$0xff] }
 0x12d   :  { %v5995_v41 = vunpack.i.h.bf16 %v5993_v34  ;;  %v5994_v50 = vunpack.i.l.bf16 %v5993_v34  ;;  %6242 = vset.pattern.permute.xlu1 %v13647_v35  ;;  %v13648_v24 = vunpack.i.l.bf16 %v8672_v43  ;;  %v1355_v45 = vsel %vm1353_vm9, %v1338_v19, %v13649_v23  ;;  %1843 = vperm.xlu0 %6243, %v8804_v61   ;;  %v8849_v19 = vld [vmem:[%s13022_s7 + $0x30] sm:$0xff]  ;;  %v8872_v34 = vld [vmem:[%s13022_s7 + $0x60] sm:$0xff] }
 0x12e   :  { %v1322_v40 = vsel %vm1319_vm7, %v1305_v10, %v5999_v8  ;;  %v1323_v53 = vsel %vm1319_vm7, %v1306_v63, %v6000_v54  ;;  %1803 = vperm.xlu1 %6242, %v8812_v31   ;;  %v13201_v25 = vmov 7   ;;  %v8856_v54 = vld [vmem:[%s13022_s7 + $0x10] sm:$0xff]  ;;  %v8864_v10 = vld [vmem:[%s13022_s7 + $0x48] sm:$0xff] }
 0x12f   :  { %v1354_v38 = vsel %vm1353_vm9, %v1337_v57, %v13648_v24  ;;  %v1339_v0 = vsel %vm1336_vm8, %v1322_v40, %v5949_v20  ;;  %v1340_v2 = vsel %vm1336_vm8, %v1323_v53, %v5950_v55  ;;  %v6003_v16 = vpop.permute.xlu1 %6002  ;;  %v8826_v42 = vpop.permute.xlu0 %6012  ;;  %v13199_v20 = vmov 6   ;;  %v8881_v24 = vld [vmem:[%s13022_s7 + $0x78] sm:$0xff] }
 0x130   :  { %v1370_v43 = vpack.c.bf16 %v1355_v45, %v1354_v38  ;;  %v1357_v12 = vsel %vm1353_vm9, %v1340_v2, %v5995_v41  ;;  %v1356_v17 = vsel %vm1353_vm9, %v1339_v0, %v5994_v50  ;;  %v13650_v55 = vmov 2  }
 0x131   :  { %v1371_v22 = vpack.c.bf16 %v1357_v12, %v1356_v17  ;;  %1855 = vperm.xlu0 %6243, %v8823_v5   ;;  %v6005_v38 = vunpack.i.h.bf16 %v6003_v16  ;;  %v6004_v23 = vunpack.i.l.bf16 %v6003_v16  ;;  %v486_v40 = vmul.f32 %v8428_v7, %v8087_v30 }
 0x132   :  { %5852 = vmatprep.mubr.msk.bf16.mxu0 %vm1419_vm10, %v1370_v43  ;;  %6244 = vset.pattern.permute.xlu1 %v13199_v20  ;;  %v487_v53 = vmul.f32 %v8516_v62, %v8234_v18  ;;  %v6015_v0 = vunpack.i.h.bf16 %v8826_v42  ;;  %v6014_v2 = vunpack.i.l.bf16 %v8826_v42  ;;  %v13651_v7 = vmov 7  }
 0x133   :  { %1883 = vperm.xlu1 %6244, %v8812_v31   ;;  %5853 = vmatmul.mubr.msk.bf16.vlgmr.msra.gmra.mrb[0].mxu0 %vm1419_vm10, %v1371_v22  ;;  %v8832_v48 = vpop.permute.xlu1 %6007  ;;  %v6023_v21 = vpop.permute.xlu0 %6022  ;;  %v1239_v17 = vsel %vm1234_vm2, %v486_v40, %v6004_v23  ;;  %v488_v18 = vmul.f32 %v8466_v3, %v8219_v52  ;;  %v489_v62 = vmul.f32 %v8549_v58, %v8253_v4 }
 0x134   :  { %v1240_v12 = vsel %vm1234_vm2, %v487_v53, %v6005_v38  ;;  %v6025_v16 = vunpack.i.h.bf16 %v6023_v21  ;;  %v6024_v22 = vunpack.i.l.bf16 %v6023_v21  ;;  %v8912_v21 = vld [vmem:[%s13022_s7 + $0x28] sm:$0xff]  ;;  %v6009_v6 = vunpack.i.l.bf16 %v8832_v48 }
 0x135   :  { %6268 = vset.pattern.permute.xlu0 %v13650_v55  ;;  %v1257_v52 = vsel %vm1251_vm3, %v1240_v12, %v6015_v0 }
 0x136   :  { %1707 = vperm.xlu0 %6268, %v8812_v31   ;;  %v1274_v40 = vsel %vm1268_vm4, %v1257_v52, %v6025_v16 }
 0x137   :  { %1887 = vperm.xlu1 %6244, %v8739_v51   ;;  %v8843_v57 = vpop.permute.xlu1 %6017  ;;  %v6033_v46 = vpop.permute.xlu0 %6032 }
 0x138   :  { %v6034_v30 = vunpack.i.l.bf16 %v6033_v46  ;;  %v6020_v0 = vunpack.i.h.bf16 %v8843_v57 }
 0x13a   :  { %1719 = vperm.xlu0 %6268, %v8839_v33  }
 0x13b   :  { %6245 = vset.pattern.permute.xlu1 %v13201_v25  ;;  %v8859_v8 = vpop.permute.xlu1 %6027  ;;  %v6043_v63 = vpop.permute.xlu0 %6042  ;;  %v6035_v25 = vunpack.i.h.bf16 %v6033_v46  ;;  %v1256_v46 = vsel %vm1251_vm3, %v1239_v17, %v6014_v2  ;;  %v6019_v2 = vunpack.i.l.bf16 %v8843_v57 }
 0x13c   :  { %1967 = vperm.xlu1 %6245, %v8739_v51   ;;  %v6045_v9 = vunpack.i.h.bf16 %v6043_v63  ;;  %v6044_v42 = vunpack.i.l.bf16 %v6043_v63  ;;  %v1273_v63 = vsel %vm1268_vm4, %v1256_v46, %v6024_v22  ;;  %v1241_v46 = vsel %vm1234_vm2, %v488_v18, %v6009_v6 }
 0x13d   :  { %v1290_v47 = vsel %vm1285_vm5, %v1273_v63, %v6034_v30  ;;  %v1291_v32 = vsel %vm1285_vm5, %v1274_v40, %v6035_v25  ;;  %v8955_v40 = vld [vmem:[%s13022_s7 + $0x58] sm:$0xff] }
 0x13e   :  { %1731 = vperm.xlu0 %6268, %v8849_v19   ;;  %v1308_v12 = vsel %vm1302_vm6, %v1291_v32, %v6045_v9  ;;  %v6030_v9 = vunpack.i.h.bf16 %v8859_v8  ;;  %v6029_v32 = vunpack.i.l.bf16 %v8859_v8 }
 0x13f   :  { %v8875_v41 = vpop.permute.xlu1 %6037  ;;  %v6053_v50 = vpop.permute.xlu0 %6052 }
 0x140   :  { %6246 = vset.pattern.permute.xlu1 %v13650_v55  ;;  %v6055_v4 = vunpack.i.h.bf16 %v6053_v50  ;;  %v6054_v23 = vunpack.i.l.bf16 %v6053_v50  ;;  %v1307_v50 = vsel %vm1302_vm6, %v1290_v47, %v6044_v42  ;;  %v6040_v22 = vunpack.i.h.bf16 %v8875_v41 }
 0x141   :  { %1715 = vperm.xlu1 %6246, %v8856_v54   ;;  %v6039_v30 = vunpack.i.l.bf16 %v8875_v41  ;;  %v1258_v41 = vsel %vm1251_vm3, %v1241_v46, %v6019_v2 }
 0x142   :  { %1743 = vperm.xlu0 %6268, %v8864_v10  }
 0x143   :  { %v8884_v45 = vpop.permute.xlu1 %6047  ;;  %v6063_v43 = vpop.permute.xlu0 %6062 }
 0x144   :  { %v6065_v53 = vunpack.i.h.bf16 %v6063_v43  ;;  %v6064_v58 = vunpack.i.l.bf16 %v6063_v43 }
 0x145   :  { %6247 = vset.pattern.permute.xlu1 %v13647_v35 }
 0x146   :  { %1811 = vperm.xlu1 %6247, %v8856_v54   ;;  %1755 = vperm.xlu0 %6268, %v8872_v34  }
 0x147   :  { %v8904_v13 = vpop.permute.xlu1 %6057 }
 0x148   :  { %v6060_v6 = vunpack.i.h.bf16 %v8904_v13  ;;  %v6059_v18 = vunpack.i.l.bf16 %v8904_v13 }
 0x14a   :  { %1815 = vperm.xlu1 %6247, %v8839_v33   ;;  %1767 = vperm.xlu0 %6268, %v8881_v24  }
 0x14e   :  { %6248 = vset.pattern.permute.xlu1 %v13199_v20  ;;  %6272 = vset.pattern.permute.xlu0 %v13199_v20  ;;  %v6010_v20 = vunpack.i.h.bf16 %v8832_v48  ;;  %v1325_v48 = vsel %vm1319_vm7, %v1308_v12, %v6055_v4  ;;  %v6050_v4 = vunpack.i.h.bf16 %v8884_v45 }
 0x14f   :  { %1895 = vperm.xlu1 %6248, %v8839_v33   ;;  %1891 = vperm.xlu0 %6272, %v8856_v54   ;;  %v1342_v16 = vsel %vm1336_vm8, %v1325_v48, %v6065_v53 }
 0x150   :  { %v1242_v3 = vsel %vm1234_vm2, %v489_v62, %v6010_v20  ;;  %v8933_v62 = vld [vmem:[%s13022_s7 + $0x40] sm:$0xff]  ;;  %v1324_v20 = vsel %vm1319_vm7, %v1307_v50, %v6054_v23  ;;  %v6049_v23 = vunpack.i.l.bf16 %v8884_v45  ;;  %v1275_v50 = vsel %vm1268_vm4, %v1258_v41, %v6029_v32 }
 0x151   :  { %v1341_v57 = vsel %vm1336_vm8, %v1324_v20, %v6064_v58  ;;  %v1259_v53 = vsel %vm1251_vm3, %v1242_v3, %v6020_v0  ;;  %v1292_v20 = vsel %vm1285_vm5, %v1275_v50, %v6039_v30 }
 0x152   :  { %v1276_v45 = vsel %vm1268_vm4, %v1259_v53, %v6030_v9  ;;  %v1309_v3 = vsel %vm1302_vm6, %v1292_v20, %v6049_v23  ;;  %v13656_v23 = vmov 6  }
 0x153   :  { %6249 = vset.pattern.permute.xlu1 %v13651_v7  ;;  %1903 = vperm.xlu0 %6272, %v8912_v21   ;;  %v1293_v2 = vsel %vm1285_vm5, %v1276_v45, %v6040_v22  ;;  %v490_v45 = vmul.f32 %v8641_v28, %v8267_v36 }
 0x154   :  { %1971 = vperm.xlu1 %6249, %v8856_v54   ;;  %v8907_v38 = vpop.permute.xlu0 %469  ;;  %v1310_v0 = vsel %vm1302_vm6, %v1293_v2, %v6050_v4 }
 0x155   :  { %13652 = vst [vmem:[#allocation52_spill] sm:$0xff] %v8907_v38  ;;  %v1327_v9 = vsel %vm1319_vm7, %v1310_v0, %v6060_v6 }
 0x157   :  { %1915 = vperm.xlu0 %6272, %v8933_v62  }
 0x158   :  { %v8927_v17 = vpop.permute.xlu1 %464  ;;  %6250 = vset.pattern.permute.xlu1 %v13650_v55  ;;  %v6073_v43 = vpop.permute.xlu0 %6072 }
 0x159   :  { %13653 = vst [vmem:[#allocation62_spill] sm:$0xff] %v8927_v17  ;;  %v6075_v25 = vunpack.i.h.bf16 %v6073_v43  ;;  %v6074_v47 = vunpack.i.l.bf16 %v6073_v43  ;;  %1723 = vperm.xlu1 %6250, %v8758_v11  }
 0x15b   :  { %v1358_v42 = vsel %vm1353_vm9, %v1341_v57, %v6074_v47  ;;  %v1359_v52 = vsel %vm1353_vm9, %v1342_v16, %v6075_v25  ;;  %1927 = vperm.xlu0 %6272, %v8955_v40   ;;  %v8975_v25 = vld [vmem:[%s13022_s7 + $0x70] sm:$0xff]  ;;  %v1326_v47 = vsel %vm1319_vm7, %v1309_v3, %v6059_v18 }
 0x15c   :  { %v6068_v63 = vpop.permute.xlu1 %6067  ;;  %v8950_v8 = vpop.permute.xlu0 %479  ;;  %v1372_v58 = vpack.c.bf16 %v1359_v52, %v1358_v42 }
 0x15d   :  { %13654 = vst [vmem:[#allocation118_spill] sm:$0xff] %v8950_v8  ;;  %1727 = vperm.xlu1 %6250, %v8912_v21   ;;  %v6070_v12 = vunpack.i.h.bf16 %v6068_v63  ;;  %v6069_v43 = vunpack.i.l.bf16 %v6068_v63 }
 0x15e   :  { %5856 = vmatprep.mubr.msk.bf16.mxu0 %vm1419_vm10, %v1372_v58 }
 0x15f   :  { %1939 = vperm.xlu0 %6272, %v8975_v25   ;;  %v1343_v16 = vsel %vm1336_vm8, %v1326_v47, %v6069_v43  ;;  %v1344_v22 = vsel %vm1336_vm8, %v1327_v9, %v6070_v12  ;;  %v491_v43 = vmul.f32 %v8639_v27, %v8457_v15 }
 0x160   :  { %v8970_v48 = vpop.permute.xlu1 %474  ;;  %v6083_v13 = vpop.permute.xlu0 %6082 }
 0x161   :  { %13655 = vst [vmem:[#allocation119_spill] sm:$0xff] %v8970_v48  ;;  %v6085_v32 = vunpack.i.h.bf16 %v6083_v13  ;;  %v6084_v57 = vunpack.i.l.bf16 %v6083_v13  ;;  %6251 = vset.pattern.permute.xlu1 %v13647_v35 }
 0x162   :  { %1823 = vperm.xlu1 %6251, %v8912_v21  }
 0x163   :  { %v1361_v30 = vsel %vm1353_vm9, %v1344_v22, %v6085_v32  ;;  %v1360_v42 = vsel %vm1353_vm9, %v1343_v16, %v6084_v57  ;;  %6274 = vset.pattern.permute.xlu0 %v13651_v7  ;;  %v493_v57 = vmul.f32 %v8689_v44, %v8488_v60  ;;  %v492_v16 = vmul.f32 %v8691_v59, %v8442_v37 }
 0x164   :  { %v6078_v52 = vpop.permute.xlu1 %6077  ;;  %v6093_v46 = vpop.permute.xlu0 %6092  ;;  %v1373_v4 = vpack.c.bf16 %v1361_v30, %v1360_v42  ;;  %1963 = vperm.xlu0 %6274, %v8812_v31  }
 0x165   :  { %v6079_v6 = vunpack.i.l.bf16 %v6078_v52  ;;  %v6080_v18 = vunpack.i.h.bf16 %v6078_v52  ;;  %v6095_v20 = vunpack.i.h.bf16 %v6093_v46  ;;  %v6094_v2 = vunpack.i.l.bf16 %v6093_v46 }
 0x166   :  { %6252 = vset.pattern.permute.xlu1 %v13656_v23  ;;  %5857 = vmatmul.mubr.msk.bf16.gmra.mrb[4].mxu0 %vm1419_vm10, %v1373_v4 }
 0x167   :  { %1899 = vperm.xlu1 %6252, %v8758_v11   ;;  %v1243_v3 = vsel %vm1234_vm2, %v490_v45, %v6079_v6  ;;  %v1244_v9 = vsel %vm1234_vm2, %v491_v43, %v6080_v18 }
 0x168   :  { %v6088_v63 = vpop.permute.xlu1 %6087  ;;  %v6103_v58 = vpop.permute.xlu0 %6102  ;;  %1975 = vperm.xlu0 %6274, %v8839_v33   ;;  %v1260_v52 = vsel %vm1251_vm3, %v1243_v3, %v6094_v2 }
 0x169   :  { %v6090_v0 = vunpack.i.h.bf16 %v6088_v63  ;;  %v6089_v13 = vunpack.i.l.bf16 %v6088_v63  ;;  %v6104_v47 = vunpack.i.l.bf16 %v6103_v58  ;;  %v6105_v32 = vunpack.i.h.bf16 %v6103_v58 }
 0x16a   :  { %v1261_v63 = vsel %vm1251_vm3, %v1244_v9, %v6095_v20 }
 0x16b   :  { %6253 = vset.pattern.permute.xlu1 %v13651_v7  ;;  %v1245_v60 = vsel %vm1234_vm2, %v492_v16, %v6089_v13  ;;  %v1246_v37 = vsel %vm1234_vm2, %v493_v57, %v6090_v0  ;;  %v1277_v58 = vsel %vm1268_vm4, %v1260_v52, %v6104_v47  ;;  %v13658_v57 = vld [vmem:[#allocation16_spill] sm:$0xff]  ;;  %v13660_v16 = vld [vmem:[#allocation9_spill] sm:$0xff] }
 0x16c   :  { %v6098_v41 = vpop.permute.xlu1 %6097  ;;  %1979 = vperm.xlu1 %6253, %v8758_v11   ;;  %v6113_v53 = vpop.permute.xlu0 %6112  ;;  %1987 = vperm.xlu0 %6274, %v8849_v19  }
 0x16d   :  { %v6099_v36 = vunpack.i.l.bf16 %v6098_v41  ;;  %v6100_v15 = vunpack.i.h.bf16 %v6098_v41  ;;  %v6114_v22 = vunpack.i.l.bf16 %v6113_v53  ;;  %v6115_v46 = vunpack.i.h.bf16 %v6113_v53 }
 0x16e   :  { %v1278_v41 = vsel %vm1268_vm4, %v1261_v63, %v6105_v32 }
 0x16f   :  { %v1262_v6 = vsel %vm1251_vm3, %v1245_v60, %v6099_v36  ;;  %v1263_v53 = vsel %vm1251_vm3, %v1246_v37, %v6100_v15  ;;  %v1294_v43 = vsel %vm1285_vm5, %v1277_v58, %v6114_v22  ;;  %v1295_v13 = vsel %vm1285_vm5, %v1278_v41, %v6115_v46  ;;  %v13657_v36 = vld [vmem:[#allocation14_spill] sm:$0xff]  ;;  %v13663_v46 = vld [vmem:[#allocation15_spill] sm:$0xff]  ;;  %v13667_v60 = vld [vmem:[#allocation12_spill] sm:$0xff] }
 0x170   :  { %v6108_v50 = vpop.permute.xlu1 %6107  ;;  %1983 = vperm.xlu1 %6253, %v8912_v21   ;;  %v6123_v12 = vpop.permute.xlu0 %6122  ;;  %1999 = vperm.xlu0 %6274, %v8864_v10   ;;  %v13661_v15 = vld [vmem:[#allocation10_spill] sm:$0xff] }
 0x171   :  { %v6109_v4 = vunpack.i.l.bf16 %v6108_v50  ;;  %v6110_v18 = vunpack.i.h.bf16 %v6108_v50  ;;  %v6124_v45 = vunpack.i.l.bf16 %v6123_v12  ;;  %v6125_v2 = vunpack.i.h.bf16 %v6123_v12 }
 0x172   :  { %v13659_v12 = vmax.f32 %v13657_v36, %v13658_v57  ;;  %v13662_v22 = vmax.f32 %v13660_v16, %v13661_v15 }
 0x173   :  { %v1279_v0 = vsel %vm1268_vm4, %v1262_v6, %v6109_v4  ;;  %v13664_v4 = vld [vmem:[#allocation17_spill] sm:$0xff]  ;;  %v1280_v41 = vsel %vm1268_vm4, %v1263_v53, %v6110_v18  ;;  %v1311_v6 = vsel %vm1302_vm6, %v1294_v43, %v6124_v45  ;;  %v1312_v36 = vsel %vm1302_vm6, %v1295_v13, %v6125_v2 }
 0x174   :  { %v6118_v30 = vpop.permute.xlu1 %6117  ;;  %6254 = vset.pattern.permute.xlu1 %v13650_v55  ;;  %v6133_v42 = vpop.permute.xlu0 %6132  ;;  %2011 = vperm.xlu0 %6274, %v8872_v34   ;;  %v9030_v52 = vmax.f32 %v13662_v22, %v13659_v12  ;;  %v13665_v63 = vmax.f32 %v13663_v46, %v13664_v4  ;;  %v7304_v18 = vmov 8  }
 0x175   :  { %1735 = vperm.xlu1 %6254, %v8777_v26   ;;  %v6134_v3 = vunpack.i.l.bf16 %v6133_v42  ;;  %v6119_v9 = vunpack.i.l.bf16 %v6118_v30  ;;  %v6135_v47 = vunpack.i.h.bf16 %v6133_v42  ;;  %v13666_v42 = vld [vmem:[#allocation11_spill] sm:$0xff] }
 0x176   :  { %v13668_v37 = vmax.f32 %v13666_v42, %v13667_v60 }
 0x177   :  { %v1328_v57 = vsel %vm1319_vm7, %v1311_v6, %v6134_v3  ;;  %v1329_v46 = vsel %vm1319_vm7, %v1312_v36, %v6135_v47 }
 0x178   :  { %v6128_v44 = vpop.permute.xlu1 %6127  ;;  %v6143_v20 = vpop.permute.xlu0 %6142  ;;  %2023 = vperm.xlu0 %6274, %v8881_v24   ;;  %v9038_v58 = vmax.f32 %v13668_v37, %v13665_v63 }
 0x179   :  { %6255 = vset.pattern.permute.xlu1 %v13647_v35  ;;  %v6145_v50 = vunpack.i.h.bf16 %v6143_v20  ;;  %v6144_v32 = vunpack.i.l.bf16 %v6143_v20  ;;  %v6120_v20 = vunpack.i.h.bf16 %v6118_v30  ;;  %v6129_v59 = vunpack.i.l.bf16 %v6128_v44 }
 0x17a   :  { %1827 = vperm.xlu1 %6255, %v8849_v19   ;;  %v6130_v12 = vunpack.i.h.bf16 %v6128_v44  ;;  %v1296_v30 = vsel %vm1285_vm5, %v1279_v0, %v6119_v9 }
 0x17b   :  { %v1345_v45 = vsel %vm1336_vm8, %v1328_v57, %v6144_v32  ;;  %v1346_v53 = vsel %vm1336_vm8, %v1329_v46, %v6145_v50  ;;  %v1297_v43 = vsel %vm1285_vm5, %v1280_v41, %v6120_v20  ;;  %v1313_v2 = vsel %vm1302_vm6, %v1296_v30, %v6129_v59  ;;  %v13669_v59 = vld [vmem:[#allocation21_spill] sm:$0xff]  ;;  %v13670_v20 = vld [vmem:[#allocation22_spill] sm:$0xff]  ;;  %v13675_v46 = vld [vmem:[#allocation23_spill] sm:$0xff] }
 0x17c   :  { %v6138_v16 = vpop.permute.xlu1 %6137  ;;  %v6153_v15 = vpop.permute.xlu0 %6152  ;;  %6278 = vset.pattern.permute.xlu0 %v7304_v18  ;;  %v1314_v0 = vsel %vm1302_vm6, %v1297_v43, %v6130_v12  ;;  %v13671_v36 = vmax.f32 %v13669_v59, %v13670_v20  ;;  %v13672_v57 = vld [vmem:[#allocation13_spill] sm:$0xff]  ;;  %v13673_v12 = vld [vmem:[#allocation18_spill] sm:$0xff] }
 0x17d   :  { %v6139_v4 = vunpack.i.l.bf16 %v6138_v16  ;;  %v6155_v63 = vunpack.i.h.bf16 %v6153_v15  ;;  %v6154_v42 = vunpack.i.l.bf16 %v6153_v15  ;;  %v6140_v44 = vunpack.i.h.bf16 %v6138_v16  ;;  %2051 = vperm.xlu0 %6278, %v8856_v54  }
 0x17e   :  { %6256 = vset.pattern.permute.xlu1 %v13656_v23  ;;  %v13674_v16 = vmax.f32 %v13672_v57, %v13673_v12  ;;  %v13687_v57 = vld [vmem:[#allocation25_spill] sm:$0xff] }
 0x17f   :  { %v1362_v3 = vsel %vm1353_vm9, %v1345_v45, %v6154_v42  ;;  %v1363_v13 = vsel %vm1353_vm9, %v1346_v53, %v6155_v63  ;;  %1907 = vperm.xlu1 %6256, %v8849_v19   ;;  %v1330_v9 = vsel %vm1319_vm7, %v1313_v2, %v6139_v4  ;;  %v1331_v41 = vsel %vm1319_vm7, %v1314_v0, %v6140_v44  ;;  %v13677_v63 = vld [vmem:[#allocation19_spill] sm:$0xff]  ;;  %v13678_v42 = vld [vmem:[#allocation20_spill] sm:$0xff] }
 0x180   :  { %v6148_v47 = vpop.permute.xlu1 %6147  ;;  %v6163_v50 = vpop.permute.xlu0 %6162  ;;  %v1374_v32 = vpack.c.bf16 %v1363_v13, %v1362_v3  ;;  %v9069_v15 = vmax.f32 %v13674_v16, %v13671_v36  ;;  %v13676_v4 = vmax.f32 %v7619_v14, %v13675_v46  ;;  %v13679_v30 = vmax.f32 %v13677_v63, %v13678_v42  ;;  %v13689_v63 = vld [vmem:[#allocation70_spill] sm:$0xff]  ;;  %v13690_v42 = vld [vmem:[#allocation68_spill] sm:$0xff] }
 0x181   :  { %v6150_v60 = vunpack.i.h.bf16 %v6148_v47  ;;  %v6149_v37 = vunpack.i.l.bf16 %v6148_v47  ;;  %v6165_v54 = vunpack.i.h.bf16 %v6163_v50  ;;  %v6164_v6 = vunpack.i.l.bf16 %v6163_v50  ;;  %2063 = vperm.xlu0 %6278, %v8912_v21   ;;  %v13680_v47 = vld [vmem:[#allocation64_spill] sm:$0xff] }
 0x182   :  { %5860 = vmatprep.mubr.msk.bf16.mxu0 %vm1419_vm10, %v1374_v32  ;;  %v9077_v45 = vmax.f32 %v13679_v30, %v13676_v4  ;;  %v1581_v50 = vmax.f32 %v13680_v47, %v8090_v56  ;;  %v13681_v32 = vld [vmem:[#allocation69_spill] sm:$0xff]  ;;  %v1583_v30 = vmax.f32 %v13690_v42, %v13689_v63 }
 0x183   :  { %v1347_v53 = vsel %vm1336_vm8, %v1330_v9, %v6149_v37  ;;  %v1348_v21 = vsel %vm1336_vm8, %v1331_v41, %v6150_v60  ;;  %1911 = vperm.xlu1 %6256, %v8777_v26   ;;  %v13682_v60 = vld [vmem:[#allocation67_spill] sm:$0xff] }
 0x184   :  { %v1365_v44 = vsel %vm1353_vm9, %v1348_v21, %v6165_v54  ;;  %v1364_v43 = vsel %vm1353_vm9, %v1347_v53, %v6164_v6  ;;  %v6158_v2 = vpop.permute.xlu1 %6157  ;;  %v6173_v3 = vpop.permute.xlu0 %6172  ;;  %v1582_v37 = vmax.f32 %v13682_v60, %v13681_v32  ;;  %v13683_v54 = vld [vmem:[#allocation26_spill] sm:$0xff]  ;;  %v13684_v6 = vld [vmem:[#allocation24_spill] sm:$0xff] }
 0x185   :  { %v1375_v13 = vpack.c.bf16 %v1365_v44, %v1364_v43  ;;  %2071 = vperm.xlu0 %6278, %v8777_v26   ;;  %v13685_v41 = vmax.f32 %v13683_v54, %v13684_v6  ;;  %v6160_v53 = vunpack.i.h.bf16 %v6158_v2  ;;  %v6159_v21 = vunpack.i.l.bf16 %v6158_v2  ;;  %v13691_v44 = vld [vmem:[#allocation30_spill] sm:$0xff]  ;;  %v13692_v43 = vld [vmem:[#allocation28_spill] sm:$0xff]  ;;  %v13698_v54 = vld [vmem:[#allocation29_spill] sm:$0xff] }
 0x186   :  { %v13695_v32 = vld [vmem:[#allocation32_spill] sm:$0xff] }
 0x187   :  { %6257 = vset.pattern.permute.xlu1 %v13651_v7  ;;  %5861 = vmatmul.mubr.msk.bf16.gmra.mrb[8].mxu0 %vm1419_vm10, %v1375_v13  ;;  %v9100_v59 = vmax.f32 %v13685_v41, %v1581_v50  ;;  %v13693_v13 = vmax.f32 %v13691_v44, %v13692_v43  ;;  %v13694_v50 = vld [vmem:[#allocation33_spill] sm:$0xff]  ;;  %v6174_v44 = vunpack.i.l.bf16 %v6173_v3 }
 0x188   :  { %v9089_v0 = vpop.permute.xlu1 %6167  ;;  %1991 = vperm.xlu1 %6257, %v8777_v26   ;;  %v6183_v9 = vpop.permute.xlu0 %6182  ;;  %v13686_v26 = vld [vmem:[#allocation27_spill] sm:$0xff]  ;;  %v13696_v60 = vmax.f32 %v13694_v50, %v13695_v32 }
 0x189   :  { %2079 = vperm.xlu0 %6278, %v8864_v10   ;;  %v13688_v12 = vmax.f32 %v13686_v26, %v13687_v57  ;;  %v9122_v47 = vmax.f32 %v13693_v13, %v1583_v30  ;;  %v495_v26 = vmul.f32 %v8907_v38, %v8680_v1  ;;  %v13700_v57 = vld [vmem:[#allocation102_spill] sm:$0xff]  ;;  %v6175_v30 = vunpack.i.h.bf16 %v6173_v3 }
 0x18a   :  { %v494_v2 = vmul.f32 %v8927_v17, %v13700_v57  ;;  %v6185_v50 = vunpack.i.h.bf16 %v6183_v9  ;;  %v6184_v32 = vunpack.i.l.bf16 %v6183_v9  ;;  %v6169_v1 = vunpack.i.l.bf16 %v9089_v0 }
 0x18b   :  { %v9108_v16 = vmax.f32 %v13688_v12, %v1582_v37  ;;  %v13697_v37 = vld [vmem:[#allocation31_spill] sm:$0xff]  ;;  %v1248_v13 = vsel %vm1234_vm2, %v495_v26, %v6160_v53 }
 0x18c   :  { %v9102_v20 = vpop.permute.xlu1 %6177  ;;  %6258 = vset.pattern.permute.xlu1 %v13650_v55  ;;  %v6193_v36 = vpop.permute.xlu0 %6192  ;;  %v13699_v6 = vmax.f32 %v13697_v37, %v13698_v54  ;;  %v1247_v43 = vsel %vm1234_vm2, %v494_v2, %v6159_v21  ;;  %v497_v54 = vmul.f32 %v8950_v8, %v8695_v39  ;;  %v1265_v53 = vsel %vm1251_vm3, %v1248_v13, %v6175_v30 }
 0x18d   :  { %1739 = vperm.xlu1 %6258, %v8933_v62   ;;  %v6194_v37 = vunpack.i.l.bf16 %v6193_v36  ;;  %v1264_v9 = vsel %vm1251_vm3, %v1247_v43, %v6174_v44  ;;  %v6179_v44 = vunpack.i.l.bf16 %v9102_v20 }
 0x18e   :  { %v9130_v41 = vmax.f32 %v13699_v6, %v13696_v60  ;;  %v6195_v60 = vunpack.i.h.bf16 %v6193_v36  ;;  %v496_v6 = vmul.f32 %v8970_v48, %v8661_v49  ;;  %v1281_v56 = vsel %vm1268_vm4, %v1264_v9, %v6184_v32 }
 0x18f   :  { %v1282_v36 = vsel %vm1268_vm4, %v1265_v53, %v6185_v50  ;;  %v6170_v49 = vunpack.i.h.bf16 %v9089_v0 }
 0x190   :  { %v9113_v46 = vpop.permute.xlu1 %6187  ;;  %v6203_v4 = vpop.permute.xlu0 %6202  ;;  %v1249_v39 = vsel %vm1234_vm2, %v496_v6, %v6169_v1  ;;  %v1299_v30 = vsel %vm1285_vm5, %v1282_v36, %v6195_v60 }
 0x191   :  { %6259 = vset.pattern.permute.xlu1 %v13647_v35  ;;  %v6205_v57 = vunpack.i.h.bf16 %v6203_v4  ;;  %v6204_v3 = vunpack.i.l.bf16 %v6203_v4  ;;  %v1298_v4 = vsel %vm1285_vm5, %v1281_v56, %v6194_v37  ;;  %v6190_v60 = vunpack.i.h.bf16 %v9113_v46 }
 0x192   :  { %1835 = vperm.xlu1 %6259, %v8933_v62   ;;  %v1250_v9 = vsel %vm1234_vm2, %v497_v54, %v6170_v49 }
 0x193   :  { %v1315_v43 = vsel %vm1302_vm6, %v1298_v4, %v6204_v3  ;;  %v1316_v13 = vsel %vm1302_vm6, %v1299_v30, %v6205_v57 }
 0x194   :  { %v9136_v12 = vpop.permute.xlu1 %6197  ;;  %v6213_v63 = vpop.permute.xlu0 %6212 }
 0x195   :  { %v6215_v26 = vunpack.i.h.bf16 %v6213_v63  ;;  %v6214_v2 = vunpack.i.l.bf16 %v6213_v63  ;;  %v6180_v63 = vunpack.i.h.bf16 %v9102_v20  ;;  %v6200_v3 = vunpack.i.h.bf16 %v9136_v12 }
 0x196   :  { %1839 = vperm.xlu1 %6259, %v8864_v10   ;;  %v6199_v57 = vunpack.i.l.bf16 %v9136_v12 }
 0x197   :  { %v1332_v0 = vsel %vm1319_vm7, %v1315_v43, %v6214_v2  ;;  %v1333_v1 = vsel %vm1319_vm7, %v1316_v13, %v6215_v26  ;;  %v1267_v36 = vsel %vm1251_vm3, %v1250_v9, %v6180_v63 }
 0x198   :  { %v6208_v42 = vpop.permute.xlu1 %6207  ;;  %v6223_v21 = vpop.permute.xlu0 %6222  ;;  %v1284_v43 = vsel %vm1268_vm4, %v1267_v36, %v6190_v60 }
 0x199   :  { %v6225_v14 = vunpack.i.h.bf16 %v6223_v21  ;;  %v6224_v22 = vunpack.i.l.bf16 %v6223_v21  ;;  %v6210_v26 = vunpack.i.h.bf16 %v6208_v42  ;;  %v6209_v2 = vunpack.i.l.bf16 %v6208_v42 }
 0x19a   :  { %6260 = vset.pattern.permute.xlu1 %v13656_v23  ;;  %v1301_v54 = vsel %vm1285_vm5, %v1284_v43, %v6200_v3 }
 0x19b   :  { %1919 = vperm.xlu1 %6260, %v8864_v10   ;;  %v6189_v10 = vunpack.i.l.bf16 %v9113_v46  ;;  %v1349_v37 = vsel %vm1336_vm8, %v1332_v0, %v6224_v22  ;;  %v1350_v20 = vsel %vm1336_vm8, %v1333_v1, %v6225_v14  ;;  %v1266_v14 = vsel %vm1251_vm3, %v1249_v39, %v6179_v44 }
 0x19c   :  { %v6218_v50 = vpop.permute.xlu1 %6217  ;;  %v6233_v32 = vpop.permute.xlu0 %6232  ;;  %v1318_v39 = vsel %vm1302_vm6, %v1301_v54, %v6210_v26 }
 0x19d   :  { %v6235_v6 = vunpack.i.h.bf16 %v6233_v32  ;;  %v6234_v56 = vunpack.i.l.bf16 %v6233_v32  ;;  %v6220_v4 = vunpack.i.h.bf16 %v6218_v50  ;;  %v6219_v12 = vunpack.i.l.bf16 %v6218_v50 }
 0x19e   :  { %v1283_v30 = vsel %vm1268_vm4, %v1266_v14, %v6189_v10 }
 0x19f   :  { %v1366_v21 = vsel %vm1353_vm9, %v1349_v37, %v6234_v56  ;;  %v1367_v53 = vsel %vm1353_vm9, %v1350_v20, %v6235_v6  ;;  %6261 = vset.pattern.permute.xlu1 %v13651_v7  ;;  %v1300_v42 = vsel %vm1285_vm5, %v1283_v30, %v6199_v57  ;;  %v1335_v50 = vsel %vm1319_vm7, %v1318_v39, %v6220_v4 }
 0x1a0   :  { %1995 = vperm.xlu1 %6261, %v8933_v62   ;;  %v6228_v46 = vpop.permute.xlu1 %6227  ;;  %v1376_v22 = vpack.c.bf16 %v1367_v53, %v1366_v21  ;;  %v1317_v49 = vsel %vm1302_vm6, %v1300_v42, %v6209_v2  ;;  %v9196_v3 = vpop.permute.xlu0 %1807 }
 0x1a1   :  { %v6230_v13 = vunpack.i.h.bf16 %v6228_v46  ;;  %v6229_v32 = vunpack.i.l.bf16 %v6228_v46  ;;  %v1334_v44 = vsel %vm1319_vm7, %v1317_v49, %v6219_v12  ;;  %13702 = vst [vmem:[#allocation16_spill] sm:$0xff] %v9196_v3 }
 0x1a2   :  { %5864 = vmatprep.mubr.msk.bf16.mxu0 %vm1419_vm10, %v1376_v22 }
 0x1a3   :  { %v1351_v6 = vsel %vm1336_vm8, %v1334_v44, %v6229_v32  ;;  %v1352_v56 = vsel %vm1336_vm8, %v1335_v50, %v6230_v13 }
 0x1a4   :  { %6262 = vset.pattern.permute.xlu1 %v13650_v55  ;;  %v6238_v63 = vpop.permute.xlu1 %6237  ;;  %v9203_v21 = vpop.permute.xlu0 %1819 }
 0x1a5   :  { %v6240_v0 = vunpack.i.h.bf16 %v6238_v63  ;;  %v6239_v1 = vunpack.i.l.bf16 %v6238_v63  ;;  %1747 = vperm.xlu1 %6262, %v8804_v61   ;;  %13704 = vst [vmem:[#allocation10_spill] sm:$0xff] %v9203_v21 }
 0x1a7   :  { %v1368_v60 = vsel %vm1353_vm9, %v1351_v6, %v6239_v1  ;;  %v1369_v10 = vsel %vm1353_vm9, %v1352_v56, %v6240_v0 }
 0x1a8   :  { %v1377_v37 = vpack.c.bf16 %v1369_v10, %v1368_v60  ;;  %v9192_v20 = vpop.permute.xlu1 %1711  ;;  %v9212_v26 = vpop.permute.xlu0 %1831 }
 0x1a9   :  { %13701 = vst [vmem:[#allocation14_spill] sm:$0xff] %v9192_v20  ;;  %1751 = vperm.xlu1 %6262, %v8955_v40   ;;  %13707 = vst [vmem:[#allocation11_spill] sm:$0xff] %v9212_v26 }
 0x1aa   :  { %5865 = vmatmul.mubr.msk.bf16.gmra.mrb[12].mxu0 %vm1419_vm10, %v1377_v37  ;;  %vm5007_vm10 = vcmask 15360  }
 0x1ac   :  { %v9217_v46 = vpop.permute.xlu0 %1843 }
 0x1ad   :  { %6263 = vset.pattern.permute.xlu1 %v13647_v35  ;;  %v9199_v57 = vpop.permute.xlu1 %1803  ;;  %13709 = vst [vmem:[#allocation21_spill] sm:$0xff] %v9217_v46 }
 0x1ae   :  { %13703 = vst [vmem:[#allocation9_spill] sm:$0xff] %v9199_v57  ;;  %1847 = vperm.xlu1 %6263, %v8955_v40  }
 0x1b0   :  { %v9223_v14 = vpop.permute.xlu0 %1855 }
 0x1b1   :  { %13711 = vst [vmem:[#allocation13_spill] sm:$0xff] %v9223_v14 }
 0x1b2   :  { %6264 = vset.pattern.permute.xlu1 %v13656_v23  ;;  %v9205_v53 = vpop.permute.xlu1 %1883 }
 0x1b3   :  { %13705 = vst [vmem:[#allocation15_spill] sm:$0xff] %v9205_v53  ;;  %1923 = vperm.xlu1 %6264, %v8804_v61  }
 0x1b6   :  { %v9208_v9 = vpop.permute.xlu1 %1887 }
 0x1b7   :  { %13706 = vst [vmem:[#allocation17_spill] sm:$0xff] %v9208_v9  ;;  %6265 = vset.pattern.permute.xlu1 %v13651_v7 }
 0x1b8   :  { %2003 = vperm.xlu1 %6265, %v8804_v61  }
 0x1bb   :  { %v9214_v2 = vpop.permute.xlu1 %1967 }
 0x1bc   :  { %13708 = vst [vmem:[#allocation12_spill] sm:$0xff] %v9214_v2  ;;  %2007 = vperm.xlu1 %6265, %v8955_v40   ;;  %v9232_v40 = vpop.permute.xlu0 %1707 }
 0x1bd   :  { %13714 = vst [vmem:[#allocation19_spill] sm:$0xff] %v9232_v40 }
 0x1c0   :  { %6266 = vset.pattern.permute.xlu1 %v13650_v55  ;;  %v9220_v22 = vpop.permute.xlu1 %1715  ;;  %v9238_v12 = vpop.permute.xlu0 %1719 }
 0x1c1   :  { %13710 = vst [vmem:[#allocation22_spill] sm:$0xff] %v9220_v22  ;;  %1759 = vperm.xlu1 %6266, %v8823_v5   ;;  %13716 = vst [vmem:[#allocation64_spill] sm:$0xff] %v9238_v12 }
 0x1c4   :  { %v9244_v43 = vpop.permute.xlu0 %1731 }
 0x1c5   :  { %6267 = vset.pattern.permute.xlu1 %v13647_v35  ;;  %v9226_v36 = vpop.permute.xlu1 %1811  ;;  %13718 = vst [vmem:[#allocation67_spill] sm:$0xff] %v9244_v43 }
 0x1c6   :  { %13712 = vst [vmem:[#allocation18_spill] sm:$0xff] %v9226_v36  ;;  %1851 = vperm.xlu1 %6267, %v8872_v34  }
 0x1c9   :  { %v9229_v61 = vpop.permute.xlu1 %1815 }
 0x1ca   :  { %13713 = vst [vmem:[#allocation23_spill] sm:$0xff] %v9229_v61  ;;  %6269 = vset.pattern.permute.xlu1 %v13656_v23 }
 0x1cb   :  { %1931 = vperm.xlu1 %6269, %v8872_v34   ;;  %v9250_v34 = vpop.permute.xlu0 %1743 }
 0x1cc   :  { %13720 = vst [vmem:[#allocation24_spill] sm:$0xff] %v9250_v34 }
 0x1ce   :  { %v9235_v4 = vpop.permute.xlu1 %1895 }
 0x1cf   :  { %13715 = vst [vmem:[#allocation20_spill] sm:$0xff] %v9235_v4  ;;  %1935 = vperm.xlu1 %6269, %v8823_v5   ;;  %v9258_v54 = vpop.permute.xlu0 %1755 }
 0x1d0   :  { %13723 = vst [vmem:[#allocation70_spill] sm:$0xff] %v9258_v54 }
 0x1d3   :  { %6270 = vset.pattern.permute.xlu1 %v13651_v7  ;;  %v9241_v30 = vpop.permute.xlu1 %1971 }
 0x1d4   :  { %13717 = vst [vmem:[#allocation69_spill] sm:$0xff] %v9241_v30  ;;  %2015 = vperm.xlu1 %6270, %v8823_v5  }
 0x1d8   :  { %6271 = vset.pattern.permute.xlu1 %v13650_v55  ;;  %v9247_v13 = vpop.permute.xlu1 %1723  ;;  %v9265_v55 = vpop.permute.xlu0 %1767 }
 0x1d9   :  { %13719 = vst [vmem:[#allocation26_spill] sm:$0xff] %v9247_v13  ;;  %1763 = vperm.xlu1 %6271, %v8975_v25   ;;  %13725 = vst [vmem:[#allocation30_spill] sm:$0xff] %v9265_v55 }
 0x1dc   :  { %v9252_v32 = vpop.permute.xlu1 %1727 }
 0x1dd   :  { %13721 = vst [vmem:[#allocation27_spill] sm:$0xff] %v9252_v32  ;;  %6273 = vset.pattern.permute.xlu1 %v13647_v35  ;;  %v9271_v35 = vpop.permute.xlu0 %1891 }
 0x1de   :  { %1859 = vperm.xlu1 %6273, %v8975_v25   ;;  %13727 = vst [vmem:[#allocation33_spill] sm:$0xff] %v9271_v35 }
 0x1e1   :  { %v9256_v42 = vpop.permute.xlu1 %1823 }
 0x1e2   :  { %13722 = vst [vmem:[#allocation25_spill] sm:$0xff] %v9256_v42  ;;  %1863 = vperm.xlu1 %6273, %v8881_v24  }
 0x1e6   :  { %6275 = vset.pattern.permute.xlu1 %v13656_v23  ;;  %v9262_v5 = vpop.permute.xlu1 %1899  ;;  %v9277_v23 = vpop.permute.xlu0 %1903 }
 0x1e7   :  { %13724 = vst [vmem:[#allocation68_spill] sm:$0xff] %v9262_v5  ;;  %1943 = vperm.xlu1 %6275, %v8881_v24   ;;  %13729 = vst [vmem:[#allocation31_spill] sm:$0xff] %v9277_v23 }
 0x1ea   :  { %v9285_v24 = vpop.permute.xlu0 %1915 }
 0x1eb   :  { %6276 = vset.pattern.permute.xlu1 %v13651_v7  ;;  %v9268_v49 = vpop.permute.xlu1 %1979  ;;  %13732 = vst [vmem:[#allocation120_spill] sm:$0xff] %v9285_v24 }
 0x1ec   :  { %13726 = vst [vmem:[#allocation28_spill] sm:$0xff] %v9268_v49  ;;  %2019 = vperm.xlu1 %6276, %v8975_v25   ;;  %v13733_v25 = vpack.i.bf16 %v9038_v58, %v9030_v52 }
 0x1ef   :  { %v9273_v39 = vpop.permute.xlu1 %1983 }
 0x1f0   :  { %13728 = vst [vmem:[#allocation32_spill] sm:$0xff] %v9273_v39  ;;  %6277 = vset.pattern.permute.xlu1 %v7304_v18 }
 0x1f1   :  { %2043 = vperm.xlu1 %6277, %v8812_v31   ;;  %v9293_v31 = vpop.permute.xlu0 %1927 }
 0x1f2   :  { %13735 = vst [vmem:[#allocation122_spill] sm:$0xff] %v9293_v31 }
 0x1f4   :  { %v9279_v63 = vpop.permute.xlu1 %1735 }
 0x1f5   :  { %13730 = vst [vmem:[#allocation29_spill] sm:$0xff] %v9279_v63  ;;  %2047 = vperm.xlu1 %6277, %v8739_v51   ;;  %v9301_v51 = vld [vmem:[%s13021_s6] ss:$0 sm:$0xff]  ;;  %v9307_v52 = vpop.permute.xlu0 %1939 }
 0x1f6   :  { %13738 = vst [vmem:[#allocation124_spill] sm:$0xff] %v9307_v52 }
 0x1f9   :  { %2055 = vperm.xlu1 %6277, %v8839_v33   ;;  %v9283_v7 = vpop.permute.xlu1 %1827  ;;  %v13737_v33 = vpack.i.bf16 %v9077_v45, %v9069_v15 }
 0x1fa   :  { %13731 = vst [vmem:[#allocation102_spill] sm:$0xff] %v9283_v7 }
 0x1fd   :  { %6280 = vrot.lane.b32.xlu1 %v13733_v25, %s7297_s30 }
 0x1fe   :  { %v9291_v18 = vpop.permute.xlu1 %1907 }
 0x1ff   :  { %13734 = vst [vmem:[#allocation121_spill] sm:$0xff] %v9291_v18 }
 0x201   :  { %2059 = vperm.xlu1 %6277, %v8758_v11  }
 0x202   :  { %v9296_v44 = vpop.permute.xlu1 %1911 }
 0x203   :  { %13736 = vst [vmem:[#allocation123_spill] sm:$0xff] %v9296_v44 }
 0x205   :  { %6285 = vrot.lane.b32.xlu1 %v13737_v33, %s7297_s30 }
 0x206   :  { %v5854_v58 = vpop.f32.mrb[0].mxu0 }
 0x207   :  { %v1491_v50 = vadd.f32 %v5854_v58, %v9301_v51  ;;  %v1482_v0 = vpop.f32.mrb[1].mxu0  ;;  %v9310_v1 = vpop.permute.xlu1 %1991 }
 0x208   :  { %13739 = vst [vmem:[#allocation125_spill] sm:$0xff] %v9310_v1  ;;  %v1483_v11 = vadd.f32 %v9301_v51, %v1482_v0  ;;  %v5855_v6 = vpop.f32.mrb[2].mxu0 }
 0x209   :  { %v1547_v56 = vmax.f32 %v1491_v50, 0.0  ;;  %v1494_v60 = vadd.f32 %v5855_v6, %v9301_v51  ;;  %2067 = vperm.xlu1 %6277, %v8849_v19   ;;  %v1485_v10 = vpop.f32.mrb[3].mxu0  ;;  %v9324_v50 = vpop.permute.xlu0 %1963 }
 0x20a   :  { %v9315_v37 = vmax.f32 %v1483_v11, 0.0  ;;  %v1486_v15 = vadd.f32 %v9301_v51, %v1485_v10  ;;  %13741 = vst [vmem:[#allocation127_spill] sm:$0xff] %v9324_v50  ;;  %v13743_v11 = vld [vmem:[#allocation48_spill] sm:$0xff] }
 0x20b   :  { %v9318_v45 = vmax.f32 %v1494_v60, 0.0  ;;  %v1611_v25 = vrot.slane %v1547_v56, 7  ;;  %v1675_v33 = vrot.slane %v1547_v56, 1  ;;  %v2027_v0 = vmul.f32 %v9214_v2, %v1547_v56 }
 0x20c   :  { %v1546_v58 = vmax.f32 %v1486_v15, 0.0  ;;  %v9322_v8 = vpop.permute.xlu1 %1739  ;;  %v13742_v60 = vpack.i.bf16 %v9108_v16, %v9100_v59  ;;  %v13744_v59 = vld [vmem:[#allocation51_spill] sm:$0xff]  ;;  %v13748_v28 = vrot.slane %v9315_v37, 7 }
 0x20d   :  { %13740 = vst [vmem:[#allocation126_spill] sm:$0xff] %v9322_v8  ;;  %v13235_v6 = vrot.slane %v9318_v45, 1  ;;  %v6299_v10 = vpack.i.bf16 %v9318_v45, %v1547_v56  ;;  %v1660_v16 = vmul.f32 %v1547_v56, %v13744_v59 }
 0x20e   :  { %6290 = vrot.lane.b32.xlu1 %v13742_v60, %s7297_s30  ;;  %v1610_v15 = vrot.slane %v1546_v58, 7  ;;  %v1674_v48 = vrot.slane %v1546_v58, 1  ;;  %v2026_v2 = vmul.f32 %v9324_v50, %v1546_v58  ;;  %v6304_v38 = vpack.i.bf16 %v1546_v58, %v9315_v37 }
 0x20f   :  { %6300 = vrot.lane.b32.xlu0 %v6299_v10, %s7295_s24  ;;  %v9341_v19 = vsel %vm1689_vm11, %v1675_v33, %v13235_v6  ;;  %v1659_v17 = vmul.f32 %v1546_v58, %v13743_v11  ;;  %v13745_v60 = vrot.slane %v9318_v45, 7  ;;  %v13758_v11 = vld [vmem:[#allocation87_spill] sm:$0xff] }
 0x210   :  { %v6309_v50 = vpack.i.bf16 %v2027_v0, %v2026_v2  ;;  %v9353_v10 = vsel %vm385_vm0, %v1610_v15, %v1611_v25  ;;  %v9359_v6 = vsel %vm385_vm0, %v13748_v28, %v1610_v15  ;;  %v9363_v56 = vsel %vm1689_vm11, %v1674_v48, %v1675_v33  ;;  %v13752_v33 = vld [vmem:[#allocation65_spill] sm:$0xff] }
 0x211   :  { %v9349_v27 = vsel %vm385_vm0, %v1611_v25, %v13745_v60  ;;  %13747 = vst [vmem:[#allocation129_spill] sm:$0xff] %v9353_v10  ;;  %13749 = vst [vmem:[#allocation130_spill] sm:$0xff] %v9359_v6  ;;  %v1946_v58 = vmul.f32 %v9205_v53, %v9359_v6  ;;  %v1947_v2 = vmul.f32 %v9208_v9, %v9353_v10  ;;  %v9370_v25 = vpop.permute.xlu1 %1835  ;;  %v13751_v60 = vld [vmem:[#allocation57_spill] sm:$0xff] }
 0x212   :  { %13746 = vst [vmem:[#allocation128_spill] sm:$0xff] %v9349_v27  ;;  %2075 = vperm.xlu1 %6277, %v8933_v62   ;;  %13750 = vst [vmem:[#allocation131_spill] sm:$0xff] %v9370_v25  ;;  %v6314_v0 = vpack.i.bf16 %v1660_v16, %v1659_v17  ;;  %v1788_v59 = vmul.f32 %v9353_v10, %v13751_v60  ;;  %v1789_v15 = vmul.f32 %v9349_v27, %v13752_v33  ;;  %v13757_v33 = vld [vmem:[#allocation91_spill] sm:$0xff] }
 0x213   :  { %6310 = vrot.lane.b32.xlu0 %v6309_v50, %s7305_s2  ;;  %v6324_v28 = vpack.i.bf16 %v1947_v2, %v1946_v58  ;;  %v13753_v62 = vpack.i.bf16 %v9130_v41, %v9122_v47  ;;  %v1772_v9 = vmul.f32 %v9220_v22, %v9363_v56  ;;  %v1773_v17 = vmul.f32 %v9238_v12, %v9341_v19  ;;  %v13755_v58 = vld [vmem:[#allocation83_spill] sm:$0xff]  ;;  %v13756_v2 = vld [vmem:[#allocation85_spill] sm:$0xff]  ;;  %v13760_v41 = vld [vmem:[#allocation36_spill] sm:$0xff] }
 0x214   :  { %v6334_v60 = vpack.i.bf16 %v1789_v15, %v1788_v59  ;;  %v13245_v50 = vrot.slane %v9315_v37, 1  ;;  %v1585_v53 = vmax.f32 %v13756_v2, %v13755_v58  ;;  %v1586_v55 = vmax.f32 %v13758_v11, %v13757_v33  ;;  %v13764_v22 = vld [vmem:[#allocation37_spill] sm:$0xff]  ;;  %v13765_v12 = vld [vmem:[#allocation35_spill] sm:$0xff] }
 0x215   :  { %v9385_v16 = vpop.permute.xlu1 %1839  ;;  %v13766_v58 = vmax.f32 %v13764_v22, %v13765_v12  ;;  %v6329_v11 = vpack.i.bf16 %v1773_v17, %v1772_v9  ;;  %v13771_v9 = vld [vmem:[#allocation92_spill] sm:$0xff]  ;;  %v13780_v33 = vld [vmem:[#allocation41_spill] sm:$0xff]  ;;  %v2028_v10 = vmul.f32 %v9241_v30, %v9318_v45  ;;  %v9472_v30 = vpop.permute.xlu0 %1975 }
 0x216   :  { %6295 = vrot.lane.b32.xlu1 %v13753_v62, %s7297_s30  ;;  %13754 = vst [vmem:[#allocation132_spill] sm:$0xff] %v9385_v16  ;;  %v9397_v47 = vsel %vm1689_vm11, %v13245_v50, %v1674_v48  ;;  %v13761_v62 = vld [vmem:[#allocation34_spill] sm:$0xff]  ;;  %v13781_v50 = vld [vmem:[#allocation39_spill] sm:$0xff] }
 0x217   :  { %6325 = vrot.lane.b32.xlu0 %v6324_v28, %s7306_s4  ;;  %13759 = vst [vmem:[#allocation83_spill] sm:$0xff] %v9397_v47  ;;  %v13762_v59 = vmax.f32 %v13760_v41, %v13761_v62  ;;  %v9407_v2 = vmax.f32 %v13766_v58, %v1586_v55  ;;  %v1866_v48 = vmul.f32 %v9199_v57, %v9397_v47  ;;  %v13772_v55 = vld [vmem:[#allocation88_spill] sm:$0xff]  ;;  %v13773_v41 = vld [vmem:[#allocation97_spill] sm:$0xff] }
 0x218   :  { %v1587_v17 = vmax.f32 %v13772_v55, %v13771_v9  ;;  %v13774_v62 = vld [vmem:[#allocation104_spill] sm:$0xff] }
 0x219   :  { %v9402_v15 = vmax.f32 %v13762_v59, %v1585_v53  ;;  %13767 = vst [vmem:[#allocation91_spill] sm:$0xff] %v9407_v2  ;;  %v1867_v53 = vmul.f32 %v9196_v3, %v9363_v56  ;;  %v1588_v59 = vmax.f32 %v13774_v62, %v13773_v41  ;;  %v13794_v2 = vld [vmem:[#allocation54_spill] sm:$0xff] }
 0x21a   :  { %6305 = vrot.lane.b32.xlu1 %v6304_v38, %s7295_s24  ;;  %v9410_v28 = vpop.permute.xlu1 %1919 }
 0x21b   :  { %13763 = vst [vmem:[#allocation85_spill] sm:$0xff] %v9402_v15  ;;  %13768 = vst [vmem:[#allocation87_spill] sm:$0xff] %v9410_v28  ;;  %6330 = vrot.lane.b32.xlu0 %v6329_v11, %s7292_s3  ;;  %v6319_v22 = vpack.i.bf16 %v1867_v53, %v1866_v48  ;;  %v13776_v11 = vld [vmem:[#allocation40_spill] sm:$0xff] }
 0x21e   :  { %6315 = vrot.lane.b32.xlu1 %v6314_v0, %s7297_s30  ;;  %v13777_v0 = vld [vmem:[#allocation38_spill] sm:$0xff] }
 0x21f   :  { %v9420_v12 = vpop.permute.xlu1 %1995  ;;  %v13778_v48 = vmax.f32 %v13776_v11, %v13777_v0  ;;  %13793 = vst [vmem:[#allocation38_spill] sm:$0xff] %v9472_v30 }
 0x220   :  { %13769 = vst [vmem:[#allocation36_spill] sm:$0xff] %v9420_v12 }
 0x221   :  { %v9435_v53 = vmax.f32 %v13778_v48, %v1587_v17 }
 0x222   :  { %6320 = vrot.lane.b32.xlu1 %v6319_v22, %s7307_s28  ;;  %v13782_v22 = vmax.f32 %v13780_v33, %v13781_v50 }
 0x223   :  { %13779 = vst [vmem:[#allocation35_spill] sm:$0xff] %v9435_v53 }
 0x224   :  { %v9423_v38 = vpop.permute.xlu1 %1747  ;;  %v9440_v57 = vmax.f32 %v13782_v22, %v1588_v59  ;;  %v13788_v22 = vld [vmem:[#allocation60_spill] sm:$0xff] }
 0x225   :  { %13770 = vst [vmem:[#allocation34_spill] sm:$0xff] %v9423_v38 }
 0x226   :  { %6335 = vrot.lane.b32.xlu1 %v6334_v60, %s7299_s23  ;;  %13783 = vst [vmem:[#allocation92_spill] sm:$0xff] %v9440_v57  ;;  %v1661_v60 = vmul.f32 %v9318_v45, %v13788_v22  ;;  %v13790_v57 = vld [vmem:[#allocation106_spill] sm:$0xff]  ;;  %v13791_v22 = vld [vmem:[#allocation112_spill] sm:$0xff] }
 0x228   :  { %v9430_v58 = vpop.permute.xlu1 %1751 }
 0x229   :  { %13775 = vst [vmem:[#allocation37_spill] sm:$0xff] %v9430_v58 }
 0x22d   :  { %v9444_v3 = vpop.permute.xlu1 %1847 }
 0x22e   :  { %13784 = vst [vmem:[#allocation88_spill] sm:$0xff] %v9444_v3  ;;  %v13792_v3 = vld [vmem:[#allocation108_spill] sm:$0xff] }
 0x22f   :  { %v1590_v52 = vmax.f32 %v13792_v3, %v13791_v22  ;;  %v13797_v22 = vld [vmem:[#allocation66_spill] sm:$0xff] }
 0x232   :  { %v9446_v9 = vpop.permute.xlu1 %1923 }
 0x233   :  { %13785 = vst [vmem:[#allocation97_spill] sm:$0xff] %v9446_v9 }
 0x237   :  { %v9448_v55 = vpop.permute.xlu1 %2003 }
 0x238   :  { %13786 = vst [vmem:[#allocation104_spill] sm:$0xff] %v9448_v55 }
 0x239   :  { %v5858_v41 = vpop.f32.mrb[4].mxu0 }
 0x23a   :  { %v1507_v62 = vadd.f32 %v5858_v41, %v9301_v51  ;;  %v1498_v11 = vpop.f32.mrb[5].mxu0  ;;  %v1868_v41 = vmul.f32 %v9226_v36, %v9341_v19 }
 0x23b   :  { %v1499_v17 = vadd.f32 %v9301_v51, %v1498_v11  ;;  %v5859_v0 = vpop.f32.mrb[6].mxu0  ;;  %v9452_v48 = vpop.permute.xlu1 %2007  ;;  %v9464_v11 = vmul.f32 %v9271_v35, %v9349_v27 }
 0x23c   :  { %13787 = vst [vmem:[#allocation40_spill] sm:$0xff] %v9452_v48  ;;  %v1551_v50 = vmax.f32 %v1507_v62, 0.0  ;;  %v1510_v33 = vadd.f32 %v5859_v0, %v9301_v51  ;;  %v1501_v59 = vpop.f32.mrb[7].mxu0  ;;  %v13789_v0 = vld [vmem:[#allocation105_spill] sm:$0xff] }
 0x23d   :  { %v1549_v14 = vmax.f32 %v1499_v17, 0.0  ;;  %v1502_v54 = vadd.f32 %v9301_v51, %v1501_v59  ;;  %v1589_v46 = vmax.f32 %v13790_v57, %v13789_v0  ;;  %v13796_v0 = vrot.slane %v9318_v45, 1 }
 0x23e   :  { %v1615_v62 = vrot.slane %v1551_v50, 7  ;;  %v9466_v53 = vmax.f32 %v1510_v33, 0.0  ;;  %v1679_v15 = vrot.slane %v1551_v50, 1  ;;  %v1664_v31 = vmul.f32 %v1551_v50, %v13797_v22 }
 0x23f   :  { %v1550_v17 = vmax.f32 %v1502_v54, 0.0  ;;  %v1677_v59 = vrot.slane %v1549_v14, 1  ;;  %v1662_v36 = vmul.f32 %v1549_v14, %v13794_v2  ;;  %v1613_v48 = vrot.slane %v1549_v14, 7 }
 0x240   :  { %v13278_v35 = vrot.slane %v9466_v53, 1  ;;  %v6339_v27 = vpack.i.bf16 %v9466_v53, %v1551_v50  ;;  %v2029_v33 = vmul.f32 %v9472_v30, %v1549_v14  ;;  %v9478_v55 = vpop.permute.xlu1 %1759  ;;  %v2031_v20 = vmul.f32 %v9273_v39, %v1551_v50  ;;  %v13816_v39 = vld [vmem:[#allocation43_spill] sm:$0xff] }
 0x241   :  { %13795 = vst [vmem:[#allocation41_spill] sm:$0xff] %v9478_v55  ;;  %v1614_v57 = vrot.slane %v1550_v17, 7  ;;  %v9484_v3 = vsel %vm1689_vm11, %v13796_v0, %v1677_v59  ;;  %v6349_v54 = vpack.i.bf16 %v1662_v36, %v1661_v60  ;;  %v1678_v2 = vrot.slane %v1550_v17, 1  ;;  %v13798_v55 = vld [vmem:[#allocation63_spill] sm:$0xff] }
 0x242   :  { %v9491_v9 = vsel %vm1689_vm11, %v1679_v15, %v13278_v35  ;;  %6340 = vrot.lane.b32.xlu0 %v6339_v27, %s7295_s24  ;;  %v6344_v30 = vpack.i.bf16 %v2029_v33, %v2028_v10  ;;  %v1663_v40 = vmul.f32 %v1550_v17, %v13798_v55  ;;  %v6354_v0 = vpack.i.bf16 %v1550_v17, %v1549_v14 }
 0x243   :  { %6350 = vrot.lane.b32.xlu1 %v6349_v54, %s7297_s30  ;;  %v1869_v36 = vmul.f32 %v9229_v61, %v9484_v3  ;;  %v2030_v60 = vmul.f32 %v9268_v49, %v1550_v17  ;;  %v9503_v35 = vsel %vm385_vm0, %v1613_v48, %v1614_v57  ;;  %v13800_v27 = vrot.slane %v9318_v45, 7  ;;  %v13803_v54 = vld [vmem:[#allocation72_spill] sm:$0xff]  ;;  %v13804_v17 = vld [vmem:[#allocation71_spill] sm:$0xff] }
 0x244   :  { %v6364_v22 = vpack.i.bf16 %v1664_v31, %v1663_v40  ;;  %13799 = vst [vmem:[#allocation39_spill] sm:$0xff] %v9503_v35  ;;  %v1791_v40 = vmul.f32 %v9503_v35, %v13804_v17  ;;  %v9522_v45 = vsel %vm1689_vm11, %v1678_v2, %v1679_v15  ;;  %v13830_v17 = vmov 0  }
 0x245   :  { %v9509_v10 = vsel %vm385_vm0, %v13800_v27, %v1613_v48  ;;  %v6369_v33 = vpack.i.bf16 %v1869_v36, %v1868_v41  ;;  %v9511_v14 = vpop.permute.xlu1 %1851  ;;  %v6359_v50 = vpack.i.bf16 %v2031_v20, %v2030_v60  ;;  %v9526_v48 = vsel %vm1689_vm11, %v1677_v59, %v1678_v2  ;;  %v13808_v60 = vld [vmem:[#allocation73_spill] sm:$0xff] }
 0x246   :  { %13801 = vst [vmem:[#allocation105_spill] sm:$0xff] %v9509_v10  ;;  %13802 = vst [vmem:[#allocation106_spill] sm:$0xff] %v9511_v14  ;;  %v1790_v6 = vmul.f32 %v9509_v10, %v13803_v54  ;;  %v1949_v31 = vmul.f32 %v9235_v4, %v9509_v10  ;;  %6345 = vrot.lane.b32.xlu0 %v6344_v30, %s7305_s2  ;;  %v1774_v41 = vmul.f32 %v9247_v13, %v9484_v3 }
 0x247   :  { %6365 = vrot.lane.b32.xlu1 %v6364_v22, %s7297_s30  ;;  %v1870_v30 = vmul.f32 %v9203_v21, %v9526_v48  ;;  %v1871_v20 = vmul.f32 %v9256_v42, %v9522_v45  ;;  %v1775_v15 = vmul.f32 %v9252_v32, %v9526_v48  ;;  %v13805_v2 = vrot.slane %v9466_v53, 7 }
 0x248   :  { %v6384_v36 = vpack.i.bf16 %v1791_v40, %v1790_v6  ;;  %v6374_v27 = vpack.i.bf16 %v1949_v31, %v9464_v11  ;;  %v9546_v6 = vsel %vm385_vm0, %v1614_v57, %v1615_v62  ;;  %v1950_v11 = vmul.f32 %v9262_v5, %v9503_v35  ;;  %v13809_v31 = vld [vmem:[#allocation75_spill] sm:$0xff]  ;;  %v13812_v5 = vld [vmem:[#allocation42_spill] sm:$0xff] }
 0x249   :  { %v9542_v59 = vsel %vm385_vm0, %v1615_v62, %v13805_v2  ;;  %13807 = vst [vmem:[#allocation108_spill] sm:$0xff] %v9546_v6  ;;  %v6389_v22 = vpack.i.bf16 %v1871_v20, %v1870_v30  ;;  %v1792_v40 = vmul.f32 %v9546_v6, %v13808_v60  ;;  %v1951_v42 = vmul.f32 %v9277_v23, %v9546_v6 }
 0x24a   :  { %13806 = vst [vmem:[#allocation112_spill] sm:$0xff] %v9542_v59  ;;  %v1793_v21 = vmul.f32 %v9542_v59, %v13809_v31  ;;  %6355 = vrot.lane.b32.xlu0 %v6354_v0, %s7295_s24  ;;  %v9557_v2 = vpop.permute.xlu1 %1931  ;;  %v6379_v55 = vpack.i.bf16 %v1775_v15, %v1774_v41  ;;  %v1776_v62 = vmul.f32 %v9244_v43, %v9522_v45  ;;  %v13811_v31 = vld [vmem:[#allocation44_spill] sm:$0xff]  ;;  %v13815_v0 = vld [vmem:[#allocation45_spill] sm:$0xff]  ;;  %v13861_v35 = vrot.slane %v9315_v37, 1 }
 0x24b   :  { %13810 = vst [vmem:[#allocation133_spill] sm:$0xff] %v9557_v2  ;;  %v1777_v57 = vmul.f32 %v9279_v63, %v9491_v9  ;;  %6370 = vrot.lane.b32.xlu1 %v6369_v33, %s7307_s28  ;;  %v6394_v20 = vpack.i.bf16 %v1951_v42, %v1950_v11  ;;  %v13813_v49 = vmax.f32 %v13811_v31, %v13812_v5  ;;  %v13829_v63 = vrot.slane %v9466_v53, 1 }
 0x24c   :  { %v6404_v30 = vpack.i.bf16 %v1793_v21, %v1792_v40  ;;  %v13817_v13 = vmax.f32 %v13815_v0, %v13816_v39  ;;  %v13824_v40 = vld [vmem:[#allocation74_spill] sm:$0xff]  ;;  %v9611_v0 = vmul.f32 %v9291_v18, %v9542_v59  ;;  %v13859_v59 = vld [vmem:[#allocation55_spill] sm:$0xff] }
 0x24d   :  { %v6399_v60 = vpack.i.bf16 %v1777_v57, %v1776_v62  ;;  %v9567_v23 = vmax.f32 %v13813_v49, %v1589_v46  ;;  %v1665_v31 = vmul.f32 %v9466_v53, %v13824_v40 }
 0x24e   :  { %v9572_v41 = vmax.f32 %v13817_v13, %v1590_v52  ;;  %6360 = vrot.lane.b32.xlu0 %v6359_v50, %s7305_s2  ;;  %v9575_v15 = vpop.permute.xlu1 %1935  ;;  %v9593_v50 = vpop.permute.xlu0 %1987 }
 0x24f   :  { %13814 = vst [vmem:[#allocation44_spill] sm:$0xff] %v9567_v23  ;;  %13819 = vst [vmem:[#allocation45_spill] sm:$0xff] %v9575_v15  ;;  %6385 = vrot.lane.b32.xlu1 %v6384_v36, %s7299_s23  ;;  %v2032_v62 = vmul.f32 %v9593_v50, %v9466_v53 }
 0x250   :  { %13818 = vst [vmem:[#allocation42_spill] sm:$0xff] %v9572_v41  ;;  %13823 = vst [vmem:[#allocation136_spill] sm:$0xff] %v9593_v50  ;;  %v13828_v50 = vld [vmem:[#allocation77_spill] sm:$0xff] }
 0x252   :  { %6375 = vrot.lane.b32.xlu0 %v6374_v27, %s7306_s4 }
 0x253   :  { %6390 = vrot.lane.b32.xlu1 %v6389_v22, %s7307_s28  ;;  %v9582_v46 = vpop.permute.xlu1 %2015 }
 0x254   :  { %13820 = vst [vmem:[#allocation43_spill] sm:$0xff] %v9582_v46 }
 0x256   :  { %6380 = vrot.lane.b32.xlu0 %v6379_v55, %s7292_s3 }
 0x257   :  { %6405 = vrot.lane.b32.xlu1 %v6404_v30, %s7299_s23 }
 0x258   :  { %v9586_v13 = vpop.permute.xlu1 %1763 }
 0x259   :  { %13821 = vst [vmem:[#allocation134_spill] sm:$0xff] %v9586_v13 }
 0x25a   :  { %6395 = vrot.lane.b32.xlu0 %v6394_v20, %s7306_s4  ;;  %v5862_v42 = vpop.f32.mrb[8].mxu0  ;;  %v1872_v20 = vmul.f32 %v9283_v7, %v9491_v9 }
 0x25b   :  { %v1523_v5 = vadd.f32 %v5862_v42, %v9301_v51  ;;  %v1514_v49 = vpop.f32.mrb[9].mxu0 }
 0x25c   :  { %v1515_v39 = vadd.f32 %v9301_v51, %v1514_v49  ;;  %v5863_v52 = vpop.f32.mrb[10].mxu0 }
 0x25d   :  { %v9591_v33 = vpop.permute.xlu1 %1859  ;;  %v9595_v36 = vmax.f32 %v1523_v5, 0.0  ;;  %v1526_v55 = vadd.f32 %v5863_v52, %v9301_v51  ;;  %v1517_v27 = vpop.f32.mrb[11].mxu0 }
 0x25e   :  { %13822 = vst [vmem:[#allocation135_spill] sm:$0xff] %v9591_v33  ;;  %6400 = vrot.lane.b32.xlu0 %v6399_v60, %s7292_s3  ;;  %v1553_v11 = vmax.f32 %v1515_v39, 0.0  ;;  %v1518_v22 = vadd.f32 %v9301_v51, %v1517_v27  ;;  %v13826_v39 = vld [vmem:[#allocation56_spill] sm:$0xff] }
 0x25f   :  { %v1619_v57 = vrot.slane %v9595_v36, 7  ;;  %v9605_v30 = vmax.f32 %v1526_v55, 0.0  ;;  %v7166_v27 = vld [vmem:[%s13827_s26] sm:$0xff]   ;;  %v1683_v55 = vrot.slane %v9595_v36, 1  ;;  %v9624_v18 = vmul.f32 %v9595_v36, %v13828_v50 }
 0x260   :  { %v1617_v60 = vrot.slane %v1553_v11, 7  ;;  %v1554_v42 = vmax.f32 %v1518_v22, 0.0  ;;  %v1681_v5 = vrot.slane %v1553_v11, 1  ;;  %v1666_v52 = vmul.f32 %v1553_v11, %v13826_v39  ;;  %2890 = vmatpush1.bf16.msra.mxu1 %v7166_v27 }
 0x261   :  { %v9613_v49 = vpop.permute.xlu1 %1863  ;;  %v13307_v21 = vrot.slane %v9605_v30, 1  ;;  %v2033_v40 = vmul.f32 %v9310_v1, %v1553_v11  ;;  %2891 = vmatprep.subr.bf16.mxu1 %v13830_v17  ;;  %v13870_v13 = vrot.slane %v9605_v30, 1 }
 0x262   :  { %13825 = vst [vmem:[#allocation137_spill] sm:$0xff] %v9613_v49  ;;  %v1618_v22 = vrot.slane %v1554_v42, 7  ;;  %v1682_v7 = vrot.slane %v1554_v42, 1  ;;  %v6414_v43 = vpack.i.bf16 %v1666_v52, %v1665_v31  ;;  %v9630_v39 = vsel %vm1689_vm11, %v13829_v63, %v1681_v5  ;;  %v9641_v31 = vpop.permute.xlu0 %1999  ;;  %v13836_v52 = vld [vmem:[#allocation79_spill] sm:$0xff] }
 0x263   :  { %v9636_v54 = vsel %vm1689_vm11, %v1683_v55, %v13307_v21  ;;  %v6409_v1 = vpack.i.bf16 %v2033_v40, %v2032_v62  ;;  %v1873_v50 = vmul.f32 %v9212_v26, %v9630_v39  ;;  %v6419_v32 = vpack.i.bf16 %v1554_v42, %v1553_v11  ;;  %13831 = vst [vmem:[#allocation138_spill] sm:$0xff] %v9641_v31  ;;  %v13837_v26 = vld [vmem:[#allocation78_spill] sm:$0xff] }
 0x264   :  { %v9646_v63 = vsel %vm1689_vm11, %v1681_v5, %v1682_v7  ;;  %6415 = vrot.lane.b32.xlu1 %v6414_v43, %s7297_s30  ;;  %v9651_v27 = vsel %vm385_vm0, %v1617_v60, %v1618_v22  ;;  %v13833_v40 = vrot.slane %v9466_v53, 7  ;;  %v9668_v61 = vmul.f32 %v9641_v31, %v9595_v36 }
 0x265   :  { %13832 = vst [vmem:[#allocation139_spill] sm:$0xff] %v9651_v27  ;;  %6410 = vrot.lane.b32.xlu0 %v6409_v1, %s7305_s2  ;;  %v6424_v21 = vpack.i.bf16 %v1873_v50, %v1872_v20  ;;  %v1795_v43 = vmul.f32 %v9651_v27, %v13837_v26  ;;  %v1779_v1 = vmul.f32 %v9250_v34, %v9646_v63 }
 0x266   :  { %v9657_v11 = vsel %vm385_vm0, %v13833_v40, %v1617_v60  ;;  %v9660_v62 = vpop.permute.xlu1 %1943  ;;  %v1778_v60 = vmul.f32 %v9322_v8, %v9630_v39  ;;  %v9678_v50 = vsel %vm1689_vm11, %v1682_v7, %v1683_v55  ;;  %v9682_v40 = vmul.f32 %v9370_v25, %v9646_v63  ;;  %v7167_v8 = vld [vmem:[%s13827_s26 + $0x8] sm:$0xff]   ;;  %v13840_v25 = vld [vmem:[#allocation76_spill] sm:$0xff] }
 0x267   :  { %13834 = vst [vmem:[#allocation140_spill] sm:$0xff] %v9657_v11  ;;  %13835 = vst [vmem:[#allocation141_spill] sm:$0xff] %v9660_v62  ;;  %v1794_v5 = vmul.f32 %v9657_v11, %v13836_v52  ;;  %v1953_v53 = vmul.f32 %v9296_v44, %v9657_v11  ;;  %v9686_v31 = vmul.f32 %v9385_v16, %v9678_v50  ;;  %2892 = vmatpush1.bf16.msra.mxu1 %v7167_v8 }
 0x268   :  { %13838 = vst [vmem:[#allocation142_spill] sm:$0xff] %v9678_v50  ;;  %v9690_v52 = vsel %vm385_vm0, %v1618_v22, %v1619_v57  ;;  %6425 = vrot.lane.b32.xlu1 %v6424_v21, %s7307_s28  ;;  %v6434_v55 = vpack.i.bf16 %v1779_v1, %v1778_v60  ;;  %v9709_v16 = vmul.f32 %v1554_v42, %v13840_v25  ;;  %v13844_v1 = vld [vmem:[#allocation80_spill] sm:$0xff]  ;;  %v13845_v25 = vld [vmem:[#allocation81_spill] sm:$0xff] }
 0x269   :  { %v6439_v20 = vpack.i.bf16 %v1795_v43, %v1794_v5  ;;  %13839 = vst [vmem:[#allocation143_spill] sm:$0xff] %v9690_v52  ;;  %v6429_v7 = vpack.i.bf16 %v1953_v53, %v9611_v0  ;;  %v9699_v5 = vmul.f32 %v9285_v24, %v9651_v27  ;;  %v9703_v43 = vmul.f32 %v9410_v28, %v9690_v52 }
 0x26a   :  { %6420 = vrot.lane.b32.xlu0 %v6419_v32, %s7295_s24  ;;  %v9712_v21 = vmul.f32 %v9420_v12, %v1554_v42  ;;  %v13841_v0 = vrot.slane %v9605_v30, 7  ;;  %v9726_v22 = vmul.f32 %v9690_v52, %v13844_v1  ;;  %v9734_v42 = vmul.f32 %v9423_v38, %v9678_v50  ;;  %2893 = vmatprep.subr.bf16.mxu1 %v13830_v17  ;;  %v7169_v32 = vld [vmem:[%s13827_s26 + $0x18] sm:$0xff]   ;;  %v13860_v50 = vld [vmem:[#allocation130_spill] sm:$0xff] }
 0x26b   :  { %v9720_v60 = vpop.permute.xlu1 %2019  ;;  %v9745_v1 = vmul.f32 %v9430_v58, %v9636_v54  ;;  %v1787_v6 = vmul.f32 %v13860_v50, %v13859_v59 }
 0x26c   :  { %v9718_v53 = vsel %vm385_vm0, %v1619_v57, %v13841_v0  ;;  %13843 = vst [vmem:[#allocation145_spill] sm:$0xff] %v9720_v60  ;;  %v7168_v57 = vld [vmem:[%s13827_s26 + $0x10] sm:$0xff]   ;;  %6440 = vrot.lane.b32.xlu1 %v6439_v20, %s7299_s23 }
 0x26d   :  { %13842 = vst [vmem:[#allocation144_spill] sm:$0xff] %v9718_v53  ;;  %v9730_v24 = vmul.f32 %v9718_v53, %v13845_v25  ;;  %2894 = vmatpush1.bf16.msra.mxu1 %v7168_v57  ;;  %v7244_v20 = vld [vmem:[%s13022_s7 + $0x50] sm:$0xff]  ;;  %v7171_v25 = vld [vmem:[%s13827_s26 + $0x28] sm:$0xff]  }
 0x26e   :  { %6430 = vrot.lane.b32.xlu0 %v6429_v7, %s7306_s4  ;;  %2895 = vmatprep.subr.bf16.mxu1 %v13830_v17  ;;  %v7170_v7 = vld [vmem:[%s13827_s26 + $0x20] sm:$0xff]  }
 0x270   :  { %v9759_v38 = vpop.permute.xlu1 %2043  ;;  %2083 = vperm.xlu1 %6277, %v7244_v20   ;;  %v9778_v20 = vpop.permute.xlu0 %2011 }
 0x271   :  { %13846 = vst [vmem:[#allocation146_spill] sm:$0xff] %v9759_v38  ;;  %2896 = vmatpush1.bf16.msra.mxu1 %v7169_v32  ;;  %13849 = vst [vmem:[#allocation149_spill] sm:$0xff] %v9778_v20 }
 0x272   :  { %6435 = vrot.lane.b32.xlu0 %v6434_v55, %s7292_s3  ;;  %2897 = vmatprep.subr.bf16.mxu1 %v13830_v17  ;;  %v7172_v55 = vld [vmem:[%s13827_s26 + $0x30] sm:$0xff]  }
 0x274   :  { %v9769_v57 = vpop.permute.xlu1 %2047  ;;  %v9788_v34 = vpop.permute.xlu0 %2023 }
 0x275   :  { %13847 = vst [vmem:[#allocation147_spill] sm:$0xff] %v9769_v57  ;;  %2898 = vmatpush1.bf16.msra.mxu1 %v7170_v7  ;;  %v2106_v7 = vmul.f32 %v9759_v38, %v9363_v56  ;;  %v2107_v8 = vmul.f32 %v9769_v57, %v9341_v19  ;;  %13850 = vst [vmem:[#allocation150_spill] sm:$0xff] %v9788_v34  ;;  %v7173_v56 = vld [vmem:[%s13827_s26 + $0x38] sm:$0xff]  }
 0x276   :  { %2899 = vmatprep.subr.bf16.mxu1 %v13830_v17 }
 0x278   :  { %v9775_v0 = vpop.permute.xlu1 %2055 }
 0x279   :  { %13848 = vst [vmem:[#allocation148_spill] sm:$0xff] %v9775_v0  ;;  %2900 = vmatpush1.bf16.msra.mxu1 %v7171_v25 }
 0x27a   :  { %2901 = vmatprep.subr.bf16.mxu1 %v13830_v17 }
 0x27c   :  { %v6281_v32 = vpop.permute.xlu1 %6280 }
 0x27d   :  { %v6283_v58 = vunpack.i.h.bf16 %v6281_v32  ;;  %v6282_v12 = vunpack.i.l.bf16 %v6281_v32  ;;  %v5866_v28 = vpop.f32.mrb[12].mxu0  ;;  %2902 = vmatpush1.bf16.msra.mxu1 %v7172_v55 }
 0x27e   :  { %v1530_v26 = vpop.f32.mrb[13].mxu0  ;;  %2903 = vmatprep.subr.bf16.mxu1 %v13830_v17 }
 0x27f   :  { %v1531_v25 = vadd.f32 %v9301_v51, %v1530_v26  ;;  %v5867_v44 = vpop.f32.mrb[14].mxu0  ;;  %v2749_v4 = vsel %vm1251_vm3, %v2106_v7, %v6282_v12  ;;  %v2750_v52 = vsel %vm1251_vm3, %v2107_v8, %v6283_v58  ;;  %v1539_v12 = vadd.f32 %v5866_v28, %v9301_v51  ;;  %v13854_v7 = vld [vmem:[#allocation50_spill] sm:$0xff] }
 0x280   :  { %v1542_v19 = vadd.f32 %v5867_v44, %v9301_v51  ;;  %v9797_v57 = vpop.permute.xlu1 %2059  ;;  %v1533_v32 = vpop.f32.mrb[15].mxu0  ;;  %v2766_v38 = vpack.c.bf16 %v2750_v52, %v2749_v4  ;;  %v1658_v4 = vmul.f32 %v9315_v37, %v13854_v7  ;;  %v7174_v52 = vld [vmem:[%s13827_s26 + $0x40] sm:$0xff]  }
 0x281   :  { %13851 = vst [vmem:[#allocation151_spill] sm:$0xff] %v9797_v57  ;;  %v9800_v27 = vmax.f32 %v1531_v25, 0.0  ;;  %v1534_v26 = vadd.f32 %v9301_v51, %v1533_v32  ;;  %2904 = vmatpush1.bf16.msra.mxu1 %v7173_v56  ;;  %v9816_v25 = vpop.permute.xlu0 %2051  ;;  %v13858_v56 = vld [vmem:[#allocation14_spill] sm:$0xff]  ;;  %v9833_v51 = vmax.f32 %v1539_v12, 0.0  ;;  %v13865_v12 = vld [vmem:[#allocation19_spill] sm:$0xff] }
 0x282   :  { %v9804_v58 = vmax.f32 %v1542_v19, 0.0  ;;  %5775 = vmatprep.mubr.msk.bf16.mxu1 %vm1268_vm4, %v2766_v38  ;;  %13855 = vst [vmem:[#allocation154_spill] sm:$0xff] %v9816_v25  ;;  %v13856_v19 = vld [vmem:[#allocation47_spill] sm:$0xff]  ;;  %2905 = vmatprep.subr.bf16.mxu1 %v13830_v17  ;;  %v1771_v7 = vmul.f32 %v13858_v56, %v9397_v47 }
 0x283   :  { %13852 = vst [vmem:[#allocation152_spill] sm:$0xff] %v9800_v27  ;;  %v1621_v8 = vrot.slane %v9800_v27, 7  ;;  %v1685_v44 = vrot.slane %v9800_v27, 1  ;;  %v9809_v55 = vmax.f32 %v1534_v26, 0.0  ;;  %v13857_v26 = vld [vmem:[#allocation59_spill] sm:$0xff] }
 0x284   :  { %v9820_v38 = vpop.permute.xlu1 %6285  ;;  %v1657_v32 = vmul.f32 %v9804_v58, %v13856_v19  ;;  %v9826_v11 = vmul.f32 %v9800_v27, %v13857_v26  ;;  %v13862_v10 = vrot.slane %v9804_v58, 1  ;;  %v13864_v26 = vld [vmem:[#allocation82_spill] sm:$0xff] }
 0x285   :  { %13853 = vst [vmem:[#allocation153_spill] sm:$0xff] %v9809_v55  ;;  %v9845_v49 = vmul.f32 %v9605_v30, %v13864_v26  ;;  %v1622_v56 = vrot.slane %v9809_v55, 7  ;;  %v1686_v47 = vrot.slane %v9809_v55, 1  ;;  %2906 = vmatpush1.bf16.msra.mxu1 %v7174_v52  ;;  %v13877_v52 = vld [vmem:[#allocation40_spill] sm:$0xff] }
 0x286   :  { %v6444_v28 = vpack.i.bf16 %v1658_v4, %v1657_v32  ;;  %v9841_v19 = vsel %vm1689_vm11, %v13862_v10, %v13861_v35  ;;  %v13866_v4 = vrot.slane %v9315_v37, 7  ;;  %v13867_v32 = vrot.slane %v9804_v58, 7  ;;  %v13869_v10 = vld [vmem:[#allocation61_spill] sm:$0xff]  ;;  %2907 = vmatprep.subr.bf16.mxu1 %v13830_v17 }
 0x287   :  { %13863 = vst [vmem:[#allocation155_spill] sm:$0xff] %v9841_v19  ;;  %v1770_v59 = vmul.f32 %v13865_v12, %v9841_v19  ;;  %v9868_v12 = vsel %vm1689_vm11, %v13870_v13, %v1685_v44  ;;  %v13871_v19 = vrot.slane %v9605_v30, 7  ;;  %v9887_v13 = vpop.permute.xlu0 %2063 }
 0x288   :  { %v9857_v33 = vsel %vm385_vm0, %v13867_v32, %v13866_v4  ;;  %v9859_v35 = vpop.permute.xlu1 %2067  ;;  %6445 = vrot.lane.b32.xlu0 %v6444_v28, %s7297_s30  ;;  %v13873_v28 = vld [vmem:[#allocation97_spill] sm:$0xff]  ;;  %13875 = vst [vmem:[#allocation158_spill] sm:$0xff] %v9887_v13 }
 0x289   :  { %13868 = vst [vmem:[#allocation156_spill] sm:$0xff] %v9859_v35  ;;  %v1786_v26 = vmul.f32 %v9857_v33, %v13869_v10  ;;  %v9874_v4 = vsel %vm385_vm0, %v13871_v19, %v1621_v8  ;;  %v6449_v32 = vpack.i.bf16 %v1771_v7, %v1770_v59  ;;  %v9880_v23 = vmul.f32 %v13873_v28, %v9718_v53  ;;  %v13874_v10 = vld [vmem:[#allocation122_spill] sm:$0xff]  ;;  %v13876_v19 = vld [vmem:[#allocation104_spill] sm:$0xff]  ;;  %v13880_v53 = vld [vmem:[#allocation93_spill] sm:$0xff] }
 0x28a   :  { %13872 = vst [vmem:[#allocation157_spill] sm:$0xff] %v9874_v4  ;;  %v9884_v41 = vmul.f32 %v13874_v10, %v9874_v4  ;;  %v9891_v14 = vmul.f32 %v13876_v19, %v9605_v30  ;;  %v9895_v59 = vmul.f32 %v13877_v52, %v9800_v27  ;;  %v1687_v7 = vrot.slane %v9833_v51, 1  ;;  %v13879_v19 = vld [vmem:[#allocation86_spill] sm:$0xff] }
 0x28b   :  { %v6454_v50 = vpack.i.bf16 %v1787_v6, %v1786_v26  ;;  %6450 = vrot.lane.b32.xlu1 %v6449_v32, %s7292_s3  ;;  %v9903_v10 = vsel %vm385_vm0, %v1621_v8, %v1622_v56  ;;  %v9910_v52 = vmul.f32 %v9874_v4, %v13879_v19  ;;  %v9918_v28 = vsel %vm1689_vm11, %v1685_v44, %v1686_v47  ;;  %v9928_v19 = vpop.permute.xlu0 %2071  ;;  %v13891_v27 = vld [vmem:[#allocation90_spill] sm:$0xff] }
 0x28c   :  { %13878 = vst [vmem:[#allocation159_spill] sm:$0xff] %v9903_v10  ;;  %v6291_v6 = vpop.permute.xlu1 %6290  ;;  %v9914_v32 = vmul.f32 %v9903_v10, %v13880_v53  ;;  %v9922_v8 = vmul.f32 %v9788_v34, %v9315_v37  ;;  %v2108_v26 = vmul.f32 %v9816_v25, %v9484_v3  ;;  %13881 = vst [vmem:[#allocation160_spill] sm:$0xff] %v9928_v19  ;;  %v1623_v4 = vrot.slane %v9833_v51, 7 }
 0x28d   :  { %6455 = vrot.lane.b32.xlu0 %v6454_v50, %s7299_s23  ;;  %v9935_v44 = vsel %vm1689_vm11, %v1686_v47, %v1687_v7  ;;  %v2111_v37 = vmul.f32 %v9887_v13, %v9491_v9  ;;  %v2113_v50 = vmul.f32 %v9928_v19, %v9646_v63  ;;  %v2109_v3 = vmul.f32 %v9775_v0, %v9526_v48  ;;  %v7245_v9 = vld [vmem:[%s13022_s7 + $0x58] sm:$0xff] }
 0x28e   :  { %v6288_v34 = vunpack.i.h.bf16 %v9820_v38  ;;  %v13882_v25 = vpack.i.bf16 %v9686_v31, %v9682_v40  ;;  %v6287_v53 = vunpack.i.l.bf16 %v9820_v38  ;;  %v9956_v63 = vsel %vm385_vm0, %v1622_v56, %v1623_v4  ;;  %v13884_v19 = vld [vmem:[#allocation84_spill] sm:$0xff]  ;;  %v13885_v38 = vld [vmem:[#allocation89_spill] sm:$0xff] }
 0x28f   :  { %v9960_v48 = vmul.f32 %v9557_v2, %v9903_v10  ;;  %v9964_v31 = vmul.f32 %v9809_v55, %v13884_v19  ;;  %v6293_v40 = vunpack.i.h.bf16 %v6291_v6  ;;  %v9976_v56 = vmul.f32 %v9778_v20, %v9809_v55 }
 0x290   :  { %6460 = vrot.lane.b32.xlu1 %v13882_v25, %s7307_s28  ;;  %v9968_v25 = vmul.f32 %v9575_v15, %v9956_v63  ;;  %v6292_v13 = vunpack.i.l.bf16 %v6291_v6  ;;  %v9980_v2 = vmul.f32 %v9582_v46, %v9833_v51  ;;  %v13886_v19 = vrot.slane %v9804_v58, 7  ;;  %v13887_v15 = vld [vmem:[#allocation95_spill] sm:$0xff] }
 0x291   :  { %v9949_v47 = vpop.permute.xlu1 %2075  ;;  %2087 = vperm.xlu0 %6278, %v7245_v9   ;;  %v9972_v9 = vmul.f32 %v9833_v51, %v13885_v38  ;;  %v9990_v10 = vmul.f32 %v9956_v63, %v13887_v15  ;;  %v13888_v38 = vld [vmem:[#allocation91_spill] sm:$0xff]  ;;  %v13893_v6 = vpack.i.bf16 %v9703_v43, %v9699_v5  ;;  %v13894_v43 = vld [vmem:[#allocation124_spill] sm:$0xff]  ;;  %v10059_v5 = vmul.f32 %v9720_v60, %v9804_v58  ;;  %v13935_v60 = vld [vmem:[#allocation46_spill] sm:$0xff] }
 0x292   :  { %13883 = vst [vmem:[#allocation161_spill] sm:$0xff] %v9949_v47  ;;  %v9986_v0 = vsel %vm385_vm0, %v1623_v4, %v13886_v19  ;;  %v13889_v47 = vld [vmem:[#allocation85_spill] sm:$0xff]  ;;  %v13892_v4 = vrot.slane %v9804_v58, 1 }
 0x293   :  { %v13890_v20 = vpack.i.bf16 %v13888_v38, %v13889_v47  ;;  %v10002_v55 = vmul.f32 %v9986_v0, %v13891_v27  ;;  %v2110_v47 = vmul.f32 %v9797_v57, %v9522_v45  ;;  %v10016_v38 = vsel %vm1251_vm3, %v2109_v3, %v6288_v34 }
 0x294   :  { %v10008_v19 = vsel %vm1689_vm11, %v1687_v7, %v13892_v4  ;;  %v7175_v7 = vld [vmem:[%s13827_s26 + $0x48] ss:$0 sps:$4 sm:$0xff]   ;;  %v2112_v45 = vmul.f32 %v9859_v35, %v9630_v39  ;;  %v10042_v4 = vmul.f32 %v9660_v62, %v9857_v33  ;;  %v10045_v39 = vsel %vm1251_vm3, %v2111_v37, %v6293_v40  ;;  %v7249_v40 = vld [vmem:[%s13022_s7 + $0x78] sm:$0xff] }
 0x295   :  { %6470 = vrot.lane.b32.xlu1 %v13890_v20, %s7297_s30  ;;  %v10013_v20 = vsel %vm1251_vm3, %v2108_v26, %v6287_v53  ;;  %v6296_v46 = vpop.permute.xlu1 %6295  ;;  %6465 = vrot.lane.b32.xlu0 %v13893_v6, %s7306_s4  ;;  %v10032_v3 = vsel %vm1251_vm3, %v2110_v47, %v6292_v13  ;;  %v10038_v6 = vmul.f32 %v13894_v43, %v9986_v0  ;;  %v13919_v62 = vld [vmem:[#allocation99_spill] sm:$0xff]  ;;  %v13922_v43 = vld [vmem:[#allocation44_spill] sm:$0xff] }
 0x296   :  { %v6298_v53 = vunpack.i.h.bf16 %v6296_v46  ;;  %v6297_v26 = vunpack.i.l.bf16 %v6296_v46  ;;  %v13895_v47 = vpack.i.bf16 %v9624_v18, %v9709_v16  ;;  %v13896_v37 = vpack.i.bf16 %v9668_v61, %v9712_v21  ;;  %v10072_v16 = vpop.permute.xlu0 %2079  ;;  %v7246_v61 = vld [vmem:[%s13022_s7 + $0x60] sm:$0xff]  ;;  %v13904_v18 = vld [vmem:[#allocation35_spill] sm:$0xff] }
 0x297   :  { %13897 = vst [vmem:[#allocation91_spill] sm:$0xff] %v10072_v16  ;;  %v13898_v21 = vpack.i.bf16 %v9730_v24, %v9726_v22  ;;  %v13901_v24 = vld [vmem:[#allocation21_spill] sm:$0xff] }
 0x298   :  { %v10048_v46 = vsel %vm1251_vm3, %v2112_v45, %v6297_v26  ;;  %v10051_v13 = vsel %vm1251_vm3, %v2113_v50, %v6298_v53  ;;  %v2887_v50 = vsel %vm1444_vm1, %v7175_v7, 0  ;;  %v13899_v7 = vpack.i.bf16 %v9745_v1, %v9734_v42  ;;  %v13900_v26 = vld [vmem:[#allocation88_spill] sm:$0xff] }
 0x299   :  { %6480 = vrot.lane.b32.xlu1 %v13895_v47, %s7297_s30  ;;  %6475 = vrot.lane.b32.xlu0 %v13896_v37, %s7305_s2  ;;  %v1877_v47 = vmul.f32 %v13900_v26, %v9868_v12  ;;  %v1876_v22 = vmul.f32 %v13901_v24, %v9636_v54  ;;  %v13902_v1 = vpack.i.bf16 %v9605_v30, %v9595_v36  ;;  %v13933_v24 = vld [vmem:[#allocation109_spill] sm:$0xff] }
 0x29a   :  { %2908 = vmatpush1.bf16.msra.mxu1 %v2887_v50  ;;  %v10089_v37 = vpop.permute.xlu0 %6300  ;;  %v10091_v50 = vpop.permute.xlu1 %6305  ;;  %v13906_v36 = vpack.i.bf16 %v9884_v41, %v9880_v23  ;;  %v13910_v23 = vld [vmem:[#allocation70_spill] sm:$0xff]  ;;  %v13934_v26 = vld [vmem:[#allocation49_spill] sm:$0xff] }
 0x29b   :  { %5868 = vmatprep.subr.bf16.mxu1 %v13830_v17  ;;  %v6499_v42 = vpack.i.bf16 %v1877_v47, %v1876_v22  ;;  %v13907_v47 = vld [vmem:[#allocation41_spill] sm:$0xff]  ;;  %v1782_v41 = vmul.f32 %v13910_v23, %v9868_v12 }
 0x29c   :  { %v1783_v22 = vmul.f32 %v13907_v47, %v9918_v28 }
 0x29d   :  { %6490 = vrot.lane.b32.xlu1 %v13898_v21, %s7299_s23  ;;  %6485 = vrot.lane.b32.xlu0 %v13899_v7, %s7292_s3  ;;  %v7247_v7 = vld [vmem:[%s13022_s7 + $0x68] sm:$0xff] }
 0x29e   :  { %v10103_v21 = vpop.permute.xlu0 %6310  ;;  %v6316_v53 = vpop.permute.xlu1 %6315 }
 0x29f   :  { %v6317_v34 = vunpack.i.l.bf16 %v6316_v53 }
 0x2a1   :  { %2091 = vperm.xlu1 %6277, %v7246_v61   ;;  %6495 = vrot.lane.b32.xlu0 %v13902_v1, %s7295_s24  ;;  %v13903_v61 = vld [vmem:[#allocation92_spill] sm:$0xff] }
 0x2a2   :  { %v13905_v45 = vpack.i.bf16 %v13903_v61, %v13904_v18  ;;  %v10116_v30 = vpop.permute.xlu0 %6325  ;;  %v10120_v1 = vpop.permute.xlu1 %6320  ;;  %v6524_v18 = vpack.i.bf16 %v1783_v22, %v1782_v41 }
 0x2a5   :  { %6500 = vrot.lane.b32.xlu1 %v6499_v42, %s7307_s28  ;;  %2095 = vperm.xlu0 %6278, %v7247_v7   ;;  %v13908_v42 = vpack.i.bf16 %v9826_v11, %v9845_v49  ;;  %v13911_v7 = vpack.i.bf16 %v9914_v32, %v9910_v52  ;;  %v13912_v49 = vld [vmem:[#allocation106_spill] sm:$0xff]  ;;  %v13914_v52 = vld [vmem:[#allocation153_spill] sm:$0xff]  ;;  %v13915_v32 = vld [vmem:[#allocation152_spill] sm:$0xff] }
 0x2a6   :  { %v6331_v61 = vpop.permute.xlu0 %6330  ;;  %v1878_v11 = vmul.f32 %v13912_v49, %v9918_v28 }
 0x2a9   :  { %6510 = vrot.lane.b32.xlu1 %v13905_v45, %s7297_s30  ;;  %6505 = vrot.lane.b32.xlu0 %v13906_v36, %s7306_s4  ;;  %v13909_v45 = vpack.i.bf16 %v9895_v59, %v9891_v14  ;;  %v6336_v36 = vpop.permute.xlu1 %6335  ;;  %v7248_v59 = vld [vmem:[%s13022_s7 + $0x70] sm:$0xff] }
 0x2ad   :  { %6520 = vrot.lane.b32.xlu1 %v13908_v42, %s7297_s30  ;;  %6515 = vrot.lane.b32.xlu0 %v13909_v45, %s7305_s2  ;;  %v13913_v42 = vld [vmem:[#allocation13_spill] sm:$0xff]  ;;  %v13916_v45 = vpack.i.bf16 %v13914_v52, %v13915_v32 }
 0x2ae   :  { %v1879_v14 = vmul.f32 %v13913_v42, %v9935_v44  ;;  %v13917_v52 = vld [vmem:[#allocation101_spill] sm:$0xff] }
 0x2af   :  { %v13918_v32 = vld [vmem:[#allocation129_spill] sm:$0xff] }
 0x2b1   :  { %6530 = vrot.lane.b32.xlu1 %v13911_v7, %s7299_s23  ;;  %6525 = vrot.lane.b32.xlu0 %v6524_v18, %s7292_s3  ;;  %v6539_v18 = vpack.i.bf16 %v1879_v14, %v1878_v11  ;;  %v13920_v11 = vld [vmem:[#allocation130_spill] sm:$0xff] }
 0x2b2   :  { %v1643_v14 = vmul.f32 %v13920_v11, %v13919_v62  ;;  %v6333_v11 = vunpack.i.h.bf16 %v6331_v61  ;;  %v6332_v62 = vunpack.i.l.bf16 %v6331_v61 }
 0x2b4   :  { %v10144_v22 = vpop.permute.xlu0 %6340  ;;  %v2636_v42 = vsel %vm1251_vm3, %v1643_v14, %v6317_v34  ;;  %v13929_v34 = vld [vmem:[#allocation115_spill] sm:$0xff] }
 0x2b5   :  { %2099 = vperm.xlu1 %6277, %v7248_v59   ;;  %6535 = vrot.lane.b32.xlu0 %v13916_v45, %s7295_s24  ;;  %v10150_v41 = vpop.permute.xlu1 %6350  ;;  %v6318_v59 = vunpack.i.h.bf16 %v6316_v53  ;;  %v1644_v45 = vmul.f32 %v13918_v32, %v13917_v52  ;;  %v6338_v32 = vunpack.i.h.bf16 %v6336_v36  ;;  %v6337_v52 = vunpack.i.l.bf16 %v6336_v36  ;;  %v13930_v36 = vld [vmem:[#allocation53_spill] sm:$0xff] }
 0x2b6   :  { %v2652_v35 = vsel %vm1285_vm5, %v2636_v42, %v6332_v62 }
 0x2b7   :  { %v2637_v53 = vsel %vm1251_vm3, %v1644_v45, %v6318_v59  ;;  %v13931_v45 = vld [vmem:[#allocation116_spill] sm:$0xff] }
 0x2b8   :  { %v10153_v7 = vpop.permute.xlu0 %6345  ;;  %v1576_v14 = vmax.f32 %v13931_v45, %v13930_v36  ;;  %v6303_v36 = vunpack.i.h.bf16 %v10089_v37 }
 0x2b9   :  { %6540 = vrot.lane.b32.xlu1 %v6539_v18, %s7307_s28  ;;  %2103 = vperm.xlu0 %6278, %v7249_v40   ;;  %v10159_v15 = vpop.permute.xlu1 %6365  ;;  %v13921_v18 = vld [vmem:[#allocation42_spill] sm:$0xff]  ;;  %v13924_v40 = vpack.i.bf16 %v9968_v25, %v9960_v48  ;;  %v13927_v48 = vpack.i.bf16 %v9972_v9, %v9964_v31  ;;  %v13936_v31 = vpack.i.bf16 %v9980_v2, %v9976_v56  ;;  %v13937_v9 = vld [vmem:[#allocation135_spill] sm:$0xff] }
 0x2ba   :  { %7159 = vset.pattern.permute.xlu1 %v13830_v17  ;;  %v13923_v27 = vpack.i.bf16 %v13921_v18, %v13922_v43  ;;  %v13926_v18 = vld [vmem:[#allocation30_spill] sm:$0xff]  ;;  %v13940_v56 = vpack.i.bf16 %v10002_v55, %v9990_v10  ;;  %v6348_v55 = vunpack.i.h.bf16 %v10153_v7  ;;  %v6347_v10 = vunpack.i.l.bf16 %v10153_v7 }
 0x2bb   :  { %v1785_v47 = vmul.f32 %v13926_v18, %v10008_v19  ;;  %v13928_v25 = vld [vmem:[#allocation110_spill] sm:$0xff]  ;;  %v2653_v18 = vsel %vm1285_vm5, %v2637_v53, %v6333_v11  ;;  %v13945_v7 = vpack.i.bf16 %v9804_v58, %v9833_v51 }
 0x2bc   :  { %v10169_v49 = vpop.permute.xlu0 %6355  ;;  %v1575_v59 = vmax.f32 %v13929_v34, %v13928_v25  ;;  %v13938_v25 = vld [vmem:[#allocation155_spill] sm:$0xff]  ;;  %v13939_v34 = vld [vmem:[#allocation137_spill] sm:$0xff]  ;;  %v2669_v62 = vsel %vm1319_vm7, %v2653_v18, %v6338_v32 }
 0x2bd   :  { %6550 = vrot.lane.b32.xlu1 %v13923_v27, %s7297_s30  ;;  %6545 = vrot.lane.b32.xlu0 %v13924_v40, %s7306_s4  ;;  %v6371_v23 = vpop.permute.xlu1 %6370  ;;  %v13925_v27 = vld [vmem:[#allocation134_spill] sm:$0xff]  ;;  %v13932_v40 = vld [vmem:[#allocation111_spill] sm:$0xff]  ;;  %v6358_v58 = vunpack.i.h.bf16 %v10169_v49  ;;  %v6357_v51 = vunpack.i.l.bf16 %v10169_v49 }
 0x2be   :  { %7160 = vset.pattern.permute.xlu0 %v13830_v17  ;;  %v1784_v43 = vmul.f32 %v13925_v27, %v9935_v44  ;;  %v1591_v61 = vmax.f32 %v13933_v24, %v13932_v40  ;;  %v1592_v27 = vmax.f32 %v13935_v60, %v13934_v26  ;;  %v1881_v24 = vmul.f32 %v13939_v34, %v13938_v25 }
 0x2bf   :  { %v2668_v60 = vsel %vm1319_vm7, %v2652_v35, %v6337_v52  ;;  %v6302_v26 = vunpack.i.l.bf16 %v10089_v37  ;;  %v6373_v42 = vunpack.i.h.bf16 %v6371_v23  ;;  %v6372_v53 = vunpack.i.l.bf16 %v6371_v23 }
 0x2c0   :  { %v10196_v57 = vpop.permute.xlu0 %6360  ;;  %v6564_v11 = vpack.i.bf16 %v1785_v47, %v1784_v43  ;;  %v1607_v45 = vmax.f32 %v1575_v59, %v1591_v61  ;;  %v1608_v40 = vmax.f32 %v1576_v14, %v1592_v27  ;;  %v2685_v35 = vsel %vm1353_vm9, %v2669_v62, %v6303_v36  ;;  %v13943_v36 = vld [vmem:[#allocation103_spill] sm:$0xff] }
 0x2c1   :  { %6560 = vrot.lane.b32.xlu1 %v13927_v48, %s7297_s30  ;;  %6555 = vrot.lane.b32.xlu0 %v13936_v31, %s7305_s2  ;;  %v1880_v48 = vmul.f32 %v13937_v9, %v10008_v19  ;;  %v6386_v2 = vpop.permute.xlu1 %6385  ;;  %v2684_v31 = vsel %vm1353_vm9, %v2668_v60, %v6302_v26  ;;  %v6353_v47 = vunpack.i.h.bf16 %v10150_v41  ;;  %v6352_v23 = vunpack.i.l.bf16 %v10150_v41  ;;  %v13944_v60 = vld [vmem:[#allocation105_spill] sm:$0xff] }
 0x2c2   :  { %v2701_v27 = vsel %vm2698_vm12, %v2684_v31, %v6372_v53  ;;  %v2702_v18 = vsel %vm2698_vm12, %v2685_v35, %v6373_v42  ;;  %v6589_v59 = vpack.i.bf16 %v1608_v40, %v1607_v45  ;;  %v1646_v62 = vmul.f32 %v13944_v60, %v13943_v36 }
 0x2c3   :  { %v6579_v37 = vpack.i.bf16 %v1881_v24, %v1880_v48  ;;  %v13941_v48 = vld [vmem:[#allocation96_spill] sm:$0xff] }
 0x2c4   :  { %v6376_v52 = vpop.permute.xlu0 %6375  ;;  %v13942_v24 = vld [vmem:[#allocation128_spill] sm:$0xff]  ;;  %v2639_v31 = vsel %vm1251_vm3, %v1646_v62, %v6353_v47 }
 0x2c5   :  { %6570 = vrot.lane.b32.xlu1 %v13940_v56, %s7299_s23  ;;  %6565 = vrot.lane.b32.xlu0 %v6564_v11, %s7292_s3  ;;  %v6378_v32 = vunpack.i.h.bf16 %v6376_v52  ;;  %v6377_v43 = vunpack.i.l.bf16 %v6376_v52  ;;  %v1645_v41 = vmul.f32 %v13942_v24, %v13941_v48  ;;  %v6391_v11 = vpop.permute.xlu1 %6390  ;;  %v6388_v52 = vunpack.i.h.bf16 %v6386_v2 }
 0x2c6   :  { %v6362_v24 = vunpack.i.l.bf16 %v10196_v57 }
 0x2c7   :  { %v2718_v14 = vsel %vm2715_vm13, %v2701_v27, %v6377_v43  ;;  %v2719_v61 = vsel %vm2715_vm13, %v2702_v18, %v6378_v32  ;;  %v2638_v35 = vsel %vm1251_vm3, %v1645_v41, %v6352_v23 }
 0x2c8   :  { %v6381_v26 = vpop.permute.xlu0 %6380  ;;  %v10235_v42 = vsel %vm2732_vm14, %v2718_v14, %v6347_v10  ;;  %v10238_v53 = vsel %vm2732_vm14, %v2719_v61, %v6348_v55  ;;  %v6393_v55 = vunpack.i.h.bf16 %v6391_v11  ;;  %v6392_v10 = vunpack.i.l.bf16 %v6391_v11 }
 0x2c9   :  { %6580 = vrot.lane.b32.xlu1 %v6579_v37, %s7307_s28  ;;  %6575 = vrot.lane.b32.xlu0 %v13945_v7, %s7295_s24  ;;  %v6383_v56 = vunpack.i.h.bf16 %v6381_v26  ;;  %v6382_v45 = vunpack.i.l.bf16 %v6381_v26  ;;  %v2767_v40 = vpack.c.bf16 %v10238_v53, %v10235_v42  ;;  %v6387_v37 = vunpack.i.l.bf16 %v6386_v2  ;;  %v6406_v11 = vpop.permute.xlu1 %6405 }
 0x2ca   :  { %v13946_v2 = vpack.i.bf16 %v10042_v4, %v10038_v6  ;;  %v13947_v6 = vpack.i.bf16 %v9922_v8, %v10059_v5  ;;  %v13948_v8 = vld [vmem:[#allocation100_spill] sm:$0xff]  ;;  %v13949_v5 = vld [vmem:[#allocation39_spill] sm:$0xff] }
 0x2cb   :  { %v2655_v32 = vsel %vm1285_vm5, %v2639_v31, %v6383_v56  ;;  %v2654_v43 = vsel %vm1285_vm5, %v2638_v35, %v6382_v45  ;;  %v6368_v45 = vunpack.i.h.bf16 %v10159_v15  ;;  %v6367_v31 = vunpack.i.l.bf16 %v10159_v15 }
 0x2cc   :  { %v2671_v27 = vsel %vm1319_vm7, %v2655_v32, %v6388_v52  ;;  %v2670_v47 = vsel %vm1319_vm7, %v2654_v43, %v6387_v37  ;;  %v6396_v18 = vpop.permute.xlu0 %6395  ;;  %v13951_v32 = vld [vmem:[#allocation108_spill] sm:$0xff] }
 0x2cd   :  { %6590 = vrot.lane.b32.xlu1 %v6589_v59, %s7297_s30  ;;  %6585 = vrot.lane.b32.xlu0 %v13946_v2, %s7306_s4  ;;  %v6398_v23 = vunpack.i.h.bf16 %v6396_v18  ;;  %v6397_v49 = vunpack.i.l.bf16 %v6396_v18  ;;  %v2686_v14 = vsel %vm1353_vm9, %v2670_v47, %v6357_v51  ;;  %v2687_v61 = vsel %vm1353_vm9, %v2671_v27, %v6358_v58  ;;  %v13950_v51 = vld [vmem:[#allocation107_spill] sm:$0xff] }
 0x2ce   :  { %v6363_v59 = vunpack.i.h.bf16 %v10196_v57  ;;  %v2703_v41 = vsel %vm2698_vm12, %v2686_v14, %v6392_v10  ;;  %v2704_v60 = vsel %vm2698_vm12, %v2687_v61, %v6393_v55  ;;  %v1647_v58 = vmul.f32 %v13949_v5, %v13948_v8 }
 0x2cf   :  { %v2720_v62 = vsel %vm2715_vm13, %v2703_v41, %v6397_v49  ;;  %v2721_v26 = vsel %vm2715_vm13, %v2704_v60, %v6398_v23  ;;  %v1648_v43 = vmul.f32 %v13951_v32, %v13950_v51  ;;  %v6408_v2 = vunpack.i.h.bf16 %v6406_v11 }
 0x2d0   :  { %v10268_v4 = vsel %vm2732_vm14, %v2720_v62, %v6362_v24  ;;  %v10271_v7 = vsel %vm2732_vm14, %v2721_v26, %v6363_v59  ;;  %v6401_v56 = vpop.permute.xlu0 %6400  ;;  %v2640_v27 = vsel %vm1251_vm3, %v1647_v58, %v6367_v31  ;;  %v6407_v23 = vunpack.i.l.bf16 %v6406_v11 }
 0x2d1   :  { %6595 = vrot.lane.b32.xlu0 %v13947_v6, %s7305_s2  ;;  %v2769_v57 = vpack.c.bf16 %v10271_v7, %v10268_v4  ;;  %v6403_v35 = vunpack.i.h.bf16 %v6401_v56  ;;  %v6402_v52 = vunpack.i.l.bf16 %v6401_v56  ;;  %v2641_v10 = vsel %vm1251_vm3, %v1648_v43, %v6368_v45 }
 0x2d2   :  { %v6343_v41 = vunpack.i.h.bf16 %v10144_v22  ;;  %v6342_v60 = vunpack.i.l.bf16 %v10144_v22 }
 0x2d3   :  { %v2657_v47 = vsel %vm1285_vm5, %v2641_v10, %v6403_v35  ;;  %v2656_v18 = vsel %vm1285_vm5, %v2640_v27, %v6402_v52 }
 0x2d4   :  { %v2673_v14 = vsel %vm1319_vm7, %v2657_v47, %v6408_v2  ;;  %v2672_v61 = vsel %vm1319_vm7, %v2656_v18, %v6407_v23  ;;  %v13953_v2 = vld [vmem:[#allocation98_spill] sm:$0xff] }
 0x2d5   :  { %v2688_v26 = vsel %vm1353_vm9, %v2672_v61, %v6342_v60  ;;  %v2689_v6 = vsel %vm1353_vm9, %v2673_v14, %v6343_v41  ;;  %v1641_v23 = vmul.f32 %v9986_v0, %v13953_v2  ;;  %v13954_v14 = vld [vmem:[#allocation94_spill] sm:$0xff] }
 0x2d6   :  { %v10277_v37 = vpop.permute.xlu1 %6415  ;;  %v1642_v61 = vmul.f32 %v9857_v33, %v13954_v14  ;;  %v6323_v33 = vunpack.i.h.bf16 %v10120_v1 }
 0x2d7   :  { %v6411_v55 = vpop.permute.xlu0 %6410 }
 0x2d8   :  { %v6413_v11 = vunpack.i.h.bf16 %v6411_v55  ;;  %v6412_v31 = vunpack.i.l.bf16 %v6411_v55 }
 0x2da   :  { %v6426_v15 = vpop.permute.xlu1 %6425 }
 0x2db   :  { %v6428_v59 = vunpack.i.h.bf16 %v6426_v15  ;;  %v6427_v24 = vunpack.i.l.bf16 %v6426_v15 }
 0x2dc   :  { %v10287_v49 = vpop.permute.xlu0 %6420 }
 0x2dd   :  { %v2705_v35 = vsel %vm2698_vm12, %v2688_v26, %v6427_v24  ;;  %v2706_v52 = vsel %vm2698_vm12, %v2689_v6, %v6428_v59 }
 0x2de   :  { %v10307_v10 = vpop.permute.xlu1 %6440 }
 0x2e0   :  { %v6431_v62 = vpop.permute.xlu0 %6430 }
 0x2e1   :  { %v6433_v56 = vunpack.i.h.bf16 %v6431_v62  ;;  %v6432_v45 = vunpack.i.l.bf16 %v6431_v62 }
 0x2e3   :  { %v2722_v5 = vsel %vm2715_vm13, %v2705_v35, %v6432_v45  ;;  %v2723_v58 = vsel %vm2715_vm13, %v2706_v52, %v6433_v56  ;;  %v6308_v45 = vunpack.i.h.bf16 %v10091_v50  ;;  %v6322_v35 = vunpack.i.l.bf16 %v10120_v1 }
 0x2e4   :  { %v10300_v32 = vsel %vm2732_vm14, %v2722_v5, %v6412_v31  ;;  %v10303_v22 = vsel %vm2732_vm14, %v2723_v58, %v6413_v11  ;;  %v6436_v55 = vpop.permute.xlu0 %6435  ;;  %v6307_v11 = vunpack.i.l.bf16 %v10091_v50 }
 0x2e5   :  { %v2771_v43 = vpack.c.bf16 %v10303_v22, %v10300_v32 }
 0x2ef   :  { %v10309_v27 = vpop.permute.xlu1 %2083 }
 0x2f0   :  { %13952 = vst [vmem:[#allocation85_spill] sm:$0xff] %v10309_v27  ;;  %v2116_v22 = vmul.f32 %v10309_v27, %v9868_v12 }
 0x2fa   :  { %v6446_v47 = vpop.permute.xlu0 %6445 }
 0x2fb   :  { %v6448_v18 = vunpack.i.h.bf16 %v6446_v47  ;;  %v6447_v15 = vunpack.i.l.bf16 %v6446_v47  ;;  %v6328_v47 = vunpack.i.h.bf16 %v10116_v30 }
 0x2fd   :  { %v6451_v59 = vpop.permute.xlu1 %6450  ;;  %v2635_v62 = vsel %vm1251_vm3, %v1642_v61, %v6448_v18  ;;  %v2634_v26 = vsel %vm1251_vm3, %v1641_v23, %v6447_v15  ;;  %v6327_v18 = vunpack.i.l.bf16 %v10116_v30  ;;  %v6313_v23 = vunpack.i.h.bf16 %v10103_v21 }
 0x2fe   :  { %v6453_v24 = vunpack.i.h.bf16 %v6451_v59  ;;  %v6452_v41 = vunpack.i.l.bf16 %v6451_v59  ;;  %v6312_v61 = vunpack.i.l.bf16 %v10103_v21 }
 0x2ff   :  { %v6456_v60 = vpop.permute.xlu0 %6455 }
 0x300   :  { %v6458_v6 = vunpack.i.h.bf16 %v6456_v60  ;;  %v6457_v56 = vunpack.i.l.bf16 %v6456_v60  ;;  %v2650_v31 = vsel %vm1285_vm5, %v2634_v26, %v6452_v41  ;;  %v2651_v0 = vsel %vm1285_vm5, %v2635_v62, %v6453_v24 }
 0x301   :  { %v2115_v60 = vmul.f32 %v10072_v16, %v9636_v54 }
 0x302   :  { %v2667_v52 = vsel %vm1319_vm7, %v2651_v0, %v6458_v6  ;;  %v2666_v5 = vsel %vm1319_vm7, %v2650_v31, %v6457_v56  ;;  %v6461_v58 = vpop.permute.xlu1 %6460  ;;  %v13955_v6 = vld [vmem:[#allocation142_spill] sm:$0xff]  ;;  %v13956_v56 = vld [vmem:[#allocation161_spill] sm:$0xff] }
 0x303   :  { %v2683_v15 = vsel %vm1353_vm9, %v2667_v52, %v6308_v45  ;;  %v2682_v50 = vsel %vm1353_vm9, %v2666_v5, %v6307_v11  ;;  %v2114_v45 = vmul.f32 %v13956_v56, %v13955_v6  ;;  %v6418_v52 = vunpack.i.h.bf16 %v10277_v37 }
 0x304   :  { %v2699_v59 = vsel %vm2698_vm12, %v2682_v50, %v6322_v35  ;;  %v2700_v1 = vsel %vm2698_vm12, %v2683_v15, %v6323_v33  ;;  %v13957_v35 = vpack.c.bf16 %v10016_v38, %v10013_v20  ;;  %v6417_v5 = vunpack.i.l.bf16 %v10277_v37  ;;  %v13958_v15 = vld [vmem:[#allocation114_spill] sm:$0xff]  ;;  %v13959_v50 = vld [vmem:[#allocation112_spill] sm:$0xff] }
 0x305   :  { %v2716_v24 = vsel %vm2715_vm13, %v2699_v59, %v6327_v18  ;;  %v2717_v41 = vsel %vm2715_vm13, %v2700_v1, %v6328_v47  ;;  %v6438_v47 = vunpack.i.h.bf16 %v6436_v55  ;;  %v6437_v18 = vunpack.i.l.bf16 %v6436_v55  ;;  %v13961_v59 = vld [vmem:[#allocation140_spill] sm:$0xff] }
 0x306   :  { %v2733_v62 = vsel %vm2732_vm14, %v2716_v24, %v6312_v61  ;;  %v2734_v26 = vsel %vm2732_vm14, %v2717_v41, %v6313_v23  ;;  %v1649_v23 = vmul.f32 %v13959_v50, %v13958_v15  ;;  %v13960_v61 = vld [vmem:[#allocation113_spill] sm:$0xff]  ;;  %v13963_v55 = vpack.c.bf16 %v10045_v39, %v10032_v3 }
 0x307   :  { %v6471_v30 = vpop.permute.xlu1 %6470  ;;  %v2765_v31 = vpack.c.bf16 %v2734_v26, %v2733_v62  ;;  %v1650_v1 = vmul.f32 %v13961_v59, %v13960_v61  ;;  %v6463_v42 = vunpack.i.h.bf16 %v6461_v58  ;;  %v6462_v53 = vunpack.i.l.bf16 %v6461_v58 }
 0x308   :  { %v6473_v21 = vunpack.i.h.bf16 %v6471_v30  ;;  %v6472_v11 = vunpack.i.l.bf16 %v6471_v30  ;;  %v2642_v20 = vsel %vm1251_vm3, %v1649_v23, %v6417_v5  ;;  %v6442_v30 = vunpack.i.l.bf16 %v10307_v10 }
 0x309   :  { %2922 = vmatmul.mubr.bf16.vlgmr.msra.gmra.mrb[0].mxu1 %v2765_v31  ;;  %v2643_v41 = vsel %vm1251_vm3, %v1650_v1, %v6418_v52  ;;  %v2658_v37 = vsel %vm1285_vm5, %v2642_v20, %v6437_v18  ;;  %v13966_v20 = vld [vmem:[#allocation117_spill] sm:$0xff] }
 0x30a   :  { %v2758_v0 = vsel %vm1251_vm3, %v2115_v60, %v6473_v21  ;;  %v2757_v33 = vsel %vm1251_vm3, %v2114_v45, %v6472_v11  ;;  %5776 = vmatprep.mubr.msk.bf16.mxu1 %vm1268_vm4, %v13957_v35  ;;  %v2659_v38 = vsel %vm1285_vm5, %v2643_v41, %v6438_v47  ;;  %v6443_v60 = vunpack.i.h.bf16 %v10307_v10 }
 0x30b   :  { %v2774_v54 = vpack.c.bf16 %v2758_v0, %v2757_v33  ;;  %v2674_v6 = vsel %vm1319_vm7, %v2658_v37, %v6442_v30  ;;  %v6423_v45 = vunpack.i.h.bf16 %v10287_v49  ;;  %v6422_v21 = vunpack.i.l.bf16 %v10287_v49 }
 0x30c   :  { %v2675_v26 = vsel %vm1319_vm7, %v2659_v38, %v6443_v60  ;;  %v13964_v49 = vpack.c.bf16 %v10051_v13, %v10048_v46  ;;  %v13967_v38 = vld [vmem:[#allocation139_spill] sm:$0xff] }
 0x30d   :  { %v2690_v39 = vsel %vm1353_vm9, %v2674_v6, %v6422_v21  ;;  %v2691_v31 = vsel %vm1353_vm9, %v2675_v26, %v6423_v45  ;;  %v1651_v37 = vmul.f32 %v13967_v38, %v13966_v20  ;;  %v13969_v60 = vld [vmem:[#allocation143_spill] sm:$0xff] }
 0x30e   :  { %v2707_v10 = vsel %vm2698_vm12, %v2690_v39, %v6462_v53  ;;  %v2708_v33 = vsel %vm2698_vm12, %v2691_v31, %v6463_v42 }
 0x310   :  { %v10353_v24 = vpop.permute.xlu0 %2087 }
 0x311   :  { %13962 = vst [vmem:[#allocation92_spill] sm:$0xff] %v10353_v24  ;;  %2930 = vmatmul.mubr.bf16.gmra.mrb[4].mxu1 %v2767_v40  ;;  %v6481_v40 = vpop.permute.xlu1 %6480 }
 0x312   :  { %5777 = vmatprep.mubr.msk.bf16.mxu1 %vm1268_vm4, %v13963_v55  ;;  %v6483_v46 = vunpack.i.h.bf16 %v6481_v40  ;;  %v6482_v13 = vunpack.i.l.bf16 %v6481_v40  ;;  %v13968_v55 = vld [vmem:[#allocation58_spill] sm:$0xff] }
 0x313   :  { %v1652_v30 = vmul.f32 %v13969_v60, %v13968_v55 }
 0x314   :  { %v6466_v62 = vpop.permute.xlu0 %6465  ;;  %v2644_v32 = vsel %vm1251_vm3, %v1651_v37, %v6482_v13 }
 0x315   :  { %v6468_v11 = vunpack.i.h.bf16 %v6466_v62  ;;  %v6467_v3 = vunpack.i.l.bf16 %v6466_v62  ;;  %v6491_v47 = vpop.permute.xlu1 %6490  ;;  %v2645_v26 = vsel %vm1251_vm3, %v1652_v30, %v6483_v46 }
 0x316   :  { %v6492_v39 = vunpack.i.l.bf16 %v6491_v47 }
 0x317   :  { %v2724_v58 = vsel %vm2715_vm13, %v2707_v10, %v6467_v3  ;;  %v2725_v5 = vsel %vm2715_vm13, %v2708_v33, %v6468_v11  ;;  %v6493_v3 = vunpack.i.h.bf16 %v6491_v47 }
 0x318   :  { %v6476_v0 = vpop.permute.xlu0 %6475 }
 0x319   :  { %v6478_v35 = vunpack.i.h.bf16 %v6476_v0  ;;  %v6477_v52 = vunpack.i.l.bf16 %v6476_v0  ;;  %2938 = vmatmul.mubr.bf16.gmra.mrb[8].mxu1 %v2769_v57 }
 0x31a   :  { %5778 = vmatprep.mubr.msk.bf16.mxu1 %vm1268_vm4, %v13964_v49 }
 0x31b   :  { %v2741_v18 = vsel %vm2732_vm14, %v2724_v58, %v6477_v52  ;;  %v2742_v50 = vsel %vm2732_vm14, %v2725_v5, %v6478_v35 }
 0x31c   :  { %v6486_v23 = vpop.permute.xlu0 %6485  ;;  %v2773_v59 = vpack.c.bf16 %v2742_v50, %v2741_v18 }
 0x31d   :  { %v6488_v7 = vunpack.i.h.bf16 %v6486_v23  ;;  %v6487_v57 = vunpack.i.l.bf16 %v6486_v23 }
 0x31f   :  { %v2660_v6 = vsel %vm1285_vm5, %v2644_v32, %v6487_v57 }
 0x320   :  { %v10387_v1 = vpop.permute.xlu1 %2091  ;;  %v6496_v4 = vpop.permute.xlu0 %6495  ;;  %v2676_v35 = vsel %vm1319_vm7, %v2660_v6, %v6492_v39  ;;  %v13972_v6 = vld [vmem:[#allocation62_spill] sm:$0xff] }
 0x321   :  { %13965 = vst [vmem:[#allocation35_spill] sm:$0xff] %v10387_v1  ;;  %2946 = vmatmul.mubr.bf16.gmra.mrb[12].mxu1 %v2771_v43  ;;  %v2117_v43 = vmul.f32 %v10353_v24, %v9918_v28  ;;  %v6498_v53 = vunpack.i.h.bf16 %v6496_v4  ;;  %v6497_v40 = vunpack.i.l.bf16 %v6496_v4 }
 0x322   :  { %5779 = vmatprep.mubr.msk.bf16.mxu1 %vm1268_vm4, %v2774_v54  ;;  %v2661_v54 = vsel %vm1285_vm5, %v2645_v26, %v6488_v7 }
 0x323   :  { %v2677_v52 = vsel %vm1319_vm7, %v2661_v54, %v6493_v3  ;;  %v2692_v5 = vsel %vm1353_vm9, %v2676_v35, %v6497_v40  ;;  %v13974_v40 = vld [vmem:[#allocation52_spill] sm:$0xff] }
 0x324   :  { %v6501_v41 = vpop.permute.xlu1 %6500  ;;  %v10397_v62 = vpop.permute.xlu0 %2095  ;;  %v2693_v18 = vsel %vm1353_vm9, %v2677_v52, %v6498_v53 }
 0x325   :  { %13970 = vst [vmem:[#allocation153_spill] sm:$0xff] %v10397_v62  ;;  %v6503_v31 = vunpack.i.h.bf16 %v6501_v41  ;;  %v6502_v0 = vunpack.i.l.bf16 %v6501_v41 }
 0x327   :  { %v2709_v50 = vsel %vm2698_vm12, %v2692_v5, %v6502_v0  ;;  %v2710_v23 = vsel %vm2698_vm12, %v2693_v18, %v6503_v31  ;;  %v2118_v31 = vmul.f32 %v10387_v1, %v9935_v44  ;;  %v2119_v0 = vmul.f32 %v10397_v62, %v10008_v19 }
 0x328   :  { %v6511_v42 = vpop.permute.xlu1 %6510  ;;  %v6506_v11 = vpop.permute.xlu0 %6505 }
 0x329   :  { %v6513_v45 = vunpack.i.h.bf16 %v6511_v42  ;;  %v6512_v21 = vunpack.i.l.bf16 %v6511_v42  ;;  %2954 = vmatmul.mubr.bf16.gmra.mrb[16].mxu1 %v2773_v59  ;;  %v6508_v28 = vunpack.i.h.bf16 %v6506_v11  ;;  %v6507_v33 = vunpack.i.l.bf16 %v6506_v11  ;;  %v13973_v42 = vld [vmem:[#allocation144_spill] sm:$0xff] }
 0x32a   :  { %v1653_v53 = vmul.f32 %v13973_v42, %v13972_v6 }
 0x32b   :  { %v2759_v12 = vsel %vm1251_vm3, %v2116_v22, %v6512_v21  ;;  %v2760_v10 = vsel %vm1251_vm3, %v2117_v43, %v6513_v45  ;;  %v2726_v46 = vsel %vm2715_vm13, %v2709_v50, %v6507_v33  ;;  %v2727_v13 = vsel %vm2715_vm13, %v2710_v23, %v6508_v28  ;;  %v13975_v45 = vld [vmem:[#allocation157_spill] sm:$0xff] }
 0x32c   :  { %v6521_v49 = vpop.permute.xlu1 %6520  ;;  %v2776_v58 = vpack.c.bf16 %v2760_v10, %v2759_v12  ;;  %v6516_v47 = vpop.permute.xlu0 %6515  ;;  %v1654_v21 = vmul.f32 %v13975_v45, %v13974_v40 }
 0x32d   :  { %v6518_v59 = vunpack.i.h.bf16 %v6516_v47  ;;  %v6517_v4 = vunpack.i.l.bf16 %v6516_v47  ;;  %v6523_v26 = vunpack.i.h.bf16 %v6521_v49  ;;  %v6522_v32 = vunpack.i.l.bf16 %v6521_v49 }
 0x32e   :  { %5780 = vmatprep.mubr.msk.bf16.mxu1 %vm1268_vm4, %v2776_v58 }
 0x32f   :  { %v2743_v57 = vsel %vm2732_vm14, %v2726_v46, %v6517_v4  ;;  %v2744_v41 = vsel %vm2732_vm14, %v2727_v13, %v6518_v59  ;;  %v2647_v3 = vsel %vm1251_vm3, %v1654_v21, %v6523_v26  ;;  %v2646_v39 = vsel %vm1251_vm3, %v1653_v53, %v6522_v32 }
 0x330   :  { %v6531_v7 = vpop.permute.xlu1 %6530  ;;  %v6526_v38 = vpop.permute.xlu0 %6525  ;;  %v2775_v37 = vpack.c.bf16 %v2744_v41, %v2743_v57 }
 0x331   :  { %v6528_v22 = vunpack.i.h.bf16 %v6526_v38  ;;  %v6527_v43 = vunpack.i.l.bf16 %v6526_v38  ;;  %v6533_v5 = vunpack.i.h.bf16 %v6531_v7  ;;  %v6532_v18 = vunpack.i.l.bf16 %v6531_v7 }
 0x332   :  { %2962 = vmatmul.mubr.bf16.gmra.mrb[20].mxu1 %v2775_v37 }
 0x333   :  { %v2663_v12 = vsel %vm1285_vm5, %v2647_v3, %v6528_v22  ;;  %v2662_v10 = vsel %vm1285_vm5, %v2646_v39, %v6527_v43 }
 0x334   :  { %v10420_v60 = vpop.permute.xlu1 %2099  ;;  %v6536_v30 = vpop.permute.xlu0 %6535  ;;  %v2678_v4 = vsel %vm1319_vm7, %v2662_v10, %v6532_v18  ;;  %v2679_v46 = vsel %vm1319_vm7, %v2663_v12, %v6533_v5  ;;  %v13977_v12 = vld [vmem:[#allocation119_spill] sm:$0xff] }
 0x335   :  { %13971 = vst [vmem:[#allocation152_spill] sm:$0xff] %v10420_v60  ;;  %v6538_v33 = vunpack.i.h.bf16 %v6536_v30  ;;  %v6537_v35 = vunpack.i.l.bf16 %v6536_v30  ;;  %v13978_v10 = vld [vmem:[#allocation159_spill] sm:$0xff] }
 0x337   :  { %v2694_v41 = vsel %vm1353_vm9, %v2678_v4, %v6537_v35  ;;  %v2695_v38 = vsel %vm1353_vm9, %v2679_v46, %v6538_v33  ;;  %v13979_v33 = vld [vmem:[#allocation118_spill] sm:$0xff]  ;;  %v13980_v4 = vld [vmem:[#allocation83_spill] sm:$0xff] }
 0x338   :  { %v6541_v54 = vpop.permute.xlu1 %6540  ;;  %v10426_v11 = vpop.permute.xlu0 %2103  ;;  %v1656_v35 = vmul.f32 %v9956_v63, %v13979_v33 }
 0x339   :  { %13976 = vst [vmem:[#allocation129_spill] sm:$0xff] %v10426_v11  ;;  %v6543_v47 = vunpack.i.h.bf16 %v6541_v54  ;;  %v6542_v50 = vunpack.i.l.bf16 %v6541_v54  ;;  %v2121_v63 = vmul.f32 %v10426_v11, %v13980_v4 }
 0x33b   :  { %v2711_v7 = vsel %vm2698_vm12, %v2694_v41, %v6542_v50  ;;  %v2712_v30 = vsel %vm2698_vm12, %v2695_v38, %v6543_v47 }
 0x33c   :  { %v6551_v28 = vpop.permute.xlu1 %6550  ;;  %v6546_v58 = vpop.permute.xlu0 %6545 }
 0x33d   :  { %v6553_v52 = vunpack.i.h.bf16 %v6551_v28  ;;  %v6552_v49 = vunpack.i.l.bf16 %v6551_v28  ;;  %v6548_v59 = vunpack.i.h.bf16 %v6546_v58  ;;  %v6547_v19 = vunpack.i.l.bf16 %v6546_v58 }
 0x33e   :  { %v1655_v28 = vmul.f32 %v13978_v10, %v13977_v12 }
 0x33f   :  { %v2761_v23 = vsel %vm1251_vm3, %v2118_v31, %v6552_v49  ;;  %v2762_v44 = vsel %vm1251_vm3, %v2119_v0, %v6553_v52  ;;  %v2728_v22 = vsel %vm2715_vm13, %v2711_v7, %v6547_v19  ;;  %v2729_v43 = vsel %vm2715_vm13, %v2712_v30, %v6548_v59 }
 0x340   :  { %v6561_v13 = vpop.permute.xlu1 %6560  ;;  %v2778_v57 = vpack.c.bf16 %v2762_v44, %v2761_v23  ;;  %v6556_v37 = vpop.permute.xlu0 %6555  ;;  %v2120_v19 = vmul.f32 %v10420_v60, %v13938_v25 }
 0x341   :  { %v6558_v26 = vunpack.i.h.bf16 %v6556_v37  ;;  %v6557_v32 = vunpack.i.l.bf16 %v6556_v37  ;;  %v6563_v45 = vunpack.i.h.bf16 %v6561_v13  ;;  %v6562_v21 = vunpack.i.l.bf16 %v6561_v13 }
 0x342   :  { %5781 = vmatprep.mubr.msk.bf16.mxu1 %vm1268_vm4, %v2778_v57 }
 0x343   :  { %v2745_v42 = vsel %vm2732_vm14, %v2728_v22, %v6557_v32  ;;  %v2746_v53 = vsel %vm2732_vm14, %v2729_v43, %v6558_v26  ;;  %v2649_v49 = vsel %vm1251_vm3, %v1656_v35, %v6563_v45  ;;  %v2648_v58 = vsel %vm1251_vm3, %v1655_v28, %v6562_v21 }
 0x344   :  { %v6571_v54 = vpop.permute.xlu1 %6570  ;;  %v6566_v3 = vpop.permute.xlu0 %6565  ;;  %v2777_v39 = vpack.c.bf16 %v2746_v53, %v2745_v42 }
 0x345   :  { %v6568_v31 = vunpack.i.h.bf16 %v6566_v3  ;;  %v6567_v0 = vunpack.i.l.bf16 %v6566_v3  ;;  %v6573_v44 = vunpack.i.h.bf16 %v6571_v54  ;;  %v6572_v59 = vunpack.i.l.bf16 %v6571_v54 }
 0x346   :  { %2970 = vmatmul.mubr.bf16.gmra.mrb[24].mxu1 %v2777_v39 }
 0x347   :  { %v2665_v18 = vsel %vm1285_vm5, %v2649_v49, %v6568_v31  ;;  %v2664_v47 = vsel %vm1285_vm5, %v2648_v58, %v6567_v0 }
 0x348   :  { %v6581_v52 = vpop.permute.xlu1 %6580  ;;  %v6576_v5 = vpop.permute.xlu0 %6575  ;;  %v2680_v13 = vsel %vm1319_vm7, %v2664_v47, %v6572_v59  ;;  %v2681_v57 = vsel %vm1319_vm7, %v2665_v18, %v6573_v44 }
 0x349   :  { %v6578_v50 = vunpack.i.h.bf16 %v6576_v5  ;;  %v6577_v23 = vunpack.i.l.bf16 %v6576_v5  ;;  %v6583_v43 = vunpack.i.h.bf16 %v6581_v52  ;;  %v6582_v54 = vunpack.i.l.bf16 %v6581_v52  ;;  %v10477_v52 = vld [vmem:[%s13021_s6 + $0x1] ss:$0 sm:$0xff] }
 0x34b   :  { %v2696_v7 = vsel %vm1353_vm9, %v2680_v13, %v6577_v23  ;;  %v2697_v30 = vsel %vm1353_vm9, %v2681_v57, %v6578_v50 }
 0x34c   :  { %v6591_v46 = vpop.permute.xlu1 %6590  ;;  %v6586_v37 = vpop.permute.xlu0 %6585  ;;  %v2713_v3 = vsel %vm2698_vm12, %v2696_v7, %v6582_v54  ;;  %v2714_v39 = vsel %vm2698_vm12, %v2697_v30, %v6583_v43  ;;  %v13985_v7 = vld [vmem:[#allocation127_spill] sm:$0xff] }
 0x34d   :  { %v6593_v41 = vunpack.i.h.bf16 %v6591_v46  ;;  %v6592_v38 = vunpack.i.l.bf16 %v6591_v46  ;;  %v6588_v25 = vunpack.i.h.bf16 %v6586_v37  ;;  %v6587_v22 = vunpack.i.l.bf16 %v6586_v37 }
 0x34f   :  { %v2763_v26 = vsel %vm1251_vm3, %v2120_v19, %v6592_v38  ;;  %v2764_v32 = vsel %vm1251_vm3, %v2121_v63, %v6593_v41  ;;  %v2730_v31 = vsel %vm2715_vm13, %v2713_v3, %v6587_v22  ;;  %v2731_v0 = vsel %vm2715_vm13, %v2714_v39, %v6588_v25  ;;  %v13986_v22 = vld [vmem:[#allocation12_spill] sm:$0xff] }
 0x350   :  { %v2780_v42 = vpack.c.bf16 %v2764_v32, %v2763_v26  ;;  %v6596_v53 = vpop.permute.xlu0 %6595 }
 0x351   :  { %v6598_v45 = vunpack.i.h.bf16 %v6596_v53  ;;  %v6597_v21 = vunpack.i.l.bf16 %v6596_v53 }
 0x352   :  { %5782 = vmatprep.mubr.msk.bf16.mxu1 %vm1268_vm4, %v2780_v42  ;;  %v13987_v42 = vld [vmem:[#allocation48_spill] sm:$0xff] }
 0x353   :  { %v2747_v10 = vsel %vm2732_vm14, %v2730_v31, %v6597_v21  ;;  %v2748_v28 = vsel %vm2732_vm14, %v2731_v0, %v6598_v45  ;;  %v13988_v45 = vld [vmem:[#allocation51_spill] sm:$0xff] }
 0x354   :  { %v2779_v35 = vpack.c.bf16 %v2748_v28, %v2747_v10 }
 0x356   :  { %2978 = vmatmul.mubr.bf16.gmra.mrb[28].mxu1 %v2779_v35 }
 0x3dc   :  { %v2923_v49 = vpop.f32.mrb[0].mxu1 }
 0x3dd   :  { %v10480_v58 = vadd.f32 %v10477_v52, %v2923_v49  ;;  %v2925_v5 = vpop.f32.mrb[1].mxu1 }
 0x3de   :  { %v2926_v18 = vpop.f32.mrb[2].mxu1 }
 0x3df   :  { %13981 = vst [vmem:[#allocation130_spill] sm:$0xff] %v10480_v58  ;;  %v10483_v47 = vadd.f32 %v10477_v52, %v2926_v18  ;;  %v2928_v50 = vpop.f32.mrb[3].mxu1  ;;  %v10486_v23 = vmax.f32 %v10480_v58, 0.0 }
 0x3e1   :  { %13982 = vst [vmem:[#allocation42_spill] sm:$0xff] %v10483_v47  ;;  %v2987_v44 = vmax.f32 %v10483_v47, 0.0  ;;  %v13389_v37 = vrot.slane %v10486_v23, 7  ;;  %v13394_v10 = vrot.slane %v10486_v23, 1  ;;  %v13996_v47 = vld [vmem:[#allocation65_spill] sm:$0xff] }
 0x3e3   :  { %v6599_v59 = vpack.i.bf16 %v2987_v44, %v10486_v23  ;;  %v3003_v46 = vrot.slane %v2987_v44, 7  ;;  %v3162_v30 = vmul.f32 %v2987_v44, %v13985_v7  ;;  %v3067_v54 = vrot.slane %v2987_v44, 1 }
 0x3e4   :  { %v2931_v19 = vpop.f32.mrb[4].mxu1  ;;  %v3052_v53 = vmul.f32 %v2987_v44, %v13987_v42  ;;  %v13990_v44 = vld [vmem:[#allocation15_spill] sm:$0xff] }
 0x3e5   :  { %v10491_v4 = vadd.f32 %v10477_v52, %v2931_v19  ;;  %6600 = vrot.lane.b32.xlu0 %v6599_v59, %s7295_s24  ;;  %v2933_v63 = vpop.f32.mrb[5].mxu1  ;;  %v10510_v3 = vsel %vm385_vm0, %v13389_v37, %v3003_v46  ;;  %v13991_v19 = vld [vmem:[#allocation17_spill] sm:$0xff] }
 0x3e6   :  { %v2934_v13 = vpop.f32.mrb[6].mxu1  ;;  %v3146_v59 = vmul.f32 %v10510_v3, %v13990_v44 }
 0x3e7   :  { %13983 = vst [vmem:[#allocation44_spill] sm:$0xff] %v10491_v4  ;;  %v2988_v57 = vmax.f32 %v10491_v4, 0.0  ;;  %v10496_v41 = vadd.f32 %v10477_v52, %v2934_v13  ;;  %v2936_v38 = vpop.f32.mrb[7].mxu1 }
 0x3e8   :  { %v13992_v38 = vld [vmem:[#allocation146_spill] sm:$0xff] }
 0x3e9   :  { %13984 = vst [vmem:[#allocation110_spill] sm:$0xff] %v10496_v41  ;;  %v3004_v26 = vrot.slane %v2988_v57, 7  ;;  %v3068_v32 = vrot.slane %v2988_v57, 1  ;;  %v10501_v25 = vmax.f32 %v10496_v41, 0.0  ;;  %v3163_v43 = vmul.f32 %v2988_v57, %v13986_v22 }
 0x3ea   :  { %v3053_v21 = vmul.f32 %v2988_v57, %v13988_v45 }
 0x3eb   :  { %v3005_v39 = vrot.slane %v10501_v25, 7  ;;  %v3069_v31 = vrot.slane %v10501_v25, 1  ;;  %v6604_v0 = vpack.i.bf16 %v3163_v43, %v3162_v30  ;;  %v10517_v49 = vsel %vm385_vm0, %v3003_v46, %v3004_v26  ;;  %v13993_v43 = vld [vmem:[#allocation147_spill] sm:$0xff] }
 0x3ec   :  { %v2939_v28 = vpop.f32.mrb[8].mxu1  ;;  %v6609_v35 = vpack.i.bf16 %v3053_v21, %v3052_v53  ;;  %v3095_v5 = vsel %vm1689_vm11, %v3067_v54, %v3068_v32  ;;  %v3147_v63 = vmul.f32 %v10517_v49, %v13991_v19  ;;  %v10538_v21 = vsel %vm1689_vm11, %v13394_v10, %v3067_v54  ;;  %v13997_v10 = vld [vmem:[#allocation9_spill] sm:$0xff] }
 0x3ed   :  { %v10522_v18 = vadd.f32 %v10477_v52, %v2939_v28  ;;  %v2941_v50 = vpop.f32.mrb[9].mxu1  ;;  %6605 = vrot.lane.b32.xlu1 %v6604_v0, %s7305_s2  ;;  %v3094_v13 = vsel %vm1689_vm11, %v3068_v32, %v3069_v31  ;;  %v3178_v30 = vmul.f32 %v3095_v5, %v13992_v38  ;;  %v10542_v0 = vsel %vm385_vm0, %v3004_v26, %v3005_v39 }
 0x3ee   :  { %6610 = vrot.lane.b32.xlu0 %v6609_v35, %s7297_s30  ;;  %v2942_v46 = vpop.f32.mrb[10].mxu1  ;;  %v3179_v53 = vmul.f32 %v3094_v13, %v13993_v43  ;;  %v6614_v32 = vpack.i.bf16 %v10501_v25, %v2988_v57  ;;  %v6624_v50 = vpack.i.bf16 %v3147_v63, %v3146_v59  ;;  %v13994_v35 = vld [vmem:[#allocation16_spill] sm:$0xff]  ;;  %v3117_v54 = vmul.f32 %v10542_v0, %v13996_v47  ;;  %v13998_v57 = vld [vmem:[#allocation57_spill] sm:$0xff] }
 0x3ef   :  { %13989 = vst [vmem:[#allocation115_spill] sm:$0xff] %v10522_v18  ;;  %v2944_v28 = vpop.f32.mrb[11].mxu1  ;;  %v3131_v37 = vmul.f32 %v3095_v5, %v13994_v35  ;;  %v2990_v4 = vmax.f32 %v10522_v18, 0.0  ;;  %v10548_v41 = vadd.f32 %v10477_v52, %v2942_v46  ;;  %v3130_v26 = vmul.f32 %v10538_v21, %v13997_v10 }
 0x3f0   :  { %v3755_v58 = vpack.c.bf16 %v3179_v53, %v3178_v30  ;;  %v3116_v59 = vmul.f32 %v10517_v49, %v13998_v57  ;;  %v13999_v28 = vld [vmem:[#allocation64_spill] sm:$0xff] }
 0x3f1   :  { %13995 = vst [vmem:[#allocation53_spill] sm:$0xff] %v10548_v41  ;;  %6615 = vrot.lane.b32.xlu1 %v6614_v32, %s7295_s24  ;;  %v6619_v63 = vpack.i.bf16 %v3131_v37, %v3130_v26  ;;  %v3101_v46 = vmul.f32 %v3094_v13, %v13999_v28  ;;  %v3006_v18 = vrot.slane %v2990_v4, 7  ;;  %v10561_v30 = vmax.f32 %v10548_v41, 0.0  ;;  %v14000_v32 = vld [vmem:[#allocation38_spill] sm:$0xff]  ;;  %v14002_v37 = vld [vmem:[#allocation69_spill] sm:$0xff] }
 0x3f2   :  { %6625 = vrot.lane.b32.xlu0 %v6624_v50, %s7306_s4  ;;  %5793 = vmatprep.mubr.msk.bf16.mxu0 %vm1251_vm3, %v3755_v58  ;;  %v6634_v47 = vpack.i.bf16 %v3117_v54, %v3116_v59  ;;  %v3165_v19 = vmul.f32 %v2990_v4, %v14000_v32  ;;  %v3070_v43 = vrot.slane %v2990_v4, 1  ;;  %v14001_v50 = vld [vmem:[#allocation22_spill] sm:$0xff]  ;;  %v3164_v26 = vmul.f32 %v10501_v25, %v14002_v37  ;;  %v14011_v37 = vld [vmem:[#allocation71_spill] sm:$0xff] }
 0x3f3   :  { %v3100_v58 = vmul.f32 %v3095_v5, %v14001_v50  ;;  %v14003_v41 = vld [vmem:[#allocation54_spill] sm:$0xff]  ;;  %v3007_v54 = vrot.slane %v10561_v30, 7  ;;  %v14012_v50 = vld [vmem:[#allocation27_spill] sm:$0xff] }
 0x3f4   :  { %v2947_v53 = vpop.f32.mrb[12].mxu1  ;;  %v3055_v44 = vmul.f32 %v2990_v4, %v14003_v41  ;;  %v6639_v59 = vpack.i.bf16 %v3165_v19, %v3164_v26  ;;  %v6649_v41 = vpack.i.bf16 %v10561_v30, %v2990_v4 }
 0x3f5   :  { %v2949_v35 = vpop.f32.mrb[13].mxu1  ;;  %6620 = vrot.lane.b32.xlu1 %v6619_v63, %s7307_s28  ;;  %v6629_v38 = vpack.i.bf16 %v3101_v46, %v3100_v58  ;;  %v3071_v63 = vrot.slane %v10561_v30, 1  ;;  %v10577_v5 = vadd.f32 %v10477_v52, %v2947_v53  ;;  %v10584_v46 = vsel %vm1689_vm11, %v3069_v31, %v3070_v43  ;;  %v14006_v58 = vld [vmem:[#allocation20_spill] sm:$0xff]  ;;  %v14007_v53 = vld [vmem:[#allocation23_spill] sm:$0xff] }
 0x3f6   :  { %6635 = vrot.lane.b32.xlu0 %v6634_v47, %s7299_s23  ;;  %v2950_v57 = vpop.f32.mrb[14].mxu1  ;;  %v10573_v35 = vsel %vm385_vm0, %v3005_v39, %v3006_v18  ;;  %v14005_v47 = vld [vmem:[#allocation60_spill] sm:$0xff]  ;;  %v3133_v32 = vmul.f32 %v10584_v46, %v14007_v53 }
 0x3f7   :  { %v2952_v28 = vpop.f32.mrb[15].mxu1  ;;  %14004 = vst [vmem:[#allocation116_spill] sm:$0xff] %v10577_v5  ;;  %v3149_v39 = vmul.f32 %v10573_v35, %v14006_v58  ;;  %v10598_v31 = vadd.f32 %v10477_v52, %v2950_v57  ;;  %v10605_v4 = vsel %vm1689_vm11, %v3070_v43, %v3071_v63  ;;  %v14013_v43 = vld [vmem:[#allocation72_spill] sm:$0xff] }
 0x3f8   :  { %v3054_v28 = vmul.f32 %v10501_v25, %v14005_v47  ;;  %v2992_v25 = vmax.f32 %v10577_v5, 0.0 }
 0x3f9   :  { %6630 = vrot.lane.b32.xlu1 %v6629_v38, %s7292_s3  ;;  %v10594_v38 = vsel %vm385_vm0, %v3006_v18, %v3007_v54  ;;  %14008 = vst [vmem:[#allocation111_spill] sm:$0xff] %v10598_v31  ;;  %v14010_v18 = vld [vmem:[#allocation18_spill] sm:$0xff] }
 0x3fa   :  { %6640 = vrot.lane.b32.xlu0 %v6639_v59, %s7305_s2  ;;  %v6644_v19 = vpack.i.bf16 %v3055_v44, %v3054_v28  ;;  %v14009_v44 = vld [vmem:[#allocation33_spill] sm:$0xff]  ;;  %v3132_v53 = vmul.f32 %v3094_v13, %v14010_v18  ;;  %v3119_v57 = vmul.f32 %v10594_v38, %v14011_v37  ;;  %v3008_v10 = vrot.slane %v2992_v25, 7  ;;  %v14014_v13 = vld [vmem:[#allocation26_spill] sm:$0xff] }
 0x3fb   :  { %v3148_v28 = vmul.f32 %v10542_v0, %v14009_v44  ;;  %v10614_v44 = vmax.f32 %v10598_v31, 0.0  ;;  %v14017_v31 = vld [vmem:[#allocation66_spill] sm:$0xff] }
 0x3fc   :  { %v2955_v26 = vpop.f32.mrb[16].mxu1  ;;  %v3057_v45 = vmul.f32 %v2992_v25, %v14017_v31 }
 0x3fd   :  { %v2957_v59 = vpop.f32.mrb[17].mxu1  ;;  %6645 = vrot.lane.b32.xlu1 %v6644_v19, %s7297_s30  ;;  %v6659_v5 = vpack.i.bf16 %v3149_v39, %v3148_v28  ;;  %v3103_v19 = vmul.f32 %v10605_v4, %v14012_v50  ;;  %v14015_v28 = vld [vmem:[#allocation32_spill] sm:$0xff]  ;;  %v10628_v42 = vadd.f32 %v10477_v52, %v2955_v26  ;;  %v14061_v20 = vrot.slane %v10614_v44, 7 }
 0x3fe   :  { %6650 = vrot.lane.b32.xlu0 %v6649_v41, %s7295_s24  ;;  %v2958_v58 = vpop.f32.mrb[18].mxu1  ;;  %v6654_v59 = vpack.i.bf16 %v3133_v32, %v3132_v53  ;;  %v3118_v41 = vmul.f32 %v10573_v35, %v14013_v43  ;;  %v3167_v32 = vmul.f32 %v2992_v25, %v14015_v28  ;;  %v3072_v53 = vrot.slane %v2992_v25, 1  ;;  %v14016_v50 = vld [vmem:[#allocation28_spill] sm:$0xff] }
 0x3ff   :  { %v2960_v47 = vpop.f32.mrb[19].mxu1  ;;  %v3166_v18 = vmul.f32 %v10561_v30, %v14016_v50  ;;  %14018 = vst [vmem:[#allocation109_spill] sm:$0xff] %v10628_v42 }
 0x400   :  { %v3102_v47 = vmul.f32 %v10584_v46, %v14014_v13  ;;  %v6669_v39 = vpack.i.bf16 %v3119_v57, %v3118_v41  ;;  %v10636_v57 = vsel %vm385_vm0, %v3007_v54, %v3008_v10  ;;  %v14023_v54 = vld [vmem:[#allocation31_spill] sm:$0xff] }
 0x401   :  { %6660 = vrot.lane.b32.xlu1 %v6659_v5, %s7306_s4  ;;  %v3073_v5 = vrot.slane %v10614_v44, 1  ;;  %v6674_v28 = vpack.i.bf16 %v3167_v32, %v3166_v18  ;;  %v3151_v13 = vmul.f32 %v10636_v57, %v14023_v54  ;;  %v14024_v18 = vrot.slane %v10614_v44, 7 }
 0x402   :  { %6655 = vrot.lane.b32.xlu0 %v6654_v59, %s7307_s28  ;;  %v6664_v37 = vpack.i.bf16 %v3103_v19, %v3102_v47  ;;  %v10631_v59 = vadd.f32 %v10477_v52, %v2958_v58  ;;  %v14021_v47 = vld [vmem:[#allocation63_spill] sm:$0xff] }
 0x403   :  { %v3056_v26 = vmul.f32 %v10561_v30, %v14021_v47  ;;  %v10663_v32 = vsel %vm385_vm0, %v3008_v10, %v14024_v18  ;;  %v7176_v10 = vld [vmem:[%s14027_s17] sm:$0xff]  }
 0x404   :  { %14019 = vst [vmem:[#allocation49_spill] sm:$0xff] %v10631_v59  ;;  %v10656_v30 = vmax.f32 %v10631_v59, 0.0  ;;  %3872 = vmatpush1.bf16.msra.mxu0 %v7176_v10 }
 0x405   :  { %v2963_v43 = vpop.f32.mrb[20].mxu1  ;;  %6670 = vrot.lane.b32.xlu1 %v6669_v39, %s7299_s23  ;;  %v6679_v31 = vpack.i.bf16 %v3057_v45, %v3056_v26  ;;  %3873 = vmatprep.subr.bf16.mxu0 %v13830_v17 }
 0x406   :  { %v10639_v19 = vadd.f32 %v10477_v52, %v2963_v43  ;;  %6665 = vrot.lane.b32.xlu0 %v6664_v37, %s7292_s3  ;;  %v2965_v41 = vpop.f32.mrb[21].mxu1  ;;  %v3091_v43 = vsel %vm1689_vm11, %v3071_v63, %v3072_v53  ;;  %v10653_v37 = vmax.f32 %v10628_v42, 0.0  ;;  %v14025_v63 = vld [vmem:[#allocation68_spill] sm:$0xff]  ;;  %v14028_v42 = vld [vmem:[#allocation75_spill] sm:$0xff]  ;;  %v3075_v59 = vrot.slane %v10656_v30, 1 }
 0x407   :  { %v2966_v58 = vpop.f32.mrb[22].mxu1  ;;  %v3150_v26 = vmul.f32 %v10594_v38, %v14025_v63  ;;  %v14031_v63 = vld [vmem:[#allocation29_spill] sm:$0xff] }
 0x408   :  { %14020 = vst [vmem:[#allocation46_spill] sm:$0xff] %v10639_v19  ;;  %v10646_v50 = vadd.f32 %v10477_v52, %v2966_v58  ;;  %v2968_v39 = vpop.f32.mrb[23].mxu1  ;;  %v10666_v45 = vmax.f32 %v10639_v19, 0.0  ;;  %v6684_v58 = vpack.i.bf16 %v10614_v44, %v2992_v25  ;;  %v3121_v19 = vmul.f32 %v10663_v32, %v14028_v42  ;;  %v14029_v25 = vld [vmem:[#allocation10_spill] sm:$0xff] }
 0x409   :  { %6675 = vrot.lane.b32.xlu1 %v6674_v28, %s7305_s2  ;;  %v14026_v28 = vld [vmem:[#allocation25_spill] sm:$0xff]  ;;  %v6694_v18 = vpack.i.bf16 %v3151_v13, %v3150_v26  ;;  %v3134_v54 = vmul.f32 %v10605_v4, %v14029_v25  ;;  %v14032_v25 = vld [vmem:[#allocation67_spill] sm:$0xff] }
 0x40a   :  { %14022 = vst [vmem:[#allocation135_spill] sm:$0xff] %v10646_v50  ;;  %v10669_v41 = vmax.f32 %v10646_v50, 0.0  ;;  %6680 = vrot.lane.b32.xlu0 %v6679_v31, %s7297_s30  ;;  %v3135_v39 = vmul.f32 %v3091_v43, %v14026_v28  ;;  %v10683_v50 = vsel %vm1689_vm11, %v3072_v53, %v3073_v5  ;;  %v3074_v31 = vrot.slane %v10653_v37, 1  ;;  %v14030_v26 = vld [vmem:[#allocation73_spill] sm:$0xff] }
 0x40b   :  { %v3076_v28 = vrot.slane %v10666_v45, 1  ;;  %v3120_v42 = vmul.f32 %v10636_v57, %v14030_v26  ;;  %v3105_v47 = vmul.f32 %v10683_v50, %v14031_v63  ;;  %v3104_v7 = vmul.f32 %v3091_v43, %v14032_v25  ;;  %v14038_v25 = vld [vmem:[#allocation158_spill] sm:$0xff] }
 0x40c   :  { %v3077_v13 = vrot.slane %v10669_v41, 1  ;;  %v6689_v53 = vpack.i.bf16 %v3135_v39, %v3134_v54  ;;  %v10709_v54 = vsel %vm1689_vm11, %v3074_v31, %v3075_v59 }
 0x40d   :  { %6685 = vrot.lane.b32.xlu1 %v6684_v58, %s7295_s24  ;;  %v7177_v58 = vld [vmem:[%s14027_s17 + $0x8] sm:$0xff]   ;;  %v6704_v22 = vpack.i.bf16 %v3121_v19, %v3120_v42  ;;  %v10714_v39 = vsel %vm1689_vm11, %v3075_v59, %v3076_v28  ;;  %v14036_v59 = vld [vmem:[#allocation151_spill] sm:$0xff] }
 0x40e   :  { %6695 = vrot.lane.b32.xlu0 %v6694_v18, %s7306_s4  ;;  %v10705_v18 = vsel %vm1689_vm11, %v3073_v5, %v3074_v31  ;;  %v10718_v42 = vsel %vm1689_vm11, %v3076_v28, %v3077_v13  ;;  %v14033_v19 = vld [vmem:[#allocation154_spill] sm:$0xff]  ;;  %v14035_v5 = vld [vmem:[#allocation148_spill] sm:$0xff]  ;;  %v6699_v31 = vpack.i.bf16 %v3105_v47, %v3104_v7  ;;  %3874 = vmatpush1.bf16.msra.mxu0 %v7177_v58 }
 0x40f   :  { %v10722_v10 = vmul.f32 %v10584_v46, %v14033_v19  ;;  %v10732_v63 = vmul.f32 %v3091_v43, %v14036_v59  ;;  %v10736_v28 = vmul.f32 %v10683_v50, %v14038_v25  ;;  %3875 = vmatprep.subr.bf16.mxu0 %v13830_v17  ;;  %v14042_v47 = vld [vmem:[#allocation160_spill] sm:$0xff]  ;;  %v10754_v25 = vmul.f32 %v10714_v39, %v13956_v56 }
 0x410   :  { %v10747_v58 = vmul.f32 %v10709_v54, %v14042_v47  ;;  %v10758_v46 = vmul.f32 %v10718_v42, %v10072_v16 }
 0x411   :  { %6690 = vrot.lane.b32.xlu1 %v6689_v53, %s7307_s28  ;;  %14034 = vst [vmem:[#allocation155_spill] sm:$0xff] %v10722_v10  ;;  %v10726_v53 = vmul.f32 %v10605_v4, %v14035_v5  ;;  %14037 = vst [vmem:[#allocation137_spill] sm:$0xff] %v10732_v63  ;;  %v14040_v4 = vld [vmem:[#allocation156_spill] sm:$0xff]  ;;  %v14062_v63 = vld [vmem:[#allocation11_spill] sm:$0xff]  ;;  %v3011_v10 = vrot.slane %v10656_v30, 7 }
 0x412   :  { %6705 = vrot.lane.b32.xlu0 %v6704_v22, %s7299_s23  ;;  %v7178_v22 = vld [vmem:[%s14027_s17 + $0x10] sm:$0xff]   ;;  %14039 = vst [vmem:[#allocation128_spill] sm:$0xff] %v10736_v28  ;;  %v10743_v7 = vmul.f32 %v10705_v18, %v14040_v4  ;;  %14043 = vst [vmem:[#allocation39_spill] sm:$0xff] %v10747_v58  ;;  %v7179_v5 = vld [vmem:[%s14027_s17 + $0x18] sm:$0xff]  }
 0x413   :  { %14044 = vst [vmem:[#allocation108_spill] sm:$0xff] %v10754_v25  ;;  %14045 = vst [vmem:[#allocation142_spill] sm:$0xff] %v10758_v46  ;;  %3876 = vmatpush1.bf16.msra.mxu0 %v7178_v22  ;;  %v7180_v22 = vld [vmem:[%s14027_s17 + $0x20] sm:$0xff]   ;;  %v14060_v58 = vld [vmem:[#allocation55_spill] sm:$0xff] }
 0x414   :  { %14041 = vst [vmem:[#allocation105_spill] sm:$0xff] %v10743_v7  ;;  %3877 = vmatprep.subr.bf16.mxu0 %v13830_v17  ;;  %v14059_v7 = vld [vmem:[#allocation61_spill] sm:$0xff]  ;;  %v3115_v55 = vmul.f32 %v10510_v3, %v14060_v58  ;;  %v14063_v28 = vld [vmem:[#allocation123_spill] sm:$0xff] }
 0x415   :  { %6700 = vrot.lane.b32.xlu1 %v6699_v31, %s7292_s3 }
 0x417   :  { %3878 = vmatpush1.bf16.msra.mxu0 %v7179_v5  ;;  %v7181_v5 = vld [vmem:[%s14027_s17 + $0x28] sm:$0xff]  }
 0x418   :  { %3879 = vmatprep.subr.bf16.mxu0 %v13830_v17 }
 0x419   :  { %v2971_v43 = vpop.f32.mrb[24].mxu1 }
 0x41a   :  { %v10769_v19 = vadd.f32 %v10477_v52, %v2971_v43  ;;  %v2973_v56 = vpop.f32.mrb[25].mxu1 }
 0x41b   :  { %v2974_v16 = vpop.f32.mrb[26].mxu1  ;;  %3880 = vmatpush1.bf16.msra.mxu0 %v7180_v22 }
 0x41c   :  { %14046 = vst [vmem:[#allocation112_spill] sm:$0xff] %v10769_v19  ;;  %v10775_v59 = vmax.f32 %v10769_v19, 0.0  ;;  %v10778_v47 = vadd.f32 %v10477_v52, %v2974_v16  ;;  %v2976_v31 = vpop.f32.mrb[27].mxu1  ;;  %3881 = vmatprep.subr.bf16.mxu0 %v13830_v17 }
 0x41e   :  { %14047 = vst [vmem:[#allocation140_spill] sm:$0xff] %v10778_v47  ;;  %v10782_v4 = vmax.f32 %v10778_v47, 0.0  ;;  %v3078_v56 = vrot.slane %v10775_v59, 1 }
 0x41f   :  { %3882 = vmatpush1.bf16.msra.mxu0 %v7181_v5 }
 0x420   :  { %v3079_v43 = vrot.slane %v10782_v4, 1  ;;  %v10792_v16 = vsel %vm1689_vm11, %v3077_v13, %v3078_v56  ;;  %3883 = vmatprep.subr.bf16.mxu0 %v13830_v17 }
 0x421   :  { %v10801_v22 = vmul.f32 %v10792_v16, %v10309_v27 }
 0x422   :  { %v10796_v31 = vsel %vm1689_vm11, %v3078_v56, %v3079_v43  ;;  %v7182_v56 = vld [vmem:[%s14027_s17 + $0x30] sm:$0xff]  }
 0x423   :  { %14048 = vst [vmem:[#allocation139_spill] sm:$0xff] %v10801_v22  ;;  %v10805_v19 = vmul.f32 %v10796_v31, %v10353_v24  ;;  %3884 = vmatpush1.bf16.msra.mxu0 %v7182_v56  ;;  %v3010_v22 = vrot.slane %v10653_v37, 7 }
 0x424   :  { %3885 = vmatprep.subr.bf16.mxu0 %v13830_v17 }
 0x425   :  { %14049 = vst [vmem:[#allocation143_spill] sm:$0xff] %v10805_v19  ;;  %v14052_v19 = vld [vmem:[#allocation47_spill] sm:$0xff] }
 0x429   :  { %v2979_v13 = vpop.f32.mrb[28].mxu1 }
 0x42a   :  { %v10813_v5 = vadd.f32 %v10477_v52, %v2979_v13  ;;  %v2981_v26 = vpop.f32.mrb[29].mxu1  ;;  %v14055_v13 = vrot.slane %v10486_v23, 1 }
 0x42b   :  { %v2982_v33 = vpop.f32.mrb[30].mxu1 }
 0x42c   :  { %14050 = vst [vmem:[#allocation144_spill] sm:$0xff] %v10813_v5  ;;  %v10816_v27 = vadd.f32 %v10477_v52, %v2982_v33  ;;  %v2984_v12 = vpop.f32.mrb[31].mxu1  ;;  %v10820_v24 = vmax.f32 %v10813_v5, 0.0  ;;  %v14053_v33 = vld [vmem:[#allocation50_spill] sm:$0xff]  ;;  %v7183_v52 = vld [vmem:[%s14027_s17 + $0x38] sm:$0xff]  }
 0x42d   :  { %v3051_v12 = vmul.f32 %v10486_v23, %v14053_v33  ;;  %v14054_v5 = vld [vmem:[#allocation14_spill] sm:$0xff]  ;;  %3886 = vmatpush1.bf16.msra.mxu0 %v7183_v52 }
 0x42e   :  { %14051 = vst [vmem:[#allocation157_spill] sm:$0xff] %v10816_v27  ;;  %v10823_v47 = vmax.f32 %v10816_v27, 0.0  ;;  %v3099_v27 = vmul.f32 %v10538_v21, %v14054_v5  ;;  %v3080_v40 = vrot.slane %v10820_v24, 1  ;;  %v7184_v5 = vld [vmem:[%s14027_s17 + $0x40] sm:$0xff]   ;;  %3887 = vmatprep.subr.bf16.mxu0 %v13830_v17 }
 0x430   :  { %v3081_v26 = vrot.slane %v10823_v47, 1  ;;  %v3050_v56 = vmul.f32 %v10823_v47, %v14052_v19  ;;  %v14056_v19 = vrot.slane %v10486_v23, 7  ;;  %v14057_v33 = vrot.slane %v10823_v47, 7 }
 0x431   :  { %v10875_v58 = vsel %vm1689_vm11, %v3079_v43, %v3080_v40  ;;  %3888 = vmatpush1.bf16.msra.mxu0 %v7184_v5 }
 0x432   :  { %v6709_v6 = vpack.i.bf16 %v3051_v12, %v3050_v56  ;;  %v10842_v25 = vsel %vm1689_vm11, %v3081_v26, %v14055_v13  ;;  %v10850_v46 = vsel %vm385_vm0, %v14057_v33, %v14056_v19  ;;  %v14058_v56 = vld [vmem:[#allocation19_spill] sm:$0xff]  ;;  %v10865_v19 = vsel %vm385_vm0, %v14061_v20, %v3010_v22  ;;  %4848 = vmatprep.subr.bf16.mxu0 %v13830_v17 }
 0x433   :  { %v3098_v12 = vmul.f32 %v10842_v25, %v14058_v56  ;;  %v3114_v13 = vmul.f32 %v10850_v46, %v14059_v7  ;;  %v3137_v56 = vmul.f32 %v10705_v18, %v14062_v63  ;;  %v3153_v7 = vmul.f32 %v10865_v19, %v14063_v28 }
 0x434   :  { %6710 = vrot.lane.b32.xlu1 %v6709_v6, %s7297_s30  ;;  %v10879_v20 = vsel %vm1689_vm11, %v3080_v40, %v3081_v26  ;;  %v14065_v6 = vld [vmem:[#allocation145_spill] sm:$0xff] }
 0x435   :  { %v6714_v33 = vpack.i.bf16 %v3099_v27, %v3098_v12  ;;  %v6724_v52 = vpack.i.bf16 %v3115_v55, %v3114_v13  ;;  %v14064_v27 = vld [vmem:[#allocation102_spill] sm:$0xff]  ;;  %v10887_v12 = vmul.f32 %v10823_v47, %v14065_v6  ;;  %v14067_v40 = vld [vmem:[#allocation121_spill] sm:$0xff]  ;;  %v10902_v6 = vmul.f32 %v10875_v58, %v10387_v1 }
 0x436   :  { %v3136_v55 = vmul.f32 %v10683_v50, %v14064_v27  ;;  %v14066_v13 = vld [vmem:[#allocation150_spill] sm:$0xff]  ;;  %v3152_v5 = vmul.f32 %v10663_v32, %v14067_v40  ;;  %v14068_v26 = vld [vmem:[#allocation125_spill] sm:$0xff]  ;;  %v14070_v50 = vld [vmem:[#allocation136_spill] sm:$0xff]  ;;  %v10924_v1 = vsel %vm385_vm0, %v3010_v22, %v3011_v10 }
 0x437   :  { %6715 = vrot.lane.b32.xlu0 %v6714_v33, %s7292_s3  ;;  %v10891_v43 = vmul.f32 %v10486_v23, %v14066_v13  ;;  %v3169_v28 = vmul.f32 %v10653_v37, %v14068_v26  ;;  %v10906_v23 = vmul.f32 %v10879_v20, %v10397_v62  ;;  %v14069_v13 = vld [vmem:[#allocation56_spill] sm:$0xff]  ;;  %v3168_v62 = vmul.f32 %v10614_v44, %v14070_v50  ;;  %v14073_v22 = vld [vmem:[#allocation78_spill] sm:$0xff] }
 0x438   :  { %6725 = vrot.lane.b32.xlu1 %v6724_v52, %s7299_s23  ;;  %v6719_v33 = vpack.i.bf16 %v3137_v56, %v3136_v55  ;;  %v6729_v52 = vpack.i.bf16 %v3153_v7, %v3152_v5  ;;  %v3059_v63 = vmul.f32 %v10653_v37, %v14069_v13  ;;  %v10913_v56 = vmul.f32 %v10842_v25, %v10420_v60  ;;  %v14071_v5 = vld [vmem:[#allocation74_spill] sm:$0xff] }
 0x439   :  { %v10917_v55 = vmul.f32 %v10538_v21, %v10426_v11  ;;  %v3058_v60 = vmul.f32 %v10614_v44, %v14071_v5  ;;  %v6734_v11 = vpack.i.bf16 %v3169_v28, %v3168_v62  ;;  %v3012_v26 = vrot.slane %v10666_v45, 7  ;;  %v14074_v7 = vld [vmem:[#allocation126_spill] sm:$0xff]  ;;  %v14075_v44 = vld [vmem:[#allocation79_spill] sm:$0xff]  ;;  %v14076_v5 = vld [vmem:[#allocation132_spill] sm:$0xff] }
 0x43a   :  { %v3123_v17 = vmul.f32 %v10924_v1, %v14073_v22  ;;  %v3122_v21 = vmul.f32 %v10865_v19, %v14075_v44  ;;  %v14083_v22 = vld [vmem:[#allocation37_spill] sm:$0xff] }
 0x43b   :  { %6720 = vrot.lane.b32.xlu0 %v6719_v33, %s7307_s28  ;;  %v14072_v33 = vld [vmem:[#allocation24_spill] sm:$0xff]  ;;  %v6739_v40 = vpack.i.bf16 %v3059_v63, %v3058_v60  ;;  %v10948_v60 = vsel %vm385_vm0, %v3011_v10, %v3012_v26 }
 0x43c   :  { %6730 = vrot.lane.b32.xlu1 %v6729_v52, %s7306_s4  ;;  %v3107_v13 = vmul.f32 %v10709_v54, %v14072_v33  ;;  %v3106_v52 = vmul.f32 %v10705_v18, %v14074_v7  ;;  %v6749_v28 = vpack.i.bf16 %v3123_v17, %v3122_v21  ;;  %v3139_v33 = vmul.f32 %v10714_v39, %v14076_v5 }
 0x43d   :  { %v6754_v18 = vpack.i.bf16 %v10656_v30, %v10653_v37 }
 0x43e   :  { %v6744_v62 = vpack.i.bf16 %v3107_v13, %v3106_v52  ;;  %v3013_v13 = vrot.slane %v10669_v41, 7  ;;  %v14079_v52 = vld [vmem:[#allocation138_spill] sm:$0xff] }
 0x43f   :  { %6735 = vrot.lane.b32.xlu0 %v6734_v11, %s7305_s2  ;;  %v14077_v11 = vld [vmem:[#allocation131_spill] sm:$0xff]  ;;  %v3171_v10 = vmul.f32 %v10666_v45, %v14079_v52 }
 0x440   :  { %6740 = vrot.lane.b32.xlu1 %v6739_v40, %s7297_s30  ;;  %v3138_v63 = vmul.f32 %v10709_v54, %v14077_v11  ;;  %v14078_v40 = vld [vmem:[#allocation87_spill] sm:$0xff]  ;;  %v14081_v54 = vld [vmem:[#allocation36_spill] sm:$0xff]  ;;  %v14082_v11 = vld [vmem:[#allocation77_spill] sm:$0xff] }
 0x441   :  { %v3155_v17 = vmul.f32 %v10948_v60, %v14078_v40  ;;  %v3170_v5 = vmul.f32 %v10656_v30, %v14081_v54  ;;  %v3061_v40 = vmul.f32 %v10666_v45, %v14082_v11 }
 0x442   :  { %v6759_v21 = vpack.i.bf16 %v3139_v33, %v3138_v63  ;;  %v3109_v33 = vmul.f32 %v10718_v42, %v14083_v22  ;;  %v10973_v63 = vsel %vm385_vm0, %v3012_v26, %v3013_v13  ;;  %v14087_v26 = vld [vmem:[#allocation80_spill] sm:$0xff] }
 0x443   :  { %6745 = vrot.lane.b32.xlu0 %v6744_v62, %s7292_s3  ;;  %v14080_v62 = vld [vmem:[#allocation120_spill] sm:$0xff]  ;;  %v6769_v44 = vpack.i.bf16 %v3171_v10, %v3170_v5  ;;  %v14086_v10 = vld [vmem:[#allocation81_spill] sm:$0xff] }
 0x444   :  { %6750 = vrot.lane.b32.xlu1 %v6749_v28, %s7299_s23  ;;  %v3154_v28 = vmul.f32 %v10924_v1, %v14080_v62  ;;  %v3125_v22 = vmul.f32 %v10973_v63, %v14086_v10  ;;  %v3124_v62 = vmul.f32 %v10948_v60, %v14087_v26  ;;  %v14093_v26 = vld [vmem:[#allocation59_spill] sm:$0xff] }
 0x446   :  { %v6764_v37 = vpack.i.bf16 %v3155_v17, %v3154_v28  ;;  %v14085_v17 = vld [vmem:[#allocation34_spill] sm:$0xff] }
 0x447   :  { %6755 = vrot.lane.b32.xlu0 %v6754_v18, %s7295_s24  ;;  %v3014_v18 = vrot.slane %v10775_v59, 7  ;;  %v3108_v28 = vmul.f32 %v10714_v39, %v14085_v17  ;;  %v14094_v17 = vld [vmem:[#allocation104_spill] sm:$0xff] }
 0x448   :  { %6760 = vrot.lane.b32.xlu1 %v6759_v21, %s7307_s28  ;;  %v14084_v21 = vld [vmem:[#allocation76_spill] sm:$0xff] }
 0x449   :  { %v3060_v52 = vmul.f32 %v10656_v30, %v14084_v21  ;;  %v6779_v11 = vpack.i.bf16 %v3109_v33, %v3108_v28  ;;  %v6784_v30 = vpack.i.bf16 %v3125_v22, %v3124_v62  ;;  %v3015_v28 = vrot.slane %v10782_v4, 7 }
 0x44b   :  { %6765 = vrot.lane.b32.xlu0 %v6764_v37, %s7306_s4  ;;  %v6774_v5 = vpack.i.bf16 %v3061_v40, %v3060_v52  ;;  %v10989_v37 = vsel %vm385_vm0, %v3013_v13, %v3014_v18  ;;  %v6789_v40 = vpack.i.bf16 %v10669_v41, %v10666_v45  ;;  %v14089_v52 = vld [vmem:[#allocation122_spill] sm:$0xff] }
 0x44c   :  { %6770 = vrot.lane.b32.xlu1 %v6769_v44, %s7305_s2  ;;  %v14088_v44 = vld [vmem:[#allocation88_spill] sm:$0xff]  ;;  %v3157_v33 = vmul.f32 %v10989_v37, %v14089_v52  ;;  %v3063_v52 = vmul.f32 %v10775_v59, %v14093_v26 }
 0x44d   :  { %v3141_v39 = vmul.f32 %v10792_v16, %v14088_v44  ;;  %v14092_v44 = vld [vmem:[#allocation40_spill] sm:$0xff] }
 0x44e   :  { %v3173_v10 = vmul.f32 %v10775_v59, %v14092_v44  ;;  %v14098_v44 = vld [vmem:[#allocation70_spill] sm:$0xff] }
 0x44f   :  { %6775 = vrot.lane.b32.xlu0 %v6774_v5, %s7297_s30  ;;  %v14090_v5 = vld [vmem:[#allocation21_spill] sm:$0xff] }
 0x450   :  { %6780 = vrot.lane.b32.xlu1 %v6779_v11, %s7292_s3  ;;  %v3140_v13 = vmul.f32 %v10718_v42, %v14090_v5  ;;  %v14091_v11 = vld [vmem:[#allocation97_spill] sm:$0xff]  ;;  %v11014_v42 = vsel %vm385_vm0, %v3014_v18, %v3015_v28  ;;  %v3110_v18 = vmul.f32 %v10792_v16, %v14098_v44 }
 0x451   :  { %v3156_v22 = vmul.f32 %v10973_v63, %v14091_v11  ;;  %v14096_v11 = vld [vmem:[#allocation41_spill] sm:$0xff] }
 0x452   :  { %v6794_v62 = vpack.i.bf16 %v3141_v39, %v3140_v13 }
 0x453   :  { %6785 = vrot.lane.b32.xlu0 %v6784_v30, %s7299_s23  ;;  %v6799_v45 = vpack.i.bf16 %v3157_v33, %v3156_v22  ;;  %v3172_v30 = vmul.f32 %v10669_v41, %v14094_v17  ;;  %v3111_v33 = vmul.f32 %v10796_v31, %v14096_v11  ;;  %v3016_v22 = vrot.slane %v10820_v24, 7  ;;  %v14100_v11 = vld [vmem:[#allocation13_spill] sm:$0xff] }
 0x454   :  { %6790 = vrot.lane.b32.xlu1 %v6789_v40, %s7295_s24  ;;  %v14095_v40 = vld [vmem:[#allocation82_spill] sm:$0xff] }
 0x455   :  { %v3062_v39 = vmul.f32 %v10669_v41, %v14095_v40  ;;  %v6804_v13 = vpack.i.bf16 %v3173_v10, %v3172_v30  ;;  %v14099_v41 = vld [vmem:[#allocation86_spill] sm:$0xff] }
 0x456   :  { %v3126_v10 = vmul.f32 %v10989_v37, %v14099_v41 }
 0x457   :  { %6795 = vrot.lane.b32.xlu0 %v6794_v62, %s7307_s28  ;;  %v6809_v5 = vpack.i.bf16 %v3063_v52, %v3062_v39  ;;  %v14097_v62 = vld [vmem:[#allocation93_spill] sm:$0xff]  ;;  %v11027_v17 = vpop.permute.xlu0 %6600  ;;  %v3143_v52 = vmul.f32 %v10875_v58, %v14100_v11  ;;  %v11036_v39 = vsel %vm385_vm0, %v3015_v28, %v3016_v22  ;;  %v14103_v11 = vld [vmem:[#allocation43_spill] sm:$0xff] }
 0x458   :  { %6800 = vrot.lane.b32.xlu1 %v6799_v45, %s7306_s4  ;;  %v3127_v26 = vmul.f32 %v11014_v42, %v14097_v62  ;;  %v6814_v45 = vpack.i.bf16 %v3111_v33, %v3110_v18  ;;  %v14102_v33 = vld [vmem:[#allocation45_spill] sm:$0xff]  ;;  %v3175_v28 = vmul.f32 %v10820_v24, %v14103_v11  ;;  %v14107_v11 = vrot.slane %v10823_v47, 7 }
 0x459   :  { %v3159_v18 = vmul.f32 %v11036_v39, %v14102_v33  ;;  %v14106_v33 = vld [vmem:[#allocation89_spill] sm:$0xff] }
 0x45a   :  { %v6819_v30 = vpack.i.bf16 %v3127_v26, %v3126_v10  ;;  %v6824_v26 = vpack.i.bf16 %v10782_v4, %v10775_v59 }
 0x45b   :  { %6805 = vrot.lane.b32.xlu0 %v6804_v13, %s7305_s2 }
 0x45c   :  { %6810 = vrot.lane.b32.xlu1 %v6809_v5, %s7297_s30  ;;  %v14101_v5 = vld [vmem:[#allocation106_spill] sm:$0xff] }
 0x45d   :  { %v3142_v62 = vmul.f32 %v10796_v31, %v14101_v5  ;;  %v14105_v31 = vld [vmem:[#allocation149_spill] sm:$0xff] }
 0x45e   :  { %v3174_v59 = vmul.f32 %v10782_v4, %v14105_v31 }
 0x45f   :  { %v11038_v13 = vpop.permute.xlu1 %6605  ;;  %6815 = vrot.lane.b32.xlu0 %v6814_v45, %s7292_s3  ;;  %v6829_v10 = vpack.i.bf16 %v3143_v52, %v3142_v62  ;;  %v14104_v45 = vld [vmem:[#allocation133_spill] sm:$0xff]  ;;  %v3065_v62 = vmul.f32 %v10820_v24, %v14106_v33  ;;  %v14110_v33 = vld [vmem:[#allocation30_spill] sm:$0xff] }
 0x460   :  { %v6611_v16 = vpop.permute.xlu0 %6610  ;;  %6820 = vrot.lane.b32.xlu1 %v6819_v30, %s7299_s23  ;;  %v3158_v30 = vmul.f32 %v11014_v42, %v14104_v45  ;;  %v6839_v52 = vpack.i.bf16 %v3175_v28, %v3174_v59  ;;  %v14108_v45 = vld [vmem:[#allocation84_spill] sm:$0xff]  ;;  %v6849_v59 = vpack.i.bf16 %v10823_v47, %v10820_v24  ;;  %v14113_v24 = vld [vmem:[#allocation134_spill] sm:$0xff] }
 0x461   :  { %v6612_v31 = vunpack.i.l.bf16 %v6611_v16  ;;  %v3112_v47 = vmul.f32 %v10875_v58, %v14113_v24 }
 0x462   :  { %v6834_v5 = vpack.i.bf16 %v3159_v18, %v3158_v30  ;;  %v14109_v30 = vld [vmem:[#allocation90_spill] sm:$0xff] }
 0x463   :  { %v11050_v41 = vpop.permute.xlu1 %6615  ;;  %6825 = vrot.lane.b32.xlu0 %v6824_v26, %s7295_s24  ;;  %v11066_v26 = vsel %vm385_vm0, %v3016_v22, %v14107_v11  ;;  %v3113_v11 = vmul.f32 %v10879_v20, %v14110_v33  ;;  %v6613_v22 = vunpack.i.h.bf16 %v6611_v16  ;;  %v14114_v33 = vld [vmem:[#allocation101_spill] sm:$0xff] }
 0x464   :  { %v11055_v44 = vpop.permute.xlu0 %6625  ;;  %6830 = vrot.lane.b32.xlu1 %v6829_v10, %s7307_s28  ;;  %v3064_v10 = vmul.f32 %v10782_v4, %v14108_v45  ;;  %v3129_v28 = vmul.f32 %v11066_v26, %v14109_v30  ;;  %v14112_v45 = vld [vmem:[#allocation99_spill] sm:$0xff]  ;;  %v3037_v16 = vmul.f32 %v10517_v49, %v14114_v33 }
 0x465   :  { %v6854_v27 = vpack.i.bf16 %v3113_v11, %v3112_v47 }
 0x466   :  { %v6844_v18 = vpack.i.bf16 %v3065_v62, %v3064_v10  ;;  %v3036_v62 = vmul.f32 %v10510_v3, %v14112_v45  ;;  %v14115_v3 = vld [vmem:[#allocation124_spill] sm:$0xff]  ;;  %v14116_v45 = vld [vmem:[#allocation141_spill] sm:$0xff]  ;;  %v3645_v58 = vsel %vm1251_vm3, %v3037_v16, %v6613_v22 }
 0x467   :  { %v11068_v40 = vpop.permute.xlu1 %6620  ;;  %6835 = vrot.lane.b32.xlu0 %v6834_v5, %s7306_s4  ;;  %v14111_v5 = vld [vmem:[#allocation95_spill] sm:$0xff] }
 0x468   :  { %v6636_v21 = vpop.permute.xlu0 %6635  ;;  %6840 = vrot.lane.b32.xlu1 %v6839_v52, %s7305_s2  ;;  %v3128_v4 = vmul.f32 %v11036_v39, %v14111_v5  ;;  %v3145_v5 = vmul.f32 %v10842_v25, %v13939_v34  ;;  %v3644_v50 = vsel %vm1251_vm3, %v3036_v62, %v6612_v31 }
 0x469   :  { %v6638_v25 = vunpack.i.h.bf16 %v6636_v21  ;;  %v6637_v11 = vunpack.i.l.bf16 %v6636_v21 }
 0x46a   :  { %v6859_v7 = vpack.i.bf16 %v3129_v28, %v3128_v4 }
 0x46b   :  { %v6631_v54 = vpop.permute.xlu1 %6630  ;;  %6845 = vrot.lane.b32.xlu0 %v6844_v18, %s7297_s30  ;;  %v3144_v18 = vmul.f32 %v10879_v20, %v13937_v9 }
 0x46c   :  { %v6633_v52 = vunpack.i.h.bf16 %v6631_v54  ;;  %v6632_v10 = vunpack.i.l.bf16 %v6631_v54  ;;  %v6641_v30 = vpop.permute.xlu0 %6640  ;;  %6850 = vrot.lane.b32.xlu1 %v6849_v59, %s7295_s24  ;;  %v3160_v54 = vmul.f32 %v11066_v26, %v14115_v3  ;;  %v3161_v59 = vmul.f32 %v10850_v46, %v14116_v45 }
 0x46d   :  { %v6864_v4 = vpack.i.bf16 %v3145_v5, %v3144_v18  ;;  %v6643_v18 = vunpack.i.h.bf16 %v6641_v30 }
 0x46e   :  { %v3660_v49 = vsel %vm1285_vm5, %v3644_v50, %v6632_v10  ;;  %v3661_v20 = vsel %vm1285_vm5, %v3645_v58, %v6633_v52  ;;  %v6869_v47 = vpack.i.bf16 %v3161_v59, %v3160_v54  ;;  %v6617_v50 = vunpack.i.l.bf16 %v11050_v41 }
 0x46f   :  { %v6646_v24 = vpop.permute.xlu1 %6645  ;;  %6860 = vrot.lane.b32.xlu0 %v6859_v7, %s7299_s23  ;;  %v3676_v33 = vsel %vm1319_vm7, %v3660_v49, %v6637_v11  ;;  %v3677_v31 = vsel %vm1319_vm7, %v3661_v20, %v6638_v25  ;;  %v6618_v7 = vunpack.i.h.bf16 %v11050_v41  ;;  %v6642_v54 = vunpack.i.l.bf16 %v6641_v30 }
 0x470   :  { %v6651_v28 = vpop.permute.xlu0 %6650  ;;  %6855 = vrot.lane.b32.xlu1 %v6854_v27, %s7292_s3  ;;  %v3692_v5 = vsel %vm1353_vm9, %v3676_v33, %v6617_v50  ;;  %v14117_v41 = vpack.i.bf16 %v10891_v43, %v10887_v12  ;;  %v3039_v43 = vmul.f32 %v10573_v35, %v13943_v36  ;;  %v3038_v50 = vmul.f32 %v10542_v0, %v13941_v48  ;;  %v14186_v36 = vld [vmem:[#allocation136_spill] sm:$0xff] }
 0x471   :  { %v3693_v16 = vsel %vm1353_vm9, %v3677_v31, %v6618_v7  ;;  %v6652_v0 = vunpack.i.l.bf16 %v6651_v28 }
 0x473   :  { %v6661_v62 = vpop.permute.xlu1 %6660  ;;  %6865 = vrot.lane.b32.xlu0 %v6864_v4, %s7307_s28  ;;  %v6648_v4 = vunpack.i.h.bf16 %v6646_v24 }
 0x474   :  { %v6663_v22 = vunpack.i.h.bf16 %v6661_v62  ;;  %v6662_v52 = vunpack.i.l.bf16 %v6661_v62  ;;  %v6656_v10 = vpop.permute.xlu0 %6655  ;;  %6870 = vrot.lane.b32.xlu1 %v6869_v47, %s7306_s4  ;;  %v6647_v47 = vunpack.i.l.bf16 %v6646_v24 }
 0x475   :  { %v6658_v27 = vunpack.i.h.bf16 %v6656_v10  ;;  %v6657_v21 = vunpack.i.l.bf16 %v6656_v10 }
 0x476   :  { %v3646_v10 = vsel %vm1251_vm3, %v3038_v50, %v6647_v47 }
 0x477   :  { %v3708_v59 = vsel %vm2698_vm12, %v3692_v5, %v6657_v21  ;;  %v3709_v58 = vsel %vm2698_vm12, %v3693_v16, %v6658_v27  ;;  %v6671_v49 = vpop.permute.xlu1 %6670  ;;  %6875 = vrot.lane.b32.xlu0 %v14117_v41, %s7305_s2 }
 0x478   :  { %v6666_v20 = vpop.permute.xlu0 %6665  ;;  %v3724_v25 = vsel %vm2715_vm13, %v3708_v59, %v6662_v52  ;;  %v3725_v11 = vsel %vm2715_vm13, %v3709_v58, %v6663_v22  ;;  %v3647_v52 = vsel %vm1251_vm3, %v3039_v43, %v6648_v4  ;;  %v6673_v27 = vunpack.i.h.bf16 %v6671_v49 }
 0x479   :  { %v11121_v33 = vsel %vm2732_vm14, %v3724_v25, %v6642_v54  ;;  %v11124_v30 = vsel %vm2732_vm14, %v3725_v11, %v6643_v18  ;;  %v6668_v62 = vunpack.i.h.bf16 %v6666_v20  ;;  %v6667_v7 = vunpack.i.l.bf16 %v6666_v20 }
 0x47a   :  { %v3756_v31 = vpack.c.bf16 %v11124_v30, %v11121_v33  ;;  %v6672_v21 = vunpack.i.l.bf16 %v6671_v49  ;;  %v6653_v59 = vunpack.i.h.bf16 %v6651_v28  ;;  %v14123_v30 = vld [vmem:[#allocation117_spill] sm:$0xff] }
 0x47b   :  { %v6676_v12 = vpop.permute.xlu1 %6675  ;;  %v3663_v24 = vsel %vm1285_vm5, %v3647_v52, %v6668_v62  ;;  %v3662_v5 = vsel %vm1285_vm5, %v3646_v10, %v6667_v7 }
 0x47c   :  { %v6681_v22 = vpop.permute.xlu0 %6680  ;;  %v3679_v18 = vsel %vm1319_vm7, %v3663_v24, %v6673_v27  ;;  %v3678_v35 = vsel %vm1319_vm7, %v3662_v5, %v6672_v21  ;;  %v6678_v47 = vunpack.i.h.bf16 %v6676_v12  ;;  %v6677_v62 = vunpack.i.l.bf16 %v6676_v12 }
 0x47d   :  { %v3694_v49 = vsel %vm1353_vm9, %v3678_v35, %v6652_v0  ;;  %v3695_v4 = vsel %vm1353_vm9, %v3679_v18, %v6653_v59  ;;  %v6683_v24 = vunpack.i.h.bf16 %v6681_v22  ;;  %v6682_v12 = vunpack.i.l.bf16 %v6681_v22 }
 0x47e   :  { %v3040_v35 = vmul.f32 %v10594_v38, %v13948_v8  ;;  %v3034_v0 = vmul.f32 %v11066_v26, %v13953_v2  ;;  %v6608_v26 = vunpack.i.h.bf16 %v11038_v13  ;;  %v14208_v8 = vld [vmem:[#allocation126_spill] sm:$0xff] }
 0x47f   :  { %v11136_v16 = vpop.permute.xlu1 %6685 }
 0x480   :  { %v6696_v54 = vpop.permute.xlu0 %6695 }
 0x481   :  { %v6698_v25 = vunpack.i.h.bf16 %v6696_v54  ;;  %v6697_v11 = vunpack.i.l.bf16 %v6696_v54  ;;  %v3041_v54 = vmul.f32 %v10636_v57, %v13950_v51 }
 0x483   :  { %v6691_v58 = vpop.permute.xlu1 %6690  ;;  %v3649_v22 = vsel %vm1251_vm3, %v3041_v54, %v6683_v24 }
 0x484   :  { %v6693_v41 = vunpack.i.h.bf16 %v6691_v58  ;;  %v6692_v20 = vunpack.i.l.bf16 %v6691_v58  ;;  %v6706_v59 = vpop.permute.xlu0 %6705  ;;  %v3035_v58 = vmul.f32 %v10850_v46, %v13954_v14  ;;  %v14191_v14 = vld [vmem:[#allocation102_spill] sm:$0xff] }
 0x485   :  { %v6708_v46 = vunpack.i.h.bf16 %v6706_v59 }
 0x486   :  { %v3710_v7 = vsel %vm2698_vm12, %v3694_v49, %v6692_v20  ;;  %v3711_v43 = vsel %vm2698_vm12, %v3695_v4, %v6693_v41  ;;  %v6603_v41 = vunpack.i.h.bf16 %v11027_v17  ;;  %v6602_v20 = vunpack.i.l.bf16 %v11027_v17 }
 0x487   :  { %v3726_v50 = vsel %vm2715_vm13, %v3710_v7, %v6697_v11  ;;  %v3727_v52 = vsel %vm2715_vm13, %v3711_v43, %v6698_v25  ;;  %v6701_v21 = vpop.permute.xlu1 %6700  ;;  %v3648_v25 = vsel %vm1251_vm3, %v3040_v35, %v6682_v12  ;;  %v6628_v7 = vunpack.i.h.bf16 %v11055_v44 }
 0x488   :  { %v11147_v28 = vsel %vm2732_vm14, %v3726_v50, %v6677_v62  ;;  %v11150_v10 = vsel %vm2732_vm14, %v3727_v52, %v6678_v47  ;;  %v6703_v5 = vunpack.i.h.bf16 %v6701_v21  ;;  %v6702_v18 = vunpack.i.l.bf16 %v6701_v21 }
 0x489   :  { %v3758_v27 = vpack.c.bf16 %v11150_v10, %v11147_v28  ;;  %v6607_v47 = vunpack.i.l.bf16 %v11038_v13  ;;  %v6707_v62 = vunpack.i.l.bf16 %v6706_v59  ;;  %v6627_v17 = vunpack.i.l.bf16 %v11055_v44 }
 0x48a   :  { %v3664_v38 = vsel %vm1285_vm5, %v3648_v25, %v6702_v18  ;;  %v3665_v57 = vsel %vm1285_vm5, %v3649_v22, %v6703_v5  ;;  %v6688_v43 = vunpack.i.h.bf16 %v11136_v16  ;;  %v6687_v50 = vunpack.i.l.bf16 %v11136_v16 }
 0x48b   :  { %v3680_v21 = vsel %vm1319_vm7, %v3664_v38, %v6707_v62  ;;  %v3681_v24 = vsel %vm1319_vm7, %v3665_v57, %v6708_v46  ;;  %v6623_v44 = vunpack.i.h.bf16 %v11068_v40  ;;  %v6622_v22 = vunpack.i.l.bf16 %v11068_v40 }
 0x48c   :  { %v3696_v46 = vsel %vm1353_vm9, %v3680_v21, %v6687_v50 }
 0x4a6   :  { %v6711_v11 = vpop.permute.xlu1 %6710 }
 0x4a7   :  { %v6713_v49 = vunpack.i.h.bf16 %v6711_v11  ;;  %v6712_v4 = vunpack.i.l.bf16 %v6711_v11 }
 0x4a9   :  { %v6716_v52 = vpop.permute.xlu0 %6715  ;;  %v3643_v13 = vsel %vm1251_vm3, %v3035_v58, %v6713_v49  ;;  %v3642_v35 = vsel %vm1251_vm3, %v3034_v0, %v6712_v4  ;;  %v3697_v58 = vsel %vm1353_vm9, %v3681_v24, %v6688_v43 }
 0x4aa   :  { %v6718_v12 = vunpack.i.h.bf16 %v6716_v52  ;;  %v6717_v5 = vunpack.i.l.bf16 %v6716_v52  ;;  %v6726_v18 = vpop.permute.xlu1 %6725 }
 0x4ab   :  { %v6728_v54 = vunpack.i.h.bf16 %v6726_v18  ;;  %v6727_v59 = vunpack.i.l.bf16 %v6726_v18 }
 0x4ac   :  { %v3659_v16 = vsel %vm1285_vm5, %v3643_v13, %v6718_v12  ;;  %v3658_v25 = vsel %vm1285_vm5, %v3642_v35, %v6717_v5 }
 0x4ad   :  { %v3674_v11 = vsel %vm1319_vm7, %v3658_v25, %v6727_v59  ;;  %v3675_v38 = vsel %vm1319_vm7, %v3659_v16, %v6728_v54  ;;  %v6721_v57 = vpop.permute.xlu0 %6720 }
 0x4ae   :  { %v3690_v0 = vsel %vm1353_vm9, %v3674_v11, %v6602_v20  ;;  %v3691_v49 = vsel %vm1353_vm9, %v3675_v38, %v6603_v41  ;;  %v6723_v4 = vunpack.i.h.bf16 %v6721_v57  ;;  %v6722_v62 = vunpack.i.l.bf16 %v6721_v57  ;;  %v6731_v40 = vpop.permute.xlu1 %6730  ;;  %v14118_v57 = vld [vmem:[#allocation155_spill] sm:$0xff] }
 0x4af   :  { %v3706_v52 = vsel %vm2698_vm12, %v3690_v0, %v6622_v22  ;;  %v3707_v12 = vsel %vm2698_vm12, %v3691_v49, %v6623_v44  ;;  %v6733_v5 = vunpack.i.h.bf16 %v6731_v40  ;;  %v6732_v18 = vunpack.i.l.bf16 %v6731_v40 }
 0x4b0   :  { %v3722_v13 = vsel %vm2715_vm13, %v3706_v52, %v6627_v17  ;;  %v3723_v35 = vsel %vm2715_vm13, %v3707_v12, %v6628_v7  ;;  %v3712_v50 = vsel %vm2698_vm12, %v3696_v46, %v6722_v62  ;;  %v3713_v43 = vsel %vm2698_vm12, %v3697_v58, %v6723_v4 }
 0x4b1   :  { %v6736_v20 = vpop.permute.xlu0 %6735  ;;  %v3738_v41 = vsel %vm2732_vm14, %v3722_v13, %v6607_v47  ;;  %v3739_v21 = vsel %vm2732_vm14, %v3723_v35, %v6608_v26  ;;  %v3728_v25 = vsel %vm2715_vm13, %v3712_v50, %v6732_v18  ;;  %v3729_v17 = vsel %vm2715_vm13, %v3713_v43, %v6733_v5 }
 0x4b2   :  { %v6738_v24 = vunpack.i.h.bf16 %v6736_v20  ;;  %v6737_v54 = vunpack.i.l.bf16 %v6736_v20  ;;  %v6741_v59 = vpop.permute.xlu1 %6740  ;;  %v3754_v22 = vpack.c.bf16 %v3739_v21, %v3738_v41  ;;  %v3042_v26 = vmul.f32 %v10663_v32, %v13958_v15  ;;  %v14199_v15 = vld [vmem:[#allocation31_spill] sm:$0xff] }
 0x4b3   :  { %v6743_v44 = vunpack.i.h.bf16 %v6741_v59  ;;  %v6742_v16 = vunpack.i.l.bf16 %v6741_v59  ;;  %v3043_v47 = vmul.f32 %v10865_v19, %v13960_v61  ;;  %v14119_v46 = vpack.c.bf16 %v10726_v53, %v14118_v57  ;;  %v14121_v59 = vld [vmem:[#allocation137_spill] sm:$0xff] }
 0x4b4   :  { %3904 = vmatmul.mubr.bf16.vlgmr.msra.gmra.mrb[16].mxu0 %v3754_v22  ;;  %v11199_v7 = vsel %vm2732_vm14, %v3728_v25, %v6737_v54  ;;  %v11202_v11 = vsel %vm2732_vm14, %v3729_v17, %v6738_v24  ;;  %v14120_v54 = vld [vmem:[#allocation128_spill] sm:$0xff]  ;;  %v14197_v61 = vld [vmem:[#allocation25_spill] sm:$0xff] }
 0x4b5   :  { %v6746_v38 = vpop.permute.xlu0 %6745  ;;  %5794 = vmatprep.mubr.msk.bf16.mxu0 %vm1251_vm3, %v14119_v46  ;;  %v3760_v58 = vpack.c.bf16 %v11202_v11, %v11199_v7  ;;  %v3651_v62 = vsel %vm1251_vm3, %v3043_v47, %v6743_v44  ;;  %v3650_v40 = vsel %vm1251_vm3, %v3042_v26, %v6742_v16  ;;  %v14122_v22 = vpack.c.bf16 %v14120_v54, %v14121_v59  ;;  %v14131_v11 = vld [vmem:[#allocation62_spill] sm:$0xff] }
 0x4b6   :  { %v6748_v0 = vunpack.i.h.bf16 %v6746_v38  ;;  %v6747_v49 = vunpack.i.l.bf16 %v6746_v38  ;;  %v6751_v4 = vpop.permute.xlu1 %6750 }
 0x4b7   :  { %v6753_v32 = vunpack.i.h.bf16 %v6751_v4  ;;  %v6752_v52 = vunpack.i.l.bf16 %v6751_v4  ;;  %v14124_v4 = vld [vmem:[#allocation58_spill] sm:$0xff] }
 0x4b8   :  { %v3667_v19 = vsel %vm1285_vm5, %v3651_v62, %v6748_v0  ;;  %v3666_v12 = vsel %vm1285_vm5, %v3650_v40, %v6747_v49  ;;  %v3045_v62 = vmul.f32 %v10948_v60, %v14124_v4 }
 0x4b9   :  { %v6756_v5 = vpop.permute.xlu0 %6755  ;;  %v3682_v35 = vsel %vm1319_vm7, %v3666_v12, %v6752_v52  ;;  %v3683_v50 = vsel %vm1319_vm7, %v3667_v19, %v6753_v32 }
 0x4ba   :  { %v6758_v53 = vunpack.i.h.bf16 %v6756_v5  ;;  %v6757_v18 = vunpack.i.l.bf16 %v6756_v5  ;;  %v6761_v13 = vpop.permute.xlu1 %6760 }
 0x4bb   :  { %v6763_v43 = vunpack.i.h.bf16 %v6761_v13  ;;  %v6762_v20 = vunpack.i.l.bf16 %v6761_v13  ;;  %v14125_v13 = vld [vmem:[#allocation39_spill] sm:$0xff] }
 0x4bc   :  { %v3698_v41 = vsel %vm1353_vm9, %v3682_v35, %v6757_v18  ;;  %v3699_v21 = vsel %vm1353_vm9, %v3683_v50, %v6758_v53  ;;  %3912 = vmatmul.mubr.bf16.gmra.mrb[20].mxu0 %v3756_v31  ;;  %v3044_v31 = vmul.f32 %v10924_v1, %v14123_v30  ;;  %v14126_v35 = vld [vmem:[#allocation105_spill] sm:$0xff] }
 0x4bd   :  { %v6766_v24 = vpop.permute.xlu0 %6765  ;;  %5795 = vmatprep.mubr.msk.bf16.mxu0 %vm1251_vm3, %v14122_v22  ;;  %v3714_v17 = vsel %vm2698_vm12, %v3698_v41, %v6762_v20  ;;  %v3715_v26 = vsel %vm2698_vm12, %v3699_v21, %v6763_v43  ;;  %v14127_v50 = vpack.c.bf16 %v14125_v13, %v14126_v35 }
 0x4be   :  { %v6768_v44 = vunpack.i.h.bf16 %v6766_v24  ;;  %v6767_v16 = vunpack.i.l.bf16 %v6766_v24  ;;  %v6771_v25 = vpop.permute.xlu1 %6770 }
 0x4bf   :  { %v6773_v47 = vunpack.i.h.bf16 %v6771_v25  ;;  %v6772_v38 = vunpack.i.l.bf16 %v6771_v25 }
 0x4c0   :  { %v3730_v57 = vsel %vm2715_vm13, %v3714_v17, %v6767_v16  ;;  %v3731_v33 = vsel %vm2715_vm13, %v3715_v26, %v6768_v44 }
 0x4c1   :  { %v6776_v46 = vpop.permute.xlu0 %6775  ;;  %v3746_v0 = vsel %vm2732_vm14, %v3730_v57, %v6772_v38  ;;  %v3747_v49 = vsel %vm2732_vm14, %v3731_v33, %v6773_v47  ;;  %v14128_v33 = vld [vmem:[#allocation142_spill] sm:$0xff] }
 0x4c2   :  { %v6778_v40 = vunpack.i.h.bf16 %v6776_v46  ;;  %v6777_v32 = vunpack.i.l.bf16 %v6776_v46  ;;  %v6781_v52 = vpop.permute.xlu1 %6780  ;;  %v3762_v19 = vpack.c.bf16 %v3747_v49, %v3746_v0 }
 0x4c3   :  { %v6783_v12 = vunpack.i.h.bf16 %v6781_v52  ;;  %v6782_v5 = vunpack.i.l.bf16 %v6781_v52 }
 0x4c4   :  { %v3653_v53 = vsel %vm1251_vm3, %v3045_v62, %v6778_v40  ;;  %v3652_v18 = vsel %vm1251_vm3, %v3044_v31, %v6777_v32  ;;  %3920 = vmatmul.mubr.bf16.gmra.mrb[24].mxu0 %v3758_v27  ;;  %v14129_v31 = vld [vmem:[#allocation108_spill] sm:$0xff] }
 0x4c5   :  { %v6786_v1 = vpop.permute.xlu0 %6785  ;;  %5796 = vmatprep.mubr.msk.bf16.mxu0 %vm1251_vm3, %v14127_v50  ;;  %v3668_v41 = vsel %vm1285_vm5, %v3652_v18, %v6782_v5  ;;  %v3669_v21 = vsel %vm1285_vm5, %v3653_v53, %v6783_v12  ;;  %v14130_v46 = vpack.c.bf16 %v14128_v33, %v14129_v31  ;;  %v14132_v53 = vld [vmem:[#allocation52_spill] sm:$0xff] }
 0x4c6   :  { %v6788_v60 = vunpack.i.h.bf16 %v6786_v1  ;;  %v6787_v43 = vunpack.i.l.bf16 %v6786_v1  ;;  %v6791_v20 = vpop.permute.xlu1 %6790  ;;  %v3047_v18 = vmul.f32 %v10989_v37, %v14132_v53 }
 0x4c7   :  { %v6793_v24 = vunpack.i.h.bf16 %v6791_v20  ;;  %v6792_v54 = vunpack.i.l.bf16 %v6791_v20 }
 0x4c8   :  { %v3684_v59 = vsel %vm1319_vm7, %v3668_v41, %v6787_v43  ;;  %v3685_v28 = vsel %vm1319_vm7, %v3669_v21, %v6788_v60 }
 0x4c9   :  { %v6796_v10 = vpop.permute.xlu0 %6795  ;;  %v3700_v16 = vsel %vm1353_vm9, %v3684_v59, %v6792_v54  ;;  %v3701_v25 = vsel %vm1353_vm9, %v3685_v28, %v6793_v24  ;;  %v14133_v59 = vld [vmem:[#allocation143_spill] sm:$0xff] }
 0x4ca   :  { %v6798_v27 = vunpack.i.h.bf16 %v6796_v10  ;;  %v6797_v22 = vunpack.i.l.bf16 %v6796_v10  ;;  %v6801_v44 = vpop.permute.xlu1 %6800  ;;  %v14134_v28 = vld [vmem:[#allocation139_spill] sm:$0xff] }
 0x4cb   :  { %v6803_v17 = vunpack.i.h.bf16 %v6801_v44  ;;  %v6802_v26 = vunpack.i.l.bf16 %v6801_v44  ;;  %v14135_v37 = vpack.c.bf16 %v14133_v59, %v14134_v28 }
 0x4cc   :  { %v3716_v47 = vsel %vm2698_vm12, %v3700_v16, %v6797_v22  ;;  %v3717_v38 = vsel %vm2698_vm12, %v3701_v25, %v6798_v27  ;;  %3928 = vmatmul.mubr.bf16.gmra.mrb[28].mxu0 %v3760_v58  ;;  %v3046_v58 = vmul.f32 %v10973_v63, %v14131_v11 }
 0x4cd   :  { %v6806_v57 = vpop.permute.xlu0 %6805  ;;  %5797 = vmatprep.mubr.msk.bf16.mxu0 %vm1251_vm3, %v14130_v46  ;;  %v3732_v52 = vsel %vm2715_vm13, %v3716_v47, %v6802_v26  ;;  %v3733_v12 = vsel %vm2715_vm13, %v3717_v38, %v6803_v17 }
 0x4ce   :  { %v6808_v0 = vunpack.i.h.bf16 %v6806_v57  ;;  %v6807_v49 = vunpack.i.l.bf16 %v6806_v57  ;;  %v6811_v62 = vpop.permute.xlu1 %6810 }
 0x4cf   :  { %v6813_v40 = vunpack.i.h.bf16 %v6811_v62  ;;  %v6812_v32 = vunpack.i.l.bf16 %v6811_v62 }
 0x4d0   :  { %v3748_v5 = vsel %vm2732_vm14, %v3732_v52, %v6807_v49  ;;  %v3749_v7 = vsel %vm2732_vm14, %v3733_v12, %v6808_v0  ;;  %v14136_v52 = vpack.c.bf16 %v10906_v23, %v10902_v6 }
 0x4d1   :  { %v6816_v1 = vpop.permute.xlu0 %6815  ;;  %v3764_v13 = vpack.c.bf16 %v3749_v7, %v3748_v5  ;;  %v3655_v43 = vsel %vm1251_vm3, %v3047_v18, %v6813_v40  ;;  %v3654_v20 = vsel %vm1251_vm3, %v3046_v58, %v6812_v32 }
 0x4d2   :  { %v6818_v35 = vunpack.i.h.bf16 %v6816_v1  ;;  %v6817_v50 = vunpack.i.l.bf16 %v6816_v1  ;;  %v6821_v60 = vpop.permute.xlu1 %6820 }
 0x4d3   :  { %v6823_v41 = vunpack.i.h.bf16 %v6821_v60  ;;  %v6822_v21 = vunpack.i.l.bf16 %v6821_v60  ;;  %v14138_v60 = vld [vmem:[#allocation118_spill] sm:$0xff] }
 0x4d4   :  { %v3671_v24 = vsel %vm1285_vm5, %v3655_v43, %v6818_v35  ;;  %v3670_v54 = vsel %vm1285_vm5, %v3654_v20, %v6817_v50  ;;  %3936 = vmatmul.mubr.bf16.gmra.mrb[32].mxu0 %v3762_v19  ;;  %v3049_v43 = vmul.f32 %v11036_v39, %v14138_v60  ;;  %v14139_v39 = vpack.c.bf16 %v10917_v55, %v10913_v56  ;;  %v14179_v60 = vld [vmem:[#allocation68_spill] sm:$0xff] }
 0x4d5   :  { %v6826_v63 = vpop.permute.xlu0 %6825  ;;  %5798 = vmatprep.mubr.msk.bf16.mxu0 %vm1251_vm3, %v14135_v37  ;;  %v3686_v44 = vsel %vm1319_vm7, %v3670_v54, %v6822_v21  ;;  %v3687_v16 = vsel %vm1319_vm7, %v3671_v24, %v6823_v41 }
 0x4d6   :  { %v6828_v10 = vunpack.i.h.bf16 %v6826_v63  ;;  %v6827_v27 = vunpack.i.l.bf16 %v6826_v63  ;;  %v6831_v22 = vpop.permute.xlu1 %6830 }
 0x4d7   :  { %v6833_v25 = vunpack.i.h.bf16 %v6831_v22  ;;  %v6832_v17 = vunpack.i.l.bf16 %v6831_v22 }
 0x4d8   :  { %v3702_v26 = vsel %vm1353_vm9, %v3686_v44, %v6827_v27  ;;  %v3703_v47 = vsel %vm1353_vm9, %v3687_v16, %v6828_v10 }
 0x4d9   :  { %v6836_v19 = vpop.permute.xlu0 %6835  ;;  %v3718_v31 = vsel %vm2698_vm12, %v3702_v26, %v6832_v17  ;;  %v3719_v46 = vsel %vm2698_vm12, %v3703_v47, %v6833_v25 }
 0x4da   :  { %v6838_v38 = vunpack.i.h.bf16 %v6836_v19  ;;  %v6837_v57 = vunpack.i.l.bf16 %v6836_v19  ;;  %v6841_v33 = vpop.permute.xlu1 %6840 }
 0x4db   :  { %v6843_v0 = vunpack.i.h.bf16 %v6841_v33  ;;  %v6842_v49 = vunpack.i.l.bf16 %v6841_v33 }
 0x4dc   :  { %3944 = vmatmul.mubr.bf16.gmra.mrb[36].mxu0 %v3764_v13  ;;  %v3734_v62 = vsel %vm2715_vm13, %v3718_v31, %v6837_v57  ;;  %v3735_v40 = vsel %vm2715_vm13, %v3719_v46, %v6838_v38  ;;  %v14137_v13 = vld [vmem:[#allocation119_spill] sm:$0xff] }
 0x4dd   :  { %v6846_v32 = vpop.permute.xlu0 %6845  ;;  %5799 = vmatprep.mubr.msk.bf16.mxu0 %vm1251_vm3, %v14136_v52  ;;  %v3750_v12 = vsel %vm2732_vm14, %v3734_v62, %v6842_v49  ;;  %v3751_v5 = vsel %vm2732_vm14, %v3735_v40, %v6843_v0  ;;  %v3048_v50 = vmul.f32 %v11014_v42, %v14137_v13  ;;  %v11318_v62 = vld [vmem:[%s13021_s6 + $0x2] ss:$0 sm:$0xff]  ;;  %v14181_v13 = vld [vmem:[#allocation28_spill] sm:$0xff] }
 0x4de   :  { %v6851_v7 = vpop.permute.xlu1 %6850  ;;  %v3766_v58 = vpack.c.bf16 %v3751_v5, %v3750_v12  ;;  %v6848_v18 = vunpack.i.h.bf16 %v6846_v32  ;;  %v6847_v1 = vunpack.i.l.bf16 %v6846_v32 }
 0x4df   :  { %v6853_v63 = vunpack.i.h.bf16 %v6851_v7  ;;  %v6852_v59 = vunpack.i.l.bf16 %v6851_v7 }
 0x4e0   :  { %v3657_v23 = vsel %vm1251_vm3, %v3049_v43, %v6848_v18  ;;  %v3656_v21 = vsel %vm1251_vm3, %v3048_v50, %v6847_v1 }
 0x4e1   :  { %v6861_v35 = vpop.permute.xlu0 %6860 }
 0x4e2   :  { %v6856_v20 = vpop.permute.xlu1 %6855  ;;  %v6863_v24 = vunpack.i.h.bf16 %v6861_v35  ;;  %v6862_v54 = vunpack.i.l.bf16 %v6861_v35 }
 0x4e3   :  { %v6858_v41 = vunpack.i.h.bf16 %v6856_v20  ;;  %v6857_v6 = vunpack.i.l.bf16 %v6856_v20 }
 0x4e4   :  { %3952 = vmatmul.mubr.bf16.gmra.mrb[40].mxu0 %v3766_v58 }
 0x4e5   :  { %v3672_v28 = vsel %vm1285_vm5, %v3656_v21, %v6857_v6  ;;  %v3673_v37 = vsel %vm1285_vm5, %v3657_v23, %v6858_v41  ;;  %v6866_v42 = vpop.permute.xlu0 %6865  ;;  %5800 = vmatprep.mubr.msk.bf16.mxu0 %vm1251_vm3, %v14139_v39 }
 0x4e6   :  { %v3688_v10 = vsel %vm1319_vm7, %v3672_v28, %v6862_v54  ;;  %v3689_v27 = vsel %vm1319_vm7, %v3673_v37, %v6863_v24  ;;  %v6868_v22 = vunpack.i.h.bf16 %v6866_v42  ;;  %v6867_v44 = vunpack.i.l.bf16 %v6866_v42  ;;  %v6871_v16 = vpop.permute.xlu1 %6870  ;;  %v14141_v37 = vld [vmem:[#allocation127_spill] sm:$0xff] }
 0x4e7   :  { %v3704_v25 = vsel %vm1353_vm9, %v3688_v10, %v6852_v59  ;;  %v3705_v17 = vsel %vm1353_vm9, %v3689_v27, %v6853_v63  ;;  %v6873_v26 = vunpack.i.h.bf16 %v6871_v16  ;;  %v6872_v47 = vunpack.i.l.bf16 %v6871_v16  ;;  %v14143_v16 = vld [vmem:[#allocation48_spill] sm:$0xff] }
 0x4e8   :  { %v3720_v19 = vsel %vm2698_vm12, %v3704_v25, %v6867_v44  ;;  %v3721_v38 = vsel %vm2698_vm12, %v3705_v17, %v6868_v22  ;;  %v14142_v22 = vld [vmem:[#allocation12_spill] sm:$0xff]  ;;  %v14144_v17 = vld [vmem:[#allocation51_spill] sm:$0xff] }
 0x4e9   :  { %v6876_v56 = vpop.permute.xlu0 %6875  ;;  %v3736_v33 = vsel %vm2715_vm13, %v3720_v19, %v6872_v47  ;;  %v3737_v31 = vsel %vm2715_vm13, %v3721_v38, %v6873_v26  ;;  %v14145_v47 = vld [vmem:[#allocation9_spill] sm:$0xff]  ;;  %v14146_v38 = vld [vmem:[#allocation15_spill] sm:$0xff] }
 0x4ea   :  { %v6878_v55 = vunpack.i.h.bf16 %v6876_v56  ;;  %v6877_v57 = vunpack.i.l.bf16 %v6876_v56 }
 0x4ec   :  { %v3752_v46 = vsel %vm2732_vm14, %v3736_v33, %v6877_v57  ;;  %v3753_v0 = vsel %vm2732_vm14, %v3737_v31, %v6878_v55 }
 0x4ed   :  { %v3768_v49 = vpack.c.bf16 %v3753_v0, %v3752_v46 }
 0x4ef   :  { %3960 = vmatmul.mubr.bf16.gmra.mrb[44].mxu0 %v3768_v49  ;;  %v14147_v49 = vld [vmem:[#allocation146_spill] sm:$0xff] }
 0x587   :  { %v3905_v40 = vpop.f32.mrb[16].mxu0 }
 0x588   :  { %v3906_v32 = vadd.f32 %v11318_v62, %v3905_v40  ;;  %v3907_v52 = vpop.f32.mrb[17].mxu0 }
 0x589   :  { %v3908_v12 = vpop.f32.mrb[18].mxu0  ;;  %v14148_v52 = vld [vmem:[#allocation16_spill] sm:$0xff] }
 0x58a   :  { %v11321_v5 = vmax.f32 %v3906_v32, 0.0  ;;  %v3909_v7 = vadd.f32 %v11318_v62, %v3908_v12  ;;  %v3910_v58 = vpop.f32.mrb[19].mxu0 }
 0x58c   :  { %v3969_v18 = vmax.f32 %v3909_v7, 0.0  ;;  %v13425_v1 = vrot.slane %v11321_v5, 7  ;;  %v13426_v35 = vrot.slane %v11321_v5, 1 }
 0x58e   :  { %v3985_v50 = vrot.slane %v3969_v18, 7  ;;  %v4049_v43 = vrot.slane %v3969_v18, 1  ;;  %v6879_v20 = vpack.i.bf16 %v3969_v18, %v11321_v5  ;;  %v4144_v42 = vmul.f32 %v3969_v18, %v14141_v37  ;;  %v14153_v37 = vld [vmem:[#allocation64_spill] sm:$0xff] }
 0x58f   :  { %v3913_v41 = vpop.f32.mrb[20].mxu0  ;;  %v4034_v25 = vmul.f32 %v3969_v18, %v14143_v16  ;;  %v14156_v16 = vld [vmem:[#allocation57_spill] sm:$0xff] }
 0x590   :  { %v3914_v6 = vadd.f32 %v11318_v62, %v3913_v41  ;;  %6880 = vrot.lane.b32.xlu0 %v6879_v20, %s7295_s24  ;;  %v3915_v23 = vpop.f32.mrb[21].mxu0  ;;  %v11333_v21 = vsel %vm1689_vm11, %v13426_v35, %v4049_v43  ;;  %v11339_v24 = vsel %vm385_vm0, %v13425_v1, %v3985_v50  ;;  %v14170_v1 = vld [vmem:[#allocation27_spill] sm:$0xff] }
 0x591   :  { %14140 = vst [vmem:[#allocation159_spill] sm:$0xff] %v11339_v24  ;;  %v3916_v54 = vpop.f32.mrb[22].mxu0  ;;  %v11348_v19 = vmul.f32 %v11333_v21, %v14145_v47  ;;  %v11352_v56 = vmul.f32 %v11339_v24, %v14146_v38  ;;  %v14151_v23 = vld [vmem:[#allocation147_spill] sm:$0xff] }
 0x592   :  { %v3970_v63 = vmax.f32 %v3914_v6, 0.0  ;;  %v3917_v59 = vadd.f32 %v11318_v62, %v3916_v54  ;;  %v3918_v28 = vpop.f32.mrb[23].mxu0 }
 0x594   :  { %v3986_v39 = vrot.slane %v3970_v63, 7  ;;  %v4050_v10 = vrot.slane %v3970_v63, 1  ;;  %v3971_v27 = vmax.f32 %v3917_v59, 0.0  ;;  %v4145_v44 = vmul.f32 %v3970_v63, %v14142_v22  ;;  %v14152_v59 = vld [vmem:[#allocation17_spill] sm:$0xff] }
 0x595   :  { %v4035_v26 = vmul.f32 %v3970_v63, %v14144_v17 }
 0x596   :  { %v3987_v55 = vrot.slane %v3971_v27, 7  ;;  %v4051_v57 = vrot.slane %v3971_v27, 1  ;;  %v6884_v33 = vpack.i.bf16 %v4145_v44, %v4144_v42  ;;  %v4077_v31 = vsel %vm1689_vm11, %v4049_v43, %v4050_v10  ;;  %v14150_v43 = vld [vmem:[#allocation22_spill] sm:$0xff] }
 0x597   :  { %v3921_v46 = vpop.f32.mrb[24].mxu0  ;;  %v6889_v0 = vpack.i.bf16 %v4035_v26, %v4034_v25  ;;  %v4160_v40 = vmul.f32 %v4077_v31, %v14147_v49  ;;  %v6894_v32 = vpack.i.bf16 %v3971_v27, %v3970_v63  ;;  %v11358_v12 = vmul.f32 %v4077_v31, %v14148_v52  ;;  %v14160_v52 = vld [vmem:[#allocation38_spill] sm:$0xff] }
 0x598   :  { %v3922_v7 = vadd.f32 %v11318_v62, %v3921_v46  ;;  %6885 = vrot.lane.b32.xlu0 %v6884_v33, %s7305_s2  ;;  %v3923_v58 = vpop.f32.mrb[25].mxu0  ;;  %v4076_v18 = vsel %vm1689_vm11, %v4050_v10, %v4051_v57  ;;  %v11366_v20 = vsel %vm385_vm0, %v3985_v50, %v3986_v39  ;;  %v11369_v41 = vmul.f32 %v4077_v31, %v14150_v43  ;;  %v14159_v46 = vld [vmem:[#allocation69_spill] sm:$0xff]  ;;  %v14162_v43 = vld [vmem:[#allocation54_spill] sm:$0xff] }
 0x599   :  { %14149 = vst [vmem:[#allocation83_spill] sm:$0xff] %v11366_v20  ;;  %v3924_v6 = vpop.f32.mrb[26].mxu0  ;;  %v4161_v54 = vmul.f32 %v4076_v18, %v14151_v23  ;;  %v6899_v63 = vpack.i.bf16 %v11358_v12, %v11348_v19  ;;  %v11376_v28 = vmul.f32 %v11366_v20, %v14152_v59  ;;  %v11379_v42 = vmul.f32 %v4076_v18, %v14153_v37  ;;  %v14157_v19 = vld [vmem:[#allocation65_spill] sm:$0xff]  ;;  %v14177_v26 = vld [vmem:[#allocation10_spill] sm:$0xff] }
 0x59a   :  { %v11381_v10 = vmax.f32 %v3922_v7, 0.0  ;;  %v3925_v50 = vadd.f32 %v11318_v62, %v3924_v6  ;;  %v3926_v22 = vpop.f32.mrb[27].mxu0  ;;  %v11386_v44 = vsel %vm385_vm0, %v3986_v39, %v3987_v55  ;;  %v11390_v25 = vmul.f32 %v11366_v20, %v14156_v16  ;;  %v14161_v7 = vld [vmem:[#allocation60_spill] sm:$0xff]  ;;  %v14164_v16 = vld [vmem:[#allocation18_spill] sm:$0xff] }
 0x59b   :  { %14155 = vst [vmem:[#allocation141_spill] sm:$0xff] %v11386_v44  ;;  %v4737_v17 = vpack.c.bf16 %v4161_v54, %v4160_v40  ;;  %v11398_v38 = vmul.f32 %v11386_v44, %v14157_v19  ;;  %v11406_v49 = vmul.f32 %v3971_v27, %v14159_v46  ;;  %v11416_v58 = vmul.f32 %v3971_v27, %v14161_v7  ;;  %v14163_v54 = vld [vmem:[#allocation63_spill] sm:$0xff]  ;;  %v14172_v27 = vld [vmem:[#allocation72_spill] sm:$0xff] }
 0x59c   :  { %14154 = vst [vmem:[#allocation124_spill] sm:$0xff] %v11381_v10  ;;  %v3988_v33 = vrot.slane %v11381_v10, 7  ;;  %v4052_v39 = vrot.slane %v11381_v10, 1  ;;  %v11402_v31 = vmax.f32 %v3925_v50, 0.0  ;;  %6890 = vrot.lane.b32.xlu0 %v6889_v0, %s7297_s30  ;;  %v11413_v12 = vmul.f32 %v11381_v10, %v14160_v52  ;;  %v14165_v19 = vld [vmem:[#allocation23_spill] sm:$0xff] }
 0x59d   :  { %5810 = vmatprep.mubr.msk.bf16.mxu0 %vm1251_vm3, %v4737_v17  ;;  %v11420_v6 = vmul.f32 %v11381_v10, %v14162_v43  ;;  %v11435_v17 = vmul.f32 %v4076_v18, %v14164_v16  ;;  %v14167_v43 = vld [vmem:[#allocation33_spill] sm:$0xff]  ;;  %v14174_v40 = vld [vmem:[#allocation71_spill] sm:$0xff] }
 0x59e   :  { %14158 = vst [vmem:[#allocation155_spill] sm:$0xff] %v11402_v31  ;;  %v3989_v0 = vrot.slane %v11402_v31, 7  ;;  %v4053_v23 = vrot.slane %v11402_v31, 1  ;;  %v4038_v59 = vmul.f32 %v11402_v31, %v14163_v54  ;;  %v11428_v37 = vsel %vm1689_vm11, %v4051_v57, %v4052_v39 }
 0x59f   :  { %v3929_v50 = vpop.f32.mrb[28].mxu0  ;;  %v11439_v46 = vmul.f32 %v11428_v37, %v14165_v19  ;;  %v11445_v7 = vsel %vm385_vm0, %v3987_v55, %v3988_v33  ;;  %v11449_v54 = vmul.f32 %v11386_v44, %v14167_v43 }
 0x5a0   :  { %v3930_v52 = vadd.f32 %v11318_v62, %v3929_v50  ;;  %6895 = vrot.lane.b32.xlu0 %v6894_v32, %s7295_s24  ;;  %v3931_v57 = vpop.f32.mrb[29].mxu0  ;;  %14166 = vst [vmem:[#allocation128_spill] sm:$0xff] %v11445_v7  ;;  %v11453_v18 = vsel %vm1689_vm11, %v4052_v39, %v4053_v23  ;;  %v14168_v50 = vld [vmem:[#allocation20_spill] sm:$0xff]  ;;  %v11474_v19 = vsel %vm385_vm0, %v3988_v33, %v3989_v0 }
 0x5a1   :  { %v3932_v16 = vpop.f32.mrb[30].mxu0  ;;  %v11459_v32 = vmul.f32 %v11445_v7, %v14168_v50  ;;  %v14169_v57 = vld [vmem:[#allocation26_spill] sm:$0xff]  ;;  %v11467_v43 = vmul.f32 %v11453_v18, %v14170_v1  ;;  %14171 = vst [vmem:[#allocation137_spill] sm:$0xff] %v11474_v19  ;;  %v11478_v50 = vmul.f32 %v11445_v7, %v14172_v27 }
 0x5a2   :  { %v11463_v55 = vmul.f32 %v11428_v37, %v14169_v57  ;;  %v11469_v35 = vmax.f32 %v3930_v52, 0.0  ;;  %v3933_v39 = vadd.f32 %v11318_v62, %v3932_v16  ;;  %v3934_v22 = vpop.f32.mrb[31].mxu0  ;;  %v11486_v52 = vmul.f32 %v11474_v19, %v14174_v40  ;;  %v14176_v27 = vld [vmem:[#allocation66_spill] sm:$0xff] }
 0x5a3   :  { %14173 = vst [vmem:[#allocation39_spill] sm:$0xff] %v11478_v50  ;;  %v11501_v40 = vmul.f32 %v11453_v18, %v14177_v26  ;;  %v11505_v22 = vmul.f32 %v11474_v19, %v14179_v60  ;;  %v14185_v60 = vld [vmem:[#allocation73_spill] sm:$0xff] }
 0x5a4   :  { %14175 = vst [vmem:[#allocation105_spill] sm:$0xff] %v11486_v52  ;;  %v3990_v33 = vrot.slane %v11469_v35, 7  ;;  %v4054_v16 = vrot.slane %v11469_v35, 1  ;;  %v11492_v47 = vmax.f32 %v3933_v39, 0.0  ;;  %6900 = vrot.lane.b32.xlu0 %v6899_v63, %s7307_s28  ;;  %v4039_v57 = vmul.f32 %v11469_v35, %v14176_v27  ;;  %v7185_v63 = vld [vmem:[%s14183_s20] sm:$0xff]  }
 0x5a5   :  { %14178 = vst [vmem:[#allocation142_spill] sm:$0xff] %v11501_v40  ;;  %14180 = vst [vmem:[#allocation108_spill] sm:$0xff] %v11505_v22  ;;  %v11509_v39 = vmul.f32 %v11402_v31, %v14181_v13  ;;  %5877 = vmatpush1.bf16.msra.mxu1 %v7185_v63  ;;  %4849 = vmatpush1.bf16.msra.mxu0 %v7185_v63  ;;  %v14234_v31 = vld [vmem:[#allocation81_spill] sm:$0xff] }
 0x5a6   :  { %v4055_v1 = vrot.slane %v11492_v47, 1  ;;  %v6944_v53 = vpack.i.bf16 %v4039_v57, %v4038_v59  ;;  %v11518_v26 = vsel %vm385_vm0, %v3989_v0, %v3990_v33  ;;  %v4150_v13 = vmul.f32 %v11492_v47, %v14186_v36 }
 0x5a7   :  { %14182 = vst [vmem:[#allocation143_spill] sm:$0xff] %v11509_v39  ;;  %14184 = vst [vmem:[#allocation139_spill] sm:$0xff] %v11518_v26  ;;  %v3937_v11 = vpop.f32.mrb[32].mxu0  ;;  %v4102_v7 = vmul.f32 %v11518_v26, %v14185_v60  ;;  %v11528_v27 = vsel %vm1689_vm11, %v4053_v23, %v4054_v16  ;;  %v14187_v0 = vpack.i.bf16 %v11376_v28, %v11352_v56  ;;  %v14188_v36 = vrot.slane %v11492_v47, 7  ;;  %v14192_v28 = vld [vmem:[#allocation67_spill] sm:$0xff] }
 0x5a8   :  { %v3938_v59 = vadd.f32 %v11318_v62, %v3937_v11  ;;  %v3939_v57 = vpop.f32.mrb[33].mxu0  ;;  %6945 = vrot.lane.b32.xlu1 %v6944_v53, %s7297_s30  ;;  %v11544_v23 = vsel %vm1689_vm11, %v4054_v16, %v4055_v1  ;;  %v14190_v11 = vld [vmem:[#allocation75_spill] sm:$0xff]  ;;  %v11554_v53 = vmul.f32 %v11528_v27, %v14192_v28 }
 0x5a9   :  { %6905 = vrot.lane.b32.xlu0 %v14187_v0, %s7306_s4  ;;  %v11540_v60 = vsel %vm385_vm0, %v3990_v33, %v14188_v36  ;;  %v3940_v44 = vpop.f32.mrb[34].mxu0  ;;  %v11550_v56 = vmul.f32 %v11544_v23, %v14191_v14  ;;  %v14193_v0 = vld [vmem:[#allocation29_spill] sm:$0xff]  ;;  %v14194_v57 = vmov 0  }
 0x5aa   :  { %14189 = vst [vmem:[#allocation127_spill] sm:$0xff] %v11540_v60  ;;  %v4103_v48 = vmul.f32 %v11540_v60, %v14190_v11  ;;  %v11558_v33 = vmul.f32 %v11544_v23, %v14193_v0  ;;  %5869 = vmatprep.subr.bf16.mxu1 %v14194_v57  ;;  %v11561_v16 = vmax.f32 %v3938_v59, 0.0  ;;  %v3941_v36 = vadd.f32 %v11318_v62, %v3940_v44  ;;  %v3942_v2 = vpop.f32.mrb[35].mxu0  ;;  %v14195_v11 = vld [vmem:[#allocation74_spill] sm:$0xff]  ;;  %v14196_v14 = vld [vmem:[#allocation121_spill] sm:$0xff]  ;;  %v14206_v0 = vld [vmem:[#allocation156_spill] sm:$0xff] }
 0x5ab   :  { %v11566_v4 = vmul.f32 %v11492_v47, %v14195_v11  ;;  %v11570_v30 = vmul.f32 %v11540_v60, %v14196_v14  ;;  %v11576_v59 = vmul.f32 %v11528_v27, %v14197_v61  ;;  %v11580_v2 = vmul.f32 %v11518_v26, %v14199_v15  ;;  %4850 = vmatprep.subr.bf16.mxu0 %v14194_v57  ;;  %v14203_v15 = vld [vmem:[#allocation56_spill] sm:$0xff] }
 0x5ac   :  { %v6959_v28 = vpack.i.bf16 %v4103_v48, %v4102_v7  ;;  %v3992_v44 = vrot.slane %v11561_v16, 7  ;;  %v4056_v11 = vrot.slane %v11561_v16, 1  ;;  %v11585_v14 = vmax.f32 %v3941_v36, 0.0  ;;  %v14202_v7 = vld [vmem:[#allocation125_spill] sm:$0xff]  ;;  %v14204_v60 = vld [vmem:[#allocation32_spill] sm:$0xff] }
 0x5ad   :  { %14198 = vst [vmem:[#allocation12_spill] sm:$0xff] %v11576_v59  ;;  %14200 = vst [vmem:[#allocation48_spill] sm:$0xff] %v11580_v2  ;;  %v14201_v48 = vpack.i.bf16 %v11379_v42, %v11369_v41  ;;  %v4151_v61 = vmul.f32 %v11561_v16, %v14202_v7  ;;  %v11596_v63 = vmul.f32 %v11561_v16, %v14203_v15  ;;  %v7186_v41 = vld [vmem:[%s14183_s20 + $0x8] sm:$0xff]  }
 0x5ae   :  { %6960 = vrot.lane.b32.xlu1 %v6959_v28, %s7299_s23  ;;  %v11604_v26 = vmul.f32 %v11469_v35, %v14204_v60  ;;  %v3993_v42 = vrot.slane %v11585_v14, 7  ;;  %v4057_v28 = vrot.slane %v11585_v14, 1  ;;  %v4071_v7 = vsel %vm1689_vm11, %v4055_v1, %v4056_v11  ;;  %v14207_v60 = vld [vmem:[#allocation11_spill] sm:$0xff]  ;;  %5878 = vmatpush1.bf16.msra.mxu1 %v7186_v41  ;;  %v14229_v59 = vld [vmem:[#allocation34_spill] sm:$0xff] }
 0x5af   :  { %6910 = vrot.lane.b32.xlu0 %v14201_v48, %s7292_s3  ;;  %v6964_v48 = vpack.i.bf16 %v4151_v61, %v4150_v13  ;;  %v3945_v15 = vpop.f32.mrb[36].mxu0  ;;  %v4166_v51 = vmul.f32 %v4071_v7, %v14206_v0  ;;  %v6974_v36 = vpack.i.bf16 %v11585_v14, %v11561_v16  ;;  %v4119_v19 = vmul.f32 %v4071_v7, %v14207_v60  ;;  %v14210_v61 = vld [vmem:[#allocation36_spill] sm:$0xff] }
 0x5b0   :  { %14205 = vst [vmem:[#allocation51_spill] sm:$0xff] %v11604_v26  ;;  %v11618_v20 = vmul.f32 %v4071_v7, %v14208_v8  ;;  %v3946_v22 = vadd.f32 %v11318_v62, %v3945_v15  ;;  %v14209_v13 = vpack.i.bf16 %v11398_v38, %v11390_v25  ;;  %v3947_v1 = vpop.f32.mrb[37].mxu0  ;;  %v11627_v0 = vsel %vm1689_vm11, %v4056_v11, %v4057_v28  ;;  %v14211_v60 = vld [vmem:[#allocation76_spill] sm:$0xff]  ;;  %v14279_v26 = vld [vmem:[#allocation106_spill] sm:$0xff] }
 0x5b1   :  { %v11631_v16 = vmul.f32 %v11585_v14, %v14210_v61  ;;  %v11635_v8 = vmul.f32 %v11585_v14, %v14211_v60  ;;  %v3948_v7 = vpop.f32.mrb[38].mxu0  ;;  %v14212_v15 = vld [vmem:[#allocation160_spill] sm:$0xff]  ;;  %v6979_v38 = vpack.i.bf16 %v4119_v19, %v11550_v56  ;;  %v11647_v1 = vsel %vm385_vm0, %v3992_v44, %v3993_v42  ;;  %v7187_v14 = vld [vmem:[%s14183_s20 + $0x10] sm:$0xff]   ;;  %5870 = vmatprep.subr.bf16.mxu1 %v14194_v57 }
 0x5b2   :  { %6965 = vrot.lane.b32.xlu1 %v6964_v48, %s7305_s2  ;;  %v4167_v25 = vmul.f32 %v11627_v0, %v14212_v15  ;;  %14214 = vst [vmem:[#allocation9_spill] sm:$0xff] %v11647_v1  ;;  %v11652_v61 = vmax.f32 %v3946_v22, 0.0  ;;  %v3949_v48 = vadd.f32 %v11318_v62, %v3948_v7  ;;  %v3950_v60 = vpop.f32.mrb[39].mxu0  ;;  %v14215_v15 = vld [vmem:[#allocation120_spill] sm:$0xff]  ;;  %4851 = vmatpush1.bf16.msra.mxu0 %v7186_v41  ;;  %v14216_v22 = vrot.slane %v11492_v47, 7 }
 0x5b3   :  { %6915 = vrot.lane.b32.xlu0 %v14209_v13, %s7299_s23  ;;  %v14213_v13 = vld [vmem:[#allocation24_spill] sm:$0xff]  ;;  %v11657_v19 = vmul.f32 %v11647_v1, %v14215_v15  ;;  %v14218_v60 = vld [vmem:[#allocation78_spill] sm:$0xff]  ;;  %5879 = vmatpush1.bf16.msra.mxu1 %v7187_v14 }
 0x5b4   :  { %v11643_v11 = vmul.f32 %v11627_v0, %v14213_v13  ;;  %v4743_v13 = vpack.c.bf16 %v4167_v25, %v4166_v51  ;;  %v11668_v7 = vsel %vm385_vm0, %v14216_v22, %v3992_v44  ;;  %v11672_v15 = vmul.f32 %v11647_v1, %v14218_v60  ;;  %5871 = vmatprep.subr.bf16.mxu1 %v14194_v57  ;;  %v7188_v25 = vld [vmem:[%s14183_s20 + $0x18] sm:$0xff]  }
 0x5b5   :  { %14217 = vst [vmem:[#allocation15_spill] sm:$0xff] %v11668_v7  ;;  %v3994_v56 = vrot.slane %v11652_v61, 7  ;;  %v4058_v40 = vrot.slane %v11652_v61, 1  ;;  %v11676_v41 = vmax.f32 %v3949_v48, 0.0  ;;  %v14220_v51 = vpack.i.bf16 %v11413_v12, %v11406_v49  ;;  %v14223_v49 = vld [vmem:[#allocation123_spill] sm:$0xff]  ;;  %4852 = vmatprep.subr.bf16.mxu0 %v14194_v57 }
 0x5b6   :  { %v6989_v2 = vpack.i.bf16 %v11643_v11, %v11618_v20  ;;  %14219 = vst [vmem:[#allocation146_spill] sm:$0xff] %v11672_v15  ;;  %v14221_v20 = vld [vmem:[#allocation138_spill] sm:$0xff]  ;;  %5813 = vmatprep.mubr.msk.bf16.mxu1 %vm1251_vm3, %v4743_v13  ;;  %6975 = vrot.lane.b32.xlu1 %v6974_v36, %s7295_s24  ;;  %v14222_v11 = vld [vmem:[#allocation77_spill] sm:$0xff]  ;;  %v11698_v12 = vmul.f32 %v11668_v7, %v14223_v49  ;;  %v14224_v22 = vld [vmem:[#allocation79_spill] sm:$0xff] }
 0x5b7   :  { %6920 = vrot.lane.b32.xlu0 %v14220_v51, %s7305_s2  ;;  %v11684_v44 = vmul.f32 %v11652_v61, %v14221_v20  ;;  %v11694_v48 = vmul.f32 %v11652_v61, %v14222_v11  ;;  %v11702_v60 = vmul.f32 %v11668_v7, %v14224_v22  ;;  %v3995_v51 = vrot.slane %v11676_v41, 7  ;;  %v3953_v11 = vpop.f32.mrb[40].mxu0  ;;  %5880 = vmatpush1.bf16.msra.mxu1 %v7188_v25  ;;  %v14228_v49 = vld [vmem:[#allocation87_spill] sm:$0xff] }
 0x5b8   :  { %v4059_v20 = vrot.slane %v11676_v41, 1  ;;  %v11715_v22 = vsel %vm385_vm0, %v3993_v42, %v3994_v56  ;;  %v11719_v1 = vsel %vm1689_vm11, %v4057_v28, %v4058_v40  ;;  %v3955_v36 = vpop.f32.mrb[41].mxu0  ;;  %v14227_v7 = vpack.i.bf16 %v11420_v6, %v11416_v58  ;;  %v14232_v6 = vld [vmem:[#allocation80_spill] sm:$0xff]  ;;  %5872 = vmatprep.subr.bf16.mxu1 %v14194_v57  ;;  %4853 = vmatpush1.bf16.msra.mxu0 %v7187_v14  ;;  %v14242_v15 = vld [vmem:[#allocation59_spill] sm:$0xff] }
 0x5b9   :  { %14225 = vst [vmem:[#allocation16_spill] sm:$0xff] %v11702_v60  ;;  %v6999_v13 = vpack.i.bf16 %v11684_v44, %v11631_v16  ;;  %14226 = vst [vmem:[#allocation22_spill] sm:$0xff] %v11715_v22  ;;  %v3954_v44 = vadd.f32 %v11318_v62, %v3953_v11  ;;  %v11730_v42 = vmul.f32 %v11715_v22, %v14228_v49  ;;  %v3956_v10 = vpop.f32.mrb[42].mxu0  ;;  %v14230_v36 = vld [vmem:[#allocation37_spill] sm:$0xff]  ;;  %4854 = vmatprep.subr.bf16.mxu0 %v14194_v57 }
 0x5ba   :  { %v11734_v28 = vsel %vm1689_vm11, %v4058_v40, %v4059_v20  ;;  %v11738_v16 = vmul.f32 %v11719_v1, %v14229_v59  ;;  %6980 = vrot.lane.b32.xlu1 %v6979_v38, %s7307_s28  ;;  %v11747_v58 = vsel %vm385_vm0, %v3994_v56, %v3995_v51  ;;  %v3957_v49 = vadd.f32 %v11318_v62, %v3956_v10  ;;  %v3958_v38 = vpop.f32.mrb[43].mxu0  ;;  %v7189_v56 = vld [vmem:[%s14183_s20 + $0x20] sm:$0xff]  }
 0x5bb   :  { %6925 = vrot.lane.b32.xlu0 %v14227_v7, %s7297_s30  ;;  %v11743_v11 = vmul.f32 %v11734_v28, %v14230_v36  ;;  %14231 = vst [vmem:[#allocation147_spill] sm:$0xff] %v11747_v58  ;;  %v11751_v7 = vmul.f32 %v11715_v22, %v14232_v6  ;;  %v11755_v59 = vmax.f32 %v3954_v44, 0.0  ;;  %v11762_v50 = vmul.f32 %v11747_v58, %v14234_v31  ;;  %v14235_v6 = vld [vmem:[#allocation104_spill] sm:$0xff]  ;;  %v14236_v38 = vld [vmem:[#allocation131_spill] sm:$0xff]  ;;  %v14249_v44 = vld [vmem:[#allocation97_spill] sm:$0xff] }
 0x5bc   :  { %v11772_v10 = vmul.f32 %v11676_v41, %v14235_v6  ;;  %v11776_v40 = vmul.f32 %v11627_v0, %v14236_v38  ;;  %v14237_v31 = vld [vmem:[#allocation132_spill] sm:$0xff]  ;;  %v11785_v52 = vmax.f32 %v3957_v49, 0.0  ;;  %v14238_v6 = vpack.i.bf16 %v11439_v46, %v11435_v17  ;;  %5881 = vmatpush1.bf16.msra.mxu1 %v7189_v56  ;;  %v14240_v49 = vld [vmem:[#allocation82_spill] sm:$0xff]  ;;  %4855 = vmatpush1.bf16.msra.mxu0 %v7188_v25  ;;  %v14243_v0 = vld [vmem:[#allocation21_spill] sm:$0xff] }
 0x5bd   :  { %14233 = vst [vmem:[#allocation17_spill] sm:$0xff] %v11755_v59  ;;  %v11780_v36 = vmul.f32 %v11719_v1, %v14237_v31  ;;  %v3996_v22 = vrot.slane %v11755_v59, 7  ;;  %v4060_v14 = vrot.slane %v11755_v59, 1  ;;  %v14239_v38 = vld [vmem:[#allocation40_spill] sm:$0xff]  ;;  %v11802_v60 = vmul.f32 %v11676_v41, %v14240_v49  ;;  %5873 = vmatprep.subr.bf16.mxu1 %v14194_v57  ;;  %v7190_v49 = vld [vmem:[%s14183_s20 + $0x28] sm:$0xff]   ;;  %4856 = vmatprep.subr.bf16.mxu0 %v14194_v57 }
 0x5be   :  { %6990 = vrot.lane.b32.xlu1 %v6989_v2, %s7292_s3  ;;  %v11796_v31 = vmul.f32 %v11755_v59, %v14239_v38  ;;  %v11806_v17 = vmul.f32 %v11755_v59, %v14242_v15  ;;  %v11826_v2 = vmul.f32 %v11734_v28, %v14243_v0  ;;  %v14245_v46 = vld [vmem:[#allocation88_spill] sm:$0xff]  ;;  %v14247_v25 = vpack.i.bf16 %v11459_v32, %v11449_v54  ;;  %v14252_v59 = vld [vmem:[#allocation70_spill] sm:$0xff]  ;;  %v14262_v54 = vld [vmem:[#allocation93_spill] sm:$0xff] }
 0x5bf   :  { %6930 = vrot.lane.b32.xlu0 %v14238_v6, %s7307_s28  ;;  %14241 = vst [vmem:[#allocation64_spill] sm:$0xff] %v11802_v60  ;;  %v11814_v38 = vsel %vm1689_vm11, %v4059_v20, %v4060_v14  ;;  %v11839_v15 = vsel %vm385_vm0, %v3995_v51, %v3996_v22  ;;  %v11843_v6 = vmul.f32 %v11747_v58, %v14249_v44  ;;  %v14251_v0 = vrot.slane %v11785_v52, 1  ;;  %v14254_v32 = vld [vmem:[#allocation122_spill] sm:$0xff]  ;;  %v14256_v44 = vld [vmem:[#allocation41_spill] sm:$0xff] }
 0x5c0   :  { %14244 = vst [vmem:[#allocation57_spill] sm:$0xff] %v11826_v2  ;;  %v11830_v20 = vmul.f32 %v11814_v38, %v14245_v46  ;;  %14248 = vst [vmem:[#allocation69_spill] sm:$0xff] %v11839_v15  ;;  %v11853_v60 = vmul.f32 %v11814_v38, %v14252_v59  ;;  %v11860_v51 = vmul.f32 %v11839_v15, %v14254_v32  ;;  %v14260_v58 = vld [vmem:[#allocation86_spill] sm:$0xff]  ;;  %5882 = vmatpush1.bf16.msra.mxu1 %v7190_v49 }
 0x5c1   :  { %14250 = vst [vmem:[#allocation38_spill] sm:$0xff] %v11843_v6  ;;  %v11849_v46 = vsel %vm1689_vm11, %v4060_v14, %v14251_v0  ;;  %v14258_v14 = vrot.slane %v11785_v52, 7  ;;  %v11883_v32 = vld [vmem:[%s14183_s20 + $0x30] sm:$0xff]   ;;  %5874 = vmatprep.subr.bf16.mxu1 %v14194_v57  ;;  %4857 = vmatpush1.bf16.msra.mxu0 %v7189_v56 }
 0x5c2   :  { %14246 = vst [vmem:[#allocation65_spill] sm:$0xff] %v11830_v20  ;;  %14253 = vst [vmem:[#allocation60_spill] sm:$0xff] %v11853_v60  ;;  %7000 = vrot.lane.b32.xlu1 %v6999_v13, %s7305_s2  ;;  %v3961_v59 = vpop.f32.mrb[44].mxu0  ;;  %v11874_v13 = vmul.f32 %v11839_v15, %v14260_v58  ;;  %v14264_v15 = vpack.i.bf16 %v11467_v43, %v11463_v55  ;;  %v14266_v58 = vld [vmem:[#allocation50_spill] sm:$0xff]  ;;  %4858 = vmatprep.subr.bf16.mxu0 %v14194_v57 }
 0x5c3   :  { %6935 = vrot.lane.b32.xlu0 %v14247_v25, %s7306_s4  ;;  %14255 = vst [vmem:[#allocation54_spill] sm:$0xff] %v11860_v51  ;;  %v11864_v25 = vmul.f32 %v11849_v46, %v14256_v44  ;;  %v11870_v0 = vsel %vm385_vm0, %v3996_v22, %v14258_v14  ;;  %v3962_v44 = vadd.f32 %v11318_v62, %v3961_v59  ;;  %v3963_v20 = vpop.f32.mrb[45].mxu0  ;;  %v14267_v55 = vld [vmem:[#allocation14_spill] sm:$0xff] }
 0x5c4   :  { %14259 = vst [vmem:[#allocation18_spill] sm:$0xff] %v11870_v0  ;;  %14261 = vst [vmem:[#allocation23_spill] sm:$0xff] %v11874_v13  ;;  %v11878_v2 = vmul.f32 %v11870_v0, %v14262_v54  ;;  %v3964_v54 = vpop.f32.mrb[46].mxu0  ;;  %v14265_v14 = vpack.i.bf16 %v11694_v48, %v11635_v8  ;;  %v11908_v39 = vmul.f32 %v11321_v5, %v14266_v58  ;;  %5883 = vmatpush1.bf16.msra.mxu1 %v11883_v32  ;;  %v11930_v48 = vld [vmem:[%s14183_s20 + $0x38] sm:$0xff]   ;;  %v14280_v13 = vld [vmem:[#allocation133_spill] sm:$0xff] }
 0x5c5   :  { %14257 = vst [vmem:[#allocation63_spill] sm:$0xff] %v11864_v25  ;;  %v11899_v59 = vmax.f32 %v3962_v44, 0.0  ;;  %v3965_v22 = vadd.f32 %v11318_v62, %v3964_v54  ;;  %v3966_v6 = vpop.f32.mrb[47].mxu0  ;;  %v11912_v43 = vmul.f32 %v11333_v21, %v14267_v55  ;;  %v14269_v62 = vld [vmem:[#allocation149_spill] sm:$0xff]  ;;  %v14271_v54 = vld [vmem:[#allocation150_spill] sm:$0xff]  ;;  %v14272_v55 = vld [vmem:[#allocation43_spill] sm:$0xff]  ;;  %5875 = vmatprep.subr.bf16.mxu1 %v14194_v57  ;;  %4859 = vmatpush1.bf16.msra.mxu0 %v7190_v49 }
 0x5c6   :  { %14263 = vst [vmem:[#allocation33_spill] sm:$0xff] %v11878_v2  ;;  %7005 = vrot.lane.b32.xlu1 %v14265_v14, %s7297_s30  ;;  %v11920_v6 = vmul.f32 %v11785_v52, %v14269_v62  ;;  %v11924_v8 = vmul.f32 %v11321_v5, %v14271_v54  ;;  %v14274_v62 = vpack.i.bf16 %v11492_v47, %v11469_v35  ;;  %v14275_v54 = vld [vmem:[#allocation84_spill] sm:$0xff]  ;;  %v14284_v25 = vld [vmem:[#allocation145_spill] sm:$0xff] }
 0x5c7   :  { %6940 = vrot.lane.b32.xlu0 %v14264_v15, %s7292_s3  ;;  %v14268_v15 = vld [vmem:[#allocation55_spill] sm:$0xff]  ;;  %v3998_v56 = vrot.slane %v11899_v59, 7  ;;  %v4062_v58 = vrot.slane %v11899_v59, 1  ;;  %v11934_v14 = vmax.f32 %v3965_v22, 0.0  ;;  %v11948_v20 = vmul.f32 %v11785_v52, %v14275_v54  ;;  %4860 = vmatprep.subr.bf16.mxu0 %v14194_v57 }
 0x5c8   :  { %v11916_v44 = vmul.f32 %v11339_v24, %v14268_v15  ;;  %14270 = vst [vmem:[#allocation20_spill] sm:$0xff] %v11920_v6  ;;  %v11938_v15 = vmul.f32 %v11899_v59, %v14272_v55  ;;  %v14277_v24 = vld [vmem:[#allocation89_spill] sm:$0xff]  ;;  %v11956_v55 = vmul.f32 %v11849_v46, %v14279_v26  ;;  %v11960_v2 = vmul.f32 %v11870_v0, %v14280_v13 }
 0x5c9   :  { %14276 = vst [vmem:[#allocation27_spill] sm:$0xff] %v11948_v20  ;;  %v11952_v22 = vmul.f32 %v11899_v59, %v14277_v24  ;;  %v3999_v60 = vrot.slane %v11934_v14, 7  ;;  %v4063_v35 = vrot.slane %v11934_v14, 1  ;;  %v14281_v47 = vpack.i.bf16 %v11676_v41, %v11652_v61  ;;  %5884 = vmatpush1.bf16.msra.mxu1 %v11930_v48  ;;  %v14288_v26 = vld [vmem:[#allocation13_spill] sm:$0xff]  ;;  %4861 = vmatpush1.bf16.msra.mxu0 %v11883_v32 }
 0x5ca   :  { %14273 = vst [vmem:[#allocation26_spill] sm:$0xff] %v11938_v15  ;;  %v14283_v54 = vrot.slane %v11785_v52, 1  ;;  %v11982_v61 = vmul.f32 %v11934_v14, %v14284_v25  ;;  %v14285_v41 = vrot.slane %v11785_v52, 7  ;;  %v14287_v13 = vrot.slane %v11321_v5, 7  ;;  %5876 = vmatprep.subr.bf16.mxu1 %v14194_v57  ;;  %v14292_v6 = vld [vmem:[#allocation45_spill] sm:$0xff]  ;;  %4862 = vmatprep.subr.bf16.mxu0 %v14194_v57 }
 0x5cb   :  { %6950 = vrot.lane.b32.xlu0 %v14274_v62, %s7295_s24  ;;  %14278 = vst [vmem:[#allocation72_spill] sm:$0xff] %v11952_v22  ;;  %7010 = vrot.lane.b32.xlu1 %v14281_v47, %s7295_s24  ;;  %v14282_v62 = vld [vmem:[#allocation47_spill] sm:$0xff]  ;;  %v14289_v49 = vpack.i.bf16 %v11558_v33, %v11554_v53  ;;  %v14291_v22 = vld [vmem:[#allocation61_spill] sm:$0xff]  ;;  %v14293_v51 = vpack.i.bf16 %v11730_v42, %v11657_v19  ;;  %v14295_v42 = vld [vmem:[#allocation30_spill] sm:$0xff] }
 0x5cc   :  { %v11970_v24 = vmul.f32 %v11934_v14, %v14282_v62  ;;  %v4065_v0 = vsel %vm1689_vm11, %v14283_v54, %v4062_v58  ;;  %v11988_v47 = vsel %vm385_vm0, %v14285_v41, %v3998_v56  ;;  %v14286_v62 = vrot.slane %v11321_v5, 1  ;;  %v7193_v41 = vld [vmem:[%s14183_s20 + $0x40] sm:$0xff]   ;;  %v14296_v53 = vld [vmem:[#allocation95_spill] sm:$0xff]  ;;  %s7308_s20 = smov [#allocation6]  }
 0x5cd   :  { %v12001_v25 = vsel %vm385_vm0, %v3999_v60, %v14287_v13  ;;  %v12004_v20 = vmul.f32 %v4065_v0, %v14288_v26  ;;  %v12021_v15 = vmul.f32 %v11988_v47, %v14292_v6  ;;  %5885 = vmatpush1.bf16.msra.mxu1 %v7193_v41  ;;  %v12045_v33 = vsel %vm385_vm0, %v3998_v56, %v3999_v60  ;;  %s5736_s17 = sshll.u32 %s7308_s20, 4  ;;  %s5737_s17 = int_to_ptr.vmem [resolvable:$true] %s5736_s17 }
 0x5ce   :  { %v4079_v54 = vsel %vm1689_vm11, %v4063_v35, %v14286_v62  ;;  %v14290_v62 = vld [vmem:[#allocation19_spill] sm:$0xff]  ;;  %v4096_v13 = vmul.f32 %v12001_v25, %v14291_v22  ;;  %v4064_v22 = vsel %vm1689_vm11, %v4062_v58, %v4063_v35  ;;  %v12049_v58 = vmul.f32 %v11988_v47, %v14296_v53  ;;  %4863 = vmatpush1.bf16.msra.mxu0 %v11930_v48  ;;  %v14315_v48 = vld [vmem:[#allocation16_spill] sm:$0xff]  ;;  %s7262_s26 = scalar_lea.vmem %s5737_s17, 2048  ;;  %p7267_p6 = scmp.lt.s32.totalorder %s5737_s17, %s5737_s17 }
 0x5cf   :  { %6955 = vrot.lane.b32.xlu0 %v14289_v49, %s7292_s3  ;;  %v4080_v5 = vmul.f32 %v4079_v54, %v14290_v62  ;;  %7020 = vrot.lane.b32.xlu1 %v14293_v51, %s7306_s4  ;;  %v14294_v49 = vld [vmem:[#allocation134_spill] sm:$0xff]  ;;  %v7089_v19 = vpack.i.bf16 %v12021_v15, %v11960_v2  ;;  %v12041_v51 = vmul.f32 %v4064_v22, %v14295_v42  ;;  %v14305_v42 = vld [vmem:[#allocation35_spill] sm:$0xff]  ;;  %p7263_p5 = scmp.ne.s32.totalorder %s5737_s17, %s7262_s26  ;;  %p7268_p7 = scmp.lt.s32.totalorder %s7262_s26, %s7262_s26 }
 0x5d0   :  { %v12034_v62 = vmul.f32 %v4065_v0, %v14294_v49  ;;  %v7099_v26 = vpack.i.bf16 %v11916_v44, %v4096_v13  ;;  %v12052_v35 = vmul.f32 %v4064_v22, %v13937_v9  ;;  %v14297_v2 = vpack.i.bf16 %v11596_v63, %v11566_v4  ;;  %v14298_v44 = vld [vmem:[#allocation90_spill] sm:$0xff]  ;;  %v14300_v63 = vld [vmem:[#allocation161_spill] sm:$0xff]  ;;  %v14301_v13 = vld [vmem:[#allocation91_spill] sm:$0xff]  ;;  %4864 = vmatprep.subr.bf16.mxu0 %v14194_v57 }
 0x5d1   :  { %v7094_v6 = vpack.i.bf16 %v11912_v43, %v4080_v5  ;;  %v12055_v43 = vmul.f32 %v4079_v54, %v13939_v34  ;;  %v4111_v56 = vmul.f32 %v12045_v33, %v14298_v44  ;;  %v4142_v9 = vmul.f32 %v12045_v33, %v14115_v3  ;;  %v14319_v57 = vld [vmem:[#allocation64_spill] sm:$0xff]  ;;  %p7269_p8 = por %p7268_p7, %p7267_p6 }
 0x5d2   :  { %v7134_v60 = vpack.i.bf16 %v12041_v51, %v12034_v62  ;;  %v4143_v34 = vmul.f32 %v12001_v25, %v14116_v45  ;;  %v14299_v15 = vpack.i.bf16 %v11743_v11, %v11738_v16  ;;  %v12078_v5 = vmul.f32 %v11719_v1, %v14300_v63  ;;  %v14302_v16 = vld [vmem:[#allocation85_spill] sm:$0xff]  ;;  %v14303_v62 = vld [vmem:[#allocation92_spill] sm:$0xff]  ;;  %4865 = vmatpush1.bf16.msra.mxu0 %v7193_v41 }
 0x5d3   :  { %6970 = vrot.lane.b32.xlu0 %v14297_v2, %s7297_s30  ;;  %v7144_v4 = vpack.i.bf16 %v12055_v43, %v12052_v35  ;;  %v12082_v53 = vmul.f32 %v11734_v28, %v14301_v13  ;;  %v7139_v3 = vpack.i.bf16 %v4111_v56, %v12049_v58  ;;  %v12090_v11 = vmul.f32 %v11814_v38, %v14302_v16  ;;  %v14306_v51 = vld [vmem:[#allocation153_spill] sm:$0xff]  ;;  %v14307_v35 = vld [vmem:[#allocation154_spill] sm:$0xff]  ;;  %v14308_v43 = vld [vmem:[#allocation148_spill] sm:$0xff]  ;;  %p7270_p9 = pnand %p7269_p8, %p7263_p5 }
 0x5d4   :  { %7025 = vrot.lane.b32.xlu1 %v14299_v15, %s7292_s3  ;;  %v7149_v49 = vpack.i.bf16 %v4143_v34, %v4142_v9  ;;  %v12094_v1 = vmul.f32 %v11849_v46, %v14303_v62  ;;  %v14304_v28 = vpack.i.bf16 %v11698_v12, %v11570_v30  ;;  %v12102_v32 = vmul.f32 %v4065_v0, %v14305_v42  ;;  %v14310_v12 = vld [vmem:[#allocation151_spill] sm:$0xff]  ;;  %v14313_v56 = vld [vmem:[#allocation129_spill] sm:$0xff]  ;;  %v14328_v16 = vld [vmem:[#allocation38_spill] sm:$0xff] }
 0x5d5   :  { %v4745_v45 = vpack.c.bf16 %v12082_v53, %v12078_v5  ;;  %v12105_v58 = vmul.f32 %v4064_v22, %v14306_v51  ;;  %v12109_v38 = vmul.f32 %v11428_v37, %v14307_v35  ;;  %v12113_v46 = vmul.f32 %v11453_v18, %v14308_v43  ;;  %v14311_v22 = vld [vmem:[#allocation158_spill] sm:$0xff]  ;;  %v14336_v51 = vld [vmem:[#allocation155_spill] sm:$0xff]  ;;  %v14337_v35 = vld [vmem:[#allocation124_spill] sm:$0xff] }
 0x5d6   :  { %v14309_v2 = vpack.i.bf16 %v11762_v50, %v11751_v7  ;;  %v4747_v30 = vpack.c.bf16 %v12094_v1, %v12090_v11  ;;  %v12123_v0 = vmul.f32 %v11528_v27, %v14310_v12  ;;  %v12127_v37 = vmul.f32 %v11544_v23, %v14311_v22  ;;  %v14312_v7 = vld [vmem:[#allocation152_spill] sm:$0xff]  ;;  %v14314_v23 = vld [vmem:[#allocation146_spill] sm:$0xff] }
 0x5d7   :  { %6985 = vrot.lane.b32.xlu0 %v14304_v28, %s7306_s4  ;;  %v4749_v18 = vpack.c.bf16 %v12105_v58, %v12102_v32  ;;  %v4739_v50 = vpack.c.bf16 %v12113_v46, %v12109_v38  ;;  %v12135_v44 = vmul.f32 %v4079_v54, %v14312_v7  ;;  %v12139_v9 = vmul.f32 %v11333_v21, %v14313_v56  ;;  %v14342_v22 = vld [vmem:[#allocation12_spill] sm:$0xff]  ;;  %v14343_v7 = vld [vmem:[#allocation142_spill] sm:$0xff] }
 0x5d8   :  { %7030 = vrot.lane.b32.xlu1 %v14309_v2, %s7299_s23  ;;  %v4741_v27 = vpack.c.bf16 %v12127_v37, %v12123_v0  ;;  %v14316_v34 = vpack.i.bf16 %v14314_v23, %v14315_v48  ;;  %v14317_v54 = vpack.i.bf16 %v11796_v31, %v11772_v10  ;;  %v14318_v21 = vpack.i.bf16 %v11780_v36, %v11776_v40  ;;  %v14322_v10 = vld [vmem:[#allocation17_spill] sm:$0xff]  ;;  %v14340_v2 = vld [vmem:[#allocation23_spill] sm:$0xff]  ;;  %v14345_v23 = vld [vmem:[#allocation26_spill] sm:$0xff] }
 0x5d9   :  { %v4751_v15 = vpack.c.bf16 %v12139_v9, %v12135_v44  ;;  %v14320_v63 = vpack.i.bf16 %v11806_v17, %v14319_v57  ;;  %v14321_v13 = vpack.i.bf16 %v11908_v39, %v11970_v24  ;;  %v14323_v31 = vpack.i.bf16 %v11785_v52, %v14322_v10  ;;  %v14324_v40 = vld [vmem:[#allocation65_spill] sm:$0xff]  ;;  %v14327_v17 = vld [vmem:[#allocation54_spill] sm:$0xff]  ;;  %v14331_v24 = vld [vmem:[#allocation39_spill] sm:$0xff] }
 0x5da   :  { %v14325_v36 = vld [vmem:[#allocation57_spill] sm:$0xff]  ;;  %v14329_v62 = vpack.i.bf16 %v14327_v17, %v14328_v16  ;;  %v14333_v52 = vld [vmem:[#allocation63_spill] sm:$0xff]  ;;  %v14338_v43 = vpack.i.bf16 %v14336_v51, %v14337_v35  ;;  %v14344_v56 = vpack.i.bf16 %v14342_v22, %v14343_v7  ;;  %v14346_v48 = vld [vmem:[#allocation20_spill] sm:$0xff]  ;;  %v14358_v17 = vpack.i.bf16 %v11924_v8, %v11982_v61 }
 0x5db   :  { %6995 = vrot.lane.b32.xlu0 %v14316_v34, %s7299_s23  ;;  %v14326_v41 = vpack.i.bf16 %v14324_v40, %v14325_v36  ;;  %v14330_v39 = vld [vmem:[#allocation105_spill] sm:$0xff]  ;;  %v14347_v34 = vpack.i.bf16 %v14345_v23, %v14346_v48  ;;  %v14355_v40 = vld [vmem:[#allocation143_spill] sm:$0xff]  ;;  %v14359_v16 = vpack.i.bf16 %v11934_v14, %v11899_v59 }
 0x5dc   :  { %7035 = vrot.lane.b32.xlu1 %v14317_v54, %s7305_s2  ;;  %v14332_v28 = vpack.i.bf16 %v14330_v39, %v14331_v24  ;;  %v14348_v54 = vld [vmem:[#allocation48_spill] sm:$0xff]  ;;  %v14360_v35 = vld [vmem:[#allocation99_spill] sm:$0xff] }
 0x5df   :  { %7015 = vrot.lane.b32.xlu0 %v14318_v21, %s7307_s28  ;;  %v14349_v21 = vld [vmem:[#allocation108_spill] sm:$0xff] }
 0x5e0   :  { %7040 = vrot.lane.b32.xlu1 %v14320_v63, %s7297_s30  ;;  %v14350_v57 = vpack.i.bf16 %v14348_v54, %v14349_v21  ;;  %v14351_v63 = vld [vmem:[#allocation72_spill] sm:$0xff] }
 0x5e3   :  { %7080 = vrot.lane.b32.xlu0 %v14321_v13, %s7297_s30  ;;  %v14352_v13 = vld [vmem:[#allocation27_spill] sm:$0xff] }
 0x5e4   :  { %7045 = vrot.lane.b32.xlu1 %v14323_v31, %s7295_s24  ;;  %v14353_v10 = vpack.i.bf16 %v14351_v63, %v14352_v13  ;;  %v14354_v31 = vld [vmem:[#allocation51_spill] sm:$0xff] }
 0x5e5   :  { %v14356_v36 = vpack.i.bf16 %v14354_v31, %v14355_v40 }
 0x5e7   :  { %7095 = vrot.lane.b32.xlu0 %v7094_v6, %s7292_s3  ;;  %v14334_v6 = vld [vmem:[#allocation60_spill] sm:$0xff] }
 0x5e8   :  { %7050 = vrot.lane.b32.xlu1 %v14326_v41, %s7307_s28  ;;  %v14335_v42 = vpack.i.bf16 %v14333_v52, %v14334_v6  ;;  %v14357_v41 = vpack.i.bf16 %v12004_v20, %v11956_v55 }
 0x5eb   :  { %7100 = vrot.lane.b32.xlu0 %v7099_v26, %s7299_s23  ;;  %v14339_v26 = vld [vmem:[#allocation33_spill] sm:$0xff] }
 0x5ec   :  { %7055 = vrot.lane.b32.xlu1 %v14329_v62, %s7306_s4  ;;  %v14341_v12 = vpack.i.bf16 %v14339_v26, %v14340_v2  ;;  %v14362_v2 = vld [vmem:[#allocation101_spill] sm:$0xff] }
 0x5ef   :  { %7105 = vrot.lane.b32.xlu0 %v14332_v28, %s7299_s23 }
 0x5f0   :  { %7060 = vrot.lane.b32.xlu1 %v14335_v42, %s7292_s3 }
 0x5f3   :  { %7110 = vrot.lane.b32.xlu0 %v14338_v43, %s7295_s24  ;;  %v14361_v43 = vld [vmem:[#allocation159_spill] sm:$0xff] }
 0x5f4   :  { %7065 = vrot.lane.b32.xlu1 %v14341_v12, %s7299_s23  ;;  %v4018_v26 = vmul.f32 %v14361_v43, %v14360_v35  ;;  %v14363_v12 = vld [vmem:[#allocation83_spill] sm:$0xff] }
 0x5f5   :  { %v4019_v22 = vmul.f32 %v14363_v12, %v14362_v2 }
 0x5f7   :  { %7115 = vrot.lane.b32.xlu0 %v14344_v56, %s7307_s28 }
 0x5f8   :  { %7070 = vrot.lane.b32.xlu1 %v14347_v34, %s7305_s2 }
 0x5fb   :  { %7125 = vrot.lane.b32.xlu0 %v14350_v57, %s7306_s4 }
 0x5fc   :  { %7075 = vrot.lane.b32.xlu1 %v14353_v10, %s7297_s30 }
 0x5ff   :  { %7130 = vrot.lane.b32.xlu0 %v14356_v36, %s7305_s2 }
 0x600   :  { %7085 = vrot.lane.b32.xlu1 %v14357_v41, %s7307_s28 }
 0x602   :  { %v12229_v62 = vpop.permute.xlu0 %6880 }
 0x603   :  { %7155 = vrot.lane.b32.xlu0 %v14358_v17, %s7305_s2 }
 0x604   :  { %7090 = vrot.lane.b32.xlu1 %v7089_v19, %s7306_s4 }
 0x608   :  { %7120 = vrot.lane.b32.xlu1 %v14359_v16, %s7295_s24 }
 0x60a   :  { %v12232_v39 = vpop.permute.xlu0 %6885 }
 0x60c   :  { %7135 = vrot.lane.b32.xlu1 %v7134_v60, %s7292_s3 }
 0x60e   :  { %v6891_v20 = vpop.permute.xlu0 %6890 }
 0x60f   :  { %v6892_v6 = vunpack.i.l.bf16 %v6891_v20 }
 0x610   :  { %7140 = vrot.lane.b32.xlu1 %v7139_v3, %s7299_s23  ;;  %v6893_v3 = vunpack.i.h.bf16 %v6891_v20 }
 0x611   :  { %v4626_v23 = vsel %vm1251_vm3, %v4018_v26, %v6892_v6 }
 0x612   :  { %v6896_v8 = vpop.permute.xlu0 %6895  ;;  %v4627_v48 = vsel %vm1251_vm3, %v4019_v22, %v6893_v3 }
 0x613   :  { %v6898_v40 = vunpack.i.h.bf16 %v6896_v8  ;;  %v6897_v36 = vunpack.i.l.bf16 %v6896_v8 }
 0x614   :  { %7145 = vrot.lane.b32.xlu1 %v7144_v4, %s7307_s28  ;;  %s5828_s28 = sld [smem:[#allocation3 + $0x2]] }
 0x616   :  { %v12237_v55 = vpop.permute.xlu0 %6900 }
 0x618   :  { %7150 = vrot.lane.b32.xlu1 %v7149_v49, %s7306_s4 }
 0x61a   :  { %v6946_v59 = vpop.permute.xlu1 %6945 }
 0x61b   :  { %v12239_v61 = vpop.permute.xlu0 %6905 }
 0x620   :  { %v12241_v19 = vpop.permute.xlu1 %6960 }
 0x621   :  { %v6911_v14 = vpop.permute.xlu0 %6910 }
 0x622   :  { %v6913_v42 = vunpack.i.h.bf16 %v6911_v14  ;;  %v6912_v49 = vunpack.i.l.bf16 %v6911_v14 }
 0x624   :  { %v12243_v60 = vpop.permute.xlu1 %6965  ;;  %v4642_v54 = vsel %vm1285_vm5, %v4626_v23, %v6912_v49  ;;  %v4643_v21 = vsel %vm1285_vm5, %v4627_v48, %v6913_v42  ;;  %v6947_v23 = vunpack.i.l.bf16 %v6946_v59  ;;  %v14364_v48 = vld [vmem:[#allocation100_spill] sm:$0xff] }
 0x625   :  { %v6916_v24 = vpop.permute.xlu0 %6915 }
 0x626   :  { %v6918_v7 = vunpack.i.h.bf16 %v6916_v24  ;;  %v6917_v56 = vunpack.i.l.bf16 %v6916_v24 }
 0x628   :  { %v12245_v52 = vpop.permute.xlu1 %6975  ;;  %v4659_v63 = vsel %vm1319_vm7, %v4643_v21, %v6918_v7  ;;  %v4658_v13 = vsel %vm1319_vm7, %v4642_v54, %v6917_v56  ;;  %v6948_v56 = vunpack.i.h.bf16 %v6946_v59  ;;  %v14366_v21 = vld [vmem:[#allocation107_spill] sm:$0xff] }
 0x629   :  { %v6921_v28 = vpop.permute.xlu0 %6920  ;;  %v4674_v17 = vsel %vm1353_vm9, %v4658_v13, %v6897_v36  ;;  %v4675_v16 = vsel %vm1353_vm9, %v4659_v63, %v6898_v40  ;;  %v14367_v63 = vld [vmem:[#allocation139_spill] sm:$0xff] }
 0x62a   :  { %v6923_v3 = vunpack.i.h.bf16 %v6921_v28  ;;  %v6922_v6 = vunpack.i.l.bf16 %v6921_v28  ;;  %v4023_v13 = vmul.f32 %v14367_v63, %v14366_v21  ;;  %v14368_v63 = vld [vmem:[#allocation114_spill] sm:$0xff] }
 0x62c   :  { %v12249_v51 = vpop.permute.xlu1 %6980 }
 0x62d   :  { %v12247_v4 = vpop.permute.xlu0 %6925 }
 0x630   :  { %v12259_v57 = vpop.permute.xlu1 %6990 }
 0x631   :  { %v6931_v34 = vpop.permute.xlu0 %6930 }
 0x632   :  { %v6933_v10 = vunpack.i.h.bf16 %v6931_v34  ;;  %v6932_v31 = vunpack.i.l.bf16 %v6931_v34  ;;  %v14365_v34 = vld [vmem:[#allocation137_spill] sm:$0xff] }
 0x633   :  { %v4022_v54 = vmul.f32 %v14365_v34, %v14364_v48 }
 0x634   :  { %v12265_v24 = vpop.permute.xlu1 %7000  ;;  %v4691_v42 = vsel %vm2698_vm12, %v4675_v16, %v6933_v10  ;;  %v4690_v49 = vsel %vm2698_vm12, %v4674_v17, %v6932_v31  ;;  %v4631_v17 = vsel %vm1251_vm3, %v4023_v13, %v6948_v56  ;;  %v6963_v16 = vunpack.i.h.bf16 %v12241_v19  ;;  %v14369_v13 = vld [vmem:[#allocation127_spill] sm:$0xff] }
 0x635   :  { %v6936_v41 = vpop.permute.xlu0 %6935 }
 0x636   :  { %v6938_v20 = vunpack.i.h.bf16 %v6936_v41  ;;  %v6937_v14 = vunpack.i.l.bf16 %v6936_v41  ;;  %v4630_v41 = vsel %vm1251_vm3, %v4022_v54, %v6947_v23  ;;  %v6982_v54 = vunpack.i.l.bf16 %v12249_v51 }
 0x638   :  { %v4706_v35 = vsel %vm2715_vm13, %v4690_v49, %v6937_v14  ;;  %v4707_v43 = vsel %vm2715_vm13, %v4691_v42, %v6938_v20  ;;  %v12279_v12 = vpop.permute.xlu1 %7005  ;;  %v6962_v20 = vunpack.i.l.bf16 %v12241_v19  ;;  %v6983_v19 = vunpack.i.h.bf16 %v12249_v51 }
 0x639   :  { %v12271_v8 = vpop.permute.xlu0 %6940  ;;  %v12274_v26 = vsel %vm2732_vm14, %v4706_v35, %v6922_v6  ;;  %v12277_v2 = vsel %vm2732_vm14, %v4707_v43, %v6923_v3  ;;  %v7008_v5 = vunpack.i.h.bf16 %v12279_v12  ;;  %v7007_v53 = vunpack.i.l.bf16 %v12279_v12 }
 0x63a   :  { %v4738_v28 = vpack.c.bf16 %v12277_v2, %v12274_v26 }
 0x63d   :  { %v6951_v22 = vpop.permute.xlu0 %6950  ;;  %v12283_v7 = vpop.permute.xlu1 %7010 }
 0x63e   :  { %v6953_v49 = vunpack.i.h.bf16 %v6951_v22  ;;  %v6952_v35 = vunpack.i.l.bf16 %v6951_v22 }
 0x641   :  { %v6956_v10 = vpop.permute.xlu0 %6955  ;;  %v12289_v36 = vpop.permute.xlu1 %7020 }
 0x642   :  { %v6958_v31 = vunpack.i.h.bf16 %v6956_v10  ;;  %v6957_v40 = vunpack.i.l.bf16 %v6956_v10  ;;  %v4024_v10 = vmul.f32 %v14369_v13, %v14368_v63 }
 0x644   :  { %v4647_v59 = vsel %vm1285_vm5, %v4631_v17, %v6958_v31  ;;  %v4646_v14 = vsel %vm1285_vm5, %v4630_v41, %v6957_v40  ;;  %v14370_v31 = vld [vmem:[#allocation113_spill] sm:$0xff]  ;;  %v14371_v40 = vld [vmem:[#allocation15_spill] sm:$0xff] }
 0x645   :  { %v4663_v3 = vsel %vm1319_vm7, %v4647_v59, %v6963_v16  ;;  %v4662_v6 = vsel %vm1319_vm7, %v4646_v14, %v6962_v20  ;;  %v6971_v42 = vpop.permute.xlu0 %6970  ;;  %v4025_v41 = vmul.f32 %v14371_v40, %v14370_v31  ;;  %v6968_v20 = vunpack.i.h.bf16 %v12243_v60 }
 0x646   :  { %v12299_v43 = vpop.permute.xlu1 %7025  ;;  %v6973_v23 = vunpack.i.h.bf16 %v6971_v42  ;;  %v6972_v48 = vunpack.i.l.bf16 %v6971_v42  ;;  %v4678_v56 = vsel %vm1353_vm9, %v4662_v6, %v6952_v35  ;;  %v4679_v34 = vsel %vm1353_vm9, %v4663_v3, %v6953_v49 }
 0x647   :  { %v6967_v59 = vunpack.i.l.bf16 %v12243_v60  ;;  %v4694_v14 = vsel %vm2698_vm12, %v4678_v56, %v6982_v54  ;;  %v4695_v3 = vsel %vm2698_vm12, %v4679_v34, %v6983_v19  ;;  %v6993_v35 = vunpack.i.h.bf16 %v12259_v57 }
 0x648   :  { %v4633_v51 = vsel %vm1251_vm3, %v4025_v41, %v6973_v23  ;;  %v4632_v6 = vsel %vm1251_vm3, %v4024_v10, %v6972_v48  ;;  %v6977_v40 = vunpack.i.l.bf16 %v12245_v52  ;;  %v14372_v41 = vld [vmem:[#allocation117_spill] sm:$0xff] }
 0x649   :  { %v6986_v21 = vpop.permute.xlu0 %6985  ;;  %v4649_v48 = vsel %vm1285_vm5, %v4633_v51, %v6993_v35  ;;  %v7003_v51 = vunpack.i.h.bf16 %v12265_v24 }
 0x64a   :  { %v6988_v22 = vunpack.i.h.bf16 %v6986_v21  ;;  %v6987_v17 = vunpack.i.l.bf16 %v6986_v21  ;;  %v12309_v16 = vpop.permute.xlu1 %7030  ;;  %v6992_v21 = vunpack.i.l.bf16 %v12259_v57  ;;  %v6978_v57 = vunpack.i.h.bf16 %v12245_v52 }
 0x64b   :  { %v7023_v52 = vunpack.i.h.bf16 %v12289_v36 }
 0x64c   :  { %v4710_v42 = vsel %vm2715_vm13, %v4694_v14, %v6987_v17  ;;  %v4711_v49 = vsel %vm2715_vm13, %v4695_v3, %v6988_v22  ;;  %v4648_v23 = vsel %vm1285_vm5, %v4632_v6, %v6992_v21  ;;  %v14373_v22 = vld [vmem:[#allocation9_spill] sm:$0xff]  ;;  %v7002_v6 = vunpack.i.l.bf16 %v12265_v24 }
 0x64d   :  { %v4726_v63 = vsel %vm2732_vm14, %v4710_v42, %v6967_v59  ;;  %v4727_v60 = vsel %vm2732_vm14, %v4711_v49, %v6968_v20  ;;  %v6996_v13 = vpop.permute.xlu0 %6995  ;;  %v4026_v17 = vmul.f32 %v14373_v22, %v14372_v41  ;;  %v14374_v20 = vld [vmem:[#allocation58_spill] sm:$0xff]  ;;  %v7022_v21 = vunpack.i.l.bf16 %v12289_v36 }
 0x64e   :  { %v4742_v56 = vpack.c.bf16 %v4727_v60, %v4726_v63  ;;  %v6998_v54 = vunpack.i.h.bf16 %v6996_v13  ;;  %v6997_v34 = vunpack.i.l.bf16 %v6996_v13  ;;  %v12323_v19 = vpop.permute.xlu1 %7035  ;;  %v14375_v59 = vld [vmem:[#allocation22_spill] sm:$0xff]  ;;  %v7028_v13 = vunpack.i.h.bf16 %v12299_v43 }
 0x64f   :  { %v4027_v14 = vmul.f32 %v14375_v59, %v14374_v20  ;;  %v14376_v41 = vld [vmem:[#allocation98_spill] sm:$0xff] }
 0x650   :  { %v4664_v10 = vsel %vm1319_vm7, %v4648_v23, %v6997_v34  ;;  %v4665_v31 = vsel %vm1319_vm7, %v4649_v48, %v6998_v54  ;;  %4905 = vmatmul.mubr.bf16.vlgmr.msra.gmra.mrb[32].mxu1 %v4742_v56  ;;  %v7027_v56 = vunpack.i.l.bf16 %v12299_v43  ;;  %v7033_v23 = vunpack.i.h.bf16 %v12309_v16  ;;  %v14377_v20 = vld [vmem:[#allocation94_spill] sm:$0xff] }
 0x651   :  { %v7016_v3 = vpop.permute.xlu0 %7015  ;;  %5814 = vmatprep.mubr.msk.bf16.mxu1 %vm1251_vm3, %v4745_v45  ;;  %v4680_v63 = vsel %vm1353_vm9, %v4664_v10, %v6977_v40  ;;  %v4681_v60 = vsel %vm1353_vm9, %v4665_v31, %v6978_v57  ;;  %v7032_v48 = vunpack.i.l.bf16 %v12309_v16  ;;  %v4635_v40 = vsel %vm1251_vm3, %v4027_v14, %v7008_v5 }
 0x652   :  { %v7018_v42 = vunpack.i.h.bf16 %v7016_v3  ;;  %v7017_v49 = vunpack.i.l.bf16 %v7016_v3  ;;  %v12341_v35 = vpop.permute.xlu1 %7040  ;;  %v4634_v43 = vsel %vm1251_vm3, %v4026_v17, %v7007_v53  ;;  %v4016_v22 = vmul.f32 %v12045_v33, %v14376_v41 }
 0x653   :  { %v4017_v59 = vmul.f32 %v12001_v25, %v14377_v20  ;;  %v6883_v3 = vunpack.i.h.bf16 %v12229_v62  ;;  %v6882_v16 = vunpack.i.l.bf16 %v12229_v62  ;;  %v7013_v25 = vunpack.i.h.bf16 %v12283_v7 }
 0x654   :  { %v4696_v45 = vsel %vm2698_vm12, %v4680_v63, %v7017_v49  ;;  %v4697_v24 = vsel %vm2698_vm12, %v4681_v60, %v7018_v42  ;;  %v4650_v42 = vsel %vm1285_vm5, %v4634_v43, %v7027_v56  ;;  %v7012_v62 = vunpack.i.l.bf16 %v12283_v7 }
 0x655   :  { %v7081_v54 = vpop.permute.xlu0 %7080  ;;  %v4712_v34 = vsel %vm2715_vm13, %v4696_v45, %v7022_v21  ;;  %v4713_v36 = vsel %vm2715_vm13, %v4697_v24, %v7023_v52  ;;  %v4666_v14 = vsel %vm1319_vm7, %v4650_v42, %v7032_v48  ;;  %v6903_v60 = vunpack.i.h.bf16 %v12237_v55 }
 0x656   :  { %v12357_v10 = vpop.permute.xlu1 %7045  ;;  %v4728_v12 = vsel %vm2732_vm14, %v4712_v34, %v7002_v6  ;;  %v4729_v31 = vsel %vm2732_vm14, %v4713_v36, %v7003_v51  ;;  %v4651_v6 = vsel %vm1285_vm5, %v4635_v40, %v7028_v13  ;;  %v7083_v49 = vunpack.i.h.bf16 %v7081_v54 }
 0x657   :  { %v4744_v57 = vpack.c.bf16 %v4729_v31, %v4728_v12  ;;  %v4667_v17 = vsel %vm1319_vm7, %v4651_v6, %v7033_v23  ;;  %v7082_v52 = vunpack.i.l.bf16 %v7081_v54  ;;  %v6902_v5 = vunpack.i.l.bf16 %v12237_v55 }
 0x658   :  { %v6908_v24 = vunpack.i.h.bf16 %v12239_v61  ;;  %v6907_v13 = vunpack.i.l.bf16 %v12239_v61  ;;  %v4682_v11 = vsel %vm1353_vm9, %v4666_v14, %v7012_v62  ;;  %v4683_v1 = vsel %vm1353_vm9, %v4667_v17, %v7013_v25 }
 0x659   :  { %v7096_v51 = vpop.permute.xlu0 %7095  ;;  %4913 = vmatmul.mubr.bf16.gmra.mrb[36].mxu1 %v4744_v57  ;;  %v4625_v56 = vsel %vm1251_vm3, %v4017_v59, %v7083_v49  ;;  %v4624_v7 = vsel %vm1251_vm3, %v4016_v22, %v7082_v52  ;;  %v7038_v42 = vunpack.i.h.bf16 %v12323_v19  ;;  %v7037_v6 = vunpack.i.l.bf16 %v12323_v19 }
 0x65a   :  { %v7051_v33 = vpop.permute.xlu1 %7050  ;;  %5815 = vmatprep.mubr.msk.bf16.mxu1 %vm1251_vm3, %v4747_v30  ;;  %v7098_v21 = vunpack.i.h.bf16 %v7096_v51  ;;  %v7097_v63 = vunpack.i.l.bf16 %v7096_v51  ;;  %v6887_v49 = vunpack.i.l.bf16 %v12232_v39  ;;  %v6888_v52 = vunpack.i.h.bf16 %v12232_v39  ;;  %v14378_v39 = vld [vmem:[#allocation96_spill] sm:$0xff] }
 0x65b   :  { %v7053_v53 = vunpack.i.h.bf16 %v7051_v33  ;;  %v7052_v45 = vunpack.i.l.bf16 %v7051_v33  ;;  %v7048_v0 = vunpack.i.h.bf16 %v12357_v10  ;;  %v7047_v37 = vunpack.i.l.bf16 %v12357_v10 }
 0x65c   :  { %v4640_v55 = vsel %vm1285_vm5, %v4624_v7, %v7097_v63  ;;  %v4641_v23 = vsel %vm1285_vm5, %v4625_v56, %v7098_v21  ;;  %v6943_v7 = vunpack.i.h.bf16 %v12271_v8 }
 0x65d   :  { %v7101_v30 = vpop.permute.xlu0 %7100  ;;  %v4698_v61 = vsel %vm2698_vm12, %v4682_v11, %v7052_v45  ;;  %v4699_v31 = vsel %vm2698_vm12, %v4683_v1, %v7053_v53  ;;  %v6927_v53 = vunpack.i.l.bf16 %v12247_v4  ;;  %v14380_v11 = vld [vmem:[#allocation103_spill] sm:$0xff]  ;;  %v14381_v1 = vld [vmem:[#allocation128_spill] sm:$0xff] }
 0x65e   :  { %v7103_v54 = vunpack.i.h.bf16 %v7101_v30  ;;  %v7102_v34 = vunpack.i.l.bf16 %v7101_v30  ;;  %v7056_v36 = vpop.permute.xlu1 %7055  ;;  %v4021_v30 = vmul.f32 %v14381_v1, %v14380_v11 }
 0x65f   :  { %v7058_v48 = vunpack.i.h.bf16 %v7056_v36  ;;  %v7057_v12 = vunpack.i.l.bf16 %v7056_v36 }
 0x660   :  { %v4656_v57 = vsel %vm1319_vm7, %v4640_v55, %v7102_v34  ;;  %v4657_v40 = vsel %vm1319_vm7, %v4641_v23, %v7103_v54  ;;  %v6942_v54 = vunpack.i.l.bf16 %v12271_v8  ;;  %v14383_v34 = vld [vmem:[#allocation147_spill] sm:$0xff]  ;;  %v14384_v55 = vld [vmem:[#allocation52_spill] sm:$0xff]  ;;  %v14385_v23 = vld [vmem:[#allocation69_spill] sm:$0xff]  ;;  %v7042_v8 = vunpack.i.l.bf16 %v12341_v35 }
 0x661   :  { %v4672_v43 = vsel %vm1353_vm9, %v4656_v57, %v6882_v16  ;;  %v4673_v41 = vsel %vm1353_vm9, %v4657_v40, %v6883_v3  ;;  %v7106_v22 = vpop.permute.xlu0 %7105  ;;  %v4714_v20 = vsel %vm2715_vm13, %v4698_v61, %v7057_v12  ;;  %v4715_v59 = vsel %vm2715_vm13, %v4699_v31, %v7058_v48 }
 0x662   :  { %v4688_v51 = vsel %vm2698_vm12, %v4672_v43, %v6902_v5  ;;  %v4689_v14 = vsel %vm2698_vm12, %v4673_v41, %v6903_v60  ;;  %v7061_v17 = vpop.permute.xlu1 %7060  ;;  %v4730_v33 = vsel %vm2732_vm14, %v4714_v20, %v7037_v6  ;;  %v4731_v25 = vsel %vm2732_vm14, %v4715_v59, %v7038_v42 }
 0x663   :  { %v4704_v16 = vsel %vm2715_vm13, %v4688_v51, %v6907_v13  ;;  %v4705_v3 = vsel %vm2715_vm13, %v4689_v14, %v6908_v24  ;;  %v4746_v21 = vpack.c.bf16 %v4731_v25, %v4730_v33  ;;  %v6928_v5 = vunpack.i.h.bf16 %v12247_v4  ;;  %v14379_v24 = vld [vmem:[#allocation141_spill] sm:$0xff]  ;;  %v14382_v4 = vld [vmem:[#allocation62_spill] sm:$0xff] }
 0x664   :  { %v4720_v19 = vsel %vm2732_vm14, %v4704_v16, %v6887_v49  ;;  %v4721_v60 = vsel %vm2732_vm14, %v4705_v3, %v6888_v52  ;;  %v4020_v13 = vmul.f32 %v14379_v24, %v14378_v39  ;;  %v4028_v36 = vmul.f32 %v14383_v34, %v14382_v4 }
 0x665   :  { %v7111_v62 = vpop.permute.xlu0 %7110  ;;  %4921 = vmatmul.mubr.bf16.gmra.mrb[40].mxu1 %v4746_v21  ;;  %v4736_v45 = vpack.c.bf16 %v4721_v60, %v4720_v19  ;;  %v4029_v48 = vmul.f32 %v14385_v23, %v14384_v55  ;;  %v7043_v12 = vunpack.i.h.bf16 %v12341_v35  ;;  %v7108_v61 = vunpack.i.h.bf16 %v7106_v22 }
 0x666   :  { %v7066_v63 = vpop.permute.xlu1 %7065  ;;  %5816 = vmatprep.mubr.msk.bf16.mxu1 %vm1251_vm3, %v4749_v18  ;;  %v4628_v58 = vsel %vm1251_vm3, %v4020_v13, %v6927_v53  ;;  %v4629_v18 = vsel %vm1251_vm3, %v4021_v30, %v6928_v5  ;;  %v7107_v38 = vunpack.i.l.bf16 %v7106_v22  ;;  %v7063_v46 = vunpack.i.h.bf16 %v7061_v17 }
 0x667   :  { %4881 = vmatmul.mubr.bf16.vlgmr.msra.gmra.mrb[48].mxu0 %v4736_v45  ;;  %v7113_v31 = vunpack.i.h.bf16 %v7111_v62  ;;  %v7112_v57 = vunpack.i.l.bf16 %v7111_v62  ;;  %v4644_v43 = vsel %vm1285_vm5, %v4628_v58, %v6942_v54  ;;  %v4645_v41 = vsel %vm1285_vm5, %v4629_v18, %v6943_v7 }
 0x668   :  { %5811 = vmatprep.mubr.msk.bf16.mxu0 %vm1251_vm3, %v4739_v50  ;;  %v7062_v50 = vunpack.i.l.bf16 %v7061_v17  ;;  %v7068_v6 = vunpack.i.h.bf16 %v7066_v63  ;;  %v7067_v51 = vunpack.i.l.bf16 %v7066_v63  ;;  %v4637_v35 = vsel %vm1251_vm3, %v4029_v48, %v7043_v12 }
 0x669   :  { %v7116_v56 = vpop.permute.xlu0 %7115  ;;  %v4636_v22 = vsel %vm1251_vm3, %v4028_v36, %v7042_v8  ;;  %v4661_v17 = vsel %vm1319_vm7, %v4645_v41, %v7108_v61  ;;  %v4660_v16 = vsel %vm1319_vm7, %v4644_v43, %v7107_v38  ;;  %v4653_v52 = vsel %vm1285_vm5, %v4637_v35, %v7063_v46 }
 0x66a   :  { %v12425_v32 = vpop.permute.xlu1 %7070  ;;  %v7118_v20 = vunpack.i.h.bf16 %v7116_v56  ;;  %v7117_v59 = vunpack.i.l.bf16 %v7116_v56  ;;  %v4652_v3 = vsel %vm1285_vm5, %v4636_v22, %v7062_v50  ;;  %v4676_v33 = vsel %vm1353_vm9, %v4660_v16, %v7112_v57  ;;  %v14386_v50 = vld [vmem:[#allocation119_spill] sm:$0xff] }
 0x66b   :  { %v4677_v25 = vsel %vm1353_vm9, %v4661_v17, %v7113_v31  ;;  %v4668_v53 = vsel %vm1319_vm7, %v4652_v3, %v7067_v51  ;;  %v4669_v45 = vsel %vm1319_vm7, %v4653_v52, %v7068_v6  ;;  %v7073_v54 = vunpack.i.h.bf16 %v12425_v32  ;;  %v14387_v31 = vld [vmem:[#allocation18_spill] sm:$0xff] }
 0x66c   :  { %v4692_v21 = vsel %vm2698_vm12, %v4676_v33, %v7117_v59  ;;  %v4693_v19 = vsel %vm2698_vm12, %v4677_v25, %v7118_v20  ;;  %v4684_v1 = vsel %vm1353_vm9, %v4668_v53, %v7047_v37  ;;  %v4685_v30 = vsel %vm1353_vm9, %v4669_v45, %v7048_v0 }
 0x66d   :  { %v7126_v40 = vpop.permute.xlu0 %7125  ;;  %v7072_v58 = vunpack.i.l.bf16 %v12425_v32  ;;  %v4030_v57 = vmul.f32 %v14387_v31, %v14386_v50 }
 0x66e   :  { %v12437_v42 = vpop.permute.xlu1 %7075  ;;  %v7128_v14 = vunpack.i.h.bf16 %v7126_v40  ;;  %v7127_v49 = vunpack.i.l.bf16 %v7126_v40  ;;  %v14388_v40 = vld [vmem:[#allocation118_spill] sm:$0xff] }
 0x66f   :  { %4889 = vmatmul.mubr.bf16.gmra.mrb[52].mxu0 %v4738_v28  ;;  %v7078_v32 = vunpack.i.h.bf16 %v12437_v42  ;;  %v7077_v8 = vunpack.i.l.bf16 %v12437_v42  ;;  %v4031_v43 = vmul.f32 %v11988_v47, %v14388_v40 }
 0x670   :  { %5812 = vmatprep.mubr.msk.bf16.mxu0 %vm1251_vm3, %v4741_v27  ;;  %v4708_v26 = vsel %vm2715_vm13, %v4692_v21, %v7127_v49  ;;  %v4709_v2 = vsel %vm2715_vm13, %v4693_v19, %v7128_v14 }
 0x671   :  { %v7131_v62 = vpop.permute.xlu0 %7130  ;;  %v4639_v59 = vsel %vm1251_vm3, %v4031_v43, %v7078_v32  ;;  %v4638_v44 = vsel %vm1251_vm3, %v4030_v57, %v7077_v8 }
 0x672   :  { %v7133_v63 = vunpack.i.h.bf16 %v7131_v62  ;;  %v7132_v60 = vunpack.i.l.bf16 %v7131_v62  ;;  %v7086_v5 = vpop.permute.xlu1 %7085 }
 0x673   :  { %v7088_v28 = vunpack.i.h.bf16 %v7086_v5  ;;  %v7087_v39 = vunpack.i.l.bf16 %v7086_v5 }
 0x674   :  { %v4724_v24 = vsel %vm2732_vm14, %v4708_v26, %v7132_v60  ;;  %v4725_v13 = vsel %vm2732_vm14, %v4709_v2, %v7133_v63 }
 0x675   :  { %v4740_v27 = vpack.c.bf16 %v4725_v13, %v4724_v24  ;;  %v4700_v18 = vsel %vm2698_vm12, %v4684_v1, %v7087_v39  ;;  %v4701_v4 = vsel %vm2698_vm12, %v4685_v30, %v7088_v28  ;;  %v7156_v35 = vpop.permute.xlu0 %7155 }
 0x676   :  { %v7091_v11 = vpop.permute.xlu1 %7090  ;;  %v7158_v25 = vunpack.i.h.bf16 %v7156_v35  ;;  %v7157_v62 = vunpack.i.l.bf16 %v7156_v35 }
 0x677   :  { %v7093_v56 = vunpack.i.h.bf16 %v7091_v11  ;;  %v7092_v7 = vunpack.i.l.bf16 %v7091_v11  ;;  %4897 = vmatmul.mubr.bf16.gmra.mrb[56].mxu0 %v4740_v27 }
 0x679   :  { %v4716_v34 = vsel %vm2715_vm13, %v4700_v18, %v7092_v7  ;;  %v4717_v10 = vsel %vm2715_vm13, %v4701_v4, %v7093_v56 }
 0x67a   :  { %v7121_v36 = vpop.permute.xlu1 %7120  ;;  %v4732_v55 = vsel %vm2732_vm14, %v4716_v34, %v7072_v58  ;;  %v4733_v23 = vsel %vm2732_vm14, %v4717_v10, %v7073_v54 }
 0x67b   :  { %v4748_v48 = vpack.c.bf16 %v4733_v23, %v4732_v55  ;;  %v7123_v22 = vunpack.i.h.bf16 %v7121_v36  ;;  %v7122_v47 = vunpack.i.l.bf16 %v7121_v36 }
 0x67d   :  { %4929 = vmatmul.mubr.bf16.gmra.mrb[44].mxu1 %v4748_v48 }
 0x67e   :  { %v7136_v12 = vpop.permute.xlu1 %7135  ;;  %5817 = vmatprep.mubr.msk.bf16.mxu1 %vm1251_vm3, %v4751_v15 }
 0x67f   :  { %v7138_v38 = vunpack.i.h.bf16 %v7136_v12  ;;  %v7137_v46 = vunpack.i.l.bf16 %v7136_v12 }
 0x681   :  { %v4654_v15 = vsel %vm1285_vm5, %v4638_v44, %v7137_v46  ;;  %v4655_v42 = vsel %vm1285_vm5, %v4639_v59, %v7138_v38 }
 0x682   :  { %v7141_v61 = vpop.permute.xlu1 %7140 }
 0x683   :  { %v7143_v41 = vunpack.i.h.bf16 %v7141_v61  ;;  %v7142_v20 = vunpack.i.l.bf16 %v7141_v61 }
 0x685   :  { %v4670_v6 = vsel %vm1319_vm7, %v4654_v15, %v7142_v20  ;;  %v4671_v51 = vsel %vm1319_vm7, %v4655_v42, %v7143_v41 }
 0x686   :  { %v7146_v9 = vpop.permute.xlu1 %7145  ;;  %v4686_v16 = vsel %vm1353_vm9, %v4670_v6, %v7122_v47  ;;  %v4687_v3 = vsel %vm1353_vm9, %v4671_v51, %v7123_v22  ;;  %vm5461_vm9 = vcmask 7168  }
 0x687   :  { %v7148_v14 = vunpack.i.h.bf16 %v7146_v9  ;;  %v7147_v49 = vunpack.i.l.bf16 %v7146_v9 }
 0x689   :  { %v4702_v21 = vsel %vm2698_vm12, %v4686_v16, %v7147_v49  ;;  %v4703_v19 = vsel %vm2698_vm12, %v4687_v3, %v7148_v14 }
 0x68a   :  { %v7151_v17 = vpop.permute.xlu1 %7150 }
 0x68b   :  { %v7153_v52 = vunpack.i.h.bf16 %v7151_v17  ;;  %v7152_v33 = vunpack.i.l.bf16 %v7151_v17 }
 0x68d   :  { %v4718_v63 = vsel %vm2715_vm13, %v4702_v21, %v7152_v33  ;;  %v4719_v60 = vsel %vm2715_vm13, %v4703_v19, %v7153_v52 }
 0x68e   :  { %v4734_v5 = vsel %vm2732_vm14, %v4718_v63, %v7157_v62  ;;  %v4735_v53 = vsel %vm2732_vm14, %v4719_v60, %v7158_v25 }
 0x68f   :  { %v4750_v45 = vpack.c.bf16 %v4735_v53, %v4734_v5 }
 0x691   :  { %4937 = vmatmul.mubr.bf16.gmra.mrb[48].mxu1 %v4750_v45 }
 0x723   :  { %v12498_v26 = vpop.f32.mrb[32].mxu1 }
 0x724   :  { %v4908_v2 = vpop.f32.mrb[33].mxu1  ;;  %v4955_v28 = vsel %vm1251_vm3, %v12498_v26, -inf }
 0x725   :  { %5350 = vmax.xlane.f32.xlu0 %v4955_v28  ;;  %v12502_v39 = vpop.f32.mrb[34].mxu1 }
 0x726   :  { %v4911_v24 = vpop.f32.mrb[35].mxu1  ;;  %v4957_v13 = vsel %vm1251_vm3, %v12502_v39, -inf }
 0x727   :  { %5352 = vmax.xlane.f32.xlu1 %v4957_v13 }
 0x72c   :  { %v12506_v0 = vpop.f32.mrb[36].mxu1 }
 0x72d   :  { %v4916_v37 = vpop.f32.mrb[37].mxu1  ;;  %v4966_v27 = vsel %vm1251_vm3, %v12506_v0, -inf }
 0x72e   :  { %5354 = vmax.xlane.f32.xlu0 %v4966_v27  ;;  %v12510_v11 = vpop.f32.mrb[38].mxu1 }
 0x72f   :  { %v4919_v1 = vpop.f32.mrb[39].mxu1  ;;  %v4967_v30 = vsel %vm1251_vm3, %v12510_v11, -inf  ;;  %v5141_v24 = vsel %vm1251_vm3, %v12510_v11, 0.0 }
 0x730   :  { %5356 = vmax.xlane.f32.xlu1 %v4967_v30 }
 0x738   :  { %v12514_v56 = vpop.f32.mrb[40].mxu1 }
 0x739   :  { %v4924_v7 = vpop.f32.mrb[41].mxu1  ;;  %v4968_v54 = vsel %vm1251_vm3, %v12514_v56, -inf  ;;  %v5144_v37 = vsel %vm1251_vm3, %v12514_v56, 0.0 }
 0x73a   :  { %v12518_v58 = vpop.f32.mrb[48].mxu0  ;;  %5358 = vmax.xlane.f32.xlu0 %v4968_v54  ;;  %v4969_v18 = vmax.f32 %v4966_v27, %v4968_v54  ;;  %v12520_v4 = vpop.f32.mrb[42].mxu1  ;;  %v5132_v54 = vsel %vm1251_vm3, %v12498_v26, 0.0 }
 0x73b   :  { %v4884_v34 = vpop.f32.mrb[49].mxu0  ;;  %v4927_v10 = vpop.f32.mrb[43].mxu1  ;;  %v4970_v36 = vsel %vm1251_vm3, %v12520_v4, -inf  ;;  %v4945_v8 = vsel %vm1251_vm3, %v12518_v58, -inf  ;;  %v5114_v53 = vsel %vm1251_vm3, %v12518_v58, 0.0  ;;  %v5147_v1 = vsel %vm1251_vm3, %v12520_v4, 0.0 }
 0x73c   :  { %v12524_v55 = vpop.f32.mrb[50].mxu0  ;;  %5360 = vmax.xlane.f32.xlu1 %v4970_v36  ;;  %v4971_v23 = vmax.f32 %v4967_v30, %v4970_v36  ;;  %v5135_v34 = vsel %vm1251_vm3, %v12502_v39, 0.0 }
 0x73d   :  { %v4887_v48 = vpop.f32.mrb[51].mxu0  ;;  %v4946_v31 = vsel %vm1251_vm3, %v12524_v55, -inf  ;;  %v5117_v2 = vsel %vm1251_vm3, %v12524_v55, 0.0 }
 0x742   :  { %v12526_v12 = vpop.f32.mrb[52].mxu0 }
 0x743   :  { %v4892_v32 = vpop.f32.mrb[53].mxu0  ;;  %v4947_v61 = vsel %vm1251_vm3, %v12526_v12, -inf }
 0x744   :  { %v12532_v38 = vpop.f32.mrb[54].mxu0  ;;  %v4948_v46 = vmax.f32 %v4945_v8, %v4947_v61 }
 0x745   :  { %v4895_v50 = vpop.f32.mrb[55].mxu0  ;;  %v4949_v57 = vsel %vm1251_vm3, %v12532_v38, -inf  ;;  %v5123_v27 = vsel %vm1251_vm3, %v12532_v38, 0.0 }
 0x746   :  { %v4950_v40 = vmax.f32 %v4946_v31, %v4949_v57 }
 0x74a   :  { %v12538_v43 = vpop.f32.mrb[56].mxu0 }
 0x74b   :  { %v4900_v41 = vpop.f32.mrb[57].mxu0  ;;  %v4951_v20 = vsel %vm1251_vm3, %v12538_v43, -inf  ;;  %v5126_v30 = vsel %vm1251_vm3, %v12538_v43, 0.0 }
 0x74c   :  { %v12542_v59 = vpop.f32.mrb[58].mxu0  ;;  %v4952_v44 = vmax.f32 %v4948_v46, %v4951_v20  ;;  %v12601_v41 = vld [vmem:[%s13024_s9] sm:$0xff] }
 0x74d   :  { %v4903_v9 = vpop.f32.mrb[59].mxu0  ;;  %v4953_v15 = vsel %vm1251_vm3, %v12542_v59, -inf  ;;  %v5129_v36 = vsel %vm1251_vm3, %v12542_v59, 0.0  ;;  %vm5370_vm15 = vcmp.gt.f32.partialorder %v12601_v41, 0.5 }
 0x74e   :  { %v4956_v6 = vmax.f32 %v4952_v44, %v4955_v28  ;;  %v4954_v51 = vmax.f32 %v4950_v40, %v4953_v15  ;;  %v5138_v28 = vsel %vm1251_vm3, %v12506_v0, 0.0  ;;  %v12611_v9 = vld [vmem:[%s13024_s9 + $0x30] sm:$0xff] }
 0x74f   :  { %vm5376_vm1 = vcmp.gt.f32.partialorder %v12611_v9, 0.5 }
 0x750   :  { %v12546_v42 = vpop.f32.mrb[44].mxu1  ;;  %v4958_v47 = vmax.f32 %v4954_v51, %v4957_v13  ;;  %v5120_v13 = vsel %vm1251_vm3, %v12526_v12, 0.0  ;;  %v12626_v51 = vld [vmem:[%s13024_s9 + $0x38] sm:$0xff] }
 0x751   :  { %v4932_v14 = vpop.f32.mrb[45].mxu1  ;;  %v4972_v49 = vsel %vm1251_vm3, %v12546_v42, -inf  ;;  %v5150_v7 = vsel %vm1251_vm3, %v12546_v42, 0.0  ;;  %vm5377_vm6 = vcmp.gt.f32.partialorder %v12626_v51, 0.5 }
 0x752   :  { %5362 = vmax.xlane.f32.xlu0 %v4972_v49  ;;  %v4973_v35 = vmax.f32 %v4969_v18, %v4972_v49  ;;  %v12550_v22 = vpop.f32.mrb[46].mxu1  ;;  %v12554_v52 = vmax.f32 %v4956_v6, %v4958_v47  ;;  %v12621_v6 = vld [vmem:[%s13024_s9 + $0x18] sm:$0xff]  ;;  %v12633_v49 = vld [vmem:[%s13024_s9 + $0x20] sm:$0xff] }
 0x753   :  { %v4935_v17 = vpop.f32.mrb[47].mxu1  ;;  %v4974_v16 = vsel %vm1251_vm3, %v12550_v22, -inf  ;;  %v5153_v18 = vsel %vm1251_vm3, %v12550_v22, 0.0  ;;  %vm5373_vm5 = vcmp.gt.f32.partialorder %v12621_v6, 0.5  ;;  %vm5374_vm7 = vcmp.gt.f32.partialorder %v12633_v49, 0.5 }
 0x754   :  { %5364 = vmax.xlane.f32.xlu1 %v4974_v16  ;;  %v4975_v3 = vmax.f32 %v4971_v23, %v4974_v16  ;;  %v12645_v17 = vld [vmem:[%s13024_s9 + $0x28] sm:$0xff] }
 0x755   :  { %vm5375_vm8 = vcmp.gt.f32.partialorder %v12645_v17, 0.5 }
 0x756   :  { %5340 = vmax.xlane.f32.xlu0 %v4946_v31 }
 0x758   :  { %5338 = vmax.xlane.f32.xlu1 %v4945_v8 }
 0x75a   :  { %5342 = vmax.xlane.f32.xlu0 %v4947_v61 }
 0x75c   :  { %5344 = vmax.xlane.f32.xlu1 %v4949_v57 }
 0x75e   :  { %5346 = vmax.xlane.f32.xlu0 %v4951_v20  ;;  %v12606_v20 = vld [vmem:[%s13024_s9 + $0x10] sm:$0xff] }
 0x75f   :  { %vm5372_vm0 = vcmp.gt.f32.partialorder %v12606_v20, 0.5 }
 0x760   :  { %5348 = vmax.xlane.f32.xlu1 %v4953_v15  ;;  %v12616_v15 = vld [vmem:[%s13024_s9 + $0x8] sm:$0xff] }
 0x761   :  { %vm5371_vm4 = vcmp.gt.f32.partialorder %v12616_v15, 0.5 }
 0x764   :  { %v12556_v33 = vpop.f32.mrb[48].mxu1 }
 0x765   :  { %v4940_v25 = vpop.f32.mrb[49].mxu1  ;;  %v4976_v62 = vsel %vm1251_vm3, %v12556_v33, -inf  ;;  %v5156_v10 = vsel %vm1251_vm3, %v12556_v33, 0.0 }
 0x766   :  { %5366 = vmax.xlane.f32.xlu0 %v4976_v62  ;;  %v4977_v21 = vmax.f32 %v4973_v35, %v4976_v62  ;;  %v12560_v19 = vpop.f32.mrb[50].mxu1 }
 0x767   :  { %v4943_v63 = vpop.f32.mrb[51].mxu1  ;;  %v4978_v60 = vsel %vm1251_vm3, %v12560_v19, -inf  ;;  %v5159_v23 = vsel %vm1251_vm3, %v12560_v19, 0.0 }
 0x768   :  { %5368 = vmax.xlane.f32.xlu1 %v4978_v60  ;;  %v4979_v5 = vmax.f32 %v4975_v3, %v4978_v60 }
 0x76a   :  { %v12566_v45 = vmax.f32 %v4977_v21, %v4979_v5  ;;  %5115 = vadd.xlane.f32.xlu0 %v5114_v53  ;;  %v4960_v21 = vrot.slane %v12554_v52, 4 }
 0x76c   :  { %5118 = vadd.xlane.f32.xlu1 %v5117_v2 }
 0x76e   :  { %5139 = vadd.xlane.f32.xlu0 %v5138_v28 }
 0x770   :  { %5142 = vadd.xlane.f32.xlu1 %v5141_v24 }
 0x772   :  { %5121 = vadd.xlane.f32.xlu0 %v5120_v13 }
 0x774   :  { %5145 = vadd.xlane.f32.xlu1 %v5144_v37 }
 0x776   :  { %5124 = vadd.xlane.f32.xlu0 %v5123_v27 }
 0x778   :  { %5148 = vadd.xlane.f32.xlu1 %v5147_v1 }
 0x77a   :  { %5127 = vadd.xlane.f32.xlu0 %v5126_v30 }
 0x77c   :  { %5151 = vadd.xlane.f32.xlu1 %v5150_v7 }
 0x77e   :  { %5133 = vadd.xlane.f32.xlu0 %v5132_v54 }
 0x780   :  { %5154 = vadd.xlane.f32.xlu1 %v5153_v18 }
 0x782   :  { %5136 = vadd.xlane.f32.xlu0 %v5135_v34 }
 0x784   :  { %5157 = vadd.xlane.f32.xlu1 %v5156_v10 }
 0x786   :  { %5130 = vadd.xlane.f32.xlu0 %v5129_v36 }
 0x788   :  { %5160 = vadd.xlane.f32.xlu1 %v5159_v23 }
 0x7b2   :  { %v5351_v48 = vpop.xlane.xlu0 %5350 }
 0x7b3   :  { %v5400_v53 = vsel %vm5376_vm1, %v5351_v48, -1e+30 }
 0x7b4   :  { %v5353_v32 = vpop.xlane.xlu1 %5352 }
 0x7b5   :  { %v5401_v24 = vsel %vm5377_vm6, %v5353_v32, -1e+30 }
 0x7bb   :  { %v5355_v8 = vpop.xlane.xlu0 %5354 }
 0x7bc   :  { %v5402_v34 = vsel %vm5370_vm15, %v5355_v8, -1e+30 }
 0x7bd   :  { %v5357_v61 = vpop.xlane.xlu1 %5356 }
 0x7be   :  { %v5403_v36 = vsel %vm5371_vm4, %v5357_v61, -1e+30  ;;  %v4961_v61 = vmax.f32 %v12554_v52, %v4960_v21 }
 0x7c7   :  { %v5359_v46 = vpop.xlane.xlu0 %5358 }
 0x7c8   :  { %v5404_v13 = vsel %vm5372_vm0, %v5359_v46, -1e+30  ;;  %v5420_v46 = vsel %vm1234_vm2, %v5400_v53, -inf }
 0x7c9   :  { %v5361_v50 = vpop.xlane.xlu1 %5360 }
 0x7ca   :  { %v5405_v30 = vsel %vm5373_vm5, %v5361_v50, -1e+30  ;;  %v5422_v50 = vsel %vm1234_vm2, %v5401_v24, -inf }
 0x7cb   :  { %v5435_v8 = vsel %vm1234_vm2, %v5405_v30, -inf }
 0x7df   :  { %v5363_v31 = vpop.xlane.xlu0 %5362 }
 0x7e0   :  { %v5406_v23 = vsel %vm5374_vm7, %v5363_v31, -1e+30  ;;  %v5431_v31 = vsel %vm1234_vm2, %v5402_v34, -inf }
 0x7e1   :  { %v5365_v57 = vpop.xlane.xlu1 %5364 }
 0x7e2   :  { %v5407_v48 = vsel %vm5375_vm8, %v5365_v57, -1e+30  ;;  %v5437_v57 = vsel %vm1234_vm2, %v5406_v23, -inf }
 0x7e3   :  { %v5341_v40 = vpop.xlane.xlu0 %5340 }
 0x7e4   :  { %v5395_v25 = vsel %vm5371_vm4, %v5341_v40, -1e+30  ;;  %v5433_v40 = vsel %vm1234_vm2, %v5404_v13, -inf }
 0x7e5   :  { %v5339_v44 = vpop.xlane.xlu1 %5338  ;;  %v5411_v37 = vsel %vm1234_vm2, %v5395_v25, -inf  ;;  %v5434_v25 = vmax.f32 %v5431_v31, %v5433_v40 }
 0x7e6   :  { %v5394_v35 = vsel %vm5370_vm15, %v5339_v44, -1e+30  ;;  %v4981_v44 = vrot.slane %v12566_v45, 4  ;;  %vm5062_vm15 = vcmask 123904  }
 0x7e7   :  { %v5343_v14 = vpop.xlane.xlu0 %5342  ;;  %v5410_v63 = vsel %vm1234_vm2, %v5394_v35, -inf }
 0x7e8   :  { %v5396_v47 = vsel %vm5372_vm0, %v5343_v14, -1e+30 }
 0x7e9   :  { %v5412_v16 = vsel %vm1234_vm2, %v5396_v47, -inf  ;;  %v5345_v3 = vpop.xlane.xlu1 %5344  ;;  %v5432_v47 = vsel %vm1234_vm2, %v5403_v36, -inf }
 0x7ea   :  { %v5397_v62 = vsel %vm5373_vm5, %v5345_v3, -1e+30  ;;  %v5413_v2 = vmax.f32 %v5410_v63, %v5412_v16  ;;  %v5439_v16 = vsel %vm1234_vm2, %v5407_v48, -inf }
 0x7eb   :  { %v5414_v60 = vsel %vm1234_vm2, %v5397_v62, -inf  ;;  %v5347_v5 = vpop.xlane.xlu0 %5346  ;;  %v5436_v62 = vmax.f32 %v5432_v47, %v5435_v8 }
 0x7ec   :  { %v5398_v28 = vsel %vm5374_vm7, %v5347_v5, -1e+30  ;;  %v5415_v7 = vmax.f32 %v5411_v37, %v5414_v60  ;;  %v4962_v37 = vrot.slane %v4961_v61, 2 }
 0x7ed   :  { %v5416_v27 = vsel %vm1234_vm2, %v5398_v28, -inf  ;;  %v5349_v1 = vpop.xlane.xlu1 %5348  ;;  %v5440_v52 = vmax.f32 %v5436_v62, %v5439_v16  ;;  %v12701_v16 = vld [vmem:[%s13023_s8 + $0x8] sm:$0xff] }
 0x7ee   :  { %v5417_v54 = vmax.f32 %v5413_v2, %v5416_v27  ;;  %v5399_v18 = vsel %vm5375_vm8, %v5349_v1, -1e+30  ;;  %v5438_v2 = vmax.f32 %v5434_v25, %v5437_v57  ;;  %v4982_v27 = vmax.f32 %v12566_v45, %v4981_v44 }
 0x7ef   :  { %v5418_v10 = vsel %vm1234_vm2, %v5399_v18, -inf  ;;  %v4963_v48 = vmax.f32 %v4961_v61, %v4962_v37 }
 0x7f0   :  { %v5419_v32 = vmax.f32 %v5415_v7, %v5418_v10  ;;  %v5421_v14 = vmax.f32 %v5417_v54, %v5420_v46 }
 0x7f2   :  { %v5423_v35 = vmax.f32 %v5419_v32, %v5422_v50  ;;  %v4983_v32 = vrot.slane %v4982_v27, 2 }
 0x7f3   :  { %v5367_v3 = vpop.xlane.xlu0 %5366 }
 0x7f4   :  { %v5424_v63 = vmax.f32 %v5421_v14, %v5423_v35  ;;  %v5408_v60 = vsel %vm5376_vm1, %v5367_v3, -1e+30  ;;  %v4964_v35 = vrot.slane %v4963_v48, 1  ;;  %v4984_v47 = vmax.f32 %v4982_v27, %v4983_v32  ;;  %v12721_v27 = vld [vmem:[%s13023_s8 + $0x18] sm:$0xff] }
 0x7f5   :  { %v5441_v5 = vsel %vm1234_vm2, %v5408_v60, -inf  ;;  %v5369_v53 = vpop.xlane.xlu1 %5368 }
 0x7f6   :  { %v5425_v21 = vrot.slane %v5424_v63, 4  ;;  %v5409_v28 = vsel %vm5377_vm6, %v5369_v53, -1e+30  ;;  %v5442_v1 = vmax.f32 %v5438_v2, %v5441_v5  ;;  %v4965_v3 = vmax.f32 %v4963_v48, %v4964_v35  ;;  %v12713_v2 = vld [vmem:[%s13023_s8 + $0x10] sm:$0xff] }
 0x7f7   :  { %v5443_v24 = vsel %vm1234_vm2, %v5409_v28, -inf  ;;  %v5116_v13 = vpop.xlane.xlu0 %5115  ;;  %v4985_v25 = vrot.slane %v4984_v47, 1 }
 0x7f8   :  { %v5444_v30 = vmax.f32 %v5440_v52, %v5443_v24  ;;  %v5426_v7 = vmax.f32 %v5424_v63, %v5425_v21  ;;  %v12706_v63 = vld [vmem:[%s13023_s8] sm:$0xff] }
 0x7f9   :  { %v5119_v54 = vpop.xlane.xlu1 %5118  ;;  %v4986_v24 = vmax.f32 %v4984_v47, %v4985_v25  ;;  %v5162_v37 = vmul.f32 %v5116_v13, %v12706_v63 }
 0x7fa   :  { %v5445_v18 = vmax.f32 %v5442_v1, %v5444_v30  ;;  %v5427_v34 = vrot.slane %v5426_v7, 2  ;;  %v5163_v53 = vmul.f32 %v5119_v54, %v12701_v16 }
 0x7fb   :  { %v5140_v10 = vpop.xlane.xlu0 %5139 }
 0x7fc   :  { %v5446_v36 = vrot.slane %v5445_v18, 4  ;;  %v5428_v23 = vmax.f32 %v5426_v7, %v5427_v34  ;;  %v5170_v21 = vmul.f32 %v5140_v10, %v12706_v63  ;;  %v12730_v34 = vld [vmem:[%s13023_s8 + $0x20] sm:$0xff]  ;;  %v12735_v10 = vld [vmem:[%s13023_s8 + $0x28] sm:$0xff] }
 0x7fd   :  { %v5143_v46 = vpop.xlane.xlu1 %5142 }
 0x7fe   :  { %v5447_v50 = vmax.f32 %v5445_v18, %v5446_v36  ;;  %v5429_v40 = vrot.slane %v5428_v23, 1  ;;  %v5171_v60 = vmul.f32 %v5143_v46, %v12701_v16  ;;  %v5179_v18 = vsel %vm1234_vm2, %v5163_v53, 0.0 }
 0x7ff   :  { %v5122_v8 = vpop.xlane.xlu0 %5121  ;;  %v5199_v36 = vsel %vm1234_vm2, %v5170_v21, 0.0  ;;  %v5178_v46 = vsel %vm1234_vm2, %v5162_v37, 0.0 }
 0x800   :  { %v5430_v14 = vmax.f32 %v5428_v23, %v5429_v40  ;;  %v5448_v31 = vrot.slane %v5447_v50, 2  ;;  %v5200_v30 = vsel %vm1234_vm2, %v5171_v60, 0.0  ;;  %v5164_v7 = vmul.f32 %v5122_v8, %v12713_v2 }
 0x801   :  { %v5146_v45 = vpop.xlane.xlu1 %5145  ;;  %v5180_v47 = vadd.f32 %v5179_v18, %v5178_v46 }
 0x802   :  { %5454 = vbcast.lane.b32.xlu0 %v5430_v14, 256  ;;  %v5449_v44 = vmax.f32 %v5447_v50, %v5448_v31  ;;  %v5172_v28 = vmul.f32 %v5146_v45, %v12713_v2  ;;  %v5201_v50 = vadd.f32 %v5200_v30, %v5199_v36  ;;  %v5181_v8 = vsel %vm1234_vm2, %v5164_v7, 0.0 }
 0x803   :  { %v5125_v57 = vpop.xlane.xlu0 %5124 }
 0x804   :  { %v5450_v61 = vrot.slane %v5449_v44, 1  ;;  %v5202_v23 = vsel %vm1234_vm2, %v5172_v28, 0.0  ;;  %v5165_v48 = vmul.f32 %v5125_v57, %v12721_v27 }
 0x805   :  { %v5149_v62 = vpop.xlane.xlu1 %5148  ;;  %v5203_v45 = vadd.f32 %v5202_v23, %v5201_v50 }
 0x806   :  { %4994 = vbcast.lane.b32.xlu0 %v4965_v3, 264  ;;  %v5451_v5 = vmax.f32 %v5449_v44, %v5450_v61  ;;  %v5173_v54 = vmul.f32 %v5149_v62, %v12721_v27  ;;  %v5183_v57 = vsel %vm1234_vm2, %v5165_v48, 0.0  ;;  %v12751_v62 = vld [vmem:[%s13023_s8 + $0x30] sm:$0xff] }
 0x807   :  { %v5128_v52 = vpop.xlane.xlu0 %5127 }
 0x808   :  { %5457 = vbcast.lane.b32.xlu1 %v5451_v5, 256  ;;  %v5204_v14 = vsel %vm1234_vm2, %v5173_v54, 0.0  ;;  %v5166_v35 = vmul.f32 %v5128_v52, %v12730_v34 }
 0x809   :  { %v5152_v1 = vpop.xlane.xlu1 %5151  ;;  %v5205_v25 = vadd.f32 %v5204_v14, %v5203_v45 }
 0x80a   :  { %5001 = vbcast.lane.b32.xlu0 %v4986_v24, 264  ;;  %v5174_v32 = vmul.f32 %v5152_v1, %v12730_v34  ;;  %v5185_v5 = vsel %vm1234_vm2, %v5166_v35, 0.0 }
 0x80b   :  { %v5134_v13 = vpop.xlane.xlu0 %5133 }
 0x80c   :  { %4990 = vbcast.lane.b32.xlu1 %v4965_v3, 256  ;;  %v5206_v61 = vsel %vm1234_vm2, %v5174_v32, 0.0  ;;  %v5182_v3 = vadd.f32 %v5181_v8, %v5180_v47  ;;  %v5168_v1 = vmul.f32 %v5134_v13, %v12751_v62 }
 0x80d   :  { %v5155_v40 = vpop.xlane.xlu1 %5154  ;;  %v5207_v28 = vadd.f32 %v5206_v61, %v5205_v25 }
 0x80e   :  { %v5175_v31 = vmul.f32 %v5155_v40, %v12735_v10  ;;  %v5184_v21 = vadd.f32 %v5183_v57, %v5182_v3  ;;  %v5189_v40 = vsel %vm1234_vm2, %v5168_v1, 0.0  ;;  %v5452_v1 = vld [vmem:[%s13031_s16] sm:$0xff] }
 0x80f   :  { %v5137_v44 = vpop.xlane.xlu0 %5136 }
 0x810   :  { %4997 = vbcast.lane.b32.xlu1 %v4986_v24, 256  ;;  %v5208_v53 = vsel %vm1234_vm2, %v5175_v31, 0.0  ;;  %v12759_v24 = vld [vmem:[%s13023_s8 + $0x38] sm:$0xff]  ;;  %v5186_v54 = vadd.f32 %v5185_v5, %v5184_v21 }
 0x811   :  { %v5158_v60 = vpop.xlane.xlu1 %5157  ;;  %v5209_v18 = vadd.f32 %v5208_v53, %v5207_v28  ;;  %v5169_v23 = vmul.f32 %v5137_v44, %v12759_v24 }
 0x812   :  { %v5176_v52 = vmul.f32 %v5158_v60, %v12751_v62 }
 0x813   :  { %v5131_v37 = vpop.xlane.xlu0 %5130  ;;  %v5191_v35 = vsel %vm1234_vm2, %v5169_v23, 0.0 }
 0x814   :  { %v5210_v30 = vsel %vm1234_vm2, %v5176_v52, 0.0  ;;  %v5167_v7 = vmul.f32 %v5131_v37, %v12735_v10 }
 0x815   :  { %v5161_v36 = vpop.xlane.xlu1 %5160  ;;  %v5211_v46 = vadd.f32 %v5210_v30, %v5209_v18 }
 0x816   :  { %v5187_v48 = vsel %vm1234_vm2, %v5167_v7, 0.0  ;;  %v5177_v32 = vmul.f32 %v5161_v36, %v12759_v24 }
 0x817   :  { %v5188_v50 = vadd.f32 %v5187_v48, %v5186_v54  ;;  %v4988_v48 = vld [vmem:[%s13025_s10 + $0x8] sm:$0xff] }
 0x818   :  { %v5212_v8 = vsel %vm1234_vm2, %v5177_v32, 0.0 }
 0x819   :  { %v5190_v13 = vadd.f32 %v5189_v40, %v5188_v50  ;;  %v5213_v14 = vadd.f32 %v5212_v8, %v5211_v46  ;;  %v4987_v40 = vld [vmem:[%s13025_s10] sm:$0xff] }
 0x81b   :  { %v5192_v31 = vadd.f32 %v5191_v35, %v5190_v13  ;;  %v5214_v47 = vrot.slane %v5213_v14, 4 }
 0x81d   :  { %v5193_v45 = vrot.slane %v5192_v31, 4  ;;  %v5215_v57 = vadd.f32 %v5214_v47, %v5213_v14 }
 0x81f   :  { %v5216_v61 = vrot.slane %v5215_v57, 2  ;;  %v5194_v44 = vadd.f32 %v5193_v45, %v5192_v31 }
 0x821   :  { %v5217_v3 = vadd.f32 %v5216_v61, %v5215_v57  ;;  %v5195_v25 = vrot.slane %v5194_v44, 2 }
 0x823   :  { %v5218_v60 = vrot.slane %v5217_v3, 1  ;;  %v5196_v5 = vadd.f32 %v5195_v25, %v5194_v44 }
 0x825   :  { %v5219_v53 = vadd.f32 %v5218_v60, %v5217_v3  ;;  %v5197_v52 = vrot.slane %v5196_v5, 1  ;;  %v5823_v60 = vld [vmem:[#allocation2] ss:$0 sm:$0xff] }
 0x827   :  { %v5221_v21 = vmul.f32 0.0078125, %v5219_v53  ;;  %v5198_v28 = vadd.f32 %v5197_v52, %v5196_v5 }
 0x829   :  { %5227 = vbcast.lane.b32.xlu0 %v5221_v21, 256  ;;  %v5220_v37 = vmul.f32 0.0078125, %v5198_v28 }
 0x82b   :  { %5224 = vbcast.lane.b32.xlu1 %v5220_v37, 256 }
 0x874   :  { %v5455_v30 = vpop.permute.xlu0 %5454 }
 0x875   :  { %v5459_v7 = vmul.f32 %v5455_v30, %v5452_v1 }
 0x877   :  { %v5462_v54 = vsel %vm5461_vm9, %v5459_v7, 0.0 }
 0x878   :  { %v5463_v18 = vrot.slane %v5462_v54, 4  ;;  %v4995_v36 = vpop.permute.xlu0 %4994 }
 0x879   :  { %v5004_v8 = vmul.f32 %v4995_v36, %v4988_v48 }
 0x87a   :  { %v5464_v23 = vadd.f32 %v5463_v18, %v5462_v54  ;;  %v5458_v32 = vpop.permute.xlu1 %5457 }
 0x87b   :  { %v5460_v46 = vmul.f32 %v5458_v32, %v5452_v1  ;;  %v5009_v44 = vsel %vm5007_vm10, %v5004_v8, 0.0 }
 0x87c   :  { %v5465_v50 = vrot.slane %v5464_v23, 2  ;;  %v5002_v31 = vpop.permute.xlu0 %5001 }
 0x87d   :  { %v5469_v13 = vsel %vm5461_vm9, %v5460_v46, 0.0  ;;  %v5006_v3 = vmul.f32 %v5002_v31, %v4988_v48 }
 0x87e   :  { %v5466_v14 = vadd.f32 %v5465_v50, %v5464_v23  ;;  %v5470_v35 = vrot.slane %v5469_v13, 4  ;;  %v4991_v47 = vpop.permute.xlu1 %4990 }
 0x87f   :  { %v5003_v45 = vmul.f32 %v4991_v47, %v4987_v40  ;;  %v5018_v7 = vsel %vm5007_vm10, %v5006_v3, 0.0  ;;  %v5818_v47 = vld [vmem:[%s13026_s11] ss:$0 sm:$0xff] }
 0x880   :  { %v5467_v57 = vrot.slane %v5466_v14, 1  ;;  %v5471_v61 = vadd.f32 %v5470_v35, %v5469_v13 }
 0x881   :  { %v5008_v25 = vsel %vm5007_vm10, %v5003_v45, 0.0 }
 0x882   :  { %v5468_v5 = vadd.f32 %v5467_v57, %v5466_v14  ;;  %v5472_v53 = vrot.slane %v5471_v61, 2  ;;  %v5010_v52 = vadd.f32 %v5009_v44, %v5008_v25  ;;  %v4998_v21 = vpop.permute.xlu1 %4997 }
 0x883   :  { %v5005_v28 = vmul.f32 %v4998_v21, %v4987_v40 }
 0x884   :  { %v5473_v37 = vadd.f32 %v5472_v53, %v5471_v61  ;;  %v5011_v1 = vrot.slane %v5010_v52, 4  ;;  %v5483_v30 = vadd.f32 %v5823_v60, %v5468_v5 }
 0x885   :  { %v5017_v54 = vsel %vm5007_vm10, %v5005_v28, 0.0 }
 0x886   :  { %v5474_v18 = vrot.slane %v5473_v37, 1  ;;  %v5012_v36 = vadd.f32 %v5011_v1, %v5010_v52  ;;  %v5019_v23 = vadd.f32 %v5018_v7, %v5017_v54  ;;  %v5487_v32 = vmul.f32 1.442695, %v5483_v30 }
 0x887   :  { %vm5485_vm11 = vcmp.gt.f32.partialorder %v5483_v30, 0.0 }
 0x888   :  { %v5475_v48 = vadd.f32 %v5474_v18, %v5473_v37  ;;  %v5013_v46 = vrot.slane %v5012_v36, 2  ;;  %v5020_v50 = vrot.slane %v5019_v23, 4  ;;  %7194 = vpow2.f32 %v5487_v32  ;;  %v5222_v37 = vld [vmem:[%s13029_s14] sm:$0xff] }
 0x889   :  { %v12790_v32 = vsub.s32 0, %v7642_v29 }
 0x88a   :  { %v5014_v8 = vadd.f32 %v5013_v46, %v5012_v36  ;;  %v5021_v13 = vadd.f32 %v5020_v50, %v5019_v23  ;;  %v5484_v14 = vadd.f32 %v5823_v60, %v5475_v48 }
 0x88c   :  { %v5015_v35 = vrot.slane %v5014_v8, 1  ;;  %v5022_v40 = vrot.slane %v5021_v13, 2  ;;  %v5489_v31 = vmul.f32 1.442695, %v5484_v14  ;;  %vm5486_vm12 = vcmp.gt.f32.partialorder %v5484_v14, 0.0 }
 0x88e   :  { %v5016_v45 = vadd.f32 %v5015_v35, %v5014_v8  ;;  %v5023_v57 = vadd.f32 %v5022_v40, %v5021_v13  ;;  %7196 = vpow2.f32 %v5489_v31 }
 0x890   :  { %v5024_v61 = vrot.slane %v5023_v57, 1  ;;  %v5033_v44 = vadd.f32 %v5818_v47, %v5016_v45 }
 0x892   :  { %v5025_v3 = vadd.f32 %v5024_v61, %v5023_v57  ;;  %v5037_v25 = vmul.f32 1.442695, %v5033_v44  ;;  %v7195_v5 = vpop.eup %7194  ;;  %vm5035_vm13 = vcmp.gt.f32.partialorder %v5033_v44, 0.0 }
 0x893   :  { %v5824_v53 = vadd.f32 -1.0, %v7195_v5 }
 0x894   :  { %7198 = vpow2.f32 %v5037_v25  ;;  %v5034_v52 = vadd.f32 %v5818_v47, %v5025_v3 }
 0x895   :  { %v5493_v60 = vsel %vm5485_vm11, %v5483_v30, %v5824_v53 }
 0x896   :  { %v5039_v21 = vmul.f32 1.442695, %v5034_v52  ;;  %5498 = vperm.xlu1 %7159, %v5493_v60   ;;  %vm5036_vm14 = vcmp.gt.f32.partialorder %v5034_v52, 0.0  ;;  %v5822_v60 = vld [vmem:[%s13030_s15] ss:$0 sm:$0xff] }
 0x898   :  { %v7197_v28 = vpop.eup %7196  ;;  %7200 = vpow2.f32 %v5039_v21 }
 0x899   :  { %v5825_v1 = vadd.f32 -1.0, %v7197_v28 }
 0x89b   :  { %v5228_v7 = vpop.permute.xlu0 %5227  ;;  %v5494_v54 = vsel %vm5486_vm12, %v5484_v14, %v5825_v1 }
 0x89c   :  { %v5230_v18 = vmul.f32 %v5228_v7, %v5222_v37  ;;  %5503 = vperm.xlu0 %7160, %v5494_v54  }
 0x89d   :  { %v5225_v36 = vpop.permute.xlu1 %5224 }
 0x89e   :  { %v7199_v23 = vpop.eup %7198  ;;  %v5238_v30 = vsel %vm1234_vm2, %v5230_v18, 0.0  ;;  %v5229_v48 = vmul.f32 %v5225_v36, %v5222_v37 }
 0x89f   :  { %v5239_v46 = vrot.slane %v5238_v30, 4  ;;  %v5819_v50 = vadd.f32 -1.0, %v7199_v23 }
 0x8a0   :  { %v5231_v8 = vsel %vm1234_vm2, %v5229_v48, 0.0 }
 0x8a1   :  { %v5240_v13 = vadd.f32 %v5239_v46, %v5238_v30  ;;  %v5232_v35 = vrot.slane %v5231_v8, 4  ;;  %v5043_v40 = vsel %vm5035_vm13, %v5033_v44, %v5819_v50 }
 0x8a2   :  { %v7201_v31 = vpop.eup %7200  ;;  %v5049_v14 = vrot.slane %v5043_v40, %v12790_v32 }
 0x8a3   :  { %v5241_v47 = vrot.slane %v5240_v13, 2  ;;  %v5233_v45 = vadd.f32 %v5232_v35, %v5231_v8  ;;  %v5820_v57 = vadd.f32 -1.0, %v7201_v31 }
 0x8a4   :  { %5051 = vbcast.lane.b32.xlu1 %v5049_v14, 256 }
 0x8a5   :  { %v5242_v29 = vadd.f32 %v5241_v47, %v5240_v13  ;;  %v5234_v61 = vrot.slane %v5233_v45, 2  ;;  %v5044_v3 = vsel %vm5036_vm14, %v5034_v52, %v5820_v57 }
 0x8a6   :  { %v5056_v25 = vrot.slane %v5044_v3, %v12790_v32 }
 0x8a7   :  { %v5243_v5 = vrot.slane %v5242_v29, 1  ;;  %v5235_v53 = vadd.f32 %v5234_v61, %v5233_v45 }
 0x8a8   :  { %5058 = vbcast.lane.b32.xlu1 %v5056_v25, 256 }
 0x8a9   :  { %v5244_v44 = vadd.f32 %v5243_v5, %v5242_v29  ;;  %v5236_v21 = vrot.slane %v5235_v53, 1 }
 0x8ab   :  { %v5253_v28 = vadd.f32 %v5822_v60, %v5244_v44  ;;  %v5237_v37 = vadd.f32 %v5236_v21, %v5235_v53 }
 0x8ad   :  { %v5255_v1 = vsub.f32 0.0, %v5253_v28  ;;  %v5252_v7 = vadd.f32 %v5822_v60, %v5237_v37 }
 0x8af   :  { %v5258_v54 = vmul.f32 1.442695, %v5255_v1  ;;  %v5254_v18 = vsub.f32 0.0, %v5252_v7 }
 0x8b1   :  { %7202 = vpow2.f32 %v5258_v54  ;;  %v5256_v36 = vmul.f32 1.442695, %v5254_v18 }
 0x8b3   :  { %7204 = vpow2.f32 %v5256_v36 }
 0x8bb   :  { %v7203_v52 = vpop.eup %7202 }
 0x8bc   :  { %v5261_v23 = vadd.f32 1.0, %v7203_v52 }
 0x8bd   :  { %v7205_v30 = vpop.eup %7204 }
 0x8be   :  { %7206 = vrcp.f32 %v5261_v23  ;;  %v5260_v48 = vadd.f32 1.0, %v7205_v30 }
 0x8c0   :  { %7208 = vrcp.f32 %v5260_v48 }
 0x8c8   :  { %v7207_v46 = vpop.eup %7206 }
 0x8c9   :  { %v5273_v50 = vrot.slane %v7207_v46, %v12790_v32 }
 0x8ca   :  { %v7209_v47 = vpop.eup %7208 }
 0x8cb   :  { %v5283_v8 = vmul.f32 %v5273_v50, %v12701_v16  ;;  %v5282_v13 = vmul.f32 %v5273_v50, %v12706_v63  ;;  %v5285_v31 = vmul.f32 %v5273_v50, %v12721_v27  ;;  %v5284_v14 = vmul.f32 %v5273_v50, %v12713_v2 }
 0x8cc   :  { %v5287_v29 = vmul.f32 %v5273_v50, %v12735_v10  ;;  %v5286_v61 = vmul.f32 %v5273_v50, %v12730_v34  ;;  %v5269_v3 = vrot.slane %v7209_v47, %v12790_v32  ;;  %v5289_v53 = vmul.f32 %v5273_v50, %v12759_v24 }
 0x8cd   :  { %v5317_v35 = vsel %vm1234_vm2, %v5283_v8, 0.0  ;;  %v5314_v40 = vsel %vm1234_vm2, %v5282_v13, 0.0  ;;  %v5323_v45 = vsel %vm1234_vm2, %v5285_v31, 0.0  ;;  %v5320_v57 = vsel %vm1234_vm2, %v5284_v14, 0.0 }
 0x8ce   :  { %5318 = vadd.xlane.f32.xlu0 %v5317_v35  ;;  %5315 = vadd.xlane.f32.xlu1 %v5314_v40  ;;  %v5329_v25 = vsel %vm1234_vm2, %v5287_v29, 0.0  ;;  %v5326_v5 = vsel %vm1234_vm2, %v5286_v61, 0.0  ;;  %v5288_v60 = vmul.f32 %v5273_v50, %v12751_v62  ;;  %v5335_v44 = vsel %vm1234_vm2, %v5289_v53, 0.0 }
 0x8cf   :  { %v5275_v28 = vmul.f32 %v5269_v3, %v12701_v16  ;;  %v5274_v37 = vmul.f32 %v5269_v3, %v12706_v63  ;;  %v5278_v54 = vmul.f32 %v5269_v3, %v12730_v34  ;;  %v5276_v18 = vmul.f32 %v5269_v3, %v12713_v2 }
 0x8d0   :  { %v5332_v21 = vsel %vm1234_vm2, %v5288_v60, 0.0  ;;  %v5280_v16 = vmul.f32 %v5269_v3, %v12751_v62  ;;  %v5277_v63 = vmul.f32 %v5269_v3, %v12721_v27  ;;  %v5279_v34 = vmul.f32 %v5269_v3, %v12735_v10  ;;  %v5495_v27 = vld [vmem:[%s13033_s18] sm:$0x1] }
 0x8d1   :  { %v5293_v1 = vsel %vm1234_vm2, %v5275_v28, 0.0  ;;  %v5290_v7 = vsel %vm1234_vm2, %v5274_v37, 0.0  ;;  %v5302_v36 = vsel %vm1234_vm2, %v5278_v54, 0.0  ;;  %v5296_v52 = vsel %vm1234_vm2, %v5276_v18, 0.0  ;;  %v5826_v62 = vld [vmem:[%s13034_s19] ss:$0 sm:$0xff] }
 0x8d2   :  { %5324 = vadd.xlane.f32.xlu0 %v5323_v45  ;;  %5321 = vadd.xlane.f32.xlu1 %v5320_v57  ;;  %v5308_v23 = vsel %vm1234_vm2, %v5280_v16, 0.0  ;;  %v5299_v30 = vsel %vm1234_vm2, %v5277_v63, 0.0  ;;  %v5305_v2 = vsel %vm1234_vm2, %v5279_v34, 0.0  ;;  %v5281_v48 = vmul.f32 %v5269_v3, %v12759_v24 }
 0x8d4   :  { %v5311_v46 = vsel %vm1234_vm2, %v5281_v48, 0.0 }
 0x8d6   :  { %5330 = vadd.xlane.f32.xlu0 %v5329_v25  ;;  %5327 = vadd.xlane.f32.xlu1 %v5326_v5 }
 0x8da   :  { %5336 = vadd.xlane.f32.xlu0 %v5335_v44  ;;  %5333 = vadd.xlane.f32.xlu1 %v5332_v21 }
 0x8de   :  { %5294 = vadd.xlane.f32.xlu1 %v5293_v1  ;;  %5291 = vadd.xlane.f32.xlu0 %v5290_v7 }
 0x8e2   :  { %5303 = vadd.xlane.f32.xlu1 %v5302_v36  ;;  %5297 = vadd.xlane.f32.xlu0 %v5296_v52 }
 0x8e6   :  { %5309 = vadd.xlane.f32.xlu1 %v5308_v23  ;;  %5300 = vadd.xlane.f32.xlu0 %v5299_v30 }
 0x8ea   :  { %5306 = vadd.xlane.f32.xlu0 %v5305_v2 }
 0x8ee   :  { %5312 = vadd.xlane.f32.xlu0 %v5311_v46 }
 0x915   :  { %v5499_v50 = vpop.permute.xlu1 %5498 }
 0x916   :  { %v5506_v10 = vmul.f32 %v5499_v50, %v5495_v27 }
 0x918   :  { %v5517_v8 = vadd.f32 %v5826_v62, %v5506_v10 }
 0x91a   :  { %v5519_v40 = vsub.f32 0.0, %v5517_v8 }
 0x91b   :  { %v5504_v13 = vpop.permute.xlu0 %5503 }
 0x91c   :  { %v5507_v35 = vmul.f32 %v5504_v13, %v5495_v27  ;;  %v5521_v14 = vmul.f32 1.442695, %v5519_v40  ;;  %v5052_v40 = vpop.permute.xlu1 %5051 }
 0x91e   :  { %v5518_v31 = vadd.f32 %v5826_v62, %v5507_v35 }
 0x920   :  { %v5520_v24 = vsub.f32 0.0, %v5518_v31  ;;  %v5059_v31 = vpop.permute.xlu1 %5058 }
 0x922   :  { %v5523_v47 = vmul.f32 1.442695, %v5520_v24  ;;  %v5045_v24 = vld [vmem:[%s13027_s12] sm:$0x3]  ;;  %s12887_s12 = sld [smem:[#allocation3]] }
 0x924   :  { %7210 = vpow2.f32 %v5523_v47 }
 0x925   :  { %7212 = vpow2.f32 %v5521_v14  ;;  %v5061_v14 = vmul.f32 %v5059_v31, %v5045_v24 }
 0x927   :  { %v5070_v47 = vsel %vm5062_vm15, %v5061_v14, 0.0 }
 0x92e   :  { %v7211_v45 = vpop.eup %7210 }
 0x92f   :  { %v7213_v57 = vpop.eup %7212  ;;  %v5526_v29 = vadd.f32 1.0, %v7211_v45  ;;  %v5060_v45 = vmul.f32 %v5052_v40, %v5045_v24 }
 0x930   :  { %v5525_v61 = vadd.f32 1.0, %v7213_v57 }
 0x931   :  { %7214 = vrcp.f32 %v5526_v29  ;;  %v5063_v57 = vsel %vm5062_vm15, %v5060_v45, 0.0 }
 0x932   :  { %7216 = vrcp.f32 %v5525_v61  ;;  %v5064_v61 = vrot.slane %v5063_v57, 4 }
 0x93b   :  { %v7215_v3 = vpop.eup %7214 }
 0x93c   :  { %v5538_v25 = vrot.slane %v7215_v3, %v12790_v32  ;;  %v7217_v60 = vpop.eup %7216 }
 0x93d   :  { %v5534_v1 = vrot.slane %v7217_v60, %v12790_v32 }
 0x93e   :  { %v5547_v5 = vmul.f32 %v5538_v25, %v12601_v41  ;;  %v5548_v53 = vmul.f32 %v5538_v25, %v12616_v15  ;;  %v5549_v28 = vmul.f32 %v5538_v25, %v12606_v20  ;;  %v5550_v37 = vmul.f32 %v5538_v25, %v12621_v6 }
 0x93f   :  { %v5551_v18 = vmul.f32 %v5538_v25, %v12633_v49  ;;  %v5552_v36 = vmul.f32 %v5538_v25, %v12645_v17  ;;  %v5540_v63 = vmul.f32 %v5534_v1, %v12616_v15  ;;  %v5539_v23 = vmul.f32 %v5534_v1, %v12601_v41 }
 0x940   :  { %v5579_v44 = vsel %vm1234_vm2, %v5547_v5, 0.0  ;;  %v5582_v21 = vsel %vm1234_vm2, %v5548_v53, 0.0  ;;  %v5585_v7 = vsel %vm1234_vm2, %v5549_v28, 0.0  ;;  %v5588_v54 = vsel %vm1234_vm2, %v5550_v37, 0.0 }
 0x941   :  { %5580 = vadd.xlane.f32.xlu1 %v5579_v44  ;;  %5583 = vadd.xlane.f32.xlu0 %v5582_v21  ;;  %v5591_v52 = vsel %vm1234_vm2, %v5551_v18, 0.0  ;;  %v5594_v16 = vsel %vm1234_vm2, %v5552_v36, 0.0  ;;  %v5558_v30 = vsel %vm1234_vm2, %v5540_v63, 0.0  ;;  %v5555_v34 = vsel %vm1234_vm2, %v5539_v23, 0.0  ;;  %v5821_v21 = vld [vmem:[%s13028_s13] ss:$0 sm:$0xff] }
 0x942   :  { %v5542_v2 = vmul.f32 %v5534_v1, %v12621_v6  ;;  %v5541_v48 = vmul.f32 %v5534_v1, %v12606_v20  ;;  %v5544_v15 = vmul.f32 %v5534_v1, %v12645_v17  ;;  %v5543_v41 = vmul.f32 %v5534_v1, %v12633_v49  ;;  %s5827_s13 = sld [smem:[#allocation3 + $0x1]] }
 0x943   :  { %v5546_v6 = vmul.f32 %v5534_v1, %v12626_v51  ;;  %v5545_v20 = vmul.f32 %v5534_v1, %v12611_v9  ;;  %v5554_v17 = vmul.f32 %v5538_v25, %v12626_v51  ;;  %v5553_v49 = vmul.f32 %v5538_v25, %v12611_v9 }
 0x944   :  { %v5564_v46 = vsel %vm1234_vm2, %v5542_v2, 0.0  ;;  %v5561_v27 = vsel %vm1234_vm2, %v5541_v48, 0.0  ;;  %v5570_v62 = vsel %vm1234_vm2, %v5544_v15, 0.0  ;;  %v5567_v50 = vsel %vm1234_vm2, %v5543_v41, 0.0 }
 0x945   :  { %5586 = vadd.xlane.f32.xlu1 %v5585_v7  ;;  %5589 = vadd.xlane.f32.xlu0 %v5588_v54  ;;  %v5576_v10 = vsel %vm1234_vm2, %v5546_v6, 0.0  ;;  %v5573_v8 = vsel %vm1234_vm2, %v5545_v20, 0.0  ;;  %v5600_v13 = vsel %vm1234_vm2, %v5554_v17, 0.0  ;;  %v5597_v35 = vsel %vm1234_vm2, %v5553_v49, 0.0 }
 0x946   :  { %v5071_v51 = vrot.slane %v5070_v47, 4  ;;  %v5065_v25 = vadd.f32 %v5064_v61, %v5063_v57 }
 0x948   :  { %v5072_v9 = vadd.f32 %v5071_v51, %v5070_v47  ;;  %v5066_v53 = vrot.slane %v5065_v25, 2  ;;  %v12902_v51 = vstv %s5828_s28 }
 0x949   :  { %5592 = vadd.xlane.f32.xlu1 %v5591_v52  ;;  %5595 = vadd.xlane.f32.xlu0 %v5594_v16 }
 0x94a   :  { %v5073_v29 = vrot.slane %v5072_v9, 2  ;;  %v5067_v28 = vadd.f32 %v5066_v53, %v5065_v25 }
 0x94c   :  { %v5074_v3 = vadd.f32 %v5073_v29, %v5072_v9  ;;  %v5068_v7 = vrot.slane %v5067_v28, 1 }
 0x94d   :  { %5559 = vadd.xlane.f32.xlu0 %v5558_v30  ;;  %5556 = vadd.xlane.f32.xlu1 %v5555_v34 }
 0x94e   :  { %v5075_v5 = vrot.slane %v5074_v3, 1  ;;  %v5069_v18 = vadd.f32 %v5068_v7, %v5067_v28 }
 0x950   :  { %v5076_v44 = vadd.f32 %v5075_v5, %v5074_v3  ;;  %v5084_v63 = vadd.f32 %v5821_v21, %v5069_v18 }
 0x951   :  { %5565 = vadd.xlane.f32.xlu0 %v5564_v46  ;;  %5562 = vadd.xlane.f32.xlu1 %v5561_v27 }
 0x952   :  { %v5085_v37 = vadd.f32 %v5821_v21, %v5076_v44  ;;  %v5086_v34 = vsub.f32 0.0, %v5084_v63 }
 0x954   :  { %v5087_v54 = vsub.f32 0.0, %v5085_v37  ;;  %v5088_v2 = vmul.f32 1.442695, %v5086_v34 }
 0x955   :  { %5571 = vadd.xlane.f32.xlu0 %v5570_v62  ;;  %5568 = vadd.xlane.f32.xlu1 %v5567_v50 }
 0x956   :  { %v5090_v16 = vmul.f32 1.442695, %v5087_v54 }
 0x958   :  { %7218 = vpow2.f32 %v5090_v16 }
 0x959   :  { %5577 = vadd.xlane.f32.xlu0 %v5576_v10  ;;  %5574 = vadd.xlane.f32.xlu1 %v5573_v8  ;;  %7220 = vpow2.f32 %v5088_v2  ;;  %v14389_v2 = vld [vmem:[#allocation49_spill] sm:$0xff] }
 0x95b   :  { %v5319_v60 = vpop.xlane.xlu0 %5318  ;;  %v5316_v36 = vpop.xlane.xlu1 %5315 }
 0x95d   :  { %5601 = vadd.xlane.f32.xlu0 %v5600_v13  ;;  %5598 = vadd.xlane.f32.xlu1 %v5597_v35  ;;  %v5606_v13 = vstv %s12887_s12  ;;  %v12894_v35 = vstv %s5827_s13 }
 0x95e   :  { %v5619_v14 = vmul.f32 %v12894_v35, %v5319_v60  ;;  %v5618_v47 = vmul.f32 %v12894_v35, %v5316_v36 }
 0x95f   :  { %v5325_v1 = vpop.xlane.xlu0 %5324  ;;  %v5322_v23 = vpop.xlane.xlu1 %5321 }
 0x960   :  { %v5621_v9 = vmul.f32 %v12894_v35, %v5325_v1  ;;  %v5620_v57 = vmul.f32 %v12894_v35, %v5322_v23 }
 0x962   :  { %v7219_v27 = vpop.eup %7218 }
 0x963   :  { %v5331_v52 = vpop.xlane.xlu0 %5330  ;;  %v5328_v48 = vpop.xlane.xlu1 %5327  ;;  %v5093_v15 = vadd.f32 1.0, %v7219_v27 }
 0x964   :  { %v7221_v20 = vpop.eup %7220  ;;  %v5623_v1 = vmul.f32 %v12894_v35, %v5331_v52  ;;  %v5622_v7 = vmul.f32 %v12894_v35, %v5328_v48 }
 0x965   :  { %7222 = vrcp.f32 %v5093_v15  ;;  %v5092_v10 = vadd.f32 1.0, %v7221_v20  ;;  %v14390_v15 = vld [vmem:[#allocation109_spill] sm:$0xff] }
 0x967   :  { %v12879_v30 = vpop.xlane.xlu0 %5336  ;;  %v12881_v41 = vpop.xlane.xlu1 %5333  ;;  %7224 = vrcp.f32 %v5092_v10 }
 0x96b   :  { %v5292_v46 = vpop.xlane.xlu0 %5291  ;;  %v5295_v50 = vpop.xlane.xlu1 %5294 }
 0x96f   :  { %v12883_v62 = vpop.xlane.xlu0 %5297  ;;  %v12889_v8 = vpop.xlane.xlu1 %5303 }
 0x970   :  { %v7223_v49 = vpop.eup %7222 }
 0x971   :  { %v5608_v40 = vmul.f32 %v7223_v49, %v5606_v13  ;;  %v7225_v60 = vpop.eup %7224 }
 0x972   :  { %v5607_v34 = vmul.f32 %v7225_v60, %v5606_v13 }
 0x973   :  { %v12885_v6 = vpop.xlane.xlu0 %5300  ;;  %v12896_v31 = vpop.xlane.xlu1 %5309  ;;  %v12905_v45 = vrot.slane %v5608_v40, %v12790_v32  ;;  %v5610_v40 = vmul.f32 %v12894_v35, %v5292_v46 }
 0x975   :  { %v5643_v3 = vadd.f32 %v12905_v45, %v5619_v14  ;;  %v5642_v25 = vadd.f32 %v12905_v45, %v5618_v47  ;;  %v5645_v28 = vadd.f32 %v12905_v45, %v5621_v9  ;;  %v5644_v37 = vadd.f32 %v12905_v45, %v5620_v57 }
 0x976   :  { %v5647_v52 = vadd.f32 %v12905_v45, %v5623_v1  ;;  %v5646_v48 = vadd.f32 %v12905_v45, %v5622_v7  ;;  %v14393_v7 = vld [vmem:[#allocation140_spill] sm:$0xff] }
 0x977   :  { %v12891_v17 = vpop.xlane.xlu0 %5306 }
 0x97b   :  { %v12898_v24 = vpop.xlane.xlu0 %5312 }
 0x9ce   :  { %v5584_v29 = vpop.xlane.xlu0 %5583  ;;  %v5581_v61 = vpop.xlane.xlu1 %5580 }
 0x9cf   :  { %v5660_v5 = vmul.f32 %v12902_v51, %v5584_v29  ;;  %v5659_v53 = vmul.f32 %v12902_v51, %v5581_v61  ;;  %v5629_v29 = vrot.slane %v5607_v34, %v12790_v32  ;;  %v14391_v61 = vld [vmem:[#allocation135_spill] sm:$0xff] }
 0x9d1   :  { %v5676_v44 = vadd.f32 %v5660_v5, %v5643_v3  ;;  %v5675_v21 = vadd.f32 %v5659_v53, %v5642_v25  ;;  %v14392_v3 = vld [vmem:[#allocation46_spill] sm:$0xff]  ;;  %v5634_v53 = vadd.f32 %v5629_v29, %v5610_v40 }
 0x9d2   :  { %v5590_v54 = vpop.xlane.xlu0 %5589  ;;  %v5587_v18 = vpop.xlane.xlu1 %5586 }
 0x9d3   :  { %v5692_v36 = vmul.f32 %v5676_v44, %v12510_v11  ;;  %v5691_v16 = vmul.f32 %v5675_v21, %v12506_v0  ;;  %v5662_v63 = vmul.f32 %v12902_v51, %v5590_v54  ;;  %v5661_v23 = vmul.f32 %v12902_v51, %v5587_v18 }
 0x9d4   :  { %v5611_v11 = vmul.f32 %v12894_v35, %v5295_v50  ;;  %v5612_v44 = vmul.f32 %v12894_v35, %v12883_v62  ;;  %v14394_v62 = vld [vmem:[#allocation112_spill] sm:$0xff] }
 0x9d5   :  { %v5708_v27 = vadd.f32 %v5692_v36, %v14389_v2  ;;  %v5707_v20 = vadd.f32 %v5691_v16, %v14390_v15  ;;  %v5678_v10 = vadd.f32 %v5662_v63, %v5645_v28  ;;  %v5677_v49 = vadd.f32 %v5661_v23, %v5644_v37 }
 0x9d6   :  { %v5596_v0 = vpop.xlane.xlu0 %5595  ;;  %v5593_v14 = vpop.xlane.xlu1 %5592  ;;  %v5635_v60 = vadd.f32 %v5629_v29, %v5611_v11  ;;  %v5636_v16 = vadd.f32 %v5629_v29, %v5612_v44  ;;  %v5614_v63 = vmul.f32 %v12894_v35, %v12889_v8  ;;  %v5616_v11 = vmul.f32 %v12894_v35, %v12896_v31 }
 0x9d7   :  { %5724 = vst.msk [vmem:[#allocation6 + $0x48] sm:$0xff] %vm1251_vm3, %v5708_v27  ;;  %5723 = vst.msk [vmem:[#allocation6 + $0x40] sm:$0xff] %vm1251_vm3, %v5707_v20  ;;  %v5694_v13 = vmul.f32 %v5678_v10, %v12520_v4  ;;  %v5693_v47 = vmul.f32 %v5677_v49, %v12514_v56  ;;  %v5664_v9 = vmul.f32 %v12902_v51, %v5596_v0  ;;  %v14395_v10 = vld [vmem:[#allocation42_spill] sm:$0xff] }
 0x9d8   :  { %v5663_v57 = vmul.f32 %v12902_v51, %v5593_v14  ;;  %v5613_v56 = vmul.f32 %v12894_v35, %v12885_v6  ;;  %v14396_v49 = vld [vmem:[#allocation130_spill] sm:$0xff]  ;;  %v5638_v40 = vadd.f32 %v5629_v29, %v5614_v63 }
 0x9d9   :  { %v5710_v46 = vadd.f32 %v5694_v13, %v14391_v61  ;;  %v5709_v50 = vadd.f32 %v5693_v47, %v14392_v3  ;;  %v5680_v25 = vadd.f32 %v5664_v9, %v5647_v52  ;;  %v14397_v61 = vld [vmem:[#allocation110_spill] sm:$0xff] }
 0x9da   :  { %v5679_v5 = vadd.f32 %v5663_v57, %v5646_v48  ;;  %v5560_v4 = vpop.xlane.xlu0 %5559  ;;  %v5557_v21 = vpop.xlane.xlu1 %5556  ;;  %v5637_v23 = vadd.f32 %v5629_v29, %v5613_v56 }
 0x9db   :  { %5726 = vst.msk [vmem:[#allocation6 + $0x58] sm:$0xff] %vm1251_vm3, %v5710_v46  ;;  %5725 = vst.msk [vmem:[#allocation6 + $0x50] sm:$0xff] %vm1251_vm3, %v5709_v50  ;;  %v5696_v32 = vmul.f32 %v5680_v25, %v12550_v22  ;;  %v5652_v37 = vmul.f32 %v12902_v51, %v5560_v4  ;;  %v5651_v1 = vmul.f32 %v12902_v51, %v5557_v21  ;;  %v14398_v46 = vld [vmem:[#allocation44_spill] sm:$0xff] }
 0x9dc   :  { %v5695_v28 = vmul.f32 %v5679_v5, %v12546_v42  ;;  %v5615_v22 = vmul.f32 %v12894_v35, %v12891_v17  ;;  %v5625_v25 = vmul.f32 %v12894_v35, %v12879_v30  ;;  %v5624_v5 = vmul.f32 %v12894_v35, %v12881_v41  ;;  %v14399_v30 = vld [vmem:[#allocation53_spill] sm:$0xff] }
 0x9dd   :  { %v5712_v54 = vadd.f32 %v5696_v32, %v14393_v7  ;;  %v5668_v36 = vadd.f32 %v5652_v37, %v5635_v60  ;;  %v5667_v6 = vadd.f32 %v5651_v1, %v5634_v53  ;;  %v5640_v53 = vadd.f32 %v5629_v29, %v5616_v11 }
 0x9de   :  { %v5711_v18 = vadd.f32 %v5695_v28, %v14394_v62  ;;  %v5566_v34 = vpop.xlane.xlu0 %5565  ;;  %v5563_v42 = vpop.xlane.xlu1 %5562  ;;  %v5639_v0 = vadd.f32 %v5629_v29, %v5615_v22  ;;  %v14400_v28 = vld [vmem:[#allocation115_spill] sm:$0xff]  ;;  %v5649_v37 = vadd.f32 %v12905_v45, %v5625_v25  ;;  %v5648_v1 = vadd.f32 %v12905_v45, %v5624_v5  ;;  %v14403_v22 = vld [vmem:[#allocation157_spill] sm:$0xff] }
 0x9df   :  { %5728 = vst.msk [vmem:[#allocation6 + $0x68] sm:$0xff] %vm1251_vm3, %v5712_v54  ;;  %v5684_v2 = vmul.f32 %v5668_v36, %v12524_v55  ;;  %v5683_v27 = vmul.f32 %v5667_v6, %v12518_v58  ;;  %v5654_v15 = vmul.f32 %v12902_v51, %v5566_v34  ;;  %v5653_v20 = vmul.f32 %v12902_v51, %v5563_v42  ;;  %v14401_v36 = vld [vmem:[#allocation111_spill] sm:$0xff]  ;;  %v14404_v42 = vld [vmem:[#allocation144_spill] sm:$0xff] }
 0x9e0   :  { %5727 = vst.msk [vmem:[#allocation6 + $0x60] sm:$0xff] %vm1251_vm3, %v5711_v18  ;;  %v5617_v55 = vmul.f32 %v12894_v35, %v12898_v24 }
 0x9e1   :  { %v5700_v8 = vadd.f32 %v5684_v2, %v14395_v10  ;;  %v5699_v52 = vadd.f32 %v5683_v27, %v14396_v49  ;;  %v5670_v48 = vadd.f32 %v5654_v15, %v5637_v23  ;;  %v5669_v17 = vadd.f32 %v5653_v20, %v5636_v16  ;;  %v14402_v16 = vld [vmem:[#allocation116_spill] sm:$0xff] }
 0x9e2   :  { %v5572_v14 = vpop.xlane.xlu0 %5571  ;;  %v5569_v58 = vpop.xlane.xlu1 %5568 }
 0x9e3   :  { %5716 = vst.msk [vmem:[#allocation6 + $0x8] sm:$0xff] %vm1251_vm3, %v5700_v8  ;;  %5715 = vst.msk [vmem:[#allocation6] sm:$0xff] %vm1251_vm3, %v5699_v52  ;;  %v5686_v13 = vmul.f32 %v5670_v48, %v12532_v38  ;;  %v5685_v47 = vmul.f32 %v5669_v17, %v12526_v12  ;;  %v5656_v9 = vmul.f32 %v12902_v51, %v5572_v14 }
 0x9e4   :  { %v5655_v57 = vmul.f32 %v12902_v51, %v5569_v58  ;;  %v5641_v38 = vadd.f32 %v5629_v29, %v5617_v55 }
 0x9e5   :  { %v5702_v31 = vadd.f32 %v5686_v13, %v14397_v61  ;;  %v5701_v3 = vadd.f32 %v5685_v47, %v14398_v46  ;;  %v5672_v50 = vadd.f32 %v5656_v9, %v5639_v0 }
 0x9e6   :  { %v5671_v24 = vadd.f32 %v5655_v57, %v5638_v40  ;;  %v5578_v60 = vpop.xlane.xlu0 %5577  ;;  %v5575_v12 = vpop.xlane.xlu1 %5574 }
 0x9e7   :  { %5718 = vst.msk [vmem:[#allocation6 + $0x18] sm:$0xff] %vm1251_vm3, %v5702_v31  ;;  %5717 = vst.msk [vmem:[#allocation6 + $0x10] sm:$0xff] %vm1251_vm3, %v5701_v3  ;;  %v5688_v44 = vmul.f32 %v5672_v50, %v12542_v59  ;;  %v5658_v4 = vmul.f32 %v12902_v51, %v5578_v60  ;;  %v5657_v21 = vmul.f32 %v12902_v51, %v5575_v12 }
 0x9e8   :  { %v5687_v56 = vmul.f32 %v5671_v24, %v12538_v43 }
 0x9e9   :  { %v5704_v32 = vadd.f32 %v5688_v44, %v14399_v30  ;;  %v5674_v35 = vadd.f32 %v5658_v4, %v5641_v38  ;;  %v5673_v29 = vadd.f32 %v5657_v21, %v5640_v53 }
 0x9ea   :  { %v5703_v41 = vadd.f32 %v5687_v56, %v14400_v28  ;;  %v5602_v7 = vpop.xlane.xlu0 %5601  ;;  %v5599_v54 = vpop.xlane.xlu1 %5598 }
 0x9eb   :  { %5720 = vst.msk [vmem:[#allocation6 + $0x28] sm:$0xff] %vm1251_vm3, %v5704_v32  ;;  %v5690_v43 = vmul.f32 %v5674_v35, %v12502_v39  ;;  %v5689_v59 = vmul.f32 %v5673_v29, %v12498_v26  ;;  %v5666_v62 = vmul.f32 %v12902_v51, %v5602_v7  ;;  %v5665_v18 = vmul.f32 %v12902_v51, %v5599_v54 }
 0x9ec   :  { %5719 = vst.msk [vmem:[#allocation6 + $0x20] sm:$0xff] %vm1251_vm3, %v5703_v41 }
 0x9ed   :  { %v5706_v6 = vadd.f32 %v5690_v43, %v14401_v36  ;;  %v5705_v63 = vadd.f32 %v5689_v59, %v14402_v16  ;;  %v5682_v23 = vadd.f32 %v5666_v62, %v5649_v37  ;;  %v5681_v45 = vadd.f32 %v5665_v18, %v5648_v1 }
 0x9ef   :  { %5722 = vst.msk [vmem:[#allocation6 + $0x38] sm:$0xff] %vm1251_vm3, %v5706_v6  ;;  %5721 = vst.msk [vmem:[#allocation6 + $0x30] sm:$0xff] %vm1251_vm3, %v5705_v63  ;;  %v5698_v39 = vmul.f32 %v5682_v23, %v12560_v19  ;;  %v5697_v26 = vmul.f32 %v5681_v45, %v12556_v33 }
 0x9f1   :  { %v5714_v34 = vadd.f32 %v5698_v39, %v14403_v22  ;;  %v5713_v51 = vadd.f32 %v5697_v26, %v14404_v42 }
 0x9f3   :  { %5730 = vst.msk [vmem:[#allocation6 + $0x78] sm:$0xff] %vm1251_vm3, %v5714_v34  ;;  %5729 = vst.msk [vmem:[#allocation6 + $0x70] sm:$0xff] %vm1251_vm3, %v5713_v51 }
 0x9f4   :  { %7273 = shalt.err (!%p7270_p9)
}
 0x9f5   :  { %s7274_s5 = scalar_lea.hbm %s13036_s21, 2048 }
 0x9f6   :  { %p7275_p10 = scmp.ne.s32.totalorder %s13036_s21, %s7274_s5  ;;  %p7278_p11 = scmp.lt.u32.totalorder %s7274_s5, %s13036_s21 }
 0x9f8   :  { %p7280_p12 = pnand %p7278_p11, %p7275_p10 }
 0x9fa   :  { %7283 = shalt.err (!%p7280_p12)
}
 0x9fb   :  { %s7309_s9 = smov 128  }
 0x9fc   :  { %5742 = dma.vmem_to_hbm [thread:$0]  %s5737_s17, 2048, %s13036_s21, [#allocation4], %s7309_s9, %s7309_s9, %s7296_s0  }
 0x9fd   :  { %7286 = dma.done.wait [#allocation4], 2048  }
 0x9fe   :  { %7287 = vsyncadd [#allocation4], 4294965248 }
 0x9ff   :  { %5746 = vsyncpa [#allocation4], 1 }
 0xa00   :  { %5747 = vsyncpa [#allocation5], 1 }

</bundles_post_ra>
